<compile_context>
chip_gen: v7x
topology: tpu7x:2x2x1
jax: 0.10.0
libtpu: 0.0.40
codegen_flags: <defaults>
</compile_context>

<pallas_src>
import functools

import numpy as np
import jax
import jax.numpy as jnp
from jax.experimental import pallas as pl
from jax.experimental.pallas import tpu as pltpu

SQRT_HALF = 0.7071067811865476
SIGMA = 25.0                      # marginal_prob_std parameter (constructor arg in torch)
ACT_DTYPE = jnp.bfloat16          # storage dtype for the big intermediates (h, hs)
_HEAD_CHUNK = 32                  # fc1 hidden processed in chunks of this size


def _round_up(n, m):
  return ((n + m - 1) // m) * m


def _cp(vmem_limit, *sems):
  return pltpu.CompilerParams(dimension_semantics=sems, vmem_limit_bytes=vmem_limit)


def _hw_budget():
  """(vmem_limit_bytes, spatial_tile_cap) tuned per TPU generation."""
  try:
    vmem = int(pltpu.get_tpu_info().vmem_capacity_bytes)
  except Exception:                              # off-device tracing / older jax
    vmem = 64 * 1024 * 1024
  if vmem >= 100 * 1024 * 1024:                  # v5e / v6e: 128 MiB physical VMEM
    return 96 * 1024 * 1024, 16384
  return 44 * 1024 * 1024, 8192                  # v7x: 64 MiB per TensorCore


def _spatial_tile(s3, cap):
  """Lane tile for the flattened spatial axis.

  Prefers the largest multiple-of-128 divisor of s3 (no padding); otherwise falls back
  to cdiv + padding so a single block never covers the whole field."""
  best = 0
  t = 128
  while t <= min(s3, cap):
    if s3 % t == 0:
      best = t
    t += 128
  if best:
    return best, s3
  ts = min(_round_up(s3, 128), cap)
  return ts, _round_up(s3, ts)


# ----------------------------------------------------------------------------------
# elementwise helpers (used INSIDE kernels)
# ----------------------------------------------------------------------------------
def _erf(x):
  # Abramowitz & Stegun 7.1.26, |error| < 1.5e-7 (~f32 precision).
  a1, a2, a3, a4, a5 = 0.254829592, -0.284496736, 1.421413741, -1.453152027, 1.061405429
  p = 0.3275911
  ax = jnp.abs(x)
  t = 1.0 / (1.0 + p * ax)
  poly = ((((a5 * t + a4) * t + a3) * t + a2) * t + a1) * t
  y = 1.0 - poly * jnp.exp(-ax * ax)
  return jnp.where(x >= 0, y, -y)


def _gelu(x):
  # Exact (erf-based) GELU to match torch F.gelu default.
  # TODO(synk): switch to tanh-approx (EUP) only if the head proves VALU-bound.
  return 0.5 * x * (1.0 + _erf(x * SQRT_HALF))


def _cf_matmul(w, x):
  """Channels-first contraction w (Co, Ci) @ x (Ci, S) -> (Co, S).

  MXU dot for Ci >= 8; unrolled VPU FMA loop (lane-dense) for tiny Ci."""
  ci = x.shape[0]
  if ci >= 8:
    return jnp.dot(w, x, preferred_element_type=jnp.float32)
  acc = w[:, 0:1] * x[0:1, :]
  for c in range(1, ci):
    acc = acc + w[:, c:c + 1] * x[c:c + 1, :]
  return acc


# ----------------------------------------------------------------------------------
# fc0: lifting layer with the coordinate-grid contribution fused into the contraction
# ----------------------------------------------------------------------------------
def _fc0_kernel(x_ref, g_ref, wd_ref, wg_ref, b_ref, o_ref):
  x = x_ref[...].astype(jnp.float32)          # (Cd, TS)
  y = _cf_matmul(wd_ref[...], x)              # (W, TS)
  y = y + _cf_matmul(wg_ref[...], g_ref[...])
  o_ref[...] = (y + b_ref[...]).astype(o_ref.dtype)


def make_grid_cf(X, Y, Z, s3_pad):
  """(3, s3_pad) channels-first table of (gx, gy, gz); torch get_grid order."""
  gx = jnp.broadcast_to(jnp.linspace(0.0, 1.0, X, dtype=jnp.float32)[:, None, None], (X, Y, Z))
  gy = jnp.broadcast_to(jnp.linspace(0.0, 1.0, Y, dtype=jnp.float32)[None, :, None], (X, Y, Z))
  gz = jnp.broadcast_to(jnp.linspace(0.0, 1.0, Z, dtype=jnp.float32)[None, None, :], (X, Y, Z))
  g = jnp.stack([gx, gy, gz], axis=0).reshape(3, X * Y * Z)
  if s3_pad != X * Y * Z:
    g = jnp.pad(g, ((0, 0), (0, s3_pad - X * Y * Z)))
  return g


def fc0_with_grid(x5, w, b, ts, s3_pad, vmem_limit):
  """x5: (B, X, Y, Z, Cd) channels-last; w: (W, Cd+3) ordered [data..., gx, gy, gz].

  Returns the lifted field channels-first, (B, W, s3_pad) in ACT_DTYPE."""
  B, X, Y, Z, Cd = x5.shape
  S3 = X * Y * Z
  W = w.shape[0]
  x = jnp.transpose(x5.reshape(B, S3, Cd), (0, 2, 1))        # (B, Cd, S3)
  if s3_pad != S3:
    x = jnp.pad(x, ((0, 0), (0, 0), (0, s3_pad - S3)))
  g = make_grid_cf(X, Y, Z, s3_pad)                           # (3, s3_pad)
  nS = s3_pad // ts
  return pl.pallas_call(
      _fc0_kernel,
      out_shape=jax.ShapeDtypeStruct((B, W, s3_pad), ACT_DTYPE),
      grid=(nS, B),
      in_specs=[
          pl.BlockSpec((None, Cd, ts), lambda i, b_: (b_, 0, i)),
          pl.BlockSpec((3, ts), lambda i, b_: (0, i)),
          pl.BlockSpec((W, Cd), lambda i, b_: (0, 0)),
          pl.BlockSpec((W, 3), lambda i, b_: (0, 0)),
          pl.BlockSpec((W, 1), lambda i, b_: (0, 0)),
      ],
      out_specs=pl.BlockSpec((None, W, ts), lambda i, b_: (b_, 0, i)),
      compiler_params=_cp(vmem_limit, "parallel", "parallel"),
  )(x, g, w[:, :Cd], w[:, Cd:], b.reshape(W, 1))


# ----------------------------------------------------------------------------------
# spectral mode mixing: corners folded into one lane-dense mode axis, VPU FMA loop
# ----------------------------------------------------------------------------------
def _mode_mix_kernel(xr_ref, xi_ref, wr_ref, wi_ref, or_ref, oi_ref):
  xr = xr_ref[...]                   # (B, Ci, KT) f32
  xi = xi_ref[...]
  wr = wr_ref[...]                   # (Ci, Co, KT) f32
  wi = wi_ref[...]
  Bn, Ci, KT = xr.shape
  Co = wr.shape[1]
  acc_r = jnp.zeros((Bn, Co, KT), jnp.float32)
  acc_i = jnp.zeros((Bn, Co, KT), jnp.float32)
  for ci in range(Ci):               # tiny static channel count -> unrolled VPU FMAs
    xr_c = xr[:, ci:ci + 1, :]       # (B, 1, KT)
    xi_c = xi[:, ci:ci + 1, :]
    wr_c = wr[ci][None]              # (1, Co, KT)
    wi_c = wi[ci][None]
    acc_r = acc_r + xr_c * wr_c - xi_c * wi_c
    acc_i = acc_i + xr_c * wi_c + xi_c * wr_c
  or_ref[...] = acc_r
  oi_ref[...] = acc_i


def spectral_conv3d(h, wr, wi, modes, spatial, s3_pad, vmem_limit):
  """h: (B, C, s3_pad) channels-first activations (ACT_DTYPE);
  wr/wi: (Ci, Co, K_pad) real/imag weights with the corner axis folded into the padded
  mode axis.  Returns (B, Co, s3_pad) float32."""
  m1, m2, m3 = modes
  X, Y, Z = spatial
  S3 = X * Y * Z
  B, Ci, _ = h.shape
  Co = wr.shape[1]
  Zr = Z // 2 + 1
  M = m1 * m2 * m3
  K = 4 * M
  K_pad = wr.shape[-1]
  KT = 128
  for cand in (512, 384, 256, 128):
    if K_pad % cand == 0:
      KT = cand
      break

  # TODO(synk): 3D rFFT / irFFT have no Pallas equivalent; kept in XLA.
  x5 = h[:, :, :S3].astype(jnp.float32).reshape(B, Ci, X, Y, Z)
  x_ft = jnp.fft.rfftn(x5, axes=(2, 3, 4))                      # (B, Ci, X, Y, Zr) c64

  sx_lo, sx_hi = slice(0, m1), slice(X - m1, X)
  sy_lo, sy_hi = slice(0, m2), slice(Y - m2, Y)
  corners = jnp.stack([x_ft[:, :, sx_lo, sy_lo, :m3],
                       x_ft[:, :, sx_hi, sy_lo, :m3],
                       x_ft[:, :, sx_lo, sy_hi, :m3],
                       x_ft[:, :, sx_hi, sy_hi, :m3]], axis=2)  # (B, Ci, 4, m1, m2, m3)
  xc = corners.reshape(B, Ci, K)
  xc = jnp.pad(xc, ((0, 0), (0, 0), (0, K_pad - K)))
  xr = jnp.real(xc).astype(jnp.float32)
  xi = jnp.imag(xc).astype(jnp.float32)

  x_spec = pl.BlockSpec((B, Ci, KT), lambda k: (0, 0, k))
  w_spec = pl.BlockSpec((Ci, Co, KT), lambda k: (0, 0, k))
  o_spec = pl.BlockSpec((B, Co, KT), lambda k: (0, 0, k))
  out_r, out_i = pl.pallas_call(
      _mode_mix_kernel,
      out_shape=(jax.ShapeDtypeStruct((B, Co, K_pad), jnp.float32),
                 jax.ShapeDtypeStruct((B, Co, K_pad), jnp.float32)),
      grid=(K_pad // KT,),
      in_specs=[x_spec, x_spec, w_spec, w_spec],
      out_specs=(o_spec, o_spec),
      compiler_params=_cp(vmem_limit, "parallel"),
  )(xr, xi, wr, wi)

  oc = (out_r + 1j * out_i).astype(jnp.complex64)[:, :, :K]
  oc = oc.reshape(B, Co, 4, m1, m2, m3)
  out_ft = jnp.zeros((B, Co, X, Y, Zr), dtype=jnp.complex64)
  out_ft = out_ft.at[:, :, sx_lo, sy_lo, :m3].set(oc[:, :, 0])
  out_ft = out_ft.at[:, :, sx_hi, sy_lo, :m3].set(oc[:, :, 1])
  out_ft = out_ft.at[:, :, sx_lo, sy_hi, :m3].set(oc[:, :, 2])
  out_ft = out_ft.at[:, :, sx_hi, sy_hi, :m3].set(oc[:, :, 3])
  spec = jnp.fft.irfftn(out_ft, s=(X, Y, Z), axes=(2, 3, 4)).reshape(B, Co, S3)
  if s3_pad != S3:
    spec = jnp.pad(spec, ((0, 0), (0, 0), (0, s3_pad - S3)))
  return spec


# ----------------------------------------------------------------------------------
# FNO block epilogue: act( w_pointwise @ x + b + spectral_out + t_embed )   (fused)
# ----------------------------------------------------------------------------------
def _block_epilogue_kernel(x_ref, spec_ref, t_ref, w_ref, b_ref, o_ref, *, act):
  x = x_ref[...].astype(jnp.float32)                     # (W, TS)
  y = _cf_matmul(w_ref[...], x)                          # 1x1x1 conv (MXU)
  y = y + spec_ref[...] + t_ref[...] + b_ref[...]
  if act == "gelu":
    y = _gelu(y)
  o_ref[...] = y.astype(o_ref.dtype)


def fno_block_epilogue(h, spec, t_emb, w, b, act, ts, vmem_limit):
  """h: (B, W, s3_pad) ACT_DTYPE;  spec: (B, W, s3_pad) f32;  t_emb: (B, W) f32."""
  B, W, s3_pad = h.shape
  nS = s3_pad // ts
  return pl.pallas_call(
      functools.partial(_block_epilogue_kernel, act=act),
      out_shape=jax.ShapeDtypeStruct((B, W, s3_pad), ACT_DTYPE),
      grid=(nS, B),
      in_specs=[
          pl.BlockSpec((None, W, ts), lambda i, b_: (b_, 0, i)),
          pl.BlockSpec((None, W, ts), lambda i, b_: (b_, 0, i)),
          pl.BlockSpec((None, W, 1), lambda i, b_: (b_, 0, 0)),
          pl.BlockSpec((W, W), lambda i, b_: (0, 0)),
          pl.BlockSpec((W, 1), lambda i, b_: (0, 0)),
      ],
      out_specs=pl.BlockSpec((None, W, ts), lambda i, b_: (b_, 0, i)),
      compiler_params=_cp(vmem_limit, "parallel", "parallel"),
  )(h, spec, t_emb.reshape(B, W, 1), w, b.reshape(W, 1))


# ----------------------------------------------------------------------------------
# head: (h + h_sparse) -> fc1 -> GELU -> fc2 -> / marginal_prob_std(t)   (fused)
# hidden dim chunked so the (128, TS) f32 intermediate never materializes; lane-dense out
# ----------------------------------------------------------------------------------
def _head_kernel(h_ref, hs_ref, w1_ref, b1_ref, w2_ref, b2_ref, inv_ref, o_ref):
  x = h_ref[...].astype(jnp.float32) + hs_ref[...].astype(jnp.float32)   # (W, TS)
  w1 = w1_ref[...]                       # (H, W)
  b1 = b1_ref[...]                       # (H, 1)
  w2 = w2_ref[...]                       # (H, 1)
  H = w1.shape[0]
  ts = x.shape[1]
  acc = jnp.zeros((1, ts), jnp.float32)
  for h0 in range(0, H, _HEAD_CHUNK):
    h1 = min(h0 + _HEAD_CHUNK, H)
    y1 = _cf_matmul(w1[h0:h1], x) + b1[h0:h1]          # (hc, TS)
    y1 = _gelu(y1)
    # fc2 contraction as VPU multiply + sublane reduce (avoids an M=1 matmul)
    acc = acc + jnp.sum(w2[h0:h1] * y1, axis=0, keepdims=True)
  o_ref[...] = (acc + b2_ref[...]) * inv_ref[...]


def head(h, hs, w1, b1, w2, b2, inv_std, ts, vmem_limit):
  B, W, s3_pad = h.shape
  H = w1.shape[0]
  nS = s3_pad // ts
  return pl.pallas_call(
      _head_kernel,
      out_shape=jax.ShapeDtypeStruct((B, 1, s3_pad), jnp.float32),
      grid=(nS, B),
      in_specs=[
          pl.BlockSpec((None, W, ts), lambda i, b_: (b_, 0, i)),
          pl.BlockSpec((None, W, ts), lambda i, b_: (b_, 0, i)),
          pl.BlockSpec((H, W), lambda i, b_: (0, 0)),
          pl.BlockSpec((H, 1), lambda i, b_: (0, 0)),
          pl.BlockSpec((H, 1), lambda i, b_: (0, 0)),
          pl.BlockSpec((1, 1), lambda i, b_: (0, 0)),
          pl.BlockSpec((None, 1, 1), lambda i, b_: (b_, 0, 0)),
      ],
      out_specs=pl.BlockSpec((None, 1, ts), lambda i, b_: (b_, 0, i)),
      compiler_params=_cp(vmem_limit, "parallel", "parallel"),
  )(h, hs, w1, b1.reshape(H, 1), w2.reshape(H, 1), b2.reshape(1, 1),
    inv_std.reshape(B, 1, 1))


# ----------------------------------------------------------------------------------
# full forward pass
# ----------------------------------------------------------------------------------
def marginal_prob_std(t):
  return jnp.sqrt((SIGMA ** (2.0 * t) - 1.0) / (2.0 * np.log(SIGMA)))


def fno3d_forward(params, t, x, x_sparse, *, modes):
  B, X, Y, Z, _ = x.shape
  # dense + sparse fields are summed before the head -> shapes must match exactly
  assert x_sparse.shape[:4] == (B, X, Y, Z), (x.shape, x_sparse.shape)
  S3 = X * Y * Z
  W = params["fc0_w"].shape[0]
  vmem_limit, cap = _hw_budget()
  ts, s3_pad = _spatial_tile(S3, cap)
  spatial = (X, Y, Z)

  # lifting layers (coordinate grid fused into the contraction, channels-first output)
  h = fc0_with_grid(x, params["fc0_w"], params["fc0_b"], ts, s3_pad, vmem_limit)
  hs = fc0_with_grid(x_sparse, params["fc0s_w"], params["fc0s_b"], ts, s3_pad, vmem_limit)

  # time embedding: tiny MLP kept in plain jnp (no pallas_call launch overhead)
  proj = t[:, None] * params["gfp_W"][None, :] * (2.0 * np.pi)
  emb0 = jnp.concatenate([jnp.sin(proj), jnp.cos(proj)], axis=-1)
  emb = jax.nn.silu(emb0 @ params["embed_w"] + params["embed_b"])
  t_emb = (emb @ params["dt_w"] + params["dt_b"]).astype(jnp.float32)     # (B, W)
  # sparse branch has no time conditioning in the torch forward -> zero embedding
  zero_emb = jnp.zeros((B, W), jnp.float32)

  def block(h_, spec_w, pw_w, pw_b, temb, act):
    spec = spectral_conv3d(h_, spec_w[0], spec_w[1], modes, spatial, s3_pad, vmem_limit)
    return fno_block_epilogue(h_, spec, temb, pw_w, pw_b, act, ts, vmem_limit)

  h = block(h, params["conv0"], params["w0_w"], params["w0_b"], t_emb, "gelu")
  h = block(h, params["conv1"], params["w1_w"], params["w1_b"], t_emb, "none")
  hs = block(hs, params["conv0s"], params["w0s_w"], params["w0s_b"], zero_emb, "gelu")
  hs = block(hs, params["conv1s"], params["w1s_w"], params["w1s_b"], zero_emb, "none")

  # fused projection head: (h + hs) -> fc1 -> gelu -> fc2 -> / std(t)
  inv_std = (1.0 / marginal_prob_std(t)).astype(jnp.float32)
  score = head(h, hs, params["fc1_w"], params["fc1_b"],
               params["fc2_w"], params["fc2_b"], inv_std, ts, vmem_limit)  # (B, 1, s3_pad)
  return score[:, 0, :S3].reshape(B, X, Y, Z, 1)


# ----------------------------------------------------------------------------------
# deterministic parameter init (synthetic; shapes follow the torch __init__;
# spectral weights stored with the corner axis folded into a lane-dense padded mode axis)
# ----------------------------------------------------------------------------------
def init_params(key, width, modes, embed_dim):
  m1, m2, m3 = modes
  M = m1 * m2 * m3
  K_pad = _round_up(4 * M, 128)
  counter = [0]

  def nk():
    counter[0] += 1
    return jax.random.fold_in(key, counter[0])

  def nrm(shape, scale=0.05):
    return (scale * jax.random.normal(nk(), shape)).astype(jnp.float32)

  def spec_weights(ci, co):
    scale = 1.0 / (ci * co)

    def one():
      w = scale * jax.random.uniform(nk(), (ci, co, 4, m1, m2, m3), dtype=jnp.float32)
      w = w.reshape(ci, co, 4 * M)
      return jnp.pad(w, ((0, 0), (0, 0), (0, K_pad - 4 * M)))

    return (one(), one())

  W, E = width, embed_dim
  return {
      # fc0 weights stored (out, in): data channels first, grid coords (gx, gy, gz) last
      "fc0_w": nrm((W, 13)), "fc0_b": nrm((W,), 0.01),
      "fc0s_w": nrm((W, 4)), "fc0s_b": nrm((W,), 0.01),
      "gfp_W": (30.0 * jax.random.normal(nk(), (E // 2,))).astype(jnp.float32),
      "embed_w": nrm((E, E)), "embed_b": nrm((E,), 0.01),
      "dt_w": nrm((E, W)), "dt_b": nrm((W,), 0.01),
      # 1x1x1 convs stored (out_ch, in_ch)
      "w0_w": nrm((W, W)), "w0_b": nrm((W,), 0.01),
      "w1_w": nrm((W, W)), "w1_b": nrm((W,), 0.01),
      "w0s_w": nrm((W, W)), "w0s_b": nrm((W,), 0.01),
      "w1s_w": nrm((W, W)), "w1s_b": nrm((W,), 0.01),
      # head linears in torch (out, in) layout
      "fc1_w": nrm((128, W)), "fc1_b": nrm((128,), 0.01),
      "fc2_w": nrm((1, 128)), "fc2_b": nrm((1,), 0.01),
      "conv0": spec_weights(W, W),
      "conv1": spec_weights(W, W),
      "conv0s": spec_weights(W, W),
      "conv1s": spec_weights(W, W),
  }


if __name__ == "__main__":
  B, S = 2, 8
  MODES = (3, 3, 3)
  WIDTH = 8
  EMBED = 32

  key = jax.random.PRNGKey(0)
  kp, kt, kx, kxs = jax.random.split(key, 4)
  params = init_params(kp, WIDTH, MODES, EMBED)

  t = jax.random.uniform(kt, (B,), minval=0.1, maxval=1.0, dtype=jnp.float32)
  x = jax.random.normal(kx, (B, S, S, S, 10), dtype=jnp.float32)
  x_sparse = jax.random.normal(kxs, (B, S, S, S, 1), dtype=jnp.float32)

  fwd = jax.jit(functools.partial(fno3d_forward, modes=MODES))
  out = fwd(params, t, x, x_sparse)
  jax.block_until_ready(out)
  assert out.shape == (B, S, S, S, 1), out.shape
  assert bool(jnp.all(jnp.isfinite(out)))
  print("KERNEL_OK")
</pallas_src>

<mosaic_0001>
module attributes {stable_mosaic.version = 11 : i64} {
  func.func @_fc0_kernel(%arg0: i32, %arg1: i32, %arg2: memref<1x1x512xf32, #tpu.memory_space<vmem>>, %arg3: memref<3x512xf32, #tpu.memory_space<vmem>>, %arg4: memref<8x1xf32, #tpu.memory_space<vmem>>, %arg5: memref<8x3xf32, #tpu.memory_space<vmem>>, %arg6: memref<8x1xf32, #tpu.memory_space<vmem>>, %arg7: memref<1x8x512xbf16, #tpu.memory_space<vmem>>) attributes {dimension_semantics = [#tpu.dimension_semantics<parallel>, #tpu.dimension_semantics<parallel>], iteration_bounds = array<i64: 1, 2>, scalar_prefetch = 0 : i64, scratch_operands = 0 : i64, tpu.core_type = #tpu.core_type<tc>, window_params = [{transform_indices = @transform_0, window_bounds = array<i64: 1, 1, 512>}, {transform_indices = @transform_1, window_bounds = array<i64: 3, 512>}, {pipeline_mode = #tpu.pipeline_mode<synchronous>, transform_indices = @transform_2, window_bounds = array<i64: 8, 1>}, {pipeline_mode = #tpu.pipeline_mode<synchronous>, transform_indices = @transform_3, window_bounds = array<i64: 8, 3>}, {pipeline_mode = #tpu.pipeline_mode<synchronous>, transform_indices = @transform_4, window_bounds = array<i64: 8, 1>}, {transform_indices = @transform_5, window_bounds = array<i64: 1, 8, 512>}]} {
    %c0 = arith.constant 0 : index
    %c0_0 = arith.constant 0 : index
    %c0_1 = arith.constant 0 : index
    %0 = vector.load %arg2[%c0, %c0_0, %c0_1] : memref<1x1x512xf32, #tpu.memory_space<vmem>>, vector<1x1x512xf32>
    %1 = vector.shape_cast %0 : vector<1x1x512xf32> to vector<1x512xf32>
    %c0_2 = arith.constant 0 : index
    %c0_3 = arith.constant 0 : index
    %2 = vector.load %arg4[%c0_2, %c0_3] : memref<8x1xf32, #tpu.memory_space<vmem>>, vector<8x1xf32>
    %3 = vector.broadcast %2 : vector<8x1xf32> to vector<8x512xf32>
    %4 = vector.broadcast %1 : vector<1x512xf32> to vector<8x512xf32>
    %5 = arith.mulf %3, %4 : vector<8x512xf32>
    %c0_4 = arith.constant 0 : index
    %c0_5 = arith.constant 0 : index
    %6 = vector.load %arg5[%c0_4, %c0_5] : memref<8x3xf32, #tpu.memory_space<vmem>>, vector<8x3xf32>
    %c0_6 = arith.constant 0 : index
    %c0_7 = arith.constant 0 : index
    %7 = vector.load %arg3[%c0_6, %c0_7] : memref<3x512xf32, #tpu.memory_space<vmem>>, vector<3x512xf32>
    %8 = vector.extract_strided_slice %6 {offsets = [0, 0], sizes = [8, 1], strides = [1, 1]} : vector<8x3xf32> to vector<8x1xf32>
    %9 = vector.extract_strided_slice %7 {offsets = [0, 0], sizes = [1, 512], strides = [1, 1]} : vector<3x512xf32> to vector<1x512xf32>
    %10 = vector.broadcast %8 : vector<8x1xf32> to vector<8x512xf32>
    %11 = vector.broadcast %9 : vector<1x512xf32> to vector<8x512xf32>
    %12 = arith.mulf %10, %11 : vector<8x512xf32>
    %13 = vector.extract_strided_slice %6 {offsets = [0, 1], sizes = [8, 1], strides = [1, 1]} : vector<8x3xf32> to vector<8x1xf32>
    %14 = vector.extract_strided_slice %7 {offsets = [1, 0], sizes = [1, 512], strides = [1, 1]} : vector<3x512xf32> to vector<1x512xf32>
    %15 = vector.broadcast %13 : vector<8x1xf32> to vector<8x512xf32>
    %16 = vector.broadcast %14 : vector<1x512xf32> to vector<8x512xf32>
    %17 = arith.mulf %15, %16 : vector<8x512xf32>
    %18 = arith.addf %12, %17 : vector<8x512xf32>
    %19 = vector.extract_strided_slice %6 {offsets = [0, 2], sizes = [8, 1], strides = [1, 1]} : vector<8x3xf32> to vector<8x1xf32>
    %20 = vector.extract_strided_slice %7 {offsets = [2, 0], sizes = [1, 512], strides = [1, 1]} : vector<3x512xf32> to vector<1x512xf32>
    %21 = vector.broadcast %19 : vector<8x1xf32> to vector<8x512xf32>
    %22 = vector.broadcast %20 : vector<1x512xf32> to vector<8x512xf32>
    %23 = arith.mulf %21, %22 : vector<8x512xf32>
    %24 = arith.addf %18, %23 : vector<8x512xf32>
    %25 = arith.addf %5, %24 : vector<8x512xf32>
    %c0_8 = arith.constant 0 : index
    %c0_9 = arith.constant 0 : index
    %26 = vector.load %arg6[%c0_8, %c0_9] : memref<8x1xf32, #tpu.memory_space<vmem>>, vector<8x1xf32>
    %27 = vector.broadcast %26 : vector<8x1xf32> to vector<8x512xf32>
    %28 = arith.addf %25, %27 : vector<8x512xf32>
    %29 = arith.truncf %28 : vector<8x512xf32> to vector<8x512xbf16>
    %c0_10 = arith.constant 0 : index
    %c0_11 = arith.constant 0 : index
    %c0_12 = arith.constant 0 : index
    %30 = vector.load %arg7[%c0_10, %c0_11, %c0_12] : memref<1x8x512xbf16, #tpu.memory_space<vmem>>, vector<1x8x512xbf16>
    %31 = vector.shape_cast %30 : vector<1x8x512xbf16> to vector<8x512xbf16>
    %32 = vector.shape_cast %29 : vector<8x512xbf16> to vector<1x8x512xbf16>
    tpu.vector_store %arg7[%c0_10, %c0_11, %c0_12], %32 {strides = array<i32>} : memref<1x8x512xbf16, #tpu.memory_space<vmem>>, vector<1x8x512xbf16>,
    return
  }
  func.func @transform_0(%arg0: i32, %arg1: i32) -> (i32, i32, i32) {
    %c0_i32 = arith.constant 0 : i32
    %c0_i32_0 = arith.constant 0 : i32
    return %arg1, %c0_i32, %arg0 : i32, i32, i32
  }
  func.func @transform_1(%arg0: i32, %arg1: i32) -> (i32, i32) {
    %c0_i32 = arith.constant 0 : i32
    %c0_i32_0 = arith.constant 0 : i32
    return %c0_i32, %arg0 : i32, i32
  }
  func.func @transform_2(%arg0: i32, %arg1: i32) -> (i32, i32) {
    %c0_i32 = arith.constant 0 : i32
    %c0_i32_0 = arith.constant 0 : i32
    %c0_i32_1 = arith.constant 0 : i32
    return %c0_i32, %c0_i32_0 : i32, i32
  }
  func.func @transform_3(%arg0: i32, %arg1: i32) -> (i32, i32) {
    %c0_i32 = arith.constant 0 : i32
    %c0_i32_0 = arith.constant 0 : i32
    %c0_i32_1 = arith.constant 0 : i32
    return %c0_i32, %c0_i32_0 : i32, i32
  }
  func.func @transform_4(%arg0: i32, %arg1: i32) -> (i32, i32) {
    %c0_i32 = arith.constant 0 : i32
    %c0_i32_0 = arith.constant 0 : i32
    %c0_i32_1 = arith.constant 0 : i32
    return %c0_i32, %c0_i32_0 : i32, i32
  }
  func.func @transform_5(%arg0: i32, %arg1: i32) -> (i32, i32, i32) {
    %c0_i32 = arith.constant 0 : i32
    %c0_i32_0 = arith.constant 0 : i32
    return %arg1, %c0_i32, %arg0 : i32, i32, i32
  }
}

module attributes {stable_mosaic.version = 11 : i64} {
  func.func @_fc0_kernel(%arg0: i32, %arg1: i32, %arg2: memref<1x10x512xf32, #tpu.memory_space<vmem>>, %arg3: memref<3x512xf32, #tpu.memory_space<vmem>>, %arg4: memref<8x10xf32, #tpu.memory_space<vmem>>, %arg5: memref<8x3xf32, #tpu.memory_space<vmem>>, %arg6: memref<8x1xf32, #tpu.memory_space<vmem>>, %arg7: memref<1x8x512xbf16, #tpu.memory_space<vmem>>) attributes {dimension_semantics = [#tpu.dimension_semantics<parallel>, #tpu.dimension_semantics<parallel>], iteration_bounds = array<i64: 1, 2>, scalar_prefetch = 0 : i64, scratch_operands = 0 : i64, tpu.core_type = #tpu.core_type<tc>, window_params = [{transform_indices = @transform_0, window_bounds = array<i64: 1, 10, 512>}, {transform_indices = @transform_1, window_bounds = array<i64: 3, 512>}, {pipeline_mode = #tpu.pipeline_mode<synchronous>, transform_indices = @transform_2, window_bounds = array<i64: 8, 10>}, {pipeline_mode = #tpu.pipeline_mode<synchronous>, transform_indices = @transform_3, window_bounds = array<i64: 8, 3>}, {pipeline_mode = #tpu.pipeline_mode<synchronous>, transform_indices = @transform_4, window_bounds = array<i64: 8, 1>}, {transform_indices = @transform_5, window_bounds = array<i64: 1, 8, 512>}]} {
    %c0 = arith.constant 0 : index
    %c0_0 = arith.constant 0 : index
    %c0_1 = arith.constant 0 : index
    %0 = vector.load %arg2[%c0, %c0_0, %c0_1] : memref<1x10x512xf32, #tpu.memory_space<vmem>>, vector<1x10x512xf32>
    %1 = vector.shape_cast %0 : vector<1x10x512xf32> to vector<10x512xf32>
    %c0_2 = arith.constant 0 : index
    %c0_3 = arith.constant 0 : index
    %2 = vector.load %arg4[%c0_2, %c0_3] : memref<8x10xf32, #tpu.memory_space<vmem>>, vector<8x10xf32>
    %cst = arith.constant dense<0.000000e+00> : vector<8x512xf32>
    %3 = tpu.matmul %2, %1, %cst {dimension_numbers = #tpu.dot_dimension_numbers<[1], [0], [0], [1], [0, 0, 1, 1], [], []>} : vector<8x10xf32>, vector<10x512xf32>, vector<8x512xf32> -> vector<8x512xf32>
    %c0_4 = arith.constant 0 : index
    %c0_5 = arith.constant 0 : index
    %4 = vector.load %arg5[%c0_4, %c0_5] : memref<8x3xf32, #tpu.memory_space<vmem>>, vector<8x3xf32>
    %c0_6 = arith.constant 0 : index
    %c0_7 = arith.constant 0 : index
    %5 = vector.load %arg3[%c0_6, %c0_7] : memref<3x512xf32, #tpu.memory_space<vmem>>, vector<3x512xf32>
    %6 = vector.extract_strided_slice %4 {offsets = [0, 0], sizes = [8, 1], strides = [1, 1]} : vector<8x3xf32> to vector<8x1xf32>
    %7 = vector.extract_strided_slice %5 {offsets = [0, 0], sizes = [1, 512], strides = [1, 1]} : vector<3x512xf32> to vector<1x512xf32>
    %8 = vector.broadcast %6 : vector<8x1xf32> to vector<8x512xf32>
    %9 = vector.broadcast %7 : vector<1x512xf32> to vector<8x512xf32>
    %10 = arith.mulf %8, %9 : vector<8x512xf32>
    %11 = vector.extract_strided_slice %4 {offsets = [0, 1], sizes = [8, 1], strides = [1, 1]} : vector<8x3xf32> to vector<8x1xf32>
    %12 = vector.extract_strided_slice %5 {offsets = [1, 0], sizes = [1, 512], strides = [1, 1]} : vector<3x512xf32> to vector<1x512xf32>
    %13 = vector.broadcast %11 : vector<8x1xf32> to vector<8x512xf32>
    %14 = vector.broadcast %12 : vector<1x512xf32> to vector<8x512xf32>
    %15 = arith.mulf %13, %14 : vector<8x512xf32>
    %16 = arith.addf %10, %15 : vector<8x512xf32>
    %17 = vector.extract_strided_slice %4 {offsets = [0, 2], sizes = [8, 1], strides = [1, 1]} : vector<8x3xf32> to vector<8x1xf32>
    %18 = vector.extract_strided_slice %5 {offsets = [2, 0], sizes = [1, 512], strides = [1, 1]} : vector<3x512xf32> to vector<1x512xf32>
    %19 = vector.broadcast %17 : vector<8x1xf32> to vector<8x512xf32>
    %20 = vector.broadcast %18 : vector<1x512xf32> to vector<8x512xf32>
    %21 = arith.mulf %19, %20 : vector<8x512xf32>
    %22 = arith.addf %16, %21 : vector<8x512xf32>
    %23 = arith.addf %3, %22 : vector<8x512xf32>
    %c0_8 = arith.constant 0 : index
    %c0_9 = arith.constant 0 : index
    %24 = vector.load %arg6[%c0_8, %c0_9] : memref<8x1xf32, #tpu.memory_space<vmem>>, vector<8x1xf32>
    %25 = vector.broadcast %24 : vector<8x1xf32> to vector<8x512xf32>
    %26 = arith.addf %23, %25 : vector<8x512xf32>
    %27 = arith.truncf %26 : vector<8x512xf32> to vector<8x512xbf16>
    %c0_10 = arith.constant 0 : index
    %c0_11 = arith.constant 0 : index
    %c0_12 = arith.constant 0 : index
    %28 = vector.load %arg7[%c0_10, %c0_11, %c0_12] : memref<1x8x512xbf16, #tpu.memory_space<vmem>>, vector<1x8x512xbf16>
    %29 = vector.shape_cast %28 : vector<1x8x512xbf16> to vector<8x512xbf16>
    %30 = vector.shape_cast %27 : vector<8x512xbf16> to vector<1x8x512xbf16>
    tpu.vector_store %arg7[%c0_10, %c0_11, %c0_12], %30 {strides = array<i32>} : memref<1x8x512xbf16, #tpu.memory_space<vmem>>, vector<1x8x512xbf16>,
    return
  }
  func.func @transform_0(%arg0: i32, %arg1: i32) -> (i32, i32, i32) {
    %c0_i32 = arith.constant 0 : i32
    %c0_i32_0 = arith.constant 0 : i32
    return %arg1, %c0_i32, %arg0 : i32, i32, i32
  }
  func.func @transform_1(%arg0: i32, %arg1: i32) -> (i32, i32) {
    %c0_i32 = arith.constant 0 : i32
    %c0_i32_0 = arith.constant 0 : i32
    return %c0_i32, %arg0 : i32, i32
  }
  func.func @transform_2(%arg0: i32, %arg1: i32) -> (i32, i32) {
    %c0_i32 = arith.constant 0 : i32
    %c0_i32_0 = arith.constant 0 : i32
    %c0_i32_1 = arith.constant 0 : i32
    return %c0_i32, %c0_i32_0 : i32, i32
  }
  func.func @transform_3(%arg0: i32, %arg1: i32) -> (i32, i32) {
    %c0_i32 = arith.constant 0 : i32
    %c0_i32_0 = arith.constant 0 : i32
    %c0_i32_1 = arith.constant 0 : i32
    return %c0_i32, %c0_i32_0 : i32, i32
  }
  func.func @transform_4(%arg0: i32, %arg1: i32) -> (i32, i32) {
    %c0_i32 = arith.constant 0 : i32
    %c0_i32_0 = arith.constant 0 : i32
    %c0_i32_1 = arith.constant 0 : i32
    return %c0_i32, %c0_i32_0 : i32, i32
  }
  func.func @transform_5(%arg0: i32, %arg1: i32) -> (i32, i32, i32) {
    %c0_i32 = arith.constant 0 : i32
    %c0_i32_0 = arith.constant 0 : i32
    return %arg1, %c0_i32, %arg0 : i32, i32, i32
  }
}

module attributes {stable_mosaic.version = 11 : i64} {
  func.func @_mode_mix_kernel(%arg0: i32, %arg1: memref<2x8x128xf32, #tpu.memory_space<vmem>>, %arg2: memref<2x8x128xf32, #tpu.memory_space<vmem>>, %arg3: memref<8x8x128xf32, #tpu.memory_space<vmem>>, %arg4: memref<8x8x128xf32, #tpu.memory_space<vmem>>, %arg5: memref<2x8x128xf32, #tpu.memory_space<vmem>>, %arg6: memref<2x8x128xf32, #tpu.memory_space<vmem>>) attributes {dimension_semantics = [#tpu.dimension_semantics<parallel>], iteration_bounds = array<i64: 1>, scalar_prefetch = 0 : i64, scratch_operands = 0 : i64, tpu.core_type = #tpu.core_type<tc>, window_params = [{transform_indices = @transform_0, window_bounds = array<i64: 2, 8, 128>}, {transform_indices = @transform_1, window_bounds = array<i64: 2, 8, 128>}, {transform_indices = @transform_2, window_bounds = array<i64: 8, 8, 128>}, {transform_indices = @transform_3, window_bounds = array<i64: 8, 8, 128>}, {transform_indices = @transform_4, window_bounds = array<i64: 2, 8, 128>}, {transform_indices = @transform_5, window_bounds = array<i64: 2, 8, 128>}]} {
    %c0 = arith.constant 0 : index
    %c0_0 = arith.constant 0 : index
    %c0_1 = arith.constant 0 : index
    %0 = vector.load %arg1[%c0, %c0_0, %c0_1] : memref<2x8x128xf32, #tpu.memory_space<vmem>>, vector<2x8x128xf32>
    %c0_2 = arith.constant 0 : index
    %c0_3 = arith.constant 0 : index
    %c0_4 = arith.constant 0 : index
    %1 = vector.load %arg2[%c0_2, %c0_3, %c0_4] : memref<2x8x128xf32, #tpu.memory_space<vmem>>, vector<2x8x128xf32>
    %c0_5 = arith.constant 0 : index
    %c0_6 = arith.constant 0 : index
    %c0_7 = arith.constant 0 : index
    %2 = vector.load %arg3[%c0_5, %c0_6, %c0_7] : memref<8x8x128xf32, #tpu.memory_space<vmem>>, vector<8x8x128xf32>
    %c0_8 = arith.constant 0 : index
    %c0_9 = arith.constant 0 : index
    %c0_10 = arith.constant 0 : index
    %3 = vector.load %arg4[%c0_8, %c0_9, %c0_10] : memref<8x8x128xf32, #tpu.memory_space<vmem>>, vector<8x8x128xf32>
    %cst = arith.constant 0.000000e+00 : f32
    %4 = vector.broadcast %cst : f32 to vector<2x8x128xf32>
    %cst_11 = arith.constant 0.000000e+00 : f32
    %5 = vector.broadcast %cst_11 : f32 to vector<2x8x128xf32>
    %6 = vector.extract_strided_slice %0 {offsets = [0, 0, 0], sizes = [2, 1, 128], strides = [1, 1, 1]} : vector<2x8x128xf32> to vector<2x1x128xf32>
    %7 = vector.extract_strided_slice %1 {offsets = [0, 0, 0], sizes = [2, 1, 128], strides = [1, 1, 1]} : vector<2x8x128xf32> to vector<2x1x128xf32>
    %8 = vector.extract_strided_slice %2 {offsets = [0, 0, 0], sizes = [1, 8, 128], strides = [1, 1, 1]} : vector<8x8x128xf32> to vector<1x8x128xf32>
    %9 = vector.shape_cast %8 : vector<1x8x128xf32> to vector<8x128xf32>
    %10 = vector.shape_cast %9 : vector<8x128xf32> to vector<1x8x128xf32>
    %11 = vector.extract_strided_slice %3 {offsets = [0, 0, 0], sizes = [1, 8, 128], strides = [1, 1, 1]} : vector<8x8x128xf32> to vector<1x8x128xf32>
    %12 = vector.shape_cast %11 : vector<1x8x128xf32> to vector<8x128xf32>
    %13 = vector.shape_cast %12 : vector<8x128xf32> to vector<1x8x128xf32>
    %14 = vector.broadcast %6 : vector<2x1x128xf32> to vector<2x8x128xf32>
    %15 = vector.broadcast %10 : vector<1x8x128xf32> to vector<2x8x128xf32>
    %16 = arith.mulf %14, %15 : vector<2x8x128xf32>
    %17 = arith.addf %4, %16 : vector<2x8x128xf32>
    %18 = vector.broadcast %7 : vector<2x1x128xf32> to vector<2x8x128xf32>
    %19 = vector.broadcast %13 : vector<1x8x128xf32> to vector<2x8x128xf32>
    %20 = arith.mulf %18, %19 : vector<2x8x128xf32>
    %21 = arith.subf %17, %20 : vector<2x8x128xf32>
    %22 = vector.broadcast %6 : vector<2x1x128xf32> to vector<2x8x128xf32>
    %23 = vector.broadcast %13 : vector<1x8x128xf32> to vector<2x8x128xf32>
    %24 = arith.mulf %22, %23 : vector<2x8x128xf32>
    %25 = arith.addf %5, %24 : vector<2x8x128xf32>
    %26 = vector.broadcast %7 : vector<2x1x128xf32> to vector<2x8x128xf32>
    %27 = vector.broadcast %10 : vector<1x8x128xf32> to vector<2x8x128xf32>
    %28 = arith.mulf %26, %27 : vector<2x8x128xf32>
    %29 = arith.addf %25, %28 : vector<2x8x128xf32>
    %30 = vector.extract_strided_slice %0 {offsets = [0, 1, 0], sizes = [2, 1, 128], strides = [1, 1, 1]} : vector<2x8x128xf32> to vector<2x1x128xf32>
    %31 = vector.extract_strided_slice %1 {offsets = [0, 1, 0], sizes = [2, 1, 128], strides = [1, 1, 1]} : vector<2x8x128xf32> to vector<2x1x128xf32>
    %32 = vector.extract_strided_slice %2 {offsets = [1, 0, 0], sizes = [1, 8, 128], strides = [1, 1, 1]} : vector<8x8x128xf32> to vector<1x8x128xf32>
    %33 = vector.shape_cast %32 : vector<1x8x128xf32> to vector<8x128xf32>
    %34 = vector.shape_cast %33 : vector<8x128xf32> to vector<1x8x128xf32>
    %35 = vector.extract_strided_slice %3 {offsets = [1, 0, 0], sizes = [1, 8, 128], strides = [1, 1, 1]} : vector<8x8x128xf32> to vector<1x8x128xf32>
    %36 = vector.shape_cast %35 : vector<1x8x128xf32> to vector<8x128xf32>
    %37 = vector.shape_cast %36 : vector<8x128xf32> to vector<1x8x128xf32>
    %38 = vector.broadcast %30 : vector<2x1x128xf32> to vector<2x8x128xf32>
    %39 = vector.broadcast %34 : vector<1x8x128xf32> to vector<2x8x128xf32>
    %40 = arith.mulf %38, %39 : vector<2x8x128xf32>
    %41 = arith.addf %21, %40 : vector<2x8x128xf32>
    %42 = vector.broadcast %31 : vector<2x1x128xf32> to vector<2x8x128xf32>
    %43 = vector.broadcast %37 : vector<1x8x128xf32> to vector<2x8x128xf32>
    %44 = arith.mulf %42, %43 : vector<2x8x128xf32>
    %45 = arith.subf %41, %44 : vector<2x8x128xf32>
    %46 = vector.broadcast %30 : vector<2x1x128xf32> to vector<2x8x128xf32>
    %47 = vector.broadcast %37 : vector<1x8x128xf32> to vector<2x8x128xf32>
    %48 = arith.mulf %46, %47 : vector<2x8x128xf32>
    %49 = arith.addf %29, %48 : vector<2x8x128xf32>
    %50 = vector.broadcast %31 : vector<2x1x128xf32> to vector<2x8x128xf32>
    %51 = vector.broadcast %34 : vector<1x8x128xf32> to vector<2x8x128xf32>
    %52 = arith.mulf %50, %51 : vector<2x8x128xf32>
    %53 = arith.addf %49, %52 : vector<2x8x128xf32>
    %54 = vector.extract_strided_slice %0 {offsets = [0, 2, 0], sizes = [2, 1, 128], strides = [1, 1, 1]} : vector<2x8x128xf32> to vector<2x1x128xf32>
    %55 = vector.extract_strided_slice %1 {offsets = [0, 2, 0], sizes = [2, 1, 128], strides = [1, 1, 1]} : vector<2x8x128xf32> to vector<2x1x128xf32>
    %56 = vector.extract_strided_slice %2 {offsets = [2, 0, 0], sizes = [1, 8, 128], strides = [1, 1, 1]} : vector<8x8x128xf32> to vector<1x8x128xf32>
    %57 = vector.shape_cast %56 : vector<1x8x128xf32> to vector<8x128xf32>
    %58 = vector.shape_cast %57 : vector<8x128xf32> to vector<1x8x128xf32>
    %59 = vector.extract_strided_slice %3 {offsets = [2, 0, 0], sizes = [1, 8, 128], strides = [1, 1, 1]} : vector<8x8x128xf32> to vector<1x8x128xf32>
    %60 = vector.shape_cast %59 : vector<1x8x128xf32> to vector<8x128xf32>
    %61 = vector.shape_cast %60 : vector<8x128xf32> to vector<1x8x128xf32>
    %62 = vector.broadcast %54 : vector<2x1x128xf32> to vector<2x8x128xf32>
    %63 = vector.broadcast %58 : vector<1x8x128xf32> to vector<2x8x128xf32>
    %64 = arith.mulf %62, %63 : vector<2x8x128xf32>
    %65 = arith.addf %45, %64 : vector<2x8x128xf32>
    %66 = vector.broadcast %55 : vector<2x1x128xf32> to vector<2x8x128xf32>
    %67 = vector.broadcast %61 : vector<1x8x128xf32> to vector<2x8x128xf32>
    %68 = arith.mulf %66, %67 : vector<2x8x128xf32>
    %69 = arith.subf %65, %68 : vector<2x8x128xf32>
    %70 = vector.broadcast %54 : vector<2x1x128xf32> to vector<2x8x128xf32>
    %71 = vector.broadcast %61 : vector<1x8x128xf32> to vector<2x8x128xf32>
    %72 = arith.mulf %70, %71 : vector<2x8x128xf32>
    %73 = arith.addf %53, %72 : vector<2x8x128xf32>
    %74 = vector.broadcast %55 : vector<2x1x128xf32> to vector<2x8x128xf32>
    %75 = vector.broadcast %58 : vector<1x8x128xf32> to vector<2x8x128xf32>
    %76 = arith.mulf %74, %75 : vector<2x8x128xf32>
    %77 = arith.addf %73, %76 : vector<2x8x128xf32>
    %78 = vector.extract_strided_slice %0 {offsets = [0, 3, 0], sizes = [2, 1, 128], strides = [1, 1, 1]} : vector<2x8x128xf32> to vector<2x1x128xf32>
    %79 = vector.extract_strided_slice %1 {offsets = [0, 3, 0], sizes = [2, 1, 128], strides = [1, 1, 1]} : vector<2x8x128xf32> to vector<2x1x128xf32>
    %80 = vector.extract_strided_slice %2 {offsets = [3, 0, 0], sizes = [1, 8, 128], strides = [1, 1, 1]} : vector<8x8x128xf32> to vector<1x8x128xf32>
    %81 = vector.shape_cast %80 : vector<1x8x128xf32> to vector<8x128xf32>
    %82 = vector.shape_cast %81 : vector<8x128xf32> to vector<1x8x128xf32>
    %83 = vector.extract_strided_slice %3 {offsets = [3, 0, 0], sizes = [1, 8, 128], strides = [1, 1, 1]} : vector<8x8x128xf32> to vector<1x8x128xf32>
    %84 = vector.shape_cast %83 : vector<1x8x128xf32> to vector<8x128xf32>
    %85 = vector.shape_cast %84 : vector<8x128xf32> to vector<1x8x128xf32>
    %86 = vector.broadcast %78 : vector<2x1x128xf32> to vector<2x8x128xf32>
    %87 = vector.broadcast %82 : vector<1x8x128xf32> to vector<2x8x128xf32>
    %88 = arith.mulf %86, %87 : vector<2x8x128xf32>
    %89 = arith.addf %69, %88 : vector<2x8x128xf32>
    %90 = vector.broadcast %79 : vector<2x1x128xf32> to vector<2x8x128xf32>
    %91 = vector.broadcast %85 : vector<1x8x128xf32> to vector<2x8x128xf32>
    %92 = arith.mulf %90, %91 : vector<2x8x128xf32>
    %93 = arith.subf %89, %92 : vector<2x8x128xf32>
    %94 = vector.broadcast %78 : vector<2x1x128xf32> to vector<2x8x128xf32>
    %95 = vector.broadcast %85 : vector<1x8x128xf32> to vector<2x8x128xf32>
    %96 = arith.mulf %94, %95 : vector<2x8x128xf32>
    %97 = arith.addf %77, %96 : vector<2x8x128xf32>
    %98 = vector.broadcast %79 : vector<2x1x128xf32> to vector<2x8x128xf32>
    %99 = vector.broadcast %82 : vector<1x8x128xf32> to vector<2x8x128xf32>
    %100 = arith.mulf %98, %99 : vector<2x8x128xf32>
    %101 = arith.addf %97, %100 : vector<2x8x128xf32>
    %102 = vector.extract_strided_slice %0 {offsets = [0, 4, 0], sizes = [2, 1, 128], strides = [1, 1, 1]} : vector<2x8x128xf32> to vector<2x1x128xf32>
    %103 = vector.extract_strided_slice %1 {offsets = [0, 4, 0], sizes = [2, 1, 128], strides = [1, 1, 1]} : vector<2x8x128xf32> to vector<2x1x128xf32>
    %104 = vector.extract_strided_slice %2 {offsets = [4, 0, 0], sizes = [1, 8, 128], strides = [1, 1, 1]} : vector<8x8x128xf32> to vector<1x8x128xf32>
    %105 = vector.shape_cast %104 : vector<1x8x128xf32> to vector<8x128xf32>
    %106 = vector.shape_cast %105 : vector<8x128xf32> to vector<1x8x128xf32>
    %107 = vector.extract_strided_slice %3 {offsets = [4, 0, 0], sizes = [1, 8, 128], strides = [1, 1, 1]} : vector<8x8x128xf32> to vector<1x8x128xf32>
    %108 = vector.shape_cast %107 : vector<1x8x128xf32> to vector<8x128xf32>
    %109 = vector.shape_cast %108 : vector<8x128xf32> to vector<1x8x128xf32>
    %110 = vector.broadcast %102 : vector<2x1x128xf32> to vector<2x8x128xf32>
    %111 = vector.broadcast %106 : vector<1x8x128xf32> to vector<2x8x128xf32>
    %112 = arith.mulf %110, %111 : vector<2x8x128xf32>
    %113 = arith.addf %93, %112 : vector<2x8x128xf32>
    %114 = vector.broadcast %103 : vector<2x1x128xf32> to vector<2x8x128xf32>
    %115 = vector.broadcast %109 : vector<1x8x128xf32> to vector<2x8x128xf32>
    %116 = arith.mulf %114, %115 : vector<2x8x128xf32>
    %117 = arith.subf %113, %116 : vector<2x8x128xf32>
    %118 = vector.broadcast %102 : vector<2x1x128xf32> to vector<2x8x128xf32>
    %119 = vector.broadcast %109 : vector<1x8x128xf32> to vector<2x8x128xf32>
    %120 = arith.mulf %118, %119 : vector<2x8x128xf32>
    %121 = arith.addf %101, %120 : vector<2x8x128xf32>
    %122 = vector.broadcast %103 : vector<2x1x128xf32> to vector<2x8x128xf32>
    %123 = vector.broadcast %106 : vector<1x8x128xf32> to vector<2x8x128xf32>
    %124 = arith.mulf %122, %123 : vector<2x8x128xf32>
    %125 = arith.addf %121, %124 : vector<2x8x128xf32>
    %126 = vector.extract_strided_slice %0 {offsets = [0, 5, 0], sizes = [2, 1, 128], strides = [1, 1, 1]} : vector<2x8x128xf32> to vector<2x1x128xf32>
    %127 = vector.extract_strided_slice %1 {offsets = [0, 5, 0], sizes = [2, 1, 128], strides = [1, 1, 1]} : vector<2x8x128xf32> to vector<2x1x128xf32>
    %128 = vector.extract_strided_slice %2 {offsets = [5, 0, 0], sizes = [1, 8, 128], strides = [1, 1, 1]} : vector<8x8x128xf32> to vector<1x8x128xf32>
    %129 = vector.shape_cast %128 : vector<1x8x128xf32> to vector<8x128xf32>
    %130 = vector.shape_cast %129 : vector<8x128xf32> to vector<1x8x128xf32>
    %131 = vector.extract_strided_slice %3 {offsets = [5, 0, 0], sizes = [1, 8, 128], strides = [1, 1, 1]} : vector<8x8x128xf32> to vector<1x8x128xf32>
    %132 = vector.shape_cast %131 : vector<1x8x128xf32> to vector<8x128xf32>
    %133 = vector.shape_cast %132 : vector<8x128xf32> to vector<1x8x128xf32>
    %134 = vector.broadcast %126 : vector<2x1x128xf32> to vector<2x8x128xf32>
    %135 = vector.broadcast %130 : vector<1x8x128xf32> to vector<2x8x128xf32>
    %136 = arith.mulf %134, %135 : vector<2x8x128xf32>
    %137 = arith.addf %117, %136 : vector<2x8x128xf32>
    %138 = vector.broadcast %127 : vector<2x1x128xf32> to vector<2x8x128xf32>
    %139 = vector.broadcast %133 : vector<1x8x128xf32> to vector<2x8x128xf32>
    %140 = arith.mulf %138, %139 : vector<2x8x128xf32>
    %141 = arith.subf %137, %140 : vector<2x8x128xf32>
    %142 = vector.broadcast %126 : vector<2x1x128xf32> to vector<2x8x128xf32>
    %143 = vector.broadcast %133 : vector<1x8x128xf32> to vector<2x8x128xf32>
    %144 = arith.mulf %142, %143 : vector<2x8x128xf32>
    %145 = arith.addf %125, %144 : vector<2x8x128xf32>
    %146 = vector.broadcast %127 : vector<2x1x128xf32> to vector<2x8x128xf32>
    %147 = vector.broadcast %130 : vector<1x8x128xf32> to vector<2x8x128xf32>
    %148 = arith.mulf %146, %147 : vector<2x8x128xf32>
    %149 = arith.addf %145, %148 : vector<2x8x128xf32>
    %150 = vector.extract_strided_slice %0 {offsets = [0, 6, 0], sizes = [2, 1, 128], strides = [1, 1, 1]} : vector<2x8x128xf32> to vector<2x1x128xf32>
    %151 = vector.extract_strided_slice %1 {offsets = [0, 6, 0], sizes = [2, 1, 128], strides = [1, 1, 1]} : vector<2x8x128xf32> to vector<2x1x128xf32>
    %152 = vector.extract_strided_slice %2 {offsets = [6, 0, 0], sizes = [1, 8, 128], strides = [1, 1, 1]} : vector<8x8x128xf32> to vector<1x8x128xf32>
    %153 = vector.shape_cast %152 : vector<1x8x128xf32> to vector<8x128xf32>
    %154 = vector.shape_cast %153 : vector<8x128xf32> to vector<1x8x128xf32>
    %155 = vector.extract_strided_slice %3 {offsets = [6, 0, 0], sizes = [1, 8, 128], strides = [1, 1, 1]} : vector<8x8x128xf32> to vector<1x8x128xf32>
    %156 = vector.shape_cast %155 : vector<1x8x128xf32> to vector<8x128xf32>
    %157 = vector.shape_cast %156 : vector<8x128xf32> to vector<1x8x128xf32>
    %158 = vector.broadcast %150 : vector<2x1x128xf32> to vector<2x8x128xf32>
    %159 = vector.broadcast %154 : vector<1x8x128xf32> to vector<2x8x128xf32>
    %160 = arith.mulf %158, %159 : vector<2x8x128xf32>
    %161 = arith.addf %141, %160 : vector<2x8x128xf32>
    %162 = vector.broadcast %151 : vector<2x1x128xf32> to vector<2x8x128xf32>
    %163 = vector.broadcast %157 : vector<1x8x128xf32> to vector<2x8x128xf32>
    %164 = arith.mulf %162, %163 : vector<2x8x128xf32>
    %165 = arith.subf %161, %164 : vector<2x8x128xf32>
    %166 = vector.broadcast %150 : vector<2x1x128xf32> to vector<2x8x128xf32>
    %167 = vector.broadcast %157 : vector<1x8x128xf32> to vector<2x8x128xf32>
    %168 = arith.mulf %166, %167 : vector<2x8x128xf32>
    %169 = arith.addf %149, %168 : vector<2x8x128xf32>
    %170 = vector.broadcast %151 : vector<2x1x128xf32> to vector<2x8x128xf32>
    %171 = vector.broadcast %154 : vector<1x8x128xf32> to vector<2x8x128xf32>
    %172 = arith.mulf %170, %171 : vector<2x8x128xf32>
    %173 = arith.addf %169, %172 : vector<2x8x128xf32>
    %174 = vector.extract_strided_slice %0 {offsets = [0, 7, 0], sizes = [2, 1, 128], strides = [1, 1, 1]} : vector<2x8x128xf32> to vector<2x1x128xf32>
    %175 = vector.extract_strided_slice %1 {offsets = [0, 7, 0], sizes = [2, 1, 128], strides = [1, 1, 1]} : vector<2x8x128xf32> to vector<2x1x128xf32>
    %176 = vector.extract_strided_slice %2 {offsets = [7, 0, 0], sizes = [1, 8, 128], strides = [1, 1, 1]} : vector<8x8x128xf32> to vector<1x8x128xf32>
    %177 = vector.shape_cast %176 : vector<1x8x128xf32> to vector<8x128xf32>
    %178 = vector.shape_cast %177 : vector<8x128xf32> to vector<1x8x128xf32>
    %179 = vector.extract_strided_slice %3 {offsets = [7, 0, 0], sizes = [1, 8, 128], strides = [1, 1, 1]} : vector<8x8x128xf32> to vector<1x8x128xf32>
    %180 = vector.shape_cast %179 : vector<1x8x128xf32> to vector<8x128xf32>
    %181 = vector.shape_cast %180 : vector<8x128xf32> to vector<1x8x128xf32>
    %182 = vector.broadcast %174 : vector<2x1x128xf32> to vector<2x8x128xf32>
    %183 = vector.broadcast %178 : vector<1x8x128xf32> to vector<2x8x128xf32>
    %184 = arith.mulf %182, %183 : vector<2x8x128xf32>
    %185 = arith.addf %165, %184 : vector<2x8x128xf32>
    %186 = vector.broadcast %175 : vector<2x1x128xf32> to vector<2x8x128xf32>
    %187 = vector.broadcast %181 : vector<1x8x128xf32> to vector<2x8x128xf32>
    %188 = arith.mulf %186, %187 : vector<2x8x128xf32>
    %189 = arith.subf %185, %188 : vector<2x8x128xf32>
    %190 = vector.broadcast %174 : vector<2x1x128xf32> to vector<2x8x128xf32>
    %191 = vector.broadcast %181 : vector<1x8x128xf32> to vector<2x8x128xf32>
    %192 = arith.mulf %190, %191 : vector<2x8x128xf32>
    %193 = arith.addf %173, %192 : vector<2x8x128xf32>
    %194 = vector.broadcast %175 : vector<2x1x128xf32> to vector<2x8x128xf32>
    %195 = vector.broadcast %178 : vector<1x8x128xf32> to vector<2x8x128xf32>
    %196 = arith.mulf %194, %195 : vector<2x8x128xf32>
    %197 = arith.addf %193, %196 : vector<2x8x128xf32>
    %c0_12 = arith.constant 0 : index
    %c0_13 = arith.constant 0 : index
    %c0_14 = arith.constant 0 : index
    %198 = vector.load %arg5[%c0_12, %c0_13, %c0_14] : memref<2x8x128xf32, #tpu.memory_space<vmem>>, vector<2x8x128xf32>
    tpu.vector_store %arg5[%c0_12, %c0_13, %c0_14], %189 {strides = array<i32>} : memref<2x8x128xf32, #tpu.memory_space<vmem>>, vector<2x8x128xf32>,
    %c0_15 = arith.constant 0 : index
    %c0_16 = arith.constant 0 : index
    %c0_17 = arith.constant 0 : index
    %199 = vector.load %arg6[%c0_15, %c0_16, %c0_17] : memref<2x8x128xf32, #tpu.memory_space<vmem>>, vector<2x8x128xf32>
    tpu.vector_store %arg6[%c0_15, %c0_16, %c0_17], %197 {strides = array<i32>} : memref<2x8x128xf32, #tpu.memory_space<vmem>>, vector<2x8x128xf32>,
    return
  }
  func.func @transform_0(%arg0: i32) -> (i32, i32, i32) {
    %c0_i32 = arith.constant 0 : i32
    %c0_i32_0 = arith.constant 0 : i32
    %c0_i32_1 = arith.constant 0 : i32
    return %c0_i32, %c0_i32_0, %arg0 : i32, i32, i32
  }
  func.func @transform_1(%arg0: i32) -> (i32, i32, i32) {
    %c0_i32 = arith.constant 0 : i32
    %c0_i32_0 = arith.constant 0 : i32
    %c0_i32_1 = arith.constant 0 : i32
    return %c0_i32, %c0_i32_0, %arg0 : i32, i32, i32
  }
  func.func @transform_2(%arg0: i32) -> (i32, i32, i32) {
    %c0_i32 = arith.constant 0 : i32
    %c0_i32_0 = arith.constant 0 : i32
    %c0_i32_1 = arith.constant 0 : i32
    return %c0_i32, %c0_i32_0, %arg0 : i32, i32, i32
  }
  func.func @transform_3(%arg0: i32) -> (i32, i32, i32) {
    %c0_i32 = arith.constant 0 : i32
    %c0_i32_0 = arith.constant 0 : i32
    %c0_i32_1 = arith.constant 0 : i32
    return %c0_i32, %c0_i32_0, %arg0 : i32, i32, i32
  }
  func.func @transform_4(%arg0: i32) -> (i32, i32, i32) {
    %c0_i32 = arith.constant 0 : i32
    %c0_i32_0 = arith.constant 0 : i32
    %c0_i32_1 = arith.constant 0 : i32
    return %c0_i32, %c0_i32_0, %arg0 : i32, i32, i32
  }
  func.func @transform_5(%arg0: i32) -> (i32, i32, i32) {
    %c0_i32 = arith.constant 0 : i32
    %c0_i32_0 = arith.constant 0 : i32
    %c0_i32_1 = arith.constant 0 : i32
    return %c0_i32, %c0_i32_0, %arg0 : i32, i32, i32
  }
}

module attributes {stable_mosaic.version = 11 : i64} {
  func.func @_block_epilogue_kernel(%arg0: i32, %arg1: i32, %arg2: memref<1x8x512xbf16, #tpu.memory_space<vmem>>, %arg3: memref<1x8x512xf32, #tpu.memory_space<vmem>>, %arg4: memref<1x8x1xf32, #tpu.memory_space<vmem>>, %arg5: memref<8x8xf32, #tpu.memory_space<vmem>>, %arg6: memref<8x1xf32, #tpu.memory_space<vmem>>, %arg7: memref<1x8x512xbf16, #tpu.memory_space<vmem>>) attributes {dimension_semantics = [#tpu.dimension_semantics<parallel>, #tpu.dimension_semantics<parallel>], iteration_bounds = array<i64: 1, 2>, scalar_prefetch = 0 : i64, scratch_operands = 0 : i64, tpu.core_type = #tpu.core_type<tc>, window_params = [{transform_indices = @transform_0, window_bounds = array<i64: 1, 8, 512>}, {transform_indices = @transform_1, window_bounds = array<i64: 1, 8, 512>}, {transform_indices = @transform_2, window_bounds = array<i64: 1, 8, 1>}, {pipeline_mode = #tpu.pipeline_mode<synchronous>, transform_indices = @transform_3, window_bounds = array<i64: 8, 8>}, {pipeline_mode = #tpu.pipeline_mode<synchronous>, transform_indices = @transform_4, window_bounds = array<i64: 8, 1>}, {transform_indices = @transform_5, window_bounds = array<i64: 1, 8, 512>}]} {
    %c0 = arith.constant 0 : index
    %c0_0 = arith.constant 0 : index
    %c0_1 = arith.constant 0 : index
    %0 = vector.load %arg2[%c0, %c0_0, %c0_1] : memref<1x8x512xbf16, #tpu.memory_space<vmem>>, vector<1x8x512xbf16>
    %1 = vector.shape_cast %0 : vector<1x8x512xbf16> to vector<8x512xbf16>
    %2 = arith.extf %1 : vector<8x512xbf16> to vector<8x512xf32>
    %c0_2 = arith.constant 0 : index
    %c0_3 = arith.constant 0 : index
    %3 = vector.load %arg5[%c0_2, %c0_3] : memref<8x8xf32, #tpu.memory_space<vmem>>, vector<8x8xf32>
    %cst = arith.constant dense<0.000000e+00> : vector<8x512xf32>
    %4 = tpu.matmul %3, %2, %cst {dimension_numbers = #tpu.dot_dimension_numbers<[1], [0], [0], [1], [0, 0, 1, 1], [], []>} : vector<8x8xf32>, vector<8x512xf32>, vector<8x512xf32> -> vector<8x512xf32>
    %c0_4 = arith.constant 0 : index
    %c0_5 = arith.constant 0 : index
    %c0_6 = arith.constant 0 : index
    %5 = vector.load %arg3[%c0_4, %c0_5, %c0_6] : memref<1x8x512xf32, #tpu.memory_space<vmem>>, vector<1x8x512xf32>
    %6 = vector.shape_cast %5 : vector<1x8x512xf32> to vector<8x512xf32>
    %7 = arith.addf %4, %6 : vector<8x512xf32>
    %c0_7 = arith.constant 0 : index
    %c0_8 = arith.constant 0 : index
    %c0_9 = arith.constant 0 : index
    %8 = vector.load %arg4[%c0_7, %c0_8, %c0_9] : memref<1x8x1xf32, #tpu.memory_space<vmem>>, vector<1x8x1xf32>
    %9 = vector.shape_cast %8 : vector<1x8x1xf32> to vector<8x1xf32>
    %10 = vector.broadcast %9 : vector<8x1xf32> to vector<8x512xf32>
    %11 = arith.addf %7, %10 : vector<8x512xf32>
    %c0_10 = arith.constant 0 : index
    %c0_11 = arith.constant 0 : index
    %12 = vector.load %arg6[%c0_10, %c0_11] : memref<8x1xf32, #tpu.memory_space<vmem>>, vector<8x1xf32>
    %13 = vector.broadcast %12 : vector<8x1xf32> to vector<8x512xf32>
    %14 = arith.addf %11, %13 : vector<8x512xf32>
    %cst_12 = arith.constant 5.000000e-01 : f32
    %15 = vector.broadcast %cst_12 : f32 to vector<8x512xf32>
    %16 = arith.mulf %15, %14 : vector<8x512xf32>
    %cst_13 = arith.constant 0.707106769 : f32
    %17 = vector.broadcast %cst_13 : f32 to vector<8x512xf32>
    %18 = arith.mulf %14, %17 : vector<8x512xf32>
    %19 = math.absf %18 : vector<8x512xf32>
    %cst_14 = arith.constant 0.327591091 : f32
    %20 = vector.broadcast %cst_14 : f32 to vector<8x512xf32>
    %21 = arith.mulf %20, %19 : vector<8x512xf32>
    %cst_15 = arith.constant 1.000000e+00 : f32
    %22 = vector.broadcast %cst_15 : f32 to vector<8x512xf32>
    %23 = arith.addf %22, %21 : vector<8x512xf32>
    %cst_16 = arith.constant 1.000000e+00 : f32
    %24 = vector.broadcast %cst_16 : f32 to vector<8x512xf32>
    %25 = arith.divf %24, %23 : vector<8x512xf32>
    %cst_17 = arith.constant 1.06140542 : f32
    %26 = vector.broadcast %cst_17 : f32 to vector<8x512xf32>
    %27 = arith.mulf %26, %25 : vector<8x512xf32>
    %cst_18 = arith.constant -1.45315206 : f32
    %28 = vector.broadcast %cst_18 : f32 to vector<8x512xf32>
    %29 = arith.addf %27, %28 : vector<8x512xf32>
    %30 = arith.mulf %29, %25 : vector<8x512xf32>
    %cst_19 = arith.constant 1.42141378 : f32
    %31 = vector.broadcast %cst_19 : f32 to vector<8x512xf32>
    %32 = arith.addf %30, %31 : vector<8x512xf32>
    %33 = arith.mulf %32, %25 : vector<8x512xf32>
    %cst_20 = arith.constant -0.284496725 : f32
    %34 = vector.broadcast %cst_20 : f32 to vector<8x512xf32>
    %35 = arith.addf %33, %34 : vector<8x512xf32>
    %36 = arith.mulf %35, %25 : vector<8x512xf32>
    %cst_21 = arith.constant 0.254829586 : f32
    %37 = vector.broadcast %cst_21 : f32 to vector<8x512xf32>
    %38 = arith.addf %36, %37 : vector<8x512xf32>
    %39 = arith.mulf %38, %25 : vector<8x512xf32>
    %cst_22 = arith.constant 0.000000e+00 : f32
    %40 = vector.broadcast %cst_22 : f32 to vector<8x512xf32>
    %41 = arith.subf %40, %19 : vector<8x512xf32>
    %42 = arith.mulf %41, %19 : vector<8x512xf32>
    %43 = math.exp %42 : vector<8x512xf32>
    %44 = arith.mulf %39, %43 : vector<8x512xf32>
    %cst_23 = arith.constant 1.000000e+00 : f32
    %45 = vector.broadcast %cst_23 : f32 to vector<8x512xf32>
    %46 = arith.subf %45, %44 : vector<8x512xf32>
    %cst_24 = arith.constant 0.000000e+00 : f32
    %47 = vector.broadcast %cst_24 : f32 to vector<8x512xf32>
    %48 = arith.cmpf oge, %18, %47 : vector<8x512xf32>
    %cst_25 = arith.constant 0.000000e+00 : f32
    %49 = vector.broadcast %cst_25 : f32 to vector<8x512xf32>
    %50 = arith.subf %49, %46 : vector<8x512xf32>
    %51 = arith.select %48, %46, %50 : vector<8x512xi1>, vector<8x512xf32>
    %cst_26 = arith.constant 1.000000e+00 : f32
    %52 = vector.broadcast %cst_26 : f32 to vector<8x512xf32>
    %53 = arith.addf %52, %51 : vector<8x512xf32>
    %54 = arith.mulf %16, %53 : vector<8x512xf32>
    %55 = arith.truncf %54 : vector<8x512xf32> to vector<8x512xbf16>
    %c0_27 = arith.constant 0 : index
    %c0_28 = arith.constant 0 : index
    %c0_29 = arith.constant 0 : index
    %56 = vector.load %arg7[%c0_27, %c0_28, %c0_29] : memref<1x8x512xbf16, #tpu.memory_space<vmem>>, vector<1x8x512xbf16>
    %57 = vector.shape_cast %56 : vector<1x8x512xbf16> to vector<8x512xbf16>
    %58 = vector.shape_cast %55 : vector<8x512xbf16> to vector<1x8x512xbf16>
    tpu.vector_store %arg7[%c0_27, %c0_28, %c0_29], %58 {strides = array<i32>} : memref<1x8x512xbf16, #tpu.memory_space<vmem>>, vector<1x8x512xbf16>,
    return
  }
  func.func @transform_0(%arg0: i32, %arg1: i32) -> (i32, i32, i32) {
    %c0_i32 = arith.constant 0 : i32
    %c0_i32_0 = arith.constant 0 : i32
    return %arg1, %c0_i32, %arg0 : i32, i32, i32
  }
  func.func @transform_1(%arg0: i32, %arg1: i32) -> (i32, i32, i32) {
    %c0_i32 = arith.constant 0 : i32
    %c0_i32_0 = arith.constant 0 : i32
    return %arg1, %c0_i32, %arg0 : i32, i32, i32
  }
  func.func @transform_2(%arg0: i32, %arg1: i32) -> (i32, i32, i32) {
    %c0_i32 = arith.constant 0 : i32
    %c0_i32_0 = arith.constant 0 : i32
    %c0_i32_1 = arith.constant 0 : i32
    return %arg1, %c0_i32, %c0_i32_0 : i32, i32, i32
  }
  func.func @transform_3(%arg0: i32, %arg1: i32) -> (i32, i32) {
    %c0_i32 = arith.constant 0 : i32
    %c0_i32_0 = arith.constant 0 : i32
    %c0_i32_1 = arith.constant 0 : i32
    return %c0_i32, %c0_i32_0 : i32, i32
  }
  func.func @transform_4(%arg0: i32, %arg1: i32) -> (i32, i32) {
    %c0_i32 = arith.constant 0 : i32
    %c0_i32_0 = arith.constant 0 : i32
    %c0_i32_1 = arith.constant 0 : i32
    return %c0_i32, %c0_i32_0 : i32, i32
  }
  func.func @transform_5(%arg0: i32, %arg1: i32) -> (i32, i32, i32) {
    %c0_i32 = arith.constant 0 : i32
    %c0_i32_0 = arith.constant 0 : i32
    return %arg1, %c0_i32, %arg0 : i32, i32, i32
  }
}

module attributes {stable_mosaic.version = 11 : i64} {
  func.func @_block_epilogue_kernel(%arg0: i32, %arg1: i32, %arg2: memref<1x8x512xbf16, #tpu.memory_space<vmem>>, %arg3: memref<1x8x512xf32, #tpu.memory_space<vmem>>, %arg4: memref<1x8x1xf32, #tpu.memory_space<vmem>>, %arg5: memref<8x8xf32, #tpu.memory_space<vmem>>, %arg6: memref<8x1xf32, #tpu.memory_space<vmem>>, %arg7: memref<1x8x512xbf16, #tpu.memory_space<vmem>>) attributes {dimension_semantics = [#tpu.dimension_semantics<parallel>, #tpu.dimension_semantics<parallel>], iteration_bounds = array<i64: 1, 2>, scalar_prefetch = 0 : i64, scratch_operands = 0 : i64, tpu.core_type = #tpu.core_type<tc>, window_params = [{transform_indices = @transform_0, window_bounds = array<i64: 1, 8, 512>}, {transform_indices = @transform_1, window_bounds = array<i64: 1, 8, 512>}, {transform_indices = @transform_2, window_bounds = array<i64: 1, 8, 1>}, {pipeline_mode = #tpu.pipeline_mode<synchronous>, transform_indices = @transform_3, window_bounds = array<i64: 8, 8>}, {pipeline_mode = #tpu.pipeline_mode<synchronous>, transform_indices = @transform_4, window_bounds = array<i64: 8, 1>}, {transform_indices = @transform_5, window_bounds = array<i64: 1, 8, 512>}]} {
    %c0 = arith.constant 0 : index
    %c0_0 = arith.constant 0 : index
    %c0_1 = arith.constant 0 : index
    %0 = vector.load %arg2[%c0, %c0_0, %c0_1] : memref<1x8x512xbf16, #tpu.memory_space<vmem>>, vector<1x8x512xbf16>
    %1 = vector.shape_cast %0 : vector<1x8x512xbf16> to vector<8x512xbf16>
    %2 = arith.extf %1 : vector<8x512xbf16> to vector<8x512xf32>
    %c0_2 = arith.constant 0 : index
    %c0_3 = arith.constant 0 : index
    %3 = vector.load %arg5[%c0_2, %c0_3] : memref<8x8xf32, #tpu.memory_space<vmem>>, vector<8x8xf32>
    %cst = arith.constant dense<0.000000e+00> : vector<8x512xf32>
    %4 = tpu.matmul %3, %2, %cst {dimension_numbers = #tpu.dot_dimension_numbers<[1], [0], [0], [1], [0, 0, 1, 1], [], []>} : vector<8x8xf32>, vector<8x512xf32>, vector<8x512xf32> -> vector<8x512xf32>
    %c0_4 = arith.constant 0 : index
    %c0_5 = arith.constant 0 : index
    %c0_6 = arith.constant 0 : index
    %5 = vector.load %arg3[%c0_4, %c0_5, %c0_6] : memref<1x8x512xf32, #tpu.memory_space<vmem>>, vector<1x8x512xf32>
    %6 = vector.shape_cast %5 : vector<1x8x512xf32> to vector<8x512xf32>
    %7 = arith.addf %4, %6 : vector<8x512xf32>
    %c0_7 = arith.constant 0 : index
    %c0_8 = arith.constant 0 : index
    %c0_9 = arith.constant 0 : index
    %8 = vector.load %arg4[%c0_7, %c0_8, %c0_9] : memref<1x8x1xf32, #tpu.memory_space<vmem>>, vector<1x8x1xf32>
    %9 = vector.shape_cast %8 : vector<1x8x1xf32> to vector<8x1xf32>
    %10 = vector.broadcast %9 : vector<8x1xf32> to vector<8x512xf32>
    %11 = arith.addf %7, %10 : vector<8x512xf32>
    %c0_10 = arith.constant 0 : index
    %c0_11 = arith.constant 0 : index
    %12 = vector.load %arg6[%c0_10, %c0_11] : memref<8x1xf32, #tpu.memory_space<vmem>>, vector<8x1xf32>
    %13 = vector.broadcast %12 : vector<8x1xf32> to vector<8x512xf32>
    %14 = arith.addf %11, %13 : vector<8x512xf32>
    %15 = arith.truncf %14 : vector<8x512xf32> to vector<8x512xbf16>
    %c0_12 = arith.constant 0 : index
    %c0_13 = arith.constant 0 : index
    %c0_14 = arith.constant 0 : index
    %16 = vector.load %arg7[%c0_12, %c0_13, %c0_14] : memref<1x8x512xbf16, #tpu.memory_space<vmem>>, vector<1x8x512xbf16>
    %17 = vector.shape_cast %16 : vector<1x8x512xbf16> to vector<8x512xbf16>
    %18 = vector.shape_cast %15 : vector<8x512xbf16> to vector<1x8x512xbf16>
    tpu.vector_store %arg7[%c0_12, %c0_13, %c0_14], %18 {strides = array<i32>} : memref<1x8x512xbf16, #tpu.memory_space<vmem>>, vector<1x8x512xbf16>,
    return
  }
  func.func @transform_0(%arg0: i32, %arg1: i32) -> (i32, i32, i32) {
    %c0_i32 = arith.constant 0 : i32
    %c0_i32_0 = arith.constant 0 : i32
    return %arg1, %c0_i32, %arg0 : i32, i32, i32
  }
  func.func @transform_1(%arg0: i32, %arg1: i32) -> (i32, i32, i32) {
    %c0_i32 = arith.constant 0 : i32
    %c0_i32_0 = arith.constant 0 : i32
    return %arg1, %c0_i32, %arg0 : i32, i32, i32
  }
  func.func @transform_2(%arg0: i32, %arg1: i32) -> (i32, i32, i32) {
    %c0_i32 = arith.constant 0 : i32
    %c0_i32_0 = arith.constant 0 : i32
    %c0_i32_1 = arith.constant 0 : i32
    return %arg1, %c0_i32, %c0_i32_0 : i32, i32, i32
  }
  func.func @transform_3(%arg0: i32, %arg1: i32) -> (i32, i32) {
    %c0_i32 = arith.constant 0 : i32
    %c0_i32_0 = arith.constant 0 : i32
    %c0_i32_1 = arith.constant 0 : i32
    return %c0_i32, %c0_i32_0 : i32, i32
  }
  func.func @transform_4(%arg0: i32, %arg1: i32) -> (i32, i32) {
    %c0_i32 = arith.constant 0 : i32
    %c0_i32_0 = arith.constant 0 : i32
    %c0_i32_1 = arith.constant 0 : i32
    return %c0_i32, %c0_i32_0 : i32, i32
  }
  func.func @transform_5(%arg0: i32, %arg1: i32) -> (i32, i32, i32) {
    %c0_i32 = arith.constant 0 : i32
    %c0_i32_0 = arith.constant 0 : i32
    return %arg1, %c0_i32, %arg0 : i32, i32, i32
  }
}

module attributes {stable_mosaic.version = 11 : i64} {
  func.func @_head_kernel(%arg0: i32, %arg1: i32, %arg2: memref<1x8x512xbf16, #tpu.memory_space<vmem>>, %arg3: memref<1x8x512xbf16, #tpu.memory_space<vmem>>, %arg4: memref<128x8xf32, #tpu.memory_space<vmem>>, %arg5: memref<128x1xf32, #tpu.memory_space<vmem>>, %arg6: memref<128x1xf32, #tpu.memory_space<vmem>>, %arg7: memref<1x1xf32, #tpu.memory_space<vmem>>, %arg8: memref<1x1x1xf32, #tpu.memory_space<vmem>>, %arg9: memref<1x1x512xf32, #tpu.memory_space<vmem>>) attributes {dimension_semantics = [#tpu.dimension_semantics<parallel>, #tpu.dimension_semantics<parallel>], iteration_bounds = array<i64: 1, 2>, scalar_prefetch = 0 : i64, scratch_operands = 0 : i64, tpu.core_type = #tpu.core_type<tc>, window_params = [{transform_indices = @transform_0, window_bounds = array<i64: 1, 8, 512>}, {transform_indices = @transform_1, window_bounds = array<i64: 1, 8, 512>}, {pipeline_mode = #tpu.pipeline_mode<synchronous>, transform_indices = @transform_2, window_bounds = array<i64: 128, 8>}, {pipeline_mode = #tpu.pipeline_mode<synchronous>, transform_indices = @transform_3, window_bounds = array<i64: 128, 1>}, {pipeline_mode = #tpu.pipeline_mode<synchronous>, transform_indices = @transform_4, window_bounds = array<i64: 128, 1>}, {pipeline_mode = #tpu.pipeline_mode<synchronous>, transform_indices = @transform_5, window_bounds = array<i64: 1, 1>}, {transform_indices = @transform_6, window_bounds = array<i64: 1, 1, 1>}, {transform_indices = @transform_7, window_bounds = array<i64: 1, 1, 512>}]} {
    %c0 = arith.constant 0 : index
    %c0_0 = arith.constant 0 : index
    %c0_1 = arith.constant 0 : index
    %0 = vector.load %arg2[%c0, %c0_0, %c0_1] : memref<1x8x512xbf16, #tpu.memory_space<vmem>>, vector<1x8x512xbf16>
    %1 = vector.shape_cast %0 : vector<1x8x512xbf16> to vector<8x512xbf16>
    %2 = arith.extf %1 : vector<8x512xbf16> to vector<8x512xf32>
    %c0_2 = arith.constant 0 : index
    %c0_3 = arith.constant 0 : index
    %c0_4 = arith.constant 0 : index
    %3 = vector.load %arg3[%c0_2, %c0_3, %c0_4] : memref<1x8x512xbf16, #tpu.memory_space<vmem>>, vector<1x8x512xbf16>
    %4 = vector.shape_cast %3 : vector<1x8x512xbf16> to vector<8x512xbf16>
    %5 = arith.extf %4 : vector<8x512xbf16> to vector<8x512xf32>
    %6 = arith.addf %2, %5 : vector<8x512xf32>
    %c0_5 = arith.constant 0 : index
    %c0_6 = arith.constant 0 : index
    %7 = vector.load %arg4[%c0_5, %c0_6] : memref<128x8xf32, #tpu.memory_space<vmem>>, vector<128x8xf32>
    %c0_7 = arith.constant 0 : index
    %c0_8 = arith.constant 0 : index
    %8 = vector.load %arg5[%c0_7, %c0_8] : memref<128x1xf32, #tpu.memory_space<vmem>>, vector<128x1xf32>
    %c0_9 = arith.constant 0 : index
    %c0_10 = arith.constant 0 : index
    %9 = vector.load %arg6[%c0_9, %c0_10] : memref<128x1xf32, #tpu.memory_space<vmem>>, vector<128x1xf32>
    %cst = arith.constant 0.000000e+00 : f32
    %10 = vector.broadcast %cst : f32 to vector<1x512xf32>
    %11 = vector.extract_strided_slice %7 {offsets = [0, 0], sizes = [32, 8], strides = [1, 1]} : vector<128x8xf32> to vector<32x8xf32>
    %cst_11 = arith.constant dense<0.000000e+00> : vector<32x512xf32>
    %12 = tpu.matmul %11, %6, %cst_11 {dimension_numbers = #tpu.dot_dimension_numbers<[1], [0], [0], [1], [0, 0, 1, 1], [], []>} : vector<32x8xf32>, vector<8x512xf32>, vector<32x512xf32> -> vector<32x512xf32>
    %13 = vector.extract_strided_slice %8 {offsets = [0, 0], sizes = [32, 1], strides = [1, 1]} : vector<128x1xf32> to vector<32x1xf32>
    %14 = vector.broadcast %13 : vector<32x1xf32> to vector<32x512xf32>
    %15 = arith.addf %12, %14 : vector<32x512xf32>
    %cst_12 = arith.constant 5.000000e-01 : f32
    %16 = vector.broadcast %cst_12 : f32 to vector<32x512xf32>
    %17 = arith.mulf %16, %15 : vector<32x512xf32>
    %cst_13 = arith.constant 0.707106769 : f32
    %18 = vector.broadcast %cst_13 : f32 to vector<32x512xf32>
    %19 = arith.mulf %15, %18 : vector<32x512xf32>
    %20 = math.absf %19 : vector<32x512xf32>
    %cst_14 = arith.constant 0.327591091 : f32
    %21 = vector.broadcast %cst_14 : f32 to vector<32x512xf32>
    %22 = arith.mulf %21, %20 : vector<32x512xf32>
    %cst_15 = arith.constant 1.000000e+00 : f32
    %23 = vector.broadcast %cst_15 : f32 to vector<32x512xf32>
    %24 = arith.addf %23, %22 : vector<32x512xf32>
    %cst_16 = arith.constant 1.000000e+00 : f32
    %25 = vector.broadcast %cst_16 : f32 to vector<32x512xf32>
    %26 = arith.divf %25, %24 : vector<32x512xf32>
    %cst_17 = arith.constant 1.06140542 : f32
    %27 = vector.broadcast %cst_17 : f32 to vector<32x512xf32>
    %28 = arith.mulf %27, %26 : vector<32x512xf32>
    %cst_18 = arith.constant -1.45315206 : f32
    %29 = vector.broadcast %cst_18 : f32 to vector<32x512xf32>
    %30 = arith.addf %28, %29 : vector<32x512xf32>
    %31 = arith.mulf %30, %26 : vector<32x512xf32>
    %cst_19 = arith.constant 1.42141378 : f32
    %32 = vector.broadcast %cst_19 : f32 to vector<32x512xf32>
    %33 = arith.addf %31, %32 : vector<32x512xf32>
    %34 = arith.mulf %33, %26 : vector<32x512xf32>
    %cst_20 = arith.constant -0.284496725 : f32
    %35 = vector.broadcast %cst_20 : f32 to vector<32x512xf32>
    %36 = arith.addf %34, %35 : vector<32x512xf32>
    %37 = arith.mulf %36, %26 : vector<32x512xf32>
    %cst_21 = arith.constant 0.254829586 : f32
    %38 = vector.broadcast %cst_21 : f32 to vector<32x512xf32>
    %39 = arith.addf %37, %38 : vector<32x512xf32>
    %40 = arith.mulf %39, %26 : vector<32x512xf32>
    %cst_22 = arith.constant 0.000000e+00 : f32
    %41 = vector.broadcast %cst_22 : f32 to vector<32x512xf32>
    %42 = arith.subf %41, %20 : vector<32x512xf32>
    %43 = arith.mulf %42, %20 : vector<32x512xf32>
    %44 = math.exp %43 : vector<32x512xf32>
    %45 = arith.mulf %40, %44 : vector<32x512xf32>
    %cst_23 = arith.constant 1.000000e+00 : f32
    %46 = vector.broadcast %cst_23 : f32 to vector<32x512xf32>
    %47 = arith.subf %46, %45 : vector<32x512xf32>
    %cst_24 = arith.constant 0.000000e+00 : f32
    %48 = vector.broadcast %cst_24 : f32 to vector<32x512xf32>
    %49 = arith.cmpf oge, %19, %48 : vector<32x512xf32>
    %cst_25 = arith.constant 0.000000e+00 : f32
    %50 = vector.broadcast %cst_25 : f32 to vector<32x512xf32>
    %51 = arith.subf %50, %47 : vector<32x512xf32>
    %52 = arith.select %49, %47, %51 : vector<32x512xi1>, vector<32x512xf32>
    %cst_26 = arith.constant 1.000000e+00 : f32
    %53 = vector.broadcast %cst_26 : f32 to vector<32x512xf32>
    %54 = arith.addf %53, %52 : vector<32x512xf32>
    %55 = arith.mulf %17, %54 : vector<32x512xf32>
    %56 = vector.extract_strided_slice %9 {offsets = [0, 0], sizes = [32, 1], strides = [1, 1]} : vector<128x1xf32> to vector<32x1xf32>
    %57 = vector.broadcast %56 : vector<32x1xf32> to vector<32x512xf32>
    %58 = arith.mulf %57, %55 : vector<32x512xf32>
    %cst_27 = arith.constant dense<0.000000e+00> : vector<512xf32>
    %59 = vector.multi_reduction <add>, %58, %cst_27 [0] : vector<32x512xf32> to vector<512xf32>
    %60 = vector.shape_cast %59 : vector<512xf32> to vector<1x512xf32>
    %61 = arith.addf %10, %60 : vector<1x512xf32>
    %62 = vector.extract_strided_slice %7 {offsets = [32, 0], sizes = [32, 8], strides = [1, 1]} : vector<128x8xf32> to vector<32x8xf32>
    %cst_28 = arith.constant dense<0.000000e+00> : vector<32x512xf32>
    %63 = tpu.matmul %62, %6, %cst_28 {dimension_numbers = #tpu.dot_dimension_numbers<[1], [0], [0], [1], [0, 0, 1, 1], [], []>} : vector<32x8xf32>, vector<8x512xf32>, vector<32x512xf32> -> vector<32x512xf32>
    %64 = vector.extract_strided_slice %8 {offsets = [32, 0], sizes = [32, 1], strides = [1, 1]} : vector<128x1xf32> to vector<32x1xf32>
    %65 = vector.broadcast %64 : vector<32x1xf32> to vector<32x512xf32>
    %66 = arith.addf %63, %65 : vector<32x512xf32>
    %cst_29 = arith.constant 5.000000e-01 : f32
    %67 = vector.broadcast %cst_29 : f32 to vector<32x512xf32>
    %68 = arith.mulf %67, %66 : vector<32x512xf32>
    %cst_30 = arith.constant 0.707106769 : f32
    %69 = vector.broadcast %cst_30 : f32 to vector<32x512xf32>
    %70 = arith.mulf %66, %69 : vector<32x512xf32>
    %71 = math.absf %70 : vector<32x512xf32>
    %cst_31 = arith.constant 0.327591091 : f32
    %72 = vector.broadcast %cst_31 : f32 to vector<32x512xf32>
    %73 = arith.mulf %72, %71 : vector<32x512xf32>
    %cst_32 = arith.constant 1.000000e+00 : f32
    %74 = vector.broadcast %cst_32 : f32 to vector<32x512xf32>
    %75 = arith.addf %74, %73 : vector<32x512xf32>
    %cst_33 = arith.constant 1.000000e+00 : f32
    %76 = vector.broadcast %cst_33 : f32 to vector<32x512xf32>
    %77 = arith.divf %76, %75 : vector<32x512xf32>
    %cst_34 = arith.constant 1.06140542 : f32
    %78 = vector.broadcast %cst_34 : f32 to vector<32x512xf32>
    %79 = arith.mulf %78, %77 : vector<32x512xf32>
    %cst_35 = arith.constant -1.45315206 : f32
    %80 = vector.broadcast %cst_35 : f32 to vector<32x512xf32>
    %81 = arith.addf %79, %80 : vector<32x512xf32>
    %82 = arith.mulf %81, %77 : vector<32x512xf32>
    %cst_36 = arith.constant 1.42141378 : f32
    %83 = vector.broadcast %cst_36 : f32 to vector<32x512xf32>
    %84 = arith.addf %82, %83 : vector<32x512xf32>
    %85 = arith.mulf %84, %77 : vector<32x512xf32>
    %cst_37 = arith.constant -0.284496725 : f32
    %86 = vector.broadcast %cst_37 : f32 to vector<32x512xf32>
    %87 = arith.addf %85, %86 : vector<32x512xf32>
    %88 = arith.mulf %87, %77 : vector<32x512xf32>
    %cst_38 = arith.constant 0.254829586 : f32
    %89 = vector.broadcast %cst_38 : f32 to vector<32x512xf32>
    %90 = arith.addf %88, %89 : vector<32x512xf32>
    %91 = arith.mulf %90, %77 : vector<32x512xf32>
    %cst_39 = arith.constant 0.000000e+00 : f32
    %92 = vector.broadcast %cst_39 : f32 to vector<32x512xf32>
    %93 = arith.subf %92, %71 : vector<32x512xf32>
    %94 = arith.mulf %93, %71 : vector<32x512xf32>
    %95 = math.exp %94 : vector<32x512xf32>
    %96 = arith.mulf %91, %95 : vector<32x512xf32>
    %cst_40 = arith.constant 1.000000e+00 : f32
    %97 = vector.broadcast %cst_40 : f32 to vector<32x512xf32>
    %98 = arith.subf %97, %96 : vector<32x512xf32>
    %cst_41 = arith.constant 0.000000e+00 : f32
    %99 = vector.broadcast %cst_41 : f32 to vector<32x512xf32>
    %100 = arith.cmpf oge, %70, %99 : vector<32x512xf32>
    %cst_42 = arith.constant 0.000000e+00 : f32
    %101 = vector.broadcast %cst_42 : f32 to vector<32x512xf32>
    %102 = arith.subf %101, %98 : vector<32x512xf32>
    %103 = arith.select %100, %98, %102 : vector<32x512xi1>, vector<32x512xf32>
    %cst_43 = arith.constant 1.000000e+00 : f32
    %104 = vector.broadcast %cst_43 : f32 to vector<32x512xf32>
    %105 = arith.addf %104, %103 : vector<32x512xf32>
    %106 = arith.mulf %68, %105 : vector<32x512xf32>
    %107 = vector.extract_strided_slice %9 {offsets = [32, 0], sizes = [32, 1], strides = [1, 1]} : vector<128x1xf32> to vector<32x1xf32>
    %108 = vector.broadcast %107 : vector<32x1xf32> to vector<32x512xf32>
    %109 = arith.mulf %108, %106 : vector<32x512xf32>
    %cst_44 = arith.constant dense<0.000000e+00> : vector<512xf32>
    %110 = vector.multi_reduction <add>, %109, %cst_44 [0] : vector<32x512xf32> to vector<512xf32>
    %111 = vector.shape_cast %110 : vector<512xf32> to vector<1x512xf32>
    %112 = arith.addf %61, %111 : vector<1x512xf32>
    %113 = vector.extract_strided_slice %7 {offsets = [64, 0], sizes = [32, 8], strides = [1, 1]} : vector<128x8xf32> to vector<32x8xf32>
    %cst_45 = arith.constant dense<0.000000e+00> : vector<32x512xf32>
    %114 = tpu.matmul %113, %6, %cst_45 {dimension_numbers = #tpu.dot_dimension_numbers<[1], [0], [0], [1], [0, 0, 1, 1], [], []>} : vector<32x8xf32>, vector<8x512xf32>, vector<32x512xf32> -> vector<32x512xf32>
    %115 = vector.extract_strided_slice %8 {offsets = [64, 0], sizes = [32, 1], strides = [1, 1]} : vector<128x1xf32> to vector<32x1xf32>
    %116 = vector.broadcast %115 : vector<32x1xf32> to vector<32x512xf32>
    %117 = arith.addf %114, %116 : vector<32x512xf32>
    %cst_46 = arith.constant 5.000000e-01 : f32
    %118 = vector.broadcast %cst_46 : f32 to vector<32x512xf32>
    %119 = arith.mulf %118, %117 : vector<32x512xf32>
    %cst_47 = arith.constant 0.707106769 : f32
    %120 = vector.broadcast %cst_47 : f32 to vector<32x512xf32>
    %121 = arith.mulf %117, %120 : vector<32x512xf32>
    %122 = math.absf %121 : vector<32x512xf32>
    %cst_48 = arith.constant 0.327591091 : f32
    %123 = vector.broadcast %cst_48 : f32 to vector<32x512xf32>
    %124 = arith.mulf %123, %122 : vector<32x512xf32>
    %cst_49 = arith.constant 1.000000e+00 : f32
    %125 = vector.broadcast %cst_49 : f32 to vector<32x512xf32>
    %126 = arith.addf %125, %124 : vector<32x512xf32>
    %cst_50 = arith.constant 1.000000e+00 : f32
    %127 = vector.broadcast %cst_50 : f32 to vector<32x512xf32>
    %128 = arith.divf %127, %126 : vector<32x512xf32>
    %cst_51 = arith.constant 1.06140542 : f32
    %129 = vector.broadcast %cst_51 : f32 to vector<32x512xf32>
    %130 = arith.mulf %129, %128 : vector<32x512xf32>
    %cst_52 = arith.constant -1.45315206 : f32
    %131 = vector.broadcast %cst_52 : f32 to vector<32x512xf32>
    %132 = arith.addf %130, %131 : vector<32x512xf32>
    %133 = arith.mulf %132, %128 : vector<32x512xf32>
    %cst_53 = arith.constant 1.42141378 : f32
    %134 = vector.broadcast %cst_53 : f32 to vector<32x512xf32>
    %135 = arith.addf %133, %134 : vector<32x512xf32>
    %136 = arith.mulf %135, %128 : vector<32x512xf32>
    %cst_54 = arith.constant -0.284496725 : f32
    %137 = vector.broadcast %cst_54 : f32 to vector<32x512xf32>
    %138 = arith.addf %136, %137 : vector<32x512xf32>
    %139 = arith.mulf %138, %128 : vector<32x512xf32>
    %cst_55 = arith.constant 0.254829586 : f32
    %140 = vector.broadcast %cst_55 : f32 to vector<32x512xf32>
    %141 = arith.addf %139, %140 : vector<32x512xf32>
    %142 = arith.mulf %141, %128 : vector<32x512xf32>
    %cst_56 = arith.constant 0.000000e+00 : f32
    %143 = vector.broadcast %cst_56 : f32 to vector<32x512xf32>
    %144 = arith.subf %143, %122 : vector<32x512xf32>
    %145 = arith.mulf %144, %122 : vector<32x512xf32>
    %146 = math.exp %145 : vector<32x512xf32>
    %147 = arith.mulf %142, %146 : vector<32x512xf32>
    %cst_57 = arith.constant 1.000000e+00 : f32
    %148 = vector.broadcast %cst_57 : f32 to vector<32x512xf32>
    %149 = arith.subf %148, %147 : vector<32x512xf32>
    %cst_58 = arith.constant 0.000000e+00 : f32
    %150 = vector.broadcast %cst_58 : f32 to vector<32x512xf32>
    %151 = arith.cmpf oge, %121, %150 : vector<32x512xf32>
    %cst_59 = arith.constant 0.000000e+00 : f32
    %152 = vector.broadcast %cst_59 : f32 to vector<32x512xf32>
    %153 = arith.subf %152, %149 : vector<32x512xf32>
    %154 = arith.select %151, %149, %153 : vector<32x512xi1>, vector<32x512xf32>
    %cst_60 = arith.constant 1.000000e+00 : f32
    %155 = vector.broadcast %cst_60 : f32 to vector<32x512xf32>
    %156 = arith.addf %155, %154 : vector<32x512xf32>
    %157 = arith.mulf %119, %156 : vector<32x512xf32>
    %158 = vector.extract_strided_slice %9 {offsets = [64, 0], sizes = [32, 1], strides = [1, 1]} : vector<128x1xf32> to vector<32x1xf32>
    %159 = vector.broadcast %158 : vector<32x1xf32> to vector<32x512xf32>
    %160 = arith.mulf %159, %157 : vector<32x512xf32>
    %cst_61 = arith.constant dense<0.000000e+00> : vector<512xf32>
    %161 = vector.multi_reduction <add>, %160, %cst_61 [0] : vector<32x512xf32> to vector<512xf32>
    %162 = vector.shape_cast %161 : vector<512xf32> to vector<1x512xf32>
    %163 = arith.addf %112, %162 : vector<1x512xf32>
    %164 = vector.extract_strided_slice %7 {offsets = [96, 0], sizes = [32, 8], strides = [1, 1]} : vector<128x8xf32> to vector<32x8xf32>
    %cst_62 = arith.constant dense<0.000000e+00> : vector<32x512xf32>
    %165 = tpu.matmul %164, %6, %cst_62 {dimension_numbers = #tpu.dot_dimension_numbers<[1], [0], [0], [1], [0, 0, 1, 1], [], []>} : vector<32x8xf32>, vector<8x512xf32>, vector<32x512xf32> -> vector<32x512xf32>
    %166 = vector.extract_strided_slice %8 {offsets = [96, 0], sizes = [32, 1], strides = [1, 1]} : vector<128x1xf32> to vector<32x1xf32>
    %167 = vector.broadcast %166 : vector<32x1xf32> to vector<32x512xf32>
    %168 = arith.addf %165, %167 : vector<32x512xf32>
    %cst_63 = arith.constant 5.000000e-01 : f32
    %169 = vector.broadcast %cst_63 : f32 to vector<32x512xf32>
    %170 = arith.mulf %169, %168 : vector<32x512xf32>
    %cst_64 = arith.constant 0.707106769 : f32
    %171 = vector.broadcast %cst_64 : f32 to vector<32x512xf32>
    %172 = arith.mulf %168, %171 : vector<32x512xf32>
    %173 = math.absf %172 : vector<32x512xf32>
    %cst_65 = arith.constant 0.327591091 : f32
    %174 = vector.broadcast %cst_65 : f32 to vector<32x512xf32>
    %175 = arith.mulf %174, %173 : vector<32x512xf32>
    %cst_66 = arith.constant 1.000000e+00 : f32
    %176 = vector.broadcast %cst_66 : f32 to vector<32x512xf32>
    %177 = arith.addf %176, %175 : vector<32x512xf32>
    %cst_67 = arith.constant 1.000000e+00 : f32
    %178 = vector.broadcast %cst_67 : f32 to vector<32x512xf32>
    %179 = arith.divf %178, %177 : vector<32x512xf32>
    %cst_68 = arith.constant 1.06140542 : f32
    %180 = vector.broadcast %cst_68 : f32 to vector<32x512xf32>
    %181 = arith.mulf %180, %179 : vector<32x512xf32>
    %cst_69 = arith.constant -1.45315206 : f32
    %182 = vector.broadcast %cst_69 : f32 to vector<32x512xf32>
    %183 = arith.addf %181, %182 : vector<32x512xf32>
    %184 = arith.mulf %183, %179 : vector<32x512xf32>
    %cst_70 = arith.constant 1.42141378 : f32
    %185 = vector.broadcast %cst_70 : f32 to vector<32x512xf32>
    %186 = arith.addf %184, %185 : vector<32x512xf32>
    %187 = arith.mulf %186, %179 : vector<32x512xf32>
    %cst_71 = arith.constant -0.284496725 : f32
    %188 = vector.broadcast %cst_71 : f32 to vector<32x512xf32>
    %189 = arith.addf %187, %188 : vector<32x512xf32>
    %190 = arith.mulf %189, %179 : vector<32x512xf32>
    %cst_72 = arith.constant 0.254829586 : f32
    %191 = vector.broadcast %cst_72 : f32 to vector<32x512xf32>
    %192 = arith.addf %190, %191 : vector<32x512xf32>
    %193 = arith.mulf %192, %179 : vector<32x512xf32>
    %cst_73 = arith.constant 0.000000e+00 : f32
    %194 = vector.broadcast %cst_73 : f32 to vector<32x512xf32>
    %195 = arith.subf %194, %173 : vector<32x512xf32>
    %196 = arith.mulf %195, %173 : vector<32x512xf32>
    %197 = math.exp %196 : vector<32x512xf32>
    %198 = arith.mulf %193, %197 : vector<32x512xf32>
    %cst_74 = arith.constant 1.000000e+00 : f32
    %199 = vector.broadcast %cst_74 : f32 to vector<32x512xf32>
    %200 = arith.subf %199, %198 : vector<32x512xf32>
    %cst_75 = arith.constant 0.000000e+00 : f32
    %201 = vector.broadcast %cst_75 : f32 to vector<32x512xf32>
    %202 = arith.cmpf oge, %172, %201 : vector<32x512xf32>
    %cst_76 = arith.constant 0.000000e+00 : f32
    %203 = vector.broadcast %cst_76 : f32 to vector<32x512xf32>
    %204 = arith.subf %203, %200 : vector<32x512xf32>
    %205 = arith.select %202, %200, %204 : vector<32x512xi1>, vector<32x512xf32>
    %cst_77 = arith.constant 1.000000e+00 : f32
    %206 = vector.broadcast %cst_77 : f32 to vector<32x512xf32>
    %207 = arith.addf %206, %205 : vector<32x512xf32>
    %208 = arith.mulf %170, %207 : vector<32x512xf32>
    %209 = vector.extract_strided_slice %9 {offsets = [96, 0], sizes = [32, 1], strides = [1, 1]} : vector<128x1xf32> to vector<32x1xf32>
    %210 = vector.broadcast %209 : vector<32x1xf32> to vector<32x512xf32>
    %211 = arith.mulf %210, %208 : vector<32x512xf32>
    %cst_78 = arith.constant dense<0.000000e+00> : vector<512xf32>
    %212 = vector.multi_reduction <add>, %211, %cst_78 [0] : vector<32x512xf32> to vector<512xf32>
    %213 = vector.shape_cast %212 : vector<512xf32> to vector<1x512xf32>
    %214 = arith.addf %163, %213 : vector<1x512xf32>
    %c0_79 = arith.constant 0 : index
    %c0_80 = arith.constant 0 : index
    %215 = vector.load %arg7[%c0_79, %c0_80] : memref<1x1xf32, #tpu.memory_space<vmem>>, vector<1x1xf32>
    %216 = vector.broadcast %215 : vector<1x1xf32> to vector<1x512xf32>
    %217 = arith.addf %214, %216 : vector<1x512xf32>
    %c0_81 = arith.constant 0 : index
    %c0_82 = arith.constant 0 : index
    %c0_83 = arith.constant 0 : index
    %218 = vector.load %arg8[%c0_81, %c0_82, %c0_83] : memref<1x1x1xf32, #tpu.memory_space<vmem>>, vector<1x1x1xf32>
    %219 = vector.shape_cast %218 : vector<1x1x1xf32> to vector<1x1xf32>
    %220 = vector.broadcast %219 : vector<1x1xf32> to vector<1x512xf32>
    %221 = arith.mulf %217, %220 : vector<1x512xf32>
    %c0_84 = arith.constant 0 : index
    %c0_85 = arith.constant 0 : index
    %c0_86 = arith.constant 0 : index
    %222 = vector.load %arg9[%c0_84, %c0_85, %c0_86] : memref<1x1x512xf32, #tpu.memory_space<vmem>>, vector<1x1x512xf32>
    %223 = vector.shape_cast %222 : vector<1x1x512xf32> to vector<1x512xf32>
    %224 = vector.shape_cast %221 : vector<1x512xf32> to vector<1x1x512xf32>
    tpu.vector_store %arg9[%c0_84, %c0_85, %c0_86], %224 {strides = array<i32>} : memref<1x1x512xf32, #tpu.memory_space<vmem>>, vector<1x1x512xf32>,
    return
  }
  func.func @transform_0(%arg0: i32, %arg1: i32) -> (i32, i32, i32) {
    %c0_i32 = arith.constant 0 : i32
    %c0_i32_0 = arith.constant 0 : i32
    return %arg1, %c0_i32, %arg0 : i32, i32, i32
  }
  func.func @transform_1(%arg0: i32, %arg1: i32) -> (i32, i32, i32) {
    %c0_i32 = arith.constant 0 : i32
    %c0_i32_0 = arith.constant 0 : i32
    return %arg1, %c0_i32, %arg0 : i32, i32, i32
  }
  func.func @transform_2(%arg0: i32, %arg1: i32) -> (i32, i32) {
    %c0_i32 = arith.constant 0 : i32
    %c0_i32_0 = arith.constant 0 : i32
    %c0_i32_1 = arith.constant 0 : i32
    return %c0_i32, %c0_i32_0 : i32, i32
  }
  func.func @transform_3(%arg0: i32, %arg1: i32) -> (i32, i32) {
    %c0_i32 = arith.constant 0 : i32
    %c0_i32_0 = arith.constant 0 : i32
    %c0_i32_1 = arith.constant 0 : i32
    return %c0_i32, %c0_i32_0 : i32, i32
  }
  func.func @transform_4(%arg0: i32, %arg1: i32) -> (i32, i32) {
    %c0_i32 = arith.constant 0 : i32
    %c0_i32_0 = arith.constant 0 : i32
    %c0_i32_1 = arith.constant 0 : i32
    return %c0_i32, %c0_i32_0 : i32, i32
  }
  func.func @transform_5(%arg0: i32, %arg1: i32) -> (i32, i32) {
    %c0_i32 = arith.constant 0 : i32
    %c0_i32_0 = arith.constant 0 : i32
    %c0_i32_1 = arith.constant 0 : i32
    return %c0_i32, %c0_i32_0 : i32, i32
  }
  func.func @transform_6(%arg0: i32, %arg1: i32) -> (i32, i32, i32) {
    %c0_i32 = arith.constant 0 : i32
    %c0_i32_0 = arith.constant 0 : i32
    %c0_i32_1 = arith.constant 0 : i32
    return %arg1, %c0_i32, %c0_i32_0 : i32, i32, i32
  }
  func.func @transform_7(%arg0: i32, %arg1: i32) -> (i32, i32, i32) {
    %c0_i32 = arith.constant 0 : i32
    %c0_i32_0 = arith.constant 0 : i32
    return %arg1, %c0_i32, %arg0 : i32, i32, i32
  }
}

</mosaic_0001>

<bundles_post_ra>
// kernel: fno3d_forward.16
= control target key start
LH: loop header
LB: loop body
LE: loop exit
PB: predicated region body
PF: predicated region fallthrough
CT: control target
= control target key end

     0   :  { %s697_s18 = smov 0   ;;  %s699_s19 = smov 0   ;;  %s749_s0 = inlined_call_operand.vmem [shape: f32[2,1,512], index: 0, kind: input, shape index: {}]   ;;  %s750_s1 = inlined_call_operand.vmem [shape: f32[3,512], index: 1, kind: input, shape index: {}]   ;;  %s751_s2 = inlined_call_operand.vmem [shape: f32[8,1], index: 2, kind: input, shape index: {}]   ;;  %s752_s3 = inlined_call_operand.vmem [shape: f32[8,3], index: 3, kind: input, shape index: {}]   ;;  %s753_s4 = inlined_call_operand.vmem [shape: f32[8,1], index: 4, kind: input, shape index: {}]   ;;  %s754_s5 = inlined_call_operand.vmem [shape: bf16[2,8,512], index: 5, kind: output, shape index: {}]  }
   0x1   :  { %s701_s20 = smov 0  }
   0x2 LB: > { %s24_s21 = sadd.s32 1, %s658_s19  ;;  %p597_p0 = scmp.ge.s32.totalorder %s662_s20, 1  ;;  %s662_s20 = sphi %s701_s20, %s15_s20   ;;  %s658_s19 = sphi %s699_s19, %s756_s19   ;;  %s654_s18 = sphi %s697_s18, %s755_s18  }
   0x3   : > { %p25_p1 = scmp.ge.s32.totalorder %s24_s21, 2  ;;  %p218_p2 = scmp.lt.s32.totalorder %s662_s20, 3 }
   0x5   : > { %s758_s21 = smov (%p25_p1, %s24_s21), 0  ;;  %p219_p3 = pnand %p597_p0, %p218_p2 }
   0x6   : > { %v315_v0 = vld [vmem:[%s752_s3] sm:$0xff] (!%p219_p3)  ;;  %v664_v1 = vmov (!%p219_p3), 2   ;;  %v665_v2 = vmov (!%p219_p3), 0   ;;  %v666_v4 = vmov (!%p219_p3), 1   ;;  %v291_v6 = vlaneseq (!%p219_p3)  ;;  %p259_p4 = scmp.lt.s32.totalorder (!%p219_p3), %s654_s18, 1 }
   0x7   : > { %222 = sbr.rel (%p219_p3) target bundleno = 154 (0x9a), region = 40  ;;  %637 = vset.pattern.permute.xlu1 (!%p219_p3), %v664_v1  ;;  %635 = vset.pattern.permute.xlu0 (!%p219_p3), %v665_v2  ;;  %v284_v3 = vld [vmem:[%s751_s2] sm:$0xff] (!%p219_p3)  ;;  %v317_v11 = vld [vmem:[%s750_s1 + $0x8] sm:$0x77] (!%p219_p3) }
   0x8   : > { %414 = vperm.xlu1 (!%p219_p3), %637, %v315_v0   ;;  %320 = vperm.xlu0 (!%p219_p3), %635, %v315_v0   ;;  %v465_v5 = vld [vmem:[%s753_s4] sm:$0xff] (!%p219_p3)  ;;  %v292_v7 = vshrl.u32 (!%p219_p3), %v291_v6, 7 }
   0x9   : > { %v316_v10 = vld [vmem:[%s750_s1] sm:$0x77] (!%p219_p3) }
   0xa   : > { %v293_v8 = vsub.s32 (!%p219_p3), 0, %v292_v7  ;;  %v331_v9 = vsub.s32 (!%p219_p3), 4, %v292_v7  ;;  %v301_v12 = vsub.s32 (!%p219_p3), 2, %v292_v7  ;;  %v423_v13 = vsub.s32 (!%p219_p3), 6, %v292_v7 }
   0xb   : > { %v297_v14 = vsub.s32 (!%p219_p3), 1, %v292_v7  ;;  %v375_v15 = vsub.s32 (!%p219_p3), 5, %v292_v7  ;;  %v305_v28 = vsub.s32 (!%p219_p3), 3, %v292_v7 }
   0xc   : > { %638 = vset.pattern.permute.xlu1 (!%p219_p3), %v665_v2  ;;  %636 = vset.pattern.permute.xlu0 (!%p219_p3), %v666_v4  ;;  %v328_v16 = vrot.slane (!%p219_p3), %v316_v10, %v293_v8  ;;  %v332_v17 = vrot.slane (!%p219_p3), %v316_v10, %v331_v9  ;;  %v336_v18 = vrot.slane (!%p219_p3), %v317_v11, %v293_v8 }
   0xd   : > { %366 = vperm.xlu0 (!%p219_p3), %636, %v315_v0   ;;  %287 = vperm.xlu1 (!%p219_p3), %638, %v284_v3   ;;  %v340_v19 = vrot.slane (!%p219_p3), %v317_v11, %v331_v9  ;;  %v420_v20 = vrot.slane (!%p219_p3), %v316_v10, %v301_v12  ;;  %v424_v21 = vrot.slane (!%p219_p3), %v316_v10, %v423_v13 }
   0xe   : > { %s760_s18 = smov (!%p259_p4, %s654_s18), 1  ;;  %v428_v22 = vrot.slane %v317_v11, %v301_v12  ;;  %v432_v23 = vrot.slane %v317_v11, %v423_v13  ;;  %v372_v24 = vrot.slane %v316_v10, %v297_v14  ;;  %v376_v25 = vrot.slane %v316_v10, %v375_v15 }
   0xf   : > { %s598_s7 = sshll.u32 %s760_s18, 2  ;;  %v380_v26 = vrot.slane %v317_v11, %v297_v14  ;;  %v384_v27 = vrot.slane %v317_v11, %v375_v15  ;;  %v348_v29 = vrot.slane %v328_v16, %v293_v8  ;;  %v352_v30 = vrot.slane %v332_v17, %v293_v8  ;;  %s605_s11 = sshll.u32 %s760_s18, 4 }
  0x10   : > { %s265_s10 = scalar_lea.vmem %s749_s0, %s598_s7  ;;  %v356_v31 = vrot.slane %v336_v18, %v293_v8  ;;  %v360_v32 = vrot.slane %v340_v19, %v293_v8  ;;  %v440_v36 = vrot.slane %v420_v20, %v301_v12  ;;  %v444_v37 = vrot.slane %v424_v21, %v301_v12  ;;  %s281_s14 = scalar_lea.vmem %s754_s5, %s605_s11 }
  0x11   : > { %468 = vperm.xlu1 %638, %v465_v5   ;;  %639 = vset.pattern.permute.xlu0 %v665_v2  ;;  %v283_v35 = vld [vmem:[%s265_s10] sm:$0xf]  ;;  %v448_v38 = vrot.slane %v428_v22, %v301_v12  ;;  %v452_v39 = vrot.slane %v432_v23, %v301_v12  ;;  %v392_v40 = vrot.slane %v372_v24, %v297_v14 }
  0x12   : > { %v396_v41 = vrot.slane %v376_v25, %v297_v14  ;;  %v400_v42 = vrot.slane %v380_v26, %v297_v14  ;;  %v404_v43 = vrot.slane %v384_v27, %v297_v14  ;;  %v294_v44 = vrot.slane %v283_v35, %v293_v8 }
  0x13   : > { %v298_v45 = vrot.slane %v283_v35, %v297_v14  ;;  %v302_v46 = vrot.slane %v283_v35, %v301_v12  ;;  %v306_v47 = vrot.slane %v283_v35, %v305_v28 }
  0x87   : > { %v321_v33 = vpop.permute.xlu0 %320  ;;  %v415_v34 = vpop.permute.xlu1 %414 }
  0x88   : > { %v361_v48 = vmul.f32 %v348_v29, %v321_v33  ;;  %v362_v49 = vmul.f32 %v352_v30, %v321_v33  ;;  %v363_v50 = vmul.f32 %v356_v31, %v321_v33  ;;  %v364_v51 = vmul.f32 %v360_v32, %v321_v33 }
  0x89   : > { %v453_v52 = vmul.f32 %v440_v36, %v415_v34  ;;  %v454_v53 = vmul.f32 %v444_v37, %v415_v34  ;;  %v455_v54 = vmul.f32 %v448_v38, %v415_v34  ;;  %v456_v55 = vmul.f32 %v452_v39, %v415_v34 }
  0x8c   : > { %v367_v56 = vpop.permute.xlu0 %366  ;;  %v288_v61 = vpop.permute.xlu1 %287 }
  0x8d   : > { %v405_v57 = vmul.f32 %v392_v40, %v367_v56  ;;  %v406_v58 = vmul.f32 %v396_v41, %v367_v56  ;;  %v407_v59 = vmul.f32 %v400_v42, %v367_v56  ;;  %v408_v60 = vmul.f32 %v404_v43, %v367_v56 }
  0x8e   : > { %v311_v62 = vmul.f32 %v294_v44, %v288_v61  ;;  %v312_v63 = vmul.f32 %v298_v45, %v288_v61  ;;  %v313_v0 = vmul.f32 %v302_v46, %v288_v61  ;;  %v314_v1 = vmul.f32 %v306_v47, %v288_v61 }
  0x8f   : > { %v409_v2 = vadd.f32 %v405_v57, %v361_v48  ;;  %v410_v3 = vadd.f32 %v406_v58, %v362_v49  ;;  %v411_v4 = vadd.f32 %v407_v59, %v363_v50  ;;  %v412_v5 = vadd.f32 %v408_v60, %v364_v51 }
  0x90   : > { %v469_v14 = vpop.permute.xlu1 %468 }
  0x91   : > { %v457_v6 = vadd.f32 %v453_v52, %v409_v2  ;;  %v458_v7 = vadd.f32 %v454_v53, %v410_v3  ;;  %v459_v8 = vadd.f32 %v455_v54, %v411_v4  ;;  %v460_v9 = vadd.f32 %v456_v55, %v412_v5 }
  0x93   : > { %v461_v10 = vadd.f32 %v457_v6, %v311_v62  ;;  %v462_v11 = vadd.f32 %v458_v7, %v312_v63  ;;  %v463_v12 = vadd.f32 %v459_v8, %v313_v0  ;;  %v464_v13 = vadd.f32 %v460_v9, %v314_v1 }
  0x95   : > { %v471_v15 = vadd.f32 %v469_v14, %v461_v10  ;;  %v472_v16 = vadd.f32 %v469_v14, %v462_v11  ;;  %v473_v17 = vadd.f32 %v469_v14, %v463_v12  ;;  %v474_v18 = vadd.f32 %v469_v14, %v464_v13 }
  0x97   : > { %v606_v19 = vpack.c.bf16 %v472_v16, %v471_v15  ;;  %v607_v20 = vpack.c.bf16 %v474_v18, %v473_v17 }
  0x99   : > { %491 = vst [vmem:[%s281_s14] sm:$0xff] %v606_v19  ;;  %492 = vst [vmem:[%s281_s14 + $0x8] sm:$0xff] %v607_v20 }
  0x9a PF: > { %s15_s20 = sadd.s32 1, %s662_s20   ;;  %s755_s18 = smov %s658_s19 }
  0x9b   : > { %p12_p5 = scmp.ge.s32.totalorder %s15_s20, 4   ;;  %s756_s19 = smov %s758_s21 }
  0x9d   :  { %14 = sbr.rel (!%p12_p5) target bundleno = 2 (0x2), region = 73 }

// kernel: fno3d_forward.11
= control target key start
LH: loop header
LB: loop body
LE: loop exit
PB: predicated region body
PF: predicated region fallthrough
CT: control target
= control target key end

     0   :  { %s859_s18 = smov 0   ;;  %s861_s19 = smov 0   ;;  %s923_s0 = inlined_call_operand.vmem [shape: f32[2,10,512], index: 0, kind: input, shape index: {}]   ;;  %s924_s1 = inlined_call_operand.vmem [shape: f32[3,512], index: 1, kind: input, shape index: {}]   ;;  %s925_s2 = inlined_call_operand.vmem [shape: f32[8,10], index: 2, kind: input, shape index: {}]   ;;  %s926_s3 = inlined_call_operand.vmem [shape: f32[8,3], index: 3, kind: input, shape index: {}]   ;;  %s927_s4 = inlined_call_operand.vmem [shape: f32[8,1], index: 4, kind: input, shape index: {}]   ;;  %s928_s5 = inlined_call_operand.vmem [shape: bf16[2,8,512], index: 5, kind: output, shape index: {}]  }
   0x1   :  { %s863_s20 = smov 0  }
   0x2 LB: > { %s24_s21 = sadd.s32 1, %s818_s19  ;;  %p735_p0 = scmp.ge.s32.totalorder %s822_s20, 1  ;;  %s822_s20 = sphi %s863_s20, %s15_s20   ;;  %s818_s19 = sphi %s861_s19, %s932_s19   ;;  %s814_s18 = sphi %s859_s18, %s931_s18  }
   0x3   : > { %p25_p1 = scmp.ge.s32.totalorder %s24_s21, 2  ;;  %p219_p2 = scmp.lt.s32.totalorder %s822_s20, 3 }
   0x5   : > { %s934_s21 = smov (%p25_p1, %s24_s21), 0  ;;  %p220_p3 = pnand %p735_p0, %p219_p2 }
   0x6   : > { %p261_p4 = scmp.lt.s32.totalorder (!%p220_p3), %s814_s18, 1  ;;  %v824_v0 = vmov (!%p220_p3), 0.0   ;;  %v295_v1 = vld [vmem:[%s926_s3] sm:$0xff] (!%p220_p3)  ;;  %vm445_vm0 = vcmask (!%p220_p3), 1041408   ;;  %v825_v2 = vmov (!%p220_p3), 0   ;;  %v826_v3 = vmov (!%p220_p3), 2  }
   0x7   : > { %223 = sbr.rel (%p220_p3) target bundleno = 246 (0xf6), region = 40  ;;  %522 = vmatprep.mubr.f32.mxu0 (!%p220_p3), %v824_v0  ;;  %593 = vmatprep.mubr.f32.mxu1 (!%p220_p3), %v824_v0  ;;  %vm827_vm1 = vmmov (!%p220_p3), 1   ;;  %v600_v5 = vld [vmem:[%s927_s4] sm:$0xff] (!%p220_p3)  ;;  %v828_v13 = vmov (!%p220_p3), 1   ;;  %vm441_vm3 = vcmask (!%p220_p3), 80896   ;;  %v305_v20 = vlaneseq (!%p220_p3) }
   0x8   : > { %795 = vset.pattern.permute.xlu0 (!%p220_p3), %v825_v2  ;;  %797 = vset.pattern.permute.xlu1 (!%p220_p3), %v826_v3  ;;  %vm886_vm2 = vmpackc.low (!%p220_p3), %vm445_vm0, %vm827_vm1  ;;  %v294_v19 = vld [vmem:[%s925_s2] sm:$0xff] (!%p220_p3)  ;;  %v297_v27 = vld [vmem:[%s924_s1 + $0x8] sm:$0x77] (!%p220_p3) }
   0x9   : > { %300 = vperm.xlu0 (!%p220_p3), %795, %v295_v1   ;;  %394 = vperm.xlu1 (!%p220_p3), %797, %v295_v1   ;;  %v306_v21 = vshrl.u32 (!%p220_p3), %v305_v20, 7  ;;  %v296_v24 = vld [vmem:[%s924_s1] sm:$0x77] (!%p220_p3) }
   0xb   : > { %v307_v22 = vsub.s32 (!%p220_p3), 0, %v306_v21  ;;  %v351_v23 = vsub.s32 (!%p220_p3), 1, %v306_v21  ;;  %v311_v25 = vsub.s32 (!%p220_p3), 4, %v306_v21  ;;  %v355_v26 = vsub.s32 (!%p220_p3), 5, %v306_v21 }
   0xc   : > { %v399_v29 = vsub.s32 (!%p220_p3), 2, %v306_v21  ;;  %v403_v32 = vsub.s32 (!%p220_p3), 6, %v306_v21 }
   0xd   : > { %796 = vset.pattern.permute.xlu0 (!%p220_p3), %v828_v13  ;;  %798 = vset.pattern.permute.xlu1 (!%p220_p3), %v825_v2  ;;  %v308_v30 = vrot.slane (!%p220_p3), %v296_v24, %v307_v22  ;;  %v352_v31 = vrot.slane (!%p220_p3), %v296_v24, %v351_v23  ;;  %v312_v33 = vrot.slane (!%p220_p3), %v296_v24, %v311_v25 }
   0xe   : > { %s936_s18 = smov (!%p261_p4, %s814_s18), 1  ;;  %346 = vperm.xlu0 %796, %v295_v1   ;;  %603 = vperm.xlu1 %798, %v600_v5   ;;  %v316_v34 = vrot.slane %v297_v27, %v307_v22  ;;  %v356_v35 = vrot.slane %v296_v24, %v355_v26  ;;  %v360_v36 = vrot.slane %v297_v27, %v351_v23 }
   0xf   : > { %s750_s24 = sshll.u32 %s936_s18, 6  ;;  %v320_v37 = vrot.slane %v297_v27, %v311_v25  ;;  %v364_v38 = vrot.slane %v297_v27, %v355_v26  ;;  %v400_v39 = vrot.slane %v296_v24, %v399_v29  ;;  %v328_v40 = vrot.slane %v308_v30, %v307_v22  ;;  %s751_s11 = sshll.u32 %s936_s18, 4 }
  0x10   : > { %s268_s27 = scalar_lea.vmem %s923_s0, %s750_s24  ;;  %v372_v41 = vrot.slane %v352_v31, %v351_v23  ;;  %v408_v42 = vrot.slane %v297_v27, %v399_v29  ;;  %v404_v43 = vrot.slane %v296_v24, %v403_v32  ;;  %v332_v44 = vrot.slane %v312_v33, %v307_v22  ;;  %s284_s14 = scalar_lea.vmem %s928_s5, %s751_s11 }
  0x11   : > { %v287_v6 = vld [vmem:[%s268_s27 + $0x8] sm:$0xff]  ;;  %v289_v8 = vld [vmem:[%s268_s27 + $0x18] sm:$0xff]  ;;  %v286_v11 = vld [vmem:[%s268_s27] sm:$0xff]  ;;  %v336_v45 = vrot.slane %v316_v34, %v307_v22  ;;  %v376_v46 = vrot.slane %v356_v35, %v351_v23  ;;  %v380_v47 = vrot.slane %v360_v36, %v351_v23  ;;  %v340_v49 = vrot.slane %v320_v37, %v307_v22 }
  0x12   : > { %v291_v7 = vld [vmem:[%s268_s27 + $0x28] sm:$0x3]  ;;  %v293_v10 = vld [vmem:[%s268_s27 + $0x38] sm:$0x3]  ;;  %v290_v12 = vld [vmem:[%s268_s27 + $0x20] sm:$0x3]  ;;  %799 = vset.pattern.permute.xlu0 %v825_v2  ;;  %v384_v50 = vrot.slane %v364_v38, %v351_v23  ;;  %v412_v51 = vrot.slane %v297_v27, %v403_v32  ;;  %v420_v52 = vrot.slane %v400_v39, %v399_v29  ;;  %v428_v55 = vrot.slane %v408_v42, %v399_v29 }
  0x13   : > { %v754_v9 = vpack.c.bf16 %v291_v7, %v287_v6  ;;  %v760_v14 = vpack.c.bf16 %v293_v10, %v289_v8  ;;  %v757_v15 = vpack.c.bf16 %v290_v12, %v286_v11  ;;  %v288_v16 = vld [vmem:[%s268_s27 + $0x10] sm:$0xff]  ;;  %v424_v56 = vrot.slane %v404_v43, %v399_v29 }
  0x14   : > { %v292_v17 = vld [vmem:[%s268_s27 + $0x30] sm:$0x3]  ;;  %v432_v0 = vrot.slane %v412_v51, %v399_v29 }
  0x15   : > { %756 = vmatprep.subr.msk.bf16.mxu0 %vm886_vm2, %v754_v9  ;;  %v763_v18 = vpack.c.bf16 %v292_v17, %v288_v16  ;;  %762 = vmatprep.subr.msk.bf16.mxu1 %vm886_vm2, %v760_v14 }
  0x16   : > { %759 = vmatpush1.bf16.msk.msra.mxu0 %vm886_vm2, %v757_v15 }
  0x17   : > { %765 = vmatpush1.bf16.msk.msra.mxu1 %vm886_vm2, %v763_v18 }
  0x19   : > { %742 = vmatmul.mubr.msk.f32.vlgmr.msra.gmra.mrb[0].mxu0 %vm441_vm3, %v294_v19 }
  0x1a   : > { %745 = vmatmul.mubr.msk.f32.vlgmr.msra.gmra.mrb[0].mxu1 %vm441_vm3, %v294_v19 }
  0x88   : > { %v301_v28 = vpop.permute.xlu0 %300  ;;  %v395_v61 = vpop.permute.xlu1 %394 }
  0x89   : > { %v341_v53 = vmul.f32 %v328_v40, %v301_v28  ;;  %v342_v57 = vmul.f32 %v332_v44, %v301_v28  ;;  %v343_v58 = vmul.f32 %v336_v45, %v301_v28  ;;  %v344_v62 = vmul.f32 %v340_v49, %v301_v28 }
  0x8a   : > { %v433_v2 = vmul.f32 %v420_v52, %v395_v61  ;;  %v435_v4 = vmul.f32 %v428_v55, %v395_v61  ;;  %v434_v6 = vmul.f32 %v424_v56, %v395_v61  ;;  %v436_v8 = vmul.f32 %v432_v0, %v395_v61 }
  0x8d   : > { %v347_v48 = vpop.permute.xlu0 %346  ;;  %v604_v13 = vpop.permute.xlu1 %603 }
  0x8e   : > { %v385_v54 = vmul.f32 %v372_v41, %v347_v48  ;;  %v386_v59 = vmul.f32 %v376_v46, %v347_v48  ;;  %v387_v60 = vmul.f32 %v380_v47, %v347_v48  ;;  %v388_v63 = vmul.f32 %v384_v50, %v347_v48 }
  0x90   : > { %v389_v1 = vadd.f32 %v385_v54, %v341_v53  ;;  %v391_v3 = vadd.f32 %v387_v60, %v343_v58  ;;  %v390_v5 = vadd.f32 %v386_v59, %v342_v57  ;;  %v392_v7 = vadd.f32 %v388_v63, %v344_v62 }
  0x92   : > { %v437_v9 = vadd.f32 %v433_v2, %v389_v1  ;;  %v439_v11 = vadd.f32 %v435_v4, %v391_v3  ;;  %v438_v12 = vadd.f32 %v434_v6, %v390_v5  ;;  %v440_v17 = vadd.f32 %v436_v8, %v392_v7 }
  0xec   : > { %v524_v10 = vpop.f32.mrb[0].mxu0 }
  0xed   : > { %v525_v14 = vadd.f32 %v524_v10, %v437_v9  ;;  %v595_v15 = vpop.f32.mrb[0].mxu1  ;;  %v526_v16 = vpop.f32.mrb[1].mxu0 }
  0xee   : > { %v596_v18 = vadd.f32 %v595_v15, %v439_v11  ;;  %v527_v19 = vadd.f32 %v526_v16, %v438_v12  ;;  %v597_v20 = vpop.f32.mrb[1].mxu1 }
  0xef   : > { %v598_v21 = vadd.f32 %v597_v20, %v440_v17  ;;  %v606_v22 = vadd.f32 %v604_v13, %v525_v14 }
  0xf0   : > { %v607_v23 = vadd.f32 %v604_v13, %v527_v19  ;;  %v608_v24 = vadd.f32 %v604_v13, %v596_v18 }
  0xf1   : > { %v609_v25 = vadd.f32 %v604_v13, %v598_v21 }
  0xf2   : > { %v752_v26 = vpack.c.bf16 %v607_v23, %v606_v22 }
  0xf3   : > { %v753_v27 = vpack.c.bf16 %v609_v25, %v608_v24 }
  0xf4   : > { %626 = vst [vmem:[%s284_s14] sm:$0xff] %v752_v26 }
  0xf5   : > { %627 = vst [vmem:[%s284_s14 + $0x8] sm:$0xff] %v753_v27 }
  0xf6 PF: > { %s15_s20 = sadd.s32 1, %s822_s20   ;;  %s931_s18 = smov %s818_s19 }
  0xf7   : > { %p12_p5 = scmp.ge.s32.totalorder %s15_s20, 4   ;;  %s932_s19 = smov %s934_s21 }
  0xf9   :  { %14 = sbr.rel (!%p12_p5) target bundleno = 2 (0x2), region = 73 }

// kernel: fno3d_forward.17
= control target key start
LH: loop header
LB: loop body
LE: loop exit
PB: predicated region body
PF: predicated region fallthrough
CT: control target
= control target key end

     0   :  { %v39_v0 = vlaneseq  ;;  %s689_s0 = inlined_call_operand.vmem [shape: f32[2,8,128], index: 0, kind: input, shape index: {}]   ;;  %s690_s1 = inlined_call_operand.vmem [shape: f32[2,8,128], index: 1, kind: input, shape index: {}]   ;;  %s691_s2 = inlined_call_operand.vmem [shape: f32[8,8,128], index: 2, kind: input, shape index: {}]   ;;  %s692_s3 = inlined_call_operand.vmem [shape: f32[8,8,128], index: 3, kind: input, shape index: {}]   ;;  %s693_s4 = inlined_call_operand.vmem [shape: f32[2,8,128], index: 4, kind: output, shape index: {0}]   ;;  %s694_s5 = inlined_call_operand.vmem [shape: f32[2,8,128], index: 5, kind: output, shape index: {1}]  }
   0x1   :  { %v340_v2 = vld [vmem:[%s689_s0] sm:$0xff]  ;;  %v355_v8 = vld [vmem:[%s691_s2 + $0x8] sm:$0xff]  ;;  %v391_v20 = vld [vmem:[%s691_s2 + $0x10] sm:$0xff] }
   0x2   :  { %v40_v1 = vshrl.u32 %v39_v0, 7  ;;  %v345_v3 = vld [vmem:[%s690_s1] sm:$0xff]  ;;  %v386_v19 = vld [vmem:[%s689_s0 + $0x8] sm:$0xff]  ;;  %v422_v30 = vld [vmem:[%s691_s2 + $0x18] sm:$0xff] }
   0x3   :  { %v350_v7 = vld [vmem:[%s691_s2] sm:$0xff]  ;;  %v396_v21 = vld [vmem:[%s692_s3 + $0x8] sm:$0xff]  ;;  %v429_v33 = vld [vmem:[%s692_s3 + $0x10] sm:$0xff] }
   0x4   :  { %v41_v4 = vsub.s32 0, %v40_v1  ;;  %v73_v5 = vsub.s32 1, %v40_v1  ;;  %v105_v6 = vsub.s32 2, %v40_v1  ;;  %v360_v9 = vld [vmem:[%s692_s3] sm:$0xff]  ;;  %v137_v14 = vsub.s32 3, %v40_v1  ;;  %v414_v28 = vld [vmem:[%s690_s1 + $0x8] sm:$0xff] }
   0x5   :  { %v409_v27 = vsub.s32 4, %v40_v1  ;;  %v431_v34 = vsub.s32 5, %v40_v1  ;;  %v436_v35 = vld [vmem:[%s692_s3 + $0x18] sm:$0xff]  ;;  %v459_v44 = vld [vmem:[%s691_s2 + $0x20] sm:$0xff]  ;;  %v474_v50 = vsub.s32 6, %v40_v1  ;;  %v484_v53 = vld [vmem:[%s691_s2 + $0x28] sm:$0xff] }
   0x6   :  { %v363_v10 = vrot.slane %v340_v2, %v41_v4  ;;  %v366_v11 = vrot.slane %v345_v3, %v41_v4  ;;  %v369_v12 = vrot.slane %v340_v2, %v73_v5  ;;  %v372_v13 = vrot.slane %v345_v3, %v73_v5  ;;  %v502_v61 = vld [vmem:[%s692_s3 + $0x20] sm:$0xff] }
   0x7   :  { %v381_v18 = vrot.slane %v340_v2, %v105_v6  ;;  %v401_v24 = vrot.slane %v345_v3, %v105_v6  ;;  %v404_v25 = vrot.slane %v340_v2, %v137_v14  ;;  %v407_v26 = vrot.slane %v345_v3, %v137_v14 }
   0x8   :  { %v47_v15 = vmul.f32 %v363_v10, %v350_v7  ;;  %v59_v16 = vmul.f32 %v366_v11, %v360_v9  ;;  %v79_v17 = vmul.f32 %v369_v12, %v355_v8  ;;  %v91_v23 = vmul.f32 %v372_v13, %v396_v21 }
   0x9   :  { %v417_v29 = vrot.slane %v386_v19, %v41_v4  ;;  %v111_v32 = vmul.f32 %v381_v18, %v391_v20  ;;  %v123_v37 = vmul.f32 %v401_v24, %v429_v33  ;;  %v443_v39 = vrot.slane %v414_v28, %v41_v4 }
   0xa   :  { %v61_v22 = vsub.f32 %v47_v15, %v59_v16  ;;  %v143_v40 = vmul.f32 %v404_v25, %v422_v30  ;;  %v155_v41 = vmul.f32 %v407_v26, %v436_v35  ;;  %v451_v42 = vrot.slane %v340_v2, %v409_v27  ;;  %v520_v15 = vld [vmem:[%s691_s2 + $0x30] sm:$0xff]  ;;  %v525_v16 = vld [vmem:[%s692_s3 + $0x28] sm:$0xff] }
   0xb   :  { %v48_v38 = vmul.f32 %v417_v29, %v350_v7  ;;  %v454_v43 = vrot.slane %v386_v19, %v73_v5  ;;  %v463_v46 = vrot.slane %v345_v3, %v409_v27  ;;  %v60_v47 = vmul.f32 %v443_v39, %v360_v9 }
   0xc   :  { %v81_v31 = vadd.f32 %v79_v17, %v61_v22  ;;  %v468_v48 = vrot.slane %v414_v28, %v73_v5  ;;  %v472_v49 = vrot.slane %v340_v2, %v431_v34  ;;  %v479_v52 = vrot.slane %v386_v19, %v105_v6 }
   0xd   :  { %v80_v51 = vmul.f32 %v454_v43, %v355_v8  ;;  %v62_v55 = vsub.f32 %v48_v38, %v60_v47  ;;  %v489_v57 = vrot.slane %v414_v28, %v105_v6  ;;  %v175_v58 = vmul.f32 %v451_v42, %v459_v44  ;;  %v555_v47 = vld [vmem:[%s691_s2 + $0x38] sm:$0xff] }
   0xe   :  { %v93_v36 = vsub.f32 %v81_v31, %v91_v23  ;;  %v92_v56 = vmul.f32 %v468_v48, %v396_v21  ;;  %v495_v59 = vrot.slane %v345_v3, %v431_v34  ;;  %v497_v60 = vsub.s32 7, %v40_v1 }
   0xf   :  { %v82_v63 = vadd.f32 %v80_v51, %v62_v55  ;;  %v112_v0 = vmul.f32 %v479_v52, %v391_v20  ;;  %v507_v4 = vrot.slane %v386_v19, %v137_v14  ;;  %v187_v5 = vmul.f32 %v463_v46, %v502_v61  ;;  %v568_v55 = vld [vmem:[%s692_s3 + $0x30] sm:$0xff] }
  0x10   :  { %v113_v45 = vadd.f32 %v111_v32, %v93_v36  ;;  %v207_v1 = vmul.f32 %v472_v49, %v484_v53  ;;  %v515_v6 = vrot.slane %v340_v2, %v474_v50  ;;  %v124_v23 = vmul.f32 %v489_v57, %v429_v33 }
  0x11   :  { %v94_v22 = vsub.f32 %v82_v63, %v92_v56  ;;  %v530_v31 = vrot.slane %v414_v28, %v137_v14  ;;  %v219_v32 = vmul.f32 %v495_v59, %v525_v16  ;;  %v536_v36 = vrot.slane %v345_v3, %v474_v50 }
  0x12   :  { %v125_v54 = vsub.f32 %v113_v45, %v123_v37  ;;  %v540_v37 = vrot.slane %v340_v2, %v497_v60  ;;  %v544_v38 = vrot.slane %v345_v3, %v497_v60  ;;  %v144_v14 = vmul.f32 %v507_v4, %v422_v30 }
  0x13   :  { %v550_v45 = vrot.slane %v386_v19, %v409_v27  ;;  %v239_v2 = vmul.f32 %v515_v6, %v520_v15  ;;  %v63_v3 = vmul.f32 %v363_v10, %v360_v9  ;;  %v67_v51 = vmul.f32 %v366_v11, %v350_v7 }
  0x14   :  { %v145_v62 = vadd.f32 %v143_v40, %v125_v54  ;;  %696 = vst [vmem:[#allocation2_spill] sm:$0xff] %v544_v38  ;;  %v95_v54 = vmul.f32 %v369_v12, %v396_v21  ;;  %v574_v63 = vrot.slane %v414_v28, %v409_v27  ;;  %v251_v10 = vmul.f32 %v536_v36, %v568_v55 }
  0x15   :  { %v580_v11 = vrot.slane %v386_v19, %v431_v34  ;;  %v69_v12 = vadd.f32 %v67_v51, %v63_v3  ;;  %v271_v27 = vmul.f32 %v540_v37, %v555_v47  ;;  %v127_v3 = vmul.f32 %v381_v18, %v429_v33 }
  0x16   :  { %v157_v17 = vsub.f32 %v145_v62, %v155_v41  ;;  %v114_v41 = vadd.f32 %v112_v0, %v94_v22  ;;  %v156_v62 = vmul.f32 %v530_v31, %v436_v35  ;;  %v99_v0 = vmul.f32 %v372_v13, %v355_v8 }
  0x17   :  { %v97_v13 = vadd.f32 %v95_v54, %v69_v12  ;;  %v64_v54 = vmul.f32 %v417_v29, %v360_v9  ;;  %v96_v12 = vmul.f32 %v454_v43, %v396_v21 }
  0x18   :  { %v177_v40 = vadd.f32 %v175_v58, %v157_v17  ;;  %v126_v58 = vsub.f32 %v114_v41, %v124_v23  ;;  %v176_v23 = vmul.f32 %v550_v45, %v459_v44  ;;  %v597_v41 = vrot.slane %v414_v28, %v431_v34 }
  0x19   :  { %v131_v34 = vmul.f32 %v401_v24, %v391_v20  ;;  %v159_v24 = vmul.f32 %v404_v25, %v436_v35  ;;  %v128_v25 = vmul.f32 %v479_v52, %v429_v33  ;;  %v195_v33 = vmul.f32 %v463_v46, %v459_v44 }
  0x1a   :  { %v189_v56 = vsub.f32 %v177_v40, %v187_v5  ;;  %v587_v5 = vld [vmem:[%s692_s3 + $0x38] sm:$0xff]  ;;  %v146_v22 = vadd.f32 %v144_v14, %v126_v58  ;;  %v605_v14 = vrot.slane %v386_v19, %v474_v50  ;;  %v208_v58 = vmul.f32 %v580_v11, %v484_v53 }
  0x1b   :  { %v283_v40 = vmul.f32 %v544_v38, %v587_v5  ;;  %v101_v38 = vadd.f32 %v99_v0, %v97_v13  ;;  %v621_v0 = vrot.slane %v414_v28, %v474_v50  ;;  %v163_v50 = vmul.f32 %v407_v26, %v422_v30 }
  0x1c   :  { %v209_v17 = vadd.f32 %v207_v1, %v189_v56  ;;  %v158_v1 = vsub.f32 %v146_v22, %v156_v62  ;;  %v188_v56 = vmul.f32 %v574_v63, %v502_v61  ;;  %v68_v62 = vmul.f32 %v443_v39, %v350_v7 }
  0x1d   :  { %v129_v22 = vadd.f32 %v127_v3, %v101_v38  ;;  %v100_v7 = vmul.f32 %v468_v48, %v355_v8  ;;  %v240_v21 = vmul.f32 %v605_v14, %v520_v15  ;;  %v270_v39 = vrot.slane %v386_v19, %v497_v60 }
  0x1e   :  { %v221_v51 = vsub.f32 %v209_v17, %v219_v32  ;;  %v178_v32 = vadd.f32 %v176_v23, %v158_v1  ;;  %v220_v17 = vmul.f32 %v597_v41, %v525_v16  ;;  %v282_v8 = vrot.slane %v414_v28, %v497_v60 }
  0x1f   :  { %v133_v43 = vadd.f32 %v131_v34, %v129_v22  ;;  %v191_v19 = vmul.f32 %v451_v42, %v502_v61  ;;  %v132_v26 = vmul.f32 %v489_v57, %v391_v20  ;;  %v272_v28 = vmul.f32 %v270_v39, %v555_v47 }
  0x20   :  { %v241_v18 = vadd.f32 %v239_v2, %v221_v51  ;;  %v190_v29 = vsub.f32 %v178_v32, %v188_v56  ;;  %v70_v2 = vadd.f32 %v68_v62, %v64_v54  ;;  %v160_v42 = vmul.f32 %v507_v4, %v436_v35 }
  0x21   :  { %v161_v48 = vadd.f32 %v159_v24, %v133_v43  ;;  %v223_v56 = vmul.f32 %v472_v49, %v525_v16  ;;  %v284_v57 = vmul.f32 %v282_v8, %v587_v5  ;;  %v164_v46 = vmul.f32 %v530_v31, %v422_v30  ;;  %v697_v24 = vld [vmem:[#allocation2_spill] sm:$0xff] }
  0x22   :  { %v253_v9 = vsub.f32 %v241_v18, %v251_v10  ;;  %v210_v23 = vadd.f32 %v208_v58, %v190_v29  ;;  %v98_v13 = vadd.f32 %v96_v12, %v70_v2  ;;  %v252_v10 = vmul.f32 %v621_v0, %v568_v55 }
  0x23   :  { %v227_v54 = vmul.f32 %v495_v59, %v484_v53  ;;  %v192_v35 = vmul.f32 %v550_v45, %v502_v61  ;;  %v255_v49 = vmul.f32 %v515_v6, %v568_v55  ;;  %v259_v30 = vmul.f32 %v536_v36, %v520_v15 }
  0x24   :  { %v273_v38 = vadd.f32 %v271_v27, %v253_v9  ;;  %v222_v51 = vsub.f32 %v210_v23, %v220_v17  ;;  %v102_v1 = vadd.f32 %v100_v7, %v98_v13  ;;  %v165_v27 = vadd.f32 %v163_v50, %v161_v48 }
  0x25   :  { %v196_v17 = vmul.f32 %v574_v63, %v459_v44  ;;  %v224_v61 = vmul.f32 %v580_v11, %v525_v16  ;;  %v287_v6 = vmul.f32 %v540_v37, %v587_v5  ;;  %v228_v44 = vmul.f32 %v597_v41, %v484_v53 }
  0x26   :  { %v285_v3 = vsub.f32 %v273_v38, %v283_v40  ;;  %v242_v52 = vadd.f32 %v240_v21, %v222_v51  ;;  %v130_v60 = vadd.f32 %v128_v25, %v102_v1  ;;  %v193_v40 = vadd.f32 %v191_v19, %v165_v27 }
  0x27   :  { %v291_v36 = vmul.f32 %v697_v24, %v555_v47  ;;  %v256_v29 = vmul.f32 %v605_v14, %v568_v55  ;;  %v260_v16 = vmul.f32 %v621_v0, %v520_v15  ;;  %v288_v37 = vmul.f32 %v270_v39, %v587_v5 }
  0x28   :  { %295 = vst [vmem:[%s693_s4] sm:$0xff] %v285_v3  ;;  %v254_v20 = vsub.f32 %v242_v52, %v252_v10  ;;  %v134_v58 = vadd.f32 %v132_v26, %v130_v60  ;;  %v197_v34 = vadd.f32 %v195_v33, %v193_v40  ;;  %v292_v41 = vmul.f32 %v282_v8, %v555_v47 }
  0x2a   :  { %v274_v18 = vadd.f32 %v272_v28, %v254_v20  ;;  %v162_v32 = vadd.f32 %v160_v42, %v134_v58  ;;  %v225_v4 = vadd.f32 %v223_v56, %v197_v34 }
  0x2c   :  { %v286_v62 = vsub.f32 %v274_v18, %v284_v57  ;;  %v166_v12 = vadd.f32 %v164_v46, %v162_v32  ;;  %v229_v22 = vadd.f32 %v227_v54, %v225_v4 }
  0x2e   :  { %296 = vst [vmem:[%s693_s4 + $0x8] sm:$0xff] %v286_v62  ;;  %v194_v59 = vadd.f32 %v192_v35, %v166_v12  ;;  %v257_v31 = vadd.f32 %v255_v49, %v229_v22 }
  0x30   :  { %v198_v45 = vadd.f32 %v196_v17, %v194_v59  ;;  %v261_v63 = vadd.f32 %v259_v30, %v257_v31 }
  0x32   :  { %v226_v9 = vadd.f32 %v224_v61, %v198_v45  ;;  %v289_v2 = vadd.f32 %v287_v6, %v261_v63 }
  0x34   :  { %v230_v7 = vadd.f32 %v228_v44, %v226_v9  ;;  %v293_v11 = vadd.f32 %v291_v36, %v289_v2 }
  0x36   :  { %v258_v21 = vadd.f32 %v256_v29, %v230_v7  ;;  %297 = vst [vmem:[%s694_s5] sm:$0xff] %v293_v11 }
  0x38   :  { %v262_v53 = vadd.f32 %v260_v16, %v258_v21 }
  0x3a   :  { %v290_v43 = vadd.f32 %v288_v37, %v262_v53 }
  0x3c   :  { %v294_v50 = vadd.f32 %v292_v41, %v290_v43 }
  0x3e   :  { %298 = vst [vmem:[%s694_s5 + $0x8] sm:$0xff] %v294_v50 }

// kernel: reverse.12
= control target key start
LH: loop header
LB: loop body
LE: loop exit
PB: predicated region body
PF: predicated region fallthrough
CT: control target
= control target key end

     0   :  { %s584_s0 = inlined_call_operand.vmem [shape: f32[2,8,8,8,3], index: 0, kind: input, shape index: {}]   ;;  %s585_s1 = inlined_call_operand.vmem [shape: f32[2,8,8,8,3], index: 1, kind: output, shape index: {}]  }
   0x1   :  { %v192_v0 = vld [vmem:[%s584_s0 + $0x10] sm:$0xff]  ;;  %v195_v2 = vld [vmem:[%s584_s0 + $0x28] sm:$0xff]  ;;  %v199_v4 = vld [vmem:[%s584_s0 + $0x40] sm:$0xff] }
   0x2   :  { %v193_v1 = vld [vmem:[%s584_s0 + $0xd0] sm:$0xff]  ;;  %4 = vst [vmem:[%s585_s1] sm:$0xff] %v192_v0  ;;  %196 = vst [vmem:[%s585_s1 + $0x18] sm:$0xff] %v195_v2  ;;  %v197_v3 = vld [vmem:[%s584_s0 + $0xe8] sm:$0xff] }
   0x3   :  { %194 = vst [vmem:[%s585_s1 + $0xc0] sm:$0xff] %v193_v1  ;;  %v201_v5 = vld [vmem:[%s584_s0 + $0x100] sm:$0xff]  ;;  %198 = vst [vmem:[%s585_s1 + $0xd8] sm:$0xff] %v197_v3  ;;  %v203_v6 = vld [vmem:[%s584_s0 + $0x58] sm:$0xff] }
   0x4   :  { %200 = vst [vmem:[%s585_s1 + $0x30] sm:$0xff] %v199_v4  ;;  %202 = vst [vmem:[%s585_s1 + $0xf0] sm:$0xff] %v201_v5  ;;  %v205_v7 = vld [vmem:[%s584_s0 + $0x118] sm:$0xff]  ;;  %v207_v8 = vld [vmem:[%s584_s0 + $0x70] sm:$0xff] }
   0x5   :  { %204 = vst [vmem:[%s585_s1 + $0x48] sm:$0xff] %v203_v6  ;;  %206 = vst [vmem:[%s585_s1 + $0x108] sm:$0xff] %v205_v7  ;;  %v209_v9 = vld [vmem:[%s584_s0 + $0x130] sm:$0xff]  ;;  %v211_v10 = vld [vmem:[%s584_s0 + $0x88] sm:$0xff] }
   0x6   :  { %208 = vst [vmem:[%s585_s1 + $0x60] sm:$0xff] %v207_v8  ;;  %v213_v11 = vld [vmem:[%s584_s0 + $0x148] sm:$0xff]  ;;  %210 = vst [vmem:[%s585_s1 + $0x120] sm:$0xff] %v209_v9  ;;  %v215_v12 = vld [vmem:[%s584_s0 + $0xa0] sm:$0xff] }
   0x7   :  { %212 = vst [vmem:[%s585_s1 + $0x78] sm:$0xff] %v211_v10  ;;  %214 = vst [vmem:[%s585_s1 + $0x138] sm:$0xff] %v213_v11  ;;  %v217_v13 = vld [vmem:[%s584_s0 + $0x160] sm:$0xff]  ;;  %v219_v14 = vld [vmem:[%s584_s0 + $0xb8] sm:$0xff] }
   0x8   :  { %216 = vst [vmem:[%s585_s1 + $0x90] sm:$0xff] %v215_v12  ;;  %218 = vst [vmem:[%s585_s1 + $0x150] sm:$0xff] %v217_v13  ;;  %v221_v15 = vld [vmem:[%s584_s0 + $0x178] sm:$0xff]  ;;  %v223_v16 = vld [vmem:[%s584_s0 + $0x8] sm:$0xff] }
   0x9   :  { %220 = vst [vmem:[%s585_s1 + $0xa8] sm:$0xff] %v219_v14  ;;  %v225_v17 = vld [vmem:[%s584_s0 + $0xc8] sm:$0xff]  ;;  %222 = vst [vmem:[%s585_s1 + $0x168] sm:$0xff] %v221_v15  ;;  %v227_v18 = vld [vmem:[%s584_s0 + $0x20] sm:$0xff] }
   0xa   :  { %224 = vst [vmem:[%s585_s1 + $0x8] sm:$0xff] %v223_v16  ;;  %226 = vst [vmem:[%s585_s1 + $0xc8] sm:$0xff] %v225_v17  ;;  %v229_v19 = vld [vmem:[%s584_s0 + $0xe0] sm:$0xff]  ;;  %v231_v20 = vld [vmem:[%s584_s0 + $0x38] sm:$0xff] }
   0xb   :  { %228 = vst [vmem:[%s585_s1 + $0x20] sm:$0xff] %v227_v18  ;;  %230 = vst [vmem:[%s585_s1 + $0xe0] sm:$0xff] %v229_v19  ;;  %v233_v21 = vld [vmem:[%s584_s0 + $0xf8] sm:$0xff]  ;;  %v235_v22 = vld [vmem:[%s584_s0 + $0x50] sm:$0xff] }
   0xc   :  { %232 = vst [vmem:[%s585_s1 + $0x38] sm:$0xff] %v231_v20  ;;  %v237_v23 = vld [vmem:[%s584_s0 + $0x110] sm:$0xff]  ;;  %234 = vst [vmem:[%s585_s1 + $0xf8] sm:$0xff] %v233_v21  ;;  %v239_v24 = vld [vmem:[%s584_s0 + $0x68] sm:$0xff] }
   0xd   :  { %236 = vst [vmem:[%s585_s1 + $0x50] sm:$0xff] %v235_v22  ;;  %238 = vst [vmem:[%s585_s1 + $0x110] sm:$0xff] %v237_v23  ;;  %v241_v25 = vld [vmem:[%s584_s0 + $0x128] sm:$0xff]  ;;  %v243_v26 = vld [vmem:[%s584_s0 + $0x80] sm:$0xff] }
   0xe   :  { %240 = vst [vmem:[%s585_s1 + $0x68] sm:$0xff] %v239_v24  ;;  %242 = vst [vmem:[%s585_s1 + $0x128] sm:$0xff] %v241_v25  ;;  %v245_v27 = vld [vmem:[%s584_s0 + $0x140] sm:$0xff]  ;;  %v247_v28 = vld [vmem:[%s584_s0 + $0x98] sm:$0xff] }
   0xf   :  { %244 = vst [vmem:[%s585_s1 + $0x80] sm:$0xff] %v243_v26  ;;  %v249_v29 = vld [vmem:[%s584_s0 + $0x158] sm:$0xff]  ;;  %246 = vst [vmem:[%s585_s1 + $0x140] sm:$0xff] %v245_v27  ;;  %v251_v30 = vld [vmem:[%s584_s0 + $0xb0] sm:$0xff] }
  0x10   :  { %248 = vst [vmem:[%s585_s1 + $0x98] sm:$0xff] %v247_v28  ;;  %250 = vst [vmem:[%s585_s1 + $0x158] sm:$0xff] %v249_v29  ;;  %v253_v31 = vld [vmem:[%s584_s0 + $0x170] sm:$0xff]  ;;  %v129_v32 = vld [vmem:[%s584_s0] sm:$0xff] }
  0x11   :  { %252 = vst [vmem:[%s585_s1 + $0xb0] sm:$0xff] %v251_v30  ;;  %254 = vst [vmem:[%s585_s1 + $0x170] sm:$0xff] %v253_v31  ;;  %v256_v33 = vld [vmem:[%s584_s0 + $0xc0] sm:$0xff]  ;;  %v258_v34 = vld [vmem:[%s584_s0 + $0x18] sm:$0xff] }
  0x12   :  { %255 = vst [vmem:[%s585_s1 + $0x10] sm:$0xff] %v129_v32  ;;  %v260_v35 = vld [vmem:[%s584_s0 + $0xd8] sm:$0xff]  ;;  %257 = vst [vmem:[%s585_s1 + $0xd0] sm:$0xff] %v256_v33  ;;  %v262_v36 = vld [vmem:[%s584_s0 + $0x30] sm:$0xff] }
  0x13   :  { %259 = vst [vmem:[%s585_s1 + $0x28] sm:$0xff] %v258_v34  ;;  %261 = vst [vmem:[%s585_s1 + $0xe8] sm:$0xff] %v260_v35  ;;  %v264_v37 = vld [vmem:[%s584_s0 + $0xf0] sm:$0xff]  ;;  %v266_v38 = vld [vmem:[%s584_s0 + $0x48] sm:$0xff] }
  0x14   :  { %263 = vst [vmem:[%s585_s1 + $0x40] sm:$0xff] %v262_v36  ;;  %265 = vst [vmem:[%s585_s1 + $0x100] sm:$0xff] %v264_v37  ;;  %v268_v39 = vld [vmem:[%s584_s0 + $0x108] sm:$0xff]  ;;  %v270_v40 = vld [vmem:[%s584_s0 + $0x60] sm:$0xff] }
  0x15   :  { %267 = vst [vmem:[%s585_s1 + $0x58] sm:$0xff] %v266_v38  ;;  %v272_v41 = vld [vmem:[%s584_s0 + $0x120] sm:$0xff]  ;;  %269 = vst [vmem:[%s585_s1 + $0x118] sm:$0xff] %v268_v39  ;;  %v274_v42 = vld [vmem:[%s584_s0 + $0x78] sm:$0xff] }
  0x16   :  { %271 = vst [vmem:[%s585_s1 + $0x70] sm:$0xff] %v270_v40  ;;  %273 = vst [vmem:[%s585_s1 + $0x130] sm:$0xff] %v272_v41  ;;  %v276_v43 = vld [vmem:[%s584_s0 + $0x138] sm:$0xff]  ;;  %v278_v44 = vld [vmem:[%s584_s0 + $0x90] sm:$0xff] }
  0x17   :  { %275 = vst [vmem:[%s585_s1 + $0x88] sm:$0xff] %v274_v42  ;;  %277 = vst [vmem:[%s585_s1 + $0x148] sm:$0xff] %v276_v43  ;;  %v280_v45 = vld [vmem:[%s584_s0 + $0x150] sm:$0xff]  ;;  %v282_v46 = vld [vmem:[%s584_s0 + $0xa8] sm:$0xff] }
  0x18   :  { %279 = vst [vmem:[%s585_s1 + $0xa0] sm:$0xff] %v278_v44  ;;  %v284_v47 = vld [vmem:[%s584_s0 + $0x168] sm:$0xff]  ;;  %281 = vst [vmem:[%s585_s1 + $0x160] sm:$0xff] %v280_v45 }
  0x19   :  { %283 = vst [vmem:[%s585_s1 + $0xb8] sm:$0xff] %v282_v46  ;;  %285 = vst [vmem:[%s585_s1 + $0x178] sm:$0xff] %v284_v47 }

// kernel: fno3d_forward.18
= control target key start
LH: loop header
LB: loop body
LE: loop exit
PB: predicated region body
PF: predicated region fallthrough
CT: control target
= control target key end

     0   :  { %s859_s18 = smov 0   ;;  %s861_s19 = smov 0   ;;  %s945_s0 = inlined_call_operand.vmem [shape: bf16[2,8,512], index: 0, kind: input, shape index: {}]   ;;  %s946_s1 = inlined_call_operand.vmem [shape: f32[2,8,512], index: 1, kind: input, shape index: {}]   ;;  %s947_s2 = inlined_call_operand.vmem [shape: f32[2,8,1], index: 2, kind: input, shape index: {}]   ;;  %s948_s3 = inlined_call_operand.vmem [shape: f32[8,8], index: 3, kind: input, shape index: {}]   ;;  %s949_s4 = inlined_call_operand.vmem [shape: f32[8,1], index: 4, kind: input, shape index: {}]   ;;  %s950_s5 = inlined_call_operand.vmem [shape: bf16[2,8,512], index: 5, kind: output, shape index: {}]  }
   0x1   :  { %s863_s20 = smov 0  }
   0x2 LB: > { %s24_s21 = sadd.s32 1, %s821_s19  ;;  %p741_p0 = scmp.ge.s32.totalorder %s825_s20, 1  ;;  %s825_s20 = sphi %s863_s20, %s15_s20   ;;  %s821_s19 = sphi %s861_s19, %s952_s19   ;;  %s817_s18 = sphi %s859_s18, %s951_s18  }
   0x3   : > { %p25_p1 = scmp.ge.s32.totalorder %s24_s21, 2  ;;  %p234_p2 = scmp.lt.s32.totalorder %s825_s20, 3 }
   0x5   : > { %s954_s21 = smov (%p25_p1, %s24_s21), 0  ;;  %p235_p3 = pnand %p741_p0, %p234_p2 }
   0x6   : > { %p284_p4 = scmp.lt.s32.totalorder (!%p235_p3), %s817_s18, 1  ;;  %v827_v0 = vmov (!%p235_p3), 0.0   ;;  %v828_v1 = vmov (!%p235_p3), 0   ;;  %v323_v9 = vld [vmem:[%s948_s3] sm:$0xff] (!%p235_p3)  ;;  %vm328_vm0 = vcmask (!%p235_p3), 64512  }
   0x7   : > { %238 = sbr.rel (%p235_p3) target bundleno = 294 (0x126), region = 40  ;;  %396 = vmatprep.mubr.f32.mxu0 (!%p235_p3), %v827_v0  ;;  %467 = vmatprep.mubr.f32.mxu1 (!%p235_p3), %v827_v0  ;;  %v484_v10 = vld [vmem:[%s949_s4] sm:$0xff] (!%p235_p3) }
   0x8   : > { %786 = vset.pattern.permute.xlu0 (!%p235_p3), %v828_v1 }
   0xe   : > { %s956_s18 = smov (!%p284_p4, %s817_s18), 1 }
   0xf   : > { %s755_s22 = sshll.u32 %s956_s18, 4  ;;  %s746_s23 = sshll.u32 %s956_s18, 3 }
  0x10   : > { %s291_s26 = scalar_lea.vmem %s945_s0, %s755_s22  ;;  %s306_s29 = scalar_lea.vmem %s947_s2, %s746_s23 }
  0x11   : > { %v317_v2 = vld [vmem:[%s291_s26] sm:$0xff]  ;;  %v318_v3 = vld [vmem:[%s291_s26 + $0x8] sm:$0xff]  ;;  %s756_s9 = sshll.u32 %s956_s18, 5  ;;  %s315_s15 = scalar_lea.vmem %s950_s5, %s755_s22 }
  0x12   : > { %v320_v4 = vunpack.c.h.bf16 %v317_v2  ;;  %v322_v5 = vunpack.c.h.bf16 %v318_v3  ;;  %v319_v6 = vunpack.c.l.bf16 %v317_v2  ;;  %v321_v7 = vunpack.c.l.bf16 %v318_v3  ;;  %v474_v8 = vld [vmem:[%s306_s29] sm:$0xff]  ;;  %s301_s12 = scalar_lea.vmem %s946_s1, %s756_s9 }
  0x13   : > { %477 = vperm.xlu0 %786, %v474_v8   ;;  %v324_v12 = vld [vmem:[%s301_s12] sm:$0xff]  ;;  %v326_v13 = vld [vmem:[%s301_s12 + $0x10] sm:$0xff]  ;;  %v325_v14 = vld [vmem:[%s301_s12 + $0x8] sm:$0xff] }
  0x14   : > { %332 = vmatprep.subr.mxu0 %v320_v4  ;;  %403 = vmatprep.subr.mxu1 %v322_v5  ;;  %v327_v15 = vld [vmem:[%s301_s12 + $0x18] sm:$0xff] }
  0x15   : > { %333 = vmatpush1.msra.mxu0 %v319_v6  ;;  %404 = vmatpush1.msra.mxu1 %v321_v7 }
  0x16   : > { %749 = vmatmul.mubr.msk.f32.vlgmr.msra.gmra.mrb[0].mxu0 %vm328_vm0, %v323_v9  ;;  %750 = vmatmul.mubr.msk.f32.vlgmr.msra.gmra.mrb[0].mxu1 %vm328_vm0, %v323_v9 }
  0x17   : > { %487 = vperm.xlu0 %786, %v484_v10  }
  0x92   : > { %v478_v11 = vpop.permute.xlu0 %477 }
  0x96   : > { %v488_v26 = vpop.permute.xlu0 %487 }
  0xe9   : > { %v398_v16 = vpop.f32.mrb[0].mxu0  ;;  %v469_v17 = vpop.f32.mrb[0].mxu1 }
  0xea   : > { %v399_v18 = vadd.f32 %v398_v16, %v324_v12  ;;  %v470_v19 = vadd.f32 %v469_v17, %v326_v13  ;;  %v400_v20 = vpop.f32.mrb[1].mxu0  ;;  %v471_v21 = vpop.f32.mrb[1].mxu1 }
  0xeb   : > { %v401_v22 = vadd.f32 %v400_v20, %v325_v14  ;;  %v472_v23 = vadd.f32 %v471_v21, %v327_v15 }
  0xec   : > { %v480_v24 = vadd.f32 %v478_v11, %v399_v18  ;;  %v482_v25 = vadd.f32 %v478_v11, %v470_v19 }
  0xed   : > { %v481_v27 = vadd.f32 %v478_v11, %v401_v22  ;;  %v483_v28 = vadd.f32 %v478_v11, %v472_v23 }
  0xee   : > { %v899_v29 = vadd.f32 %v488_v26, %v480_v24  ;;  %v901_v30 = vadd.f32 %v488_v26, %v482_v25 }
  0xef   : > { %v903_v31 = vadd.f32 %v488_v26, %v481_v27  ;;  %v905_v32 = vadd.f32 %v488_v26, %v483_v28 }
  0xf0   : > { %v908_v33 = vmul.f32 0.70710677, %v899_v29  ;;  %v911_v34 = vmul.f32 0.70710677, %v901_v30 }
  0xf1   : > { %v914_v35 = vmul.f32 0.70710677, %v903_v31  ;;  %v917_v36 = vmul.f32 0.70710677, %v905_v32 }
  0xf2   : > { %v502_v37 = vand.u32 2147483647, %v908_v33  ;;  %v504_v38 = vand.u32 2147483647, %v911_v34  ;;  %vm582_vm1 = vcmp.ge.f32.partialorder %v908_v33, 0.0  ;;  %vm584_vm2 = vcmp.ge.f32.partialorder %v911_v34, 0.0 }
  0xf3   : > { %v503_v39 = vand.u32 2147483647, %v914_v35  ;;  %v505_v40 = vand.u32 2147483647, %v917_v36  ;;  %vm583_vm3 = vcmp.ge.f32.partialorder %v914_v35, 0.0  ;;  %v495_v34 = vmul.f32 0.5, %v903_v31 }
  0xf4   : > { %v506_v41 = vmul.f32 0.3275911, %v502_v37  ;;  %v508_v42 = vmul.f32 0.3275911, %v504_v38  ;;  %v558_v49 = vsub.f32 0.0, %v502_v37  ;;  %v560_v50 = vsub.f32 0.0, %v504_v38 }
  0xf5   : > { %v507_v43 = vmul.f32 0.3275911, %v503_v39  ;;  %v509_v46 = vmul.f32 0.3275911, %v505_v40  ;;  %v559_v53 = vsub.f32 0.0, %v503_v39  ;;  %v561_v58 = vsub.f32 0.0, %v505_v40 }
  0xf6   : > { %v510_v44 = vadd.f32 1.0, %v506_v41  ;;  %v512_v45 = vadd.f32 1.0, %v508_v42  ;;  %v562_v52 = vmul.f32 %v558_v49, %v502_v37  ;;  %v564_v56 = vmul.f32 %v560_v50, %v504_v38 }
  0xf7   : > { %v511_v47 = vadd.f32 1.0, %v507_v43  ;;  %v513_v48 = vadd.f32 1.0, %v509_v46  ;;  %v563_v63 = vmul.f32 %v559_v53, %v503_v39  ;;  %v565_v5 = vmul.f32 %v561_v58, %v505_v40 }
  0xf8   : > { %787 = vrcp.f32 %v510_v44  ;;  %v566_v62 = vmul.f32 1.442695, %v562_v52  ;;  %v570_v1 = vmul.f32 1.442695, %v564_v56  ;;  %vm585_vm4 = vcmp.ge.f32.partialorder %v917_v36, 0.0 }
  0xf9   : > { %789 = vrcp.f32 %v512_v45  ;;  %v568_v10 = vmul.f32 1.442695, %v563_v63  ;;  %v572_v15 = vmul.f32 1.442695, %v565_v5 }
  0xfa   : > { %791 = vrcp.f32 %v511_v47 }
  0xfb   : > { %793 = vrcp.f32 %v513_v48 }
  0xfc   : > { %795 = vpow2.f32 %v566_v62 }
  0xfd   : > { %797 = vpow2.f32 %v570_v1  ;;  %v496_v1 = vmul.f32 0.5, %v901_v30 }
  0xfe   : > { %799 = vpow2.f32 %v568_v10 }
  0xff   : > { %801 = vpow2.f32 %v572_v15 }
 0x102   : > { %v788_v51 = vpop.eup %787 }
 0x103   : > { %v790_v54 = vpop.eup %789  ;;  %v522_v55 = vmul.f32 1.0614054, %v788_v51 }
 0x104   : > { %v524_v57 = vmul.f32 1.0614054, %v790_v54  ;;  %v792_v60 = vpop.eup %791 }
 0x105   : > { %v526_v59 = vadd.f32 -1.4531521, %v522_v55  ;;  %v523_v2 = vmul.f32 1.0614054, %v792_v60  ;;  %v794_v3 = vpop.eup %793 }
 0x106   : > { %v528_v61 = vadd.f32 -1.4531521, %v524_v57  ;;  %v525_v8 = vmul.f32 1.0614054, %v794_v3  ;;  %v796_v39 = vpop.eup %795 }
 0x107   : > { %v530_v0 = vmul.f32 %v788_v51, %v526_v59  ;;  %v527_v7 = vadd.f32 -1.4531521, %v523_v2  ;;  %v798_v41 = vpop.eup %797 }
 0x108   : > { %v532_v4 = vmul.f32 %v790_v54, %v528_v61  ;;  %v529_v13 = vadd.f32 -1.4531521, %v525_v8  ;;  %v800_v49 = vpop.eup %799  ;;  %v497_v8 = vmul.f32 0.5, %v905_v32 }
 0x109   : > { %v534_v6 = vadd.f32 1.4214138, %v530_v0  ;;  %v531_v12 = vmul.f32 %v792_v60, %v527_v7  ;;  %v802_v56 = vpop.eup %801 }
 0x10a   : > { %v536_v9 = vadd.f32 1.4214138, %v532_v4  ;;  %v533_v18 = vmul.f32 %v794_v3, %v529_v13 }
 0x10b   : > { %v538_v11 = vmul.f32 %v788_v51, %v534_v6  ;;  %v535_v17 = vadd.f32 1.4214138, %v531_v12 }
 0x10c   : > { %v540_v14 = vmul.f32 %v790_v54, %v536_v9  ;;  %v537_v22 = vadd.f32 1.4214138, %v533_v18 }
 0x10d   : > { %v542_v16 = vadd.f32 -0.28449672, %v538_v11  ;;  %v539_v21 = vmul.f32 %v792_v60, %v535_v17 }
 0x10e   : > { %v544_v19 = vadd.f32 -0.28449672, %v540_v14  ;;  %v541_v26 = vmul.f32 %v794_v3, %v537_v22 }
 0x10f   : > { %v546_v20 = vmul.f32 %v788_v51, %v542_v16  ;;  %v543_v25 = vadd.f32 -0.28449672, %v539_v21 }
 0x110   : > { %v548_v23 = vmul.f32 %v790_v54, %v544_v19  ;;  %v545_v38 = vadd.f32 -0.28449672, %v541_v26 }
 0x111   : > { %v550_v24 = vadd.f32 0.2548296, %v546_v20  ;;  %v547_v37 = vmul.f32 %v792_v60, %v543_v25 }
 0x112   : > { %v552_v27 = vadd.f32 0.2548296, %v548_v23  ;;  %v549_v44 = vmul.f32 %v794_v3, %v545_v38 }
 0x113   : > { %v554_v28 = vmul.f32 %v788_v51, %v550_v24  ;;  %v551_v43 = vadd.f32 0.2548296, %v547_v37 }
 0x114   : > { %v556_v40 = vmul.f32 %v790_v54, %v552_v27  ;;  %v553_v48 = vadd.f32 0.2548296, %v549_v44 }
 0x115   : > { %v574_v42 = vmul.f32 %v796_v39, %v554_v28  ;;  %v555_v47 = vmul.f32 %v792_v60, %v551_v43  ;;  %v494_v60 = vmul.f32 0.5, %v899_v29 }
 0x116   : > { %v576_v45 = vmul.f32 %v798_v41, %v556_v40  ;;  %v557_v55 = vmul.f32 %v794_v3, %v553_v48 }
 0x117   : > { %v578_v46 = vsub.f32 1.0, %v574_v42  ;;  %v575_v53 = vmul.f32 %v800_v49, %v555_v47 }
 0x118   : > { %v580_v50 = vsub.f32 1.0, %v576_v45  ;;  %v577_v58 = vmul.f32 %v802_v56, %v557_v55 }
 0x119   : > { %v586_v52 = vsub.f32 0.0, %v578_v46  ;;  %v579_v57 = vsub.f32 1.0, %v575_v53 }
 0x11a   : > { %v588_v51 = vsub.f32 0.0, %v580_v50  ;;  %v581_v63 = vsub.f32 1.0, %v577_v58 }
 0x11b   : > { %v590_v54 = vsel %vm582_vm1, %v578_v46, %v586_v52  ;;  %v587_v62 = vsub.f32 0.0, %v579_v57 }
 0x11c   : > { %v592_v59 = vsel %vm584_vm2, %v580_v50, %v588_v51  ;;  %v594_v61 = vadd.f32 1.0, %v590_v54  ;;  %v589_v33 = vsub.f32 0.0, %v581_v63 }
 0x11d   : > { %v596_v0 = vadd.f32 1.0, %v592_v59  ;;  %v591_v2 = vsel %vm583_vm3, %v579_v57, %v587_v62 }
 0x11e   : > { %v598_v3 = vmul.f32 %v594_v61, %v494_v60  ;;  %v595_v4 = vadd.f32 1.0, %v591_v2  ;;  %v593_v5 = vsel %vm585_vm4, %v581_v63, %v589_v33 }
 0x11f   : > { %v600_v6 = vmul.f32 %v596_v0, %v496_v1  ;;  %v597_v9 = vadd.f32 1.0, %v593_v5 }
 0x120   : > { %v599_v7 = vmul.f32 %v595_v4, %v495_v34 }
 0x121   : > { %v601_v30 = vmul.f32 %v597_v9, %v497_v8 }
 0x122   : > { %v758_v29 = vpack.c.bf16 %v599_v7, %v598_v3 }
 0x123   : > { %v759_v35 = vpack.c.bf16 %v601_v30, %v600_v6 }
 0x124   : > { %618 = vst [vmem:[%s315_s15] sm:$0xff] %v758_v29 }
 0x125   : > { %619 = vst [vmem:[%s315_s15 + $0x8] sm:$0xff] %v759_v35 }
 0x126 PF: > { %s15_s20 = sadd.s32 1, %s825_s20   ;;  %s951_s18 = smov %s821_s19 }
 0x127   : > { %p12_p5 = scmp.ge.s32.totalorder %s15_s20, 4   ;;  %s952_s19 = smov %s954_s21 }
 0x129   :  { %14 = sbr.rel (!%p12_p5) target bundleno = 2 (0x2), region = 76 }

// kernel: fno3d_forward.20
= control target key start
LH: loop header
LB: loop body
LE: loop exit
PB: predicated region body
PF: predicated region fallthrough
CT: control target
= control target key end

     0   :  { %s735_s18 = smov 0   ;;  %s737_s19 = smov 0   ;;  %s789_s0 = inlined_call_operand.vmem [shape: bf16[2,8,512], index: 0, kind: input, shape index: {}]   ;;  %s790_s1 = inlined_call_operand.vmem [shape: f32[2,8,512], index: 1, kind: input, shape index: {}]   ;;  %s791_s2 = inlined_call_operand.vmem [shape: f32[2,8,1], index: 2, kind: input, shape index: {}]   ;;  %s792_s3 = inlined_call_operand.vmem [shape: f32[8,8], index: 3, kind: input, shape index: {}]   ;;  %s793_s4 = inlined_call_operand.vmem [shape: f32[8,1], index: 4, kind: input, shape index: {}]   ;;  %s794_s5 = inlined_call_operand.vmem [shape: bf16[2,8,512], index: 5, kind: output, shape index: {}]  }
   0x1   :  { %s739_s20 = smov 0  }
   0x2 LB: > { %s24_s21 = sadd.s32 1, %s697_s19  ;;  %p633_p0 = scmp.ge.s32.totalorder %s701_s20, 1  ;;  %s701_s20 = sphi %s739_s20, %s15_s20   ;;  %s697_s19 = sphi %s737_s19, %s796_s19   ;;  %s693_s18 = sphi %s735_s18, %s795_s18  }
   0x3   : > { %p25_p1 = scmp.ge.s32.totalorder %s24_s21, 2  ;;  %p234_p2 = scmp.lt.s32.totalorder %s701_s20, 3 }
   0x5   : > { %s798_s21 = smov (%p25_p1, %s24_s21), 0  ;;  %p235_p3 = pnand %p633_p0, %p234_p2 }
   0x6   : > { %p284_p4 = scmp.lt.s32.totalorder (!%p235_p3), %s693_s18, 1  ;;  %v703_v0 = vmov (!%p235_p3), 0.0   ;;  %v704_v1 = vmov (!%p235_p3), 0   ;;  %v323_v9 = vld [vmem:[%s792_s3] sm:$0xff] (!%p235_p3)  ;;  %vm328_vm0 = vcmask (!%p235_p3), 64512  }
   0x7   : > { %238 = sbr.rel (%p235_p3) target bundleno = 244 (0xf4), region = 40  ;;  %396 = vmatprep.mubr.f32.mxu0 (!%p235_p3), %v703_v0  ;;  %467 = vmatprep.mubr.f32.mxu1 (!%p235_p3), %v703_v0  ;;  %v484_v10 = vld [vmem:[%s793_s4] sm:$0xff] (!%p235_p3) }
   0x8   : > { %678 = vset.pattern.permute.xlu0 (!%p235_p3), %v704_v1 }
   0xe   : > { %s800_s18 = smov (!%p284_p4, %s693_s18), 1 }
   0xf   : > { %s647_s22 = sshll.u32 %s800_s18, 4  ;;  %s638_s23 = sshll.u32 %s800_s18, 3 }
  0x10   : > { %s291_s26 = scalar_lea.vmem %s789_s0, %s647_s22  ;;  %s306_s29 = scalar_lea.vmem %s791_s2, %s638_s23 }
  0x11   : > { %v317_v2 = vld [vmem:[%s291_s26] sm:$0xff]  ;;  %v318_v3 = vld [vmem:[%s291_s26 + $0x8] sm:$0xff]  ;;  %s648_s9 = sshll.u32 %s800_s18, 5  ;;  %s315_s15 = scalar_lea.vmem %s794_s5, %s647_s22 }
  0x12   : > { %v320_v4 = vunpack.c.h.bf16 %v317_v2  ;;  %v322_v5 = vunpack.c.h.bf16 %v318_v3  ;;  %v319_v6 = vunpack.c.l.bf16 %v317_v2  ;;  %v321_v7 = vunpack.c.l.bf16 %v318_v3  ;;  %v474_v8 = vld [vmem:[%s306_s29] sm:$0xff]  ;;  %s301_s12 = scalar_lea.vmem %s790_s1, %s648_s9 }
  0x13   : > { %477 = vperm.xlu0 %678, %v474_v8   ;;  %v324_v12 = vld [vmem:[%s301_s12] sm:$0xff]  ;;  %v326_v13 = vld [vmem:[%s301_s12 + $0x10] sm:$0xff]  ;;  %v325_v14 = vld [vmem:[%s301_s12 + $0x8] sm:$0xff] }
  0x14   : > { %332 = vmatprep.subr.mxu0 %v320_v4  ;;  %403 = vmatprep.subr.mxu1 %v322_v5  ;;  %v327_v15 = vld [vmem:[%s301_s12 + $0x18] sm:$0xff] }
  0x15   : > { %333 = vmatpush1.msra.mxu0 %v319_v6  ;;  %404 = vmatpush1.msra.mxu1 %v321_v7 }
  0x16   : > { %641 = vmatmul.mubr.msk.f32.vlgmr.msra.gmra.mrb[0].mxu0 %vm328_vm0, %v323_v9  ;;  %642 = vmatmul.mubr.msk.f32.vlgmr.msra.gmra.mrb[0].mxu1 %vm328_vm0, %v323_v9 }
  0x17   : > { %487 = vperm.xlu0 %678, %v484_v10  }
  0x92   : > { %v478_v11 = vpop.permute.xlu0 %477 }
  0x96   : > { %v488_v26 = vpop.permute.xlu0 %487 }
  0xe9   : > { %v398_v16 = vpop.f32.mrb[0].mxu0  ;;  %v469_v17 = vpop.f32.mrb[0].mxu1 }
  0xea   : > { %v399_v18 = vadd.f32 %v398_v16, %v324_v12  ;;  %v470_v19 = vadd.f32 %v469_v17, %v326_v13  ;;  %v400_v20 = vpop.f32.mrb[1].mxu0  ;;  %v471_v21 = vpop.f32.mrb[1].mxu1 }
  0xeb   : > { %v401_v22 = vadd.f32 %v400_v20, %v325_v14  ;;  %v472_v23 = vadd.f32 %v471_v21, %v327_v15 }
  0xec   : > { %v480_v24 = vadd.f32 %v478_v11, %v399_v18  ;;  %v482_v25 = vadd.f32 %v478_v11, %v470_v19 }
  0xed   : > { %v481_v27 = vadd.f32 %v478_v11, %v401_v22  ;;  %v483_v28 = vadd.f32 %v478_v11, %v472_v23 }
  0xee   : > { %v490_v29 = vadd.f32 %v488_v26, %v480_v24  ;;  %v492_v30 = vadd.f32 %v488_v26, %v482_v25 }
  0xef   : > { %v491_v31 = vadd.f32 %v488_v26, %v481_v27  ;;  %v493_v32 = vadd.f32 %v488_v26, %v483_v28 }
  0xf1   : > { %v650_v33 = vpack.c.bf16 %v491_v31, %v490_v29  ;;  %v651_v34 = vpack.c.bf16 %v493_v32, %v492_v30 }
  0xf3   : > { %510 = vst [vmem:[%s315_s15] sm:$0xff] %v650_v33  ;;  %511 = vst [vmem:[%s315_s15 + $0x8] sm:$0xff] %v651_v34 }
  0xf4 PF: > { %s15_s20 = sadd.s32 1, %s701_s20   ;;  %s795_s18 = smov %s697_s19 }
  0xf5   : > { %p12_p5 = scmp.ge.s32.totalorder %s15_s20, 4   ;;  %s796_s19 = smov %s798_s21 }
  0xf7   :  { %14 = sbr.rel (!%p12_p5) target bundleno = 2 (0x2), region = 76 }

// kernel: squeeze.33
= control target key start
LH: loop header
LB: loop body
LE: loop exit
PB: predicated region body
PF: predicated region fallthrough
CT: control target
= control target key end

     0   :  { %s460_s0 = inlined_call_operand.vmem [shape: f32[2,512], index: 0, kind: input, shape index: {}]   ;;  %s461_s1 = inlined_call_operand.hbm [shape: f32[2,8,8,8,1], index: 1, kind: output, shape index: {}]  }
   0x1   :  { %v299_v0 = vld [vmem:[%s460_s0 + $0x6] sm:$0x3]  ;;  %v300_v1 = vld [vmem:[%s460_s0 + $0x4] sm:$0x3]  ;;  %v301_v2 = vld [vmem:[%s460_s0 + $0x2] sm:$0x3] }
   0x2   :  { %9 = vst [vmem:[#allocation2 + $0x18] sm:$0x3] %v299_v0  ;;  %14 = vst [vmem:[#allocation2 + $0x10] sm:$0x3] %v300_v1  ;;  %v19_v3 = vld [vmem:[%s460_s0] sm:$0x3] }
   0x3   :  { %18 = vst [vmem:[#allocation2 + $0x8] sm:$0x3] %v301_v2  ;;  %20 = vst [vmem:[#allocation2] sm:$0x3] %v19_v3 }
   0x4   :  { %2 = vsyncpa [#allocation1], 0  ;;  %vm50_vm0 = vcmask 1047556   ;;  %s342_s0 = smov 120   ;;  %s343_s14 = smov 104   ;;  %vm22_vm1 = vcmask 64512  }
   0x5   :  { %s344_s15 = smov 112   ;;  %s345_s16 = smov 96  }
   0x6   :  { %s346_s17 = smov 88   ;;  %s347_s18 = smov 80  }
   0x7   :  { %s348_s19 = smov 72   ;;  %s349_s20 = smov 64  }
   0x8   :  { %s350_s21 = smov 56   ;;  %s351_s22 = smov 48  }
   0x9   :  { %v49_v4 = vld.sshfl [vmem:[#allocation2 + $0x10] sm:$0xff pattern:$0x91800000]   ;;  %s352_s23 = smov 40   ;;  %s353_s24 = smov 32  }
   0xa   :  { %v47_v5 = vld.sshfl [vmem:[#allocation2] sm:$0xff pattern:$0x99999180]   ;;  %v34_v9 = vld [vmem:[#allocation2 + $0x10] sm:$0x3]   ;;  %s354_s25 = smov 24  }
   0xb   :  { %v51_v6 = vsel %vm50_vm0, %v49_v4, %v47_v5  ;;  %v21_v7 = vld [vmem:[#allocation2] sm:$0x3]   ;;  %v27_v8 = vld [vmem:[#allocation2 + $0x8] sm:$0x3]   ;;  %37 = vst.msk [vmem:[#allocation0 + $0x20] sm:$0x1] %vm22_vm1, %v34_v9  }
   0xc   :  { %52 = vrot.lane.b32.xlu0 %v51_v6, %s342_s0  ;;  %84 = vrot.lane.b32.xlu1 %v51_v6, %s343_s14  ;;  %23 = vst.msk [vmem:[#allocation0] sm:$0x1] %vm22_vm1, %v21_v7   ;;  %25 = vst.msk [vmem:[#allocation0 + $0x3f] sm:$0x2] %vm22_vm1, %v21_v7   ;;  %v41_v10 = vld [vmem:[#allocation2 + $0x18] sm:$0x3]  }
   0xd   :  { %30 = vst.msk [vmem:[#allocation0 + $0x10] sm:$0x1] %vm22_vm1, %v27_v8   ;;  %32 = vst.msk [vmem:[#allocation0 + $0x4f] sm:$0x2] %vm22_vm1, %v27_v8   ;;  %s355_s26 = smov 16   ;;  %s356_s27 = smov 8  }
   0xe   :  { %39 = vst.msk [vmem:[#allocation0 + $0x5f] sm:$0x2] %vm22_vm1, %v34_v9   ;;  %44 = vst.msk [vmem:[#allocation0 + $0x30] sm:$0x1] %vm22_vm1, %v41_v10   ;;  %s357_s28 = smov [#allocation0]  }
   0xf   :  { %46 = vst.msk [vmem:[#allocation0 + $0x6f] sm:$0x2] %vm22_vm1, %v41_v10   ;;  %s291_s29 = sshll.u32 %s357_s28, 4  ;;  %s292_s29 = int_to_ptr.vmem [resolvable:$true] %s291_s29 }
  0x10   :  { %68 = vrot.lane.b32.xlu0 %v51_v6, %s344_s15  ;;  %100 = vrot.lane.b32.xlu1 %v51_v6, %s345_s16  ;;  %s318_s30 = scalar_lea.vmem %s292_s29, 2048  ;;  %p323_p1 = scmp.lt.s32.totalorder %s292_s29, %s292_s29 }
  0x11   :  { %p319_p0 = scmp.ne.s32.totalorder %s292_s29, %s318_s30  ;;  %p324_p2 = scmp.lt.s32.totalorder %s318_s30, %s318_s30 }
  0x13   :  { %p325_p3 = por %p324_p2, %p323_p1 }
  0x14   :  { %116 = vrot.lane.b32.xlu0 %v51_v6, %s346_s17  ;;  %132 = vrot.lane.b32.xlu1 %v51_v6, %s347_s18 }
  0x15   :  { %p326_p4 = pnand %p325_p3, %p319_p0 }
  0x18   :  { %148 = vrot.lane.b32.xlu0 %v51_v6, %s348_s19  ;;  %164 = vrot.lane.b32.xlu1 %v51_v6, %s349_s20 }
  0x1c   :  { %180 = vrot.lane.b32.xlu0 %v51_v6, %s350_s21  ;;  %196 = vrot.lane.b32.xlu1 %v51_v6, %s351_s22 }
  0x20   :  { %212 = vrot.lane.b32.xlu0 %v51_v6, %s352_s23  ;;  %228 = vrot.lane.b32.xlu1 %v51_v6, %s353_s24 }
  0x24   :  { %244 = vrot.lane.b32.xlu0 %v51_v6, %s354_s25  ;;  %260 = vrot.lane.b32.xlu1 %v51_v6, %s355_s26 }
  0x28   :  { %276 = vrot.lane.b32.xlu0 %v51_v6, %s356_s27 }
  0x7e   :  { %v53_v11 = vpop.permute.xlu0 %52   ;;  %v85_v12 = vpop.permute.xlu1 %84  }
  0x7f   :  { %56 = vst.msk [vmem:[#allocation0 + $0x1] ss:$16 sm:$0x3] %vm22_vm1, %v53_v11   ;;  %58 = vst.msk [vmem:[#allocation0 + $0x21] ss:$16 sm:$0xc] %vm22_vm1, %v53_v11  }
  0x80   :  { %60 = vst.msk [vmem:[#allocation0 - $0x1f] ss:$16 sm:$0x30] %vm22_vm1, %v53_v11   ;;  %62 = vst.msk [vmem:[#allocation0 + $0x1] ss:$16 sm:$0xc0] %vm22_vm1, %v53_v11  }
  0x81   :  { %88 = vst.msk [vmem:[#allocation0 + $0x3] ss:$16 sm:$0x3] %vm22_vm1, %v85_v12   ;;  %90 = vst.msk [vmem:[#allocation0 + $0x23] ss:$16 sm:$0xc] %vm22_vm1, %v85_v12  }
  0x82   :  { %92 = vst.msk [vmem:[#allocation0 - $0x1d] ss:$16 sm:$0x30] %vm22_vm1, %v85_v12   ;;  %94 = vst.msk [vmem:[#allocation0 + $0x3] ss:$16 sm:$0xc0] %vm22_vm1, %v85_v12   ;;  %v69_v13 = vpop.permute.xlu0 %68   ;;  %v101_v14 = vpop.permute.xlu1 %100  }
  0x83   :  { %72 = vst.msk [vmem:[#allocation0 + $0x2] ss:$16 sm:$0x3] %vm22_vm1, %v69_v13   ;;  %74 = vst.msk [vmem:[#allocation0 + $0x22] ss:$16 sm:$0xc] %vm22_vm1, %v69_v13  }
  0x84   :  { %76 = vst.msk [vmem:[#allocation0 - $0x1e] ss:$16 sm:$0x30] %vm22_vm1, %v69_v13   ;;  %78 = vst.msk [vmem:[#allocation0 + $0x2] ss:$16 sm:$0xc0] %vm22_vm1, %v69_v13  }
  0x85   :  { %104 = vst.msk [vmem:[#allocation0 + $0x4] ss:$16 sm:$0x3] %vm22_vm1, %v101_v14   ;;  %106 = vst.msk [vmem:[#allocation0 + $0x24] ss:$16 sm:$0xc] %vm22_vm1, %v101_v14  }
  0x86   :  { %108 = vst.msk [vmem:[#allocation0 - $0x1c] ss:$16 sm:$0x30] %vm22_vm1, %v101_v14   ;;  %110 = vst.msk [vmem:[#allocation0 + $0x4] ss:$16 sm:$0xc0] %vm22_vm1, %v101_v14   ;;  %v117_v15 = vpop.permute.xlu0 %116   ;;  %v133_v16 = vpop.permute.xlu1 %132  }
  0x87   :  { %120 = vst.msk [vmem:[#allocation0 + $0x5] ss:$16 sm:$0x3] %vm22_vm1, %v117_v15   ;;  %122 = vst.msk [vmem:[#allocation0 + $0x25] ss:$16 sm:$0xc] %vm22_vm1, %v117_v15  }
  0x88   :  { %124 = vst.msk [vmem:[#allocation0 - $0x1b] ss:$16 sm:$0x30] %vm22_vm1, %v117_v15   ;;  %126 = vst.msk [vmem:[#allocation0 + $0x5] ss:$16 sm:$0xc0] %vm22_vm1, %v117_v15  }
  0x89   :  { %136 = vst.msk [vmem:[#allocation0 + $0x6] ss:$16 sm:$0x3] %vm22_vm1, %v133_v16   ;;  %138 = vst.msk [vmem:[#allocation0 + $0x26] ss:$16 sm:$0xc] %vm22_vm1, %v133_v16  }
  0x8a   :  { %140 = vst.msk [vmem:[#allocation0 - $0x1a] ss:$16 sm:$0x30] %vm22_vm1, %v133_v16   ;;  %142 = vst.msk [vmem:[#allocation0 + $0x6] ss:$16 sm:$0xc0] %vm22_vm1, %v133_v16   ;;  %v149_v17 = vpop.permute.xlu0 %148   ;;  %v165_v18 = vpop.permute.xlu1 %164  }
  0x8b   :  { %152 = vst.msk [vmem:[#allocation0 + $0x7] ss:$16 sm:$0x3] %vm22_vm1, %v149_v17   ;;  %154 = vst.msk [vmem:[#allocation0 + $0x27] ss:$16 sm:$0xc] %vm22_vm1, %v149_v17  }
  0x8c   :  { %156 = vst.msk [vmem:[#allocation0 - $0x19] ss:$16 sm:$0x30] %vm22_vm1, %v149_v17   ;;  %158 = vst.msk [vmem:[#allocation0 + $0x7] ss:$16 sm:$0xc0] %vm22_vm1, %v149_v17  }
  0x8d   :  { %168 = vst.msk [vmem:[#allocation0 + $0x8] ss:$16 sm:$0x3] %vm22_vm1, %v165_v18   ;;  %170 = vst.msk [vmem:[#allocation0 + $0x28] ss:$16 sm:$0xc] %vm22_vm1, %v165_v18  }
  0x8e   :  { %172 = vst.msk [vmem:[#allocation0 - $0x18] ss:$16 sm:$0x30] %vm22_vm1, %v165_v18   ;;  %174 = vst.msk [vmem:[#allocation0 + $0x8] ss:$16 sm:$0xc0] %vm22_vm1, %v165_v18   ;;  %v181_v19 = vpop.permute.xlu0 %180   ;;  %v197_v20 = vpop.permute.xlu1 %196  }
  0x8f   :  { %184 = vst.msk [vmem:[#allocation0 + $0x9] ss:$16 sm:$0x3] %vm22_vm1, %v181_v19   ;;  %186 = vst.msk [vmem:[#allocation0 + $0x29] ss:$16 sm:$0xc] %vm22_vm1, %v181_v19  }
  0x90   :  { %188 = vst.msk [vmem:[#allocation0 - $0x17] ss:$16 sm:$0x30] %vm22_vm1, %v181_v19   ;;  %190 = vst.msk [vmem:[#allocation0 + $0x9] ss:$16 sm:$0xc0] %vm22_vm1, %v181_v19  }
  0x91   :  { %200 = vst.msk [vmem:[#allocation0 + $0xa] ss:$16 sm:$0x3] %vm22_vm1, %v197_v20   ;;  %202 = vst.msk [vmem:[#allocation0 + $0x2a] ss:$16 sm:$0xc] %vm22_vm1, %v197_v20  }
  0x92   :  { %204 = vst.msk [vmem:[#allocation0 - $0x16] ss:$16 sm:$0x30] %vm22_vm1, %v197_v20   ;;  %206 = vst.msk [vmem:[#allocation0 + $0xa] ss:$16 sm:$0xc0] %vm22_vm1, %v197_v20   ;;  %v213_v21 = vpop.permute.xlu0 %212   ;;  %v229_v22 = vpop.permute.xlu1 %228  }
  0x93   :  { %216 = vst.msk [vmem:[#allocation0 + $0xb] ss:$16 sm:$0x3] %vm22_vm1, %v213_v21   ;;  %218 = vst.msk [vmem:[#allocation0 + $0x2b] ss:$16 sm:$0xc] %vm22_vm1, %v213_v21  }
  0x94   :  { %220 = vst.msk [vmem:[#allocation0 - $0x15] ss:$16 sm:$0x30] %vm22_vm1, %v213_v21   ;;  %222 = vst.msk [vmem:[#allocation0 + $0xb] ss:$16 sm:$0xc0] %vm22_vm1, %v213_v21  }
  0x95   :  { %232 = vst.msk [vmem:[#allocation0 + $0xc] ss:$16 sm:$0x3] %vm22_vm1, %v229_v22   ;;  %234 = vst.msk [vmem:[#allocation0 + $0x2c] ss:$16 sm:$0xc] %vm22_vm1, %v229_v22  }
  0x96   :  { %236 = vst.msk [vmem:[#allocation0 - $0x14] ss:$16 sm:$0x30] %vm22_vm1, %v229_v22   ;;  %238 = vst.msk [vmem:[#allocation0 + $0xc] ss:$16 sm:$0xc0] %vm22_vm1, %v229_v22   ;;  %v245_v23 = vpop.permute.xlu0 %244   ;;  %v261_v24 = vpop.permute.xlu1 %260  }
  0x97   :  { %248 = vst.msk [vmem:[#allocation0 + $0xd] ss:$16 sm:$0x3] %vm22_vm1, %v245_v23   ;;  %250 = vst.msk [vmem:[#allocation0 + $0x2d] ss:$16 sm:$0xc] %vm22_vm1, %v245_v23  }
  0x98   :  { %252 = vst.msk [vmem:[#allocation0 - $0x13] ss:$16 sm:$0x30] %vm22_vm1, %v245_v23   ;;  %254 = vst.msk [vmem:[#allocation0 + $0xd] ss:$16 sm:$0xc0] %vm22_vm1, %v245_v23  }
  0x99   :  { %264 = vst.msk [vmem:[#allocation0 + $0xe] ss:$16 sm:$0x3] %vm22_vm1, %v261_v24   ;;  %266 = vst.msk [vmem:[#allocation0 + $0x2e] ss:$16 sm:$0xc] %vm22_vm1, %v261_v24  }
  0x9a   :  { %268 = vst.msk [vmem:[#allocation0 - $0x12] ss:$16 sm:$0x30] %vm22_vm1, %v261_v24   ;;  %270 = vst.msk [vmem:[#allocation0 + $0xe] ss:$16 sm:$0xc0] %vm22_vm1, %v261_v24   ;;  %v277_v25 = vpop.permute.xlu0 %276  }
  0x9b   :  { %280 = vst.msk [vmem:[#allocation0 + $0xf] ss:$16 sm:$0x3] %vm22_vm1, %v277_v25   ;;  %282 = vst.msk [vmem:[#allocation0 + $0x2f] ss:$16 sm:$0xc] %vm22_vm1, %v277_v25  }
  0x9c   :  { %284 = vst.msk [vmem:[#allocation0 - $0x11] ss:$16 sm:$0x30] %vm22_vm1, %v277_v25   ;;  %286 = vst.msk [vmem:[#allocation0 + $0xf] ss:$16 sm:$0xc0] %vm22_vm1, %v277_v25  }
  0x9d   :  { %329 = shalt.err (!%p326_p4)
}
  0x9e   :  { %s330_s4 = scalar_lea.hbm %s461_s1, 2048 }
  0x9f   :  { %p331_p5 = scmp.ne.s32.totalorder %s461_s1, %s330_s4  ;;  %p334_p6 = scmp.lt.u32.totalorder %s330_s4, %s461_s1 }
  0xa1   :  { %p336_p7 = pnand %p334_p6, %p331_p5 }
  0xa3   :  { %339 = shalt.err (!%p336_p7)
}
  0xa4   :  { %294 = dma.vmem_to_hbm [thread:$0]  %s292_s29, 2048, %s461_s1, [#allocation1]  }
  0xa5   :  { %340 = dma.done.wait [#allocation1], 2048  }
  0xa6   :  { %341 = vsyncadd [#allocation1], 4294965248 }
  0xa7   :  { %296 = vsyncpa [#allocation1], 1 }

// kernel: fno3d_forward.21
= control target key start
LH: loop header
LB: loop body
LE: loop exit
PB: predicated region body
PF: predicated region fallthrough
CT: control target
= control target key end

     0   :  { %s3876_s26 = smov 0   ;;  %s3878_s27 = smov 0   ;;  %s5799_s0 = inlined_call_operand.vmem [shape: bf16[2,8,512], index: 0, kind: input, shape index: {}]   ;;  %s5800_s1 = inlined_call_operand.vmem [shape: bf16[2,8,512], index: 1, kind: input, shape index: {}]   ;;  %s5801_s2 = inlined_call_operand.vmem [shape: f32[128,8], index: 2, kind: input, shape index: {}]   ;;  %s5802_s3 = inlined_call_operand.vmem [shape: f32[128,1], index: 3, kind: input, shape index: {}]   ;;  %s5803_s4 = inlined_call_operand.vmem [shape: f32[128,1], index: 4, kind: input, shape index: {}]   ;;  %s5804_s5 = inlined_call_operand.<no memory space> [shape: f32[1,1], index: 5, kind: input, shape index: {}]   ;;  %s5805_s6 = inlined_call_operand.vmem [shape: f32[2,1,1], index: 6, kind: input, shape index: {}]   ;;  %s5806_s7 = inlined_call_operand.vmem [shape: f32[2,1,512], index: 7, kind: output, shape index: {}]  }
   0x1   :  { %v12_v0 = vstv %s5804_s5  ;;  %s3880_s28 = smov 0  }
   0x2   :  { %13 = vst [vmem:[#allocation2] sm:$0x1] %v12_v0 }
   0x3 LB: > { %s28_s5 = sadd.s32 1, %s3824_s27  ;;  %p3479_p0 = scmp.ge.s32.totalorder %s3828_s28, 1  ;;  %s3828_s28 = sphi %s3880_s28, %s19_s28   ;;  %s3824_s27 = sphi %s3878_s27, %s5901_s27   ;;  %s3820_s26 = sphi %s3876_s26, %s5900_s26  }
   0x4   : > { %p29_p1 = scmp.ge.s32.totalorder %s28_s5, 2  ;;  %p285_p2 = scmp.lt.s32.totalorder %s3828_s28, 3 }
   0x6   : > { %s5903_s5 = smov (%p29_p1, %s28_s5), 0  ;;  %p286_p3 = pnand %p3479_p0, %p285_p2 }
   0x8   : > { %289 = sbr.rel (%p286_p3) target bundleno = 778 (0x30a), region = 48 }
   0xf   : > { %p337_p4 = scmp.lt.s32.totalorder %s3820_s26, 1  ;;  %v3830_v1 = vmov 0.0   ;;  %v3831_v2 = vmov 0   ;;  %v400_v3 = vld [vmem:[%s5802_s3] sm:$0xff]  ;;  %v401_v5 = vld [vmem:[%s5802_s3 + $0x8] sm:$0xff]  ;;  %vm452_vm0 = vcmask 64512  }
  0x10   : > { %529 = vmatprep.mubr.f32.mxu0 %v3830_v1  ;;  %618 = vmatprep.mubr.f32.mxu1 %v3830_v1  ;;  %v404_v4 = vld [vmem:[%s5802_s3 + $0x20] sm:$0xff]  ;;  %v405_v14 = vld [vmem:[%s5802_s3 + $0x28] sm:$0xff]  ;;  %v402_v25 = vld [vmem:[%s5802_s3 + $0x10] sm:$0xff] }
  0x11   : > { %s5905_s26 = smov (!%p337_p4, %s3820_s26), 1  ;;  %3548 = vset.pattern.permute.xlu0 %v3831_v2  ;;  %3549 = vset.pattern.permute.xlu1 %v3831_v2  ;;  %v384_v23 = vld [vmem:[%s5801_s2] sm:$0xff]  ;;  %v385_v24 = vld [vmem:[%s5801_s2 + $0x8] sm:$0xff]  ;;  %v386_v26 = vld [vmem:[%s5801_s2 + $0x10] sm:$0xff] }
  0x12   : > { %s3519_s29 = sshll.u32 %s5905_s26, 4  ;;  %434 = vperm.xlu0 %3548, %v400_v3   ;;  %1153 = vperm.xlu1 %3549, %v404_v4   ;;  %v406_v27 = vld [vmem:[%s5802_s3 + $0x30] sm:$0xff]  ;;  %v408_v28 = vld [vmem:[%s5802_s3 + $0x40] sm:$0xff]  ;;  %v387_v29 = vld [vmem:[%s5801_s2 + $0x18] sm:$0xff]  ;;  %s3484_s12 = sshll.u32 %s5905_s26, 2 }
  0x13   : > { %s344_s11 = scalar_lea.vmem %s5799_s0, %s3519_s29  ;;  %s354_s14 = scalar_lea.vmem %s5800_s1, %s3519_s29  ;;  %v409_v30 = vld [vmem:[%s5802_s3 + $0x48] sm:$0xff]  ;;  %v403_v31 = vld [vmem:[%s5802_s3 + $0x18] sm:$0xff]  ;;  %v388_v32 = vld [vmem:[%s5801_s2 + $0x20] sm:$0xff] }
  0x14   : > { %v368_v6 = vld [vmem:[%s344_s11] sm:$0xff]  ;;  %v369_v8 = vld [vmem:[%s344_s11 + $0x8] sm:$0xff]  ;;  %v407_v33 = vld [vmem:[%s5802_s3 + $0x38] sm:$0xff]  ;;  %s358_s11 = scalar_lea.vmem %s5805_s6, %s5905_s26  ;;  %s366_s15 = scalar_lea.vmem %s5806_s7, %s3484_s12 }
  0x15   : > { %v374_v7 = vld [vmem:[%s354_s14] sm:$0xff]  ;;  %v371_v9 = vunpack.c.h.bf16 %v368_v6  ;;  %v373_v11 = vunpack.c.h.bf16 %v369_v8  ;;  %v375_v12 = vld [vmem:[%s354_s14 + $0x8] sm:$0xff]  ;;  %v370_v13 = vunpack.c.l.bf16 %v368_v6  ;;  %v372_v17 = vunpack.c.l.bf16 %v369_v8  ;;  %v410_v35 = vld [vmem:[%s5802_s3 + $0x50] sm:$0xff] }
  0x16   : > { %v377_v10 = vunpack.c.h.bf16 %v374_v7  ;;  %v379_v15 = vunpack.c.h.bf16 %v375_v12  ;;  %v376_v16 = vunpack.c.l.bf16 %v374_v7  ;;  %v378_v18 = vunpack.c.l.bf16 %v375_v12  ;;  %439 = vperm.xlu0 %3548, %v401_v5   ;;  %1158 = vperm.xlu1 %3549, %v405_v14   ;;  %v389_v34 = vld [vmem:[%s5801_s2 + $0x28] sm:$0xff]  ;;  %v412_v36 = vld [vmem:[%s5802_s3 + $0x60] sm:$0xff]  ;;  %v390_v37 = vld [vmem:[%s5801_s2 + $0x30] sm:$0xff] }
  0x17   : > { %v413_v38 = vld [vmem:[%s5802_s3 + $0x68] sm:$0xff]  ;;  %v411_v39 = vld [vmem:[%s5802_s3 + $0x58] sm:$0xff]  ;;  %v414_v41 = vld [vmem:[%s5802_s3 + $0x70] sm:$0xff] }
  0x18   : > { %v381_v19 = vadd.f32 %v377_v10, %v371_v9  ;;  %v383_v20 = vadd.f32 %v379_v15, %v373_v11  ;;  %v3917_v21 = vadd.f32 %v376_v16, %v370_v13  ;;  %v3919_v22 = vadd.f32 %v378_v18, %v372_v17  ;;  %v391_v40 = vld [vmem:[%s5801_s2 + $0x38] sm:$0xff]  ;;  %v392_v43 = vld [vmem:[%s5801_s2 + $0x40] sm:$0xff]  ;;  %v393_v45 = vld [vmem:[%s5801_s2 + $0x48] sm:$0xff] }
  0x19   : > { %v415_v42 = vld [vmem:[%s5802_s3 + $0x78] sm:$0xff]  ;;  %v416_v44 = vld [vmem:[%s5803_s4] sm:$0xff]  ;;  %v417_v46 = vld [vmem:[%s5803_s4 + $0x8] sm:$0xff] }
  0x1a   : > { %465 = vmatprep.subr.mxu0 %v381_v19  ;;  %554 = vmatprep.subr.mxu1 %v383_v20  ;;  %v420_v47 = vld [vmem:[%s5803_s4 + $0x20] sm:$0xff]  ;;  %v394_v48 = vld [vmem:[%s5801_s2 + $0x50] sm:$0xff]  ;;  %v421_v49 = vld [vmem:[%s5803_s4 + $0x28] sm:$0xff] }
  0x1b   : > { %466 = vmatpush1.msra.mxu0 %v3917_v21  ;;  %555 = vmatpush1.msra.mxu1 %v3919_v22  ;;  %v418_v50 = vld [vmem:[%s5803_s4 + $0x10] sm:$0xff]  ;;  %v395_v51 = vld [vmem:[%s5801_s2 + $0x58] sm:$0xff]  ;;  %v424_v53 = vld [vmem:[%s5803_s4 + $0x40] sm:$0xff] }
  0x1c   : > { %3485 = vmatmul.mubr.msk.f32.vlgmr.msra.gmra.mrb[0].mxu0 %vm452_vm0, %v384_v23  ;;  %3489 = vmatmul.mubr.msk.f32.vlgmr.msra.gmra.mrb[0].mxu1 %vm452_vm0, %v384_v23  ;;  %v422_v52 = vld [vmem:[%s5803_s4 + $0x30] sm:$0xff]  ;;  %v396_v54 = vld [vmem:[%s5801_s2 + $0x60] sm:$0xff]  ;;  %v425_v55 = vld [vmem:[%s5803_s4 + $0x48] sm:$0xff] }
  0x1d   : > { %1183 = vmatprep.subr.mxu0 %v381_v19  ;;  %1272 = vmatprep.subr.mxu1 %v383_v20  ;;  %v419_v56 = vld [vmem:[%s5803_s4 + $0x18] sm:$0xff]  ;;  %v397_v57 = vld [vmem:[%s5801_s2 + $0x68] sm:$0xff]  ;;  %v426_v59 = vld [vmem:[%s5803_s4 + $0x50] sm:$0xff] }
  0x1e   : > { %1184 = vmatpush1.msra.mxu0 %v3917_v21  ;;  %1273 = vmatpush1.msra.mxu1 %v3919_v22  ;;  %v423_v58 = vld [vmem:[%s5803_s4 + $0x38] sm:$0xff]  ;;  %v398_v60 = vld [vmem:[%s5801_s2 + $0x70] sm:$0xff]  ;;  %v428_v61 = vld [vmem:[%s5803_s4 + $0x60] sm:$0xff] }
  0x1f   : > { %535 = vmatprep.mubr.f32.mxu0 %v3830_v1  ;;  %624 = vmatprep.mubr.f32.mxu1 %v3830_v1  ;;  %v429_v62 = vld [vmem:[%s5803_s4 + $0x68] sm:$0xff]  ;;  %v399_v63 = vld [vmem:[%s5801_s2 + $0x78] sm:$0xff]  ;;  %v430_v2 = vld [vmem:[%s5803_s4 + $0x70] sm:$0xff] }
  0x20   : > { %3486 = vmatmul.mubr.msk.f32.gmra.mrb[2].mxu0 %vm452_vm0, %v385_v24  ;;  %3490 = vmatmul.mubr.msk.f32.gmra.mrb[2].mxu1 %vm452_vm0, %v385_v24  ;;  %v427_v0 = vld [vmem:[%s5803_s4 + $0x58] sm:$0xff]  ;;  %v3319_v4 = vld [vmem:[%s358_s11] sm:$0x1] }
  0x21   : > { %541 = vmatprep.mubr.f32.mxu0 %v3830_v1  ;;  %630 = vmatprep.mubr.f32.mxu1 %v3830_v1  ;;  %v431_v3 = vld [vmem:[%s5803_s4 + $0x78] sm:$0xff] }
  0x22   : > { %1901 = vmatprep.subr.mxu0 %v381_v19  ;;  %1990 = vmatprep.subr.mxu1 %v383_v20 }
  0x23   : > { %444 = vperm.xlu0 %3548, %v402_v25   ;;  %1163 = vperm.xlu1 %3549, %v406_v27  }
  0x24   : > { %3487 = vmatmul.mubr.msk.f32.gmra.mrb[4].mxu0 %vm452_vm0, %v386_v26  ;;  %3491 = vmatmul.mubr.msk.f32.gmra.mrb[4].mxu1 %vm452_vm0, %v386_v26 }
  0x25   : > { %547 = vmatprep.mubr.f32.mxu0 %v3830_v1  ;;  %636 = vmatprep.mubr.f32.mxu1 %v3830_v1 }
  0x27   : > { %1871 = vperm.xlu0 %3548, %v408_v28   ;;  %1876 = vperm.xlu1 %3549, %v409_v30  }
  0x28   : > { %3488 = vmatmul.mubr.msk.f32.gmra.mrb[6].mxu0 %vm452_vm0, %v387_v29  ;;  %3492 = vmatmul.mubr.msk.f32.gmra.mrb[6].mxu1 %vm452_vm0, %v387_v29 }
  0x29   : > { %1247 = vmatprep.mubr.f32.mxu0 %v3830_v1  ;;  %1336 = vmatprep.mubr.f32.mxu1 %v3830_v1 }
  0x2b   : > { %449 = vperm.xlu0 %3548, %v403_v31   ;;  %1168 = vperm.xlu1 %3549, %v407_v33  }
  0x2c   : > { %3493 = vmatmul.mubr.msk.f32.vlgmr.msra.gmra.mrb[8].mxu0 %vm452_vm0, %v388_v32  ;;  %3497 = vmatmul.mubr.msk.f32.vlgmr.msra.gmra.mrb[8].mxu1 %vm452_vm0, %v388_v32 }
  0x2d   : > { %1902 = vmatpush1.msra.mxu0 %v3917_v21  ;;  %1991 = vmatpush1.msra.mxu1 %v3919_v22 }
  0x2e   : > { %1253 = vmatprep.mubr.f32.mxu0 %v3830_v1  ;;  %1342 = vmatprep.mubr.f32.mxu1 %v3830_v1 }
  0x2f   : > { %2619 = vmatprep.subr.mxu0 %v381_v19  ;;  %2708 = vmatprep.subr.mxu1 %v383_v20 }
  0x30   : > { %3494 = vmatmul.mubr.msk.f32.gmra.mrb[10].mxu0 %vm452_vm0, %v389_v34  ;;  %3498 = vmatmul.mubr.msk.f32.gmra.mrb[10].mxu1 %vm452_vm0, %v389_v34 }
  0x31   : > { %1259 = vmatprep.mubr.f32.mxu0 %v3830_v1  ;;  %1348 = vmatprep.mubr.f32.mxu1 %v3830_v1 }
  0x32   : > { %1881 = vperm.xlu0 %3548, %v410_v35   ;;  %2589 = vperm.xlu1 %3549, %v412_v36  }
  0x34   : > { %3495 = vmatmul.mubr.msk.f32.gmra.mrb[12].mxu0 %vm452_vm0, %v390_v37  ;;  %3499 = vmatmul.mubr.msk.f32.gmra.mrb[12].mxu1 %vm452_vm0, %v390_v37 }
  0x35   : > { %1265 = vmatprep.mubr.f32.mxu0 %v3830_v1  ;;  %1354 = vmatprep.mubr.f32.mxu1 %v3830_v1 }
  0x36   : > { %2594 = vperm.xlu0 %3548, %v413_v38   ;;  %1886 = vperm.xlu1 %3549, %v411_v39  }
  0x38   : > { %3496 = vmatmul.mubr.msk.f32.gmra.mrb[14].mxu0 %vm452_vm0, %v391_v40  ;;  %3500 = vmatmul.mubr.msk.f32.gmra.mrb[14].mxu1 %vm452_vm0, %v391_v40 }
  0x39   : > { %1965 = vmatprep.mubr.f32.mxu0 %v3830_v1  ;;  %2054 = vmatprep.mubr.f32.mxu1 %v3830_v1 }
  0x3a   : > { %2599 = vperm.xlu0 %3548, %v414_v41   ;;  %2604 = vperm.xlu1 %3549, %v415_v42  }
  0x3c   : > { %3501 = vmatmul.mubr.msk.f32.vlgmr.msra.gmra.mrb[16].mxu0 %vm452_vm0, %v392_v43  ;;  %3505 = vmatmul.mubr.msk.f32.vlgmr.msra.gmra.mrb[16].mxu1 %vm452_vm0, %v392_v43 }
  0x3d   : > { %2620 = vmatpush1.msra.mxu0 %v3917_v21  ;;  %2709 = vmatpush1.msra.mxu1 %v3919_v22 }
  0x3e   : > { %1971 = vmatprep.mubr.f32.mxu0 %v3830_v1  ;;  %2060 = vmatprep.mubr.f32.mxu1 %v3830_v1 }
  0x3f   : > { %1077 = vperm.xlu0 %3548, %v416_v44   ;;  %1082 = vperm.xlu1 %3549, %v417_v46  }
  0x40   : > { %3502 = vmatmul.mubr.msk.f32.gmra.mrb[18].mxu0 %vm452_vm0, %v393_v45  ;;  %3506 = vmatmul.mubr.msk.f32.gmra.mrb[18].mxu1 %vm452_vm0, %v393_v45 }
  0x41   : > { %1977 = vmatprep.mubr.f32.mxu0 %v3830_v1  ;;  %2066 = vmatprep.mubr.f32.mxu1 %v3830_v1 }
  0x43   : > { %1795 = vperm.xlu0 %3548, %v420_v47   ;;  %1800 = vperm.xlu1 %3549, %v421_v49  }
  0x44   : > { %3503 = vmatmul.mubr.msk.f32.gmra.mrb[20].mxu0 %vm452_vm0, %v394_v48  ;;  %3507 = vmatmul.mubr.msk.f32.gmra.mrb[20].mxu1 %vm452_vm0, %v394_v48 }
  0x45   : > { %1983 = vmatprep.mubr.f32.mxu0 %v3830_v1  ;;  %2072 = vmatprep.mubr.f32.mxu1 %v3830_v1 }
  0x47   : > { %1087 = vperm.xlu0 %3548, %v418_v50   ;;  %1805 = vperm.xlu1 %3549, %v422_v52  }
  0x48   : > { %3504 = vmatmul.mubr.msk.f32.gmra.mrb[22].mxu0 %vm452_vm0, %v395_v51  ;;  %3508 = vmatmul.mubr.msk.f32.gmra.mrb[22].mxu1 %vm452_vm0, %v395_v51 }
  0x49   : > { %2683 = vmatprep.mubr.f32.mxu0 %v3830_v1  ;;  %2772 = vmatprep.mubr.f32.mxu1 %v3830_v1 }
  0x4b   : > { %2513 = vperm.xlu0 %3548, %v424_v53   ;;  %2518 = vperm.xlu1 %3549, %v425_v55  }
  0x4c   : > { %3509 = vmatmul.mubr.msk.f32.vlgmr.msra.gmra.mrb[24].mxu0 %vm452_vm0, %v396_v54  ;;  %3513 = vmatmul.mubr.msk.f32.vlgmr.msra.gmra.mrb[24].mxu1 %vm452_vm0, %v396_v54 }
  0x4d   : > { %2689 = vmatprep.mubr.f32.mxu0 %v3830_v1  ;;  %2778 = vmatprep.mubr.f32.mxu1 %v3830_v1 }
  0x4f   : > { %1092 = vperm.xlu0 %3548, %v419_v56   ;;  %1810 = vperm.xlu1 %3549, %v423_v58  }
  0x50   : > { %3510 = vmatmul.mubr.msk.f32.gmra.mrb[26].mxu0 %vm452_vm0, %v397_v57  ;;  %3514 = vmatmul.mubr.msk.f32.gmra.mrb[26].mxu1 %vm452_vm0, %v397_v57 }
  0x51   : > { %2695 = vmatprep.mubr.f32.mxu0 %v3830_v1  ;;  %2784 = vmatprep.mubr.f32.mxu1 %v3830_v1 }
  0x53   : > { %2523 = vperm.xlu0 %3548, %v426_v59   ;;  %3231 = vperm.xlu1 %3549, %v428_v61  }
  0x54   : > { %3511 = vmatmul.mubr.msk.f32.gmra.mrb[28].mxu0 %vm452_vm0, %v398_v60  ;;  %3515 = vmatmul.mubr.msk.f32.gmra.mrb[28].mxu1 %vm452_vm0, %v398_v60 }
  0x55   : > { %2701 = vmatprep.mubr.f32.mxu0 %v3830_v1  ;;  %2790 = vmatprep.mubr.f32.mxu1 %v3830_v1  ;;  %v3305_v1 = vld [vmem:[#allocation2] sm:$0x1] }
  0x57   : > { %3236 = vperm.xlu0 %3548, %v429_v62   ;;  %2528 = vperm.xlu1 %3549, %v427_v0  }
  0x58   : > { %3512 = vmatmul.mubr.msk.f32.gmra.mrb[30].mxu0 %vm452_vm0, %v399_v63  ;;  %3516 = vmatmul.mubr.msk.f32.gmra.mrb[30].mxu1 %vm452_vm0, %v399_v63 }
  0x5b   : > { %3241 = vperm.xlu0 %3548, %v430_v2   ;;  %3246 = vperm.xlu1 %3549, %v431_v3  }
  0x5f   : > { %3308 = vperm.xlu0 %3548, %v3305_v1   ;;  %3322 = vperm.xlu1 %3549, %v3319_v4  }
  0x91   : > { %v435_v5 = vpop.permute.xlu0 %434  ;;  %v4139_v24 = vpop.permute.xlu1 %1153 }
  0x95   : > { %v440_v25 = vpop.permute.xlu0 %439 }
  0xef   : > { %v531_v6 = vpop.f32.mrb[0].mxu0  ;;  %v620_v8 = vpop.f32.mrb[0].mxu1 }
  0xf0   : > { %v532_v7 = vadd.f32 %v531_v6, %v435_v5  ;;  %v533_v9 = vpop.f32.mrb[1].mxu0  ;;  %v621_v10 = vadd.f32 %v620_v8, %v435_v5  ;;  %v622_v12 = vpop.f32.mrb[1].mxu1 }
  0xf1   : > { %v534_v11 = vadd.f32 %v533_v9, %v435_v5  ;;  %v623_v14 = vadd.f32 %v622_v12, %v435_v5  ;;  %v4179_v6 = vpop.permute.xlu0 %444 }
  0xf2   : > { %v4127_v13 = vmul.f32 0.70710677, %v532_v7  ;;  %v4129_v15 = vmul.f32 0.70710677, %v621_v10  ;;  %v4141_v38 = vmul.f32 0.5, %v532_v7  ;;  %v4147_v43 = vmul.f32 0.5, %v621_v10 }
  0xf3   : > { %v4131_v16 = vmul.f32 0.70710677, %v534_v11  ;;  %v4134_v18 = vmul.f32 0.70710677, %v623_v14  ;;  %v537_v32 = vpop.f32.mrb[2].mxu0  ;;  %v626_v33 = vpop.f32.mrb[2].mxu1 }
  0xf4   : > { %v675_v17 = vand.u32 2147483647, %v4127_v13  ;;  %v677_v19 = vand.u32 2147483647, %v4129_v15  ;;  %v539_v36 = vpop.f32.mrb[3].mxu0  ;;  %v628_v37 = vpop.f32.mrb[3].mxu1  ;;  %v538_v45 = vadd.f32 %v537_v32, %v440_v25  ;;  %v627_v50 = vadd.f32 %v626_v33, %v440_v25 }
  0xf5   : > { %v676_v20 = vand.u32 2147483647, %v4131_v16  ;;  %v678_v23 = vand.u32 2147483647, %v4134_v18  ;;  %v540_v51 = vadd.f32 %v539_v36, %v440_v25  ;;  %v629_v60 = vadd.f32 %v628_v37, %v440_v25 }
  0xf6   : > { %v691_v21 = vmul.f32 0.3275911, %v675_v17  ;;  %v899_v22 = vsub.f32 0.0, %v675_v17  ;;  %v693_v26 = vmul.f32 0.3275911, %v677_v19  ;;  %v901_v27 = vsub.f32 0.0, %v677_v19 }
  0xf7   : > { %v692_v28 = vmul.f32 0.3275911, %v676_v20  ;;  %v900_v30 = vsub.f32 0.0, %v676_v20  ;;  %v694_v31 = vmul.f32 0.3275911, %v678_v23  ;;  %v4143_v41 = vpop.f32.mrb[4].mxu0 }
  0xf8   : > { %v707_v29 = vadd.f32 1.0, %v691_v21  ;;  %v915_v34 = vmul.f32 %v899_v22, %v675_v17  ;;  %v709_v35 = vadd.f32 1.0, %v693_v26  ;;  %v917_v39 = vmul.f32 %v901_v27, %v677_v19  ;;  %v4145_v42 = vpop.f32.mrb[4].mxu1  ;;  %v4149_v46 = vpop.f32.mrb[5].mxu0 }
  0xf9   : > { %v708_v40 = vadd.f32 1.0, %v692_v28  ;;  %v902_v44 = vsub.f32 0.0, %v678_v23  ;;  %v4151_v47 = vpop.f32.mrb[5].mxu1  ;;  %v916_v48 = vmul.f32 %v900_v30, %v676_v20  ;;  %v710_v49 = vadd.f32 1.0, %v694_v31 }
  0xfa   : > { %3550 = vrcp.f32 %v707_v29  ;;  %v931_v54 = vmul.f32 1.442695, %v915_v34  ;;  %v4157_v55 = vmul.f32 0.70710677, %v538_v45  ;;  %v935_v58 = vmul.f32 1.442695, %v917_v39 }
  0xfb   : > { %3552 = vrcp.f32 %v709_v35  ;;  %v4153_v52 = vpop.f32.mrb[6].mxu0  ;;  %v4155_v53 = vpop.f32.mrb[6].mxu1  ;;  %v4163_v59 = vmul.f32 0.70710677, %v627_v50  ;;  %v4165_v61 = vmul.f32 0.5, %v534_v11  ;;  %v918_v62 = vmul.f32 %v902_v44, %v678_v23 }
  0xfc   : > { %v4159_v56 = vpop.f32.mrb[7].mxu0  ;;  %v4161_v57 = vpop.f32.mrb[7].mxu1  ;;  %3554 = vrcp.f32 %v708_v40  ;;  %v679_v63 = vand.u32 2147483647, %v4157_v55  ;;  %v4168_v0 = vmul.f32 0.70710677, %v540_v51 }
  0xfd   : > { %v4172_v3 = vmul.f32 1.442695, %v916_v48  ;;  %3556 = vrcp.f32 %v710_v49  ;;  %v681_v1 = vand.u32 2147483647, %v4163_v59  ;;  %v4181_v7 = vmul.f32 0.5, %v623_v14  ;;  %v4186_v11 = vpop.permute.xlu1 %1158  ;;  %v4207_v40 = vpop.permute.xlu0 %1871 }
  0xfe   : > { %v695_v8 = vmul.f32 0.3275911, %v679_v63  ;;  %v680_v9 = vand.u32 2147483647, %v4168_v0  ;;  %5821 = vst [vmem:[#allocation5_spill] sm:$0xff] %v4186_v11  ;;  %v903_v12 = vsub.f32 0.0, %v679_v63  ;;  %3558 = vpow2.f32 %v931_v54 }
  0xff   : > { %v4170_v2 = vpop.f32.mrb[8].mxu0  ;;  %v4175_v4 = vpop.f32.mrb[8].mxu1  ;;  %v697_v17 = vmul.f32 0.3275911, %v681_v1  ;;  %v905_v19 = vsub.f32 0.0, %v681_v1  ;;  %3560 = vpow2.f32 %v935_v58  ;;  %v4202_v33 = vmul.f32 0.5, %v538_v45 }
 0x100   : > { %v4177_v5 = vpop.f32.mrb[9].mxu0  ;;  %v4184_v10 = vpop.f32.mrb[9].mxu1  ;;  %v4188_v20 = vmul.f32 0.70710677, %v629_v60  ;;  %v937_v21 = vmul.f32 1.442695, %v918_v62  ;;  %v919_v37 = vmul.f32 %v903_v12, %v679_v63  ;;  %v4221_v63 = vadd.f32 %v4143_v41, %v4179_v6 }
 0x101   : > { %5819 = vst [vmem:[#allocation3_spill] sm:$0xff] %v4177_v5  ;;  %5820 = vst [vmem:[#allocation4_spill] sm:$0xff] %v4184_v10  ;;  %v711_v22 = vadd.f32 1.0, %v695_v8  ;;  %v696_v23 = vmul.f32 0.3275911, %v680_v9  ;;  %v713_v26 = vadd.f32 1.0, %v697_v17  ;;  %v921_v39 = vmul.f32 %v905_v19, %v681_v1  ;;  %v4215_v45 = vpop.permute.xlu1 %1163 }
 0x102   : > { %v904_v27 = vsub.f32 0.0, %v680_v9  ;;  %v682_v28 = vand.u32 2147483647, %v4188_v20  ;;  %5826 = vst [vmem:[#allocation10_spill] sm:$0xff] %v4207_v40  ;;  %v4209_v48 = vmul.f32 0.5, %v627_v50  ;;  %v4211_v49 = vmul.f32 0.5, %v540_v51  ;;  %v4237_v40 = vpop.permute.xlu0 %449 }
 0x103   : > { %v4190_v25 = vpop.f32.mrb[10].mxu0  ;;  %v4195_v29 = vpop.f32.mrb[10].mxu1  ;;  %3562 = vrcp.f32 %v711_v22  ;;  %v712_v34 = vadd.f32 1.0, %v696_v23  ;;  %5827 = vst [vmem:[#allocation11_spill] sm:$0xff] %v4215_v45  ;;  %v4217_v17 = vmul.f32 0.5, %v629_v60  ;;  %vm995_vm1 = vcmp.ge.f32.partialorder %v4127_v13, 0.0 }
 0x104   : > { %5822 = vst [vmem:[#allocation6_spill] sm:$0xff] %v4190_v25  ;;  %v4192_v14 = vpop.eup %3550  ;;  %5823 = vst [vmem:[#allocation7_spill] sm:$0xff] %v4195_v29  ;;  %v4197_v30 = vpop.f32.mrb[11].mxu0  ;;  %3564 = vrcp.f32 %v713_v26  ;;  %v698_v54 = vmul.f32 0.3275911, %v682_v28  ;;  %v920_v8 = vmul.f32 %v904_v27, %v680_v9  ;;  %v906_v26 = vsub.f32 0.0, %v682_v28 }
 0x105   : > { %5824 = vst [vmem:[#allocation8_spill] sm:$0xff] %v4197_v30  ;;  %v4199_v31 = vpop.eup %3552  ;;  %v755_v32 = vmul.f32 1.0614054, %v4192_v14  ;;  %v4204_v35 = vpop.f32.mrb[11].mxu1  ;;  %3566 = vrcp.f32 %v712_v34  ;;  %v939_v60 = vmul.f32 1.442695, %v919_v37 }
 0x106   : > { %5825 = vst [vmem:[#allocation9_spill] sm:$0xff] %v4204_v35  ;;  %v757_v36 = vmul.f32 1.0614054, %v4199_v31  ;;  %v4213_v58 = vpop.eup %3554  ;;  %v714_v12 = vadd.f32 1.0, %v698_v54  ;;  %v943_v23 = vmul.f32 1.442695, %v921_v39 }
 0x107   : > { %v771_v44 = vadd.f32 -1.4531521, %v755_v32  ;;  %v4223_v1 = vpop.f32.mrb[12].mxu0  ;;  %v756_v51 = vmul.f32 1.0614054, %v4213_v58  ;;  %v4227_v19 = vpop.f32.mrb[12].mxu1 }
 0x108   : > { %v773_v62 = vadd.f32 -1.4531521, %v757_v36  ;;  %5828 = vst [vmem:[#allocation12_spill] sm:$0xff] %v4223_v1  ;;  %5829 = vst [vmem:[#allocation13_spill] sm:$0xff] %v4227_v19  ;;  %v4229_v22 = vpop.eup %3556  ;;  %3568 = vrcp.f32 %v714_v12  ;;  %v4235_v34 = vmul.f32 0.70710677, %v4221_v63 }
 0x109   : > { %v787_v50 = vmul.f32 %v4192_v14, %v771_v44  ;;  %v772_v41 = vadd.f32 -1.4531521, %v756_v51  ;;  %v758_v32 = vmul.f32 1.0614054, %v4229_v22  ;;  %3570 = vpow2.f32 %v4172_v3  ;;  %v3559_v54 = vpop.eup %3558  ;;  %v4241_v51 = vpop.permute.xlu1 %1876 }
 0x10a   : > { %v789_v9 = vmul.f32 %v4199_v31, %v773_v62  ;;  %v941_v44 = vmul.f32 1.442695, %v920_v8  ;;  %3572 = vpow2.f32 %v937_v21  ;;  %5830 = vst [vmem:[#allocation14_spill] sm:$0xff] %v4241_v51  ;;  %v922_v3 = vmul.f32 %v906_v26, %v682_v28  ;;  %v4260_v45 = vpop.f32.mrb[13].mxu0 }
 0x10b   : > { %v803_v27 = vadd.f32 1.4214138, %v787_v50  ;;  %v788_v37 = vmul.f32 %v4213_v58, %v772_v41  ;;  %v774_v39 = vadd.f32 -1.4531521, %v758_v32  ;;  %v3561_v50 = vpop.eup %3560  ;;  %3574 = vpow2.f32 %v939_v60  ;;  %5831 = vst [vmem:[#allocation15_spill] sm:$0xff] %v4260_v45 }
 0x10c   : > { %v805_v36 = vadd.f32 1.4214138, %v789_v9  ;;  %v4245_v8 = vand.u32 2147483647, %v4235_v34  ;;  %3576 = vpow2.f32 %v943_v23  ;;  %vm997_vm2 = vcmp.ge.f32.partialorder %v4129_v15, 0.0 }
 0x10d   : > { %v819_v62 = vmul.f32 %v4192_v14, %v803_v27  ;;  %v4247_v9 = vpop.eup %3562  ;;  %v804_v1 = vadd.f32 1.4214138, %v788_v37  ;;  %v790_v27 = vmul.f32 %v4229_v22, %v774_v39  ;;  %3578 = vpow2.f32 %v941_v44  ;;  %v4264_v44 = vpop.permute.xlu0 %1881 }
 0x10e   : > { %v821_v12 = vmul.f32 %v4199_v31, %v805_v36  ;;  %v4250_v41 = vpop.eup %3564  ;;  %v759_v32 = vmul.f32 1.0614054, %v4247_v9  ;;  %v699_v36 = vmul.f32 0.3275911, %v4245_v8  ;;  %v4258_v39 = vmul.f32 1.442695, %v922_v3 }
 0x10f   : > { %v835_v19 = vadd.f32 -0.28449672, %v819_v62  ;;  %v820_v60 = vmul.f32 %v4213_v58, %v804_v1  ;;  %v806_v26 = vadd.f32 1.4214138, %v790_v27  ;;  %v761_v51 = vmul.f32 1.0614054, %v4250_v41  ;;  %v4267_v27 = vpop.permute.xlu1 %1168 }
 0x110   : > { %v837_v21 = vadd.f32 -0.28449672, %v821_v12  ;;  %v775_v37 = vadd.f32 -1.4531521, %v759_v32  ;;  %v715_v23 = vadd.f32 1.0, %v699_v36  ;;  %v4262_v12 = vpop.eup %3566  ;;  %5832 = vst [vmem:[#allocation16_spill] sm:$0xff] %v4264_v44 }
 0x111   : > { %v851_v28 = vmul.f32 %v4192_v14, %v835_v19  ;;  %v836_v30 = vadd.f32 -0.28449672, %v820_v60  ;;  %v822_v19 = vmul.f32 %v4229_v22, %v806_v26  ;;  %v777_v1 = vadd.f32 -1.4531521, %v761_v51  ;;  %5833 = vst [vmem:[#allocation17_spill] sm:$0xff] %v4267_v27 }
 0x112   : > { %v853_v62 = vmul.f32 %v4199_v31, %v837_v21  ;;  %v791_v3 = vmul.f32 %v4247_v9, %v775_v37  ;;  %v760_v32 = vmul.f32 1.0614054, %v4262_v12  ;;  %3580 = vrcp.f32 %v715_v23  ;;  %v4272_v36 = vpop.eup %3568 }
 0x113   : > { %v867_v35 = vadd.f32 0.2548296, %v851_v28  ;;  %v852_v28 = vmul.f32 %v4213_v58, %v836_v30  ;;  %v838_v60 = vadd.f32 -0.28449672, %v822_v19  ;;  %v793_v51 = vmul.f32 %v4250_v41, %v777_v1  ;;  %v3571_v26 = vpop.eup %3570 }
 0x114   : > { %v869_v21 = vadd.f32 0.2548296, %v853_v62  ;;  %v807_v62 = vadd.f32 1.4214138, %v791_v3  ;;  %v776_v27 = vadd.f32 -1.4531521, %v760_v32  ;;  %v3573_v29 = vpop.eup %3572  ;;  %3582 = vpow2.f32 %v4258_v39 }
 0x115   : > { %v883_v45 = vmul.f32 %v4192_v14, %v867_v35  ;;  %v762_v37 = vmul.f32 1.0614054, %v4272_v36  ;;  %v868_v25 = vadd.f32 0.2548296, %v852_v28  ;;  %v854_v11 = vmul.f32 %v4229_v22, %v838_v60  ;;  %v3575_v35 = vpop.eup %3574  ;;  %v4290_v60 = vpop.permute.xlu1 %2589 }
 0x116   : > { %v885_v44 = vmul.f32 %v4199_v31, %v869_v21  ;;  %v809_v14 = vadd.f32 1.4214138, %v793_v51  ;;  %vm996_vm3 = vcmp.ge.f32.partialorder %v4131_v16, 0.0  ;;  %v823_v30 = vmul.f32 %v4247_v9, %v807_v62  ;;  %v3577_v31 = vpop.eup %3576  ;;  %v4284_v21 = vpop.permute.xlu0 %2594  ;;  %5835 = vst [vmem:[#allocation19_spill] sm:$0xff] %v4290_v60 }
 0x117   : > { %v963_v23 = vmul.f32 %v3559_v54, %v883_v45  ;;  %v792_v19 = vmul.f32 %v4262_v12, %v776_v27  ;;  %v778_v1 = vadd.f32 -1.4531521, %v762_v37  ;;  %5834 = vst [vmem:[#allocation18_spill] sm:$0xff] %v4284_v21  ;;  %v884_v32 = vmul.f32 %v4213_v58, %v868_v25  ;;  %v4288_v28 = vpop.eup %3578  ;;  %v4293_v27 = vpop.f32.mrb[13].mxu1 }
 0x118   : > { %v965_v10 = vmul.f32 %v3561_v50, %v885_v44  ;;  %v870_v45 = vadd.f32 0.2548296, %v854_v11  ;;  %v825_v54 = vmul.f32 %v4250_v41, %v809_v14  ;;  %v839_v44 = vadd.f32 -0.28449672, %v823_v30  ;;  %5836 = vst [vmem:[#allocation20_spill] sm:$0xff] %v4293_v27 }
 0x119   : > { %v979_v3 = vsub.f32 1.0, %v963_v23  ;;  %v808_v51 = vadd.f32 1.4214138, %v792_v19  ;;  %v794_v62 = vmul.f32 %v4272_v36, %v778_v1  ;;  %v964_v5 = vmul.f32 %v3571_v26, %v884_v32 }
 0x11a   : > { %v981_v50 = vsub.f32 1.0, %v965_v10  ;;  %v886_v23 = vmul.f32 %v4229_v22, %v870_v45  ;;  %v841_v21 = vadd.f32 -0.28449672, %v825_v54  ;;  %v855_v11 = vmul.f32 %v4247_v9, %v839_v44  ;;  %v4306_v45 = vpop.permute.xlu0 %2599 }
 0x11b   : > { %v1011_v37 = vsub.f32 0.0, %v979_v3  ;;  %v824_v58 = vmul.f32 %v4262_v12, %v808_v51  ;;  %v810_v14 = vadd.f32 1.4214138, %v794_v62  ;;  %v980_v30 = vsub.f32 1.0, %v964_v5  ;;  %5837 = vst [vmem:[#allocation21_spill] sm:$0xff] %v4306_v45 }
 0x11c   : > { %v1013_v25 = vsub.f32 0.0, %v981_v50  ;;  %v966_v19 = vmul.f32 %v3573_v29, %v886_v23  ;;  %v857_v1 = vmul.f32 %v4250_v41, %v841_v21  ;;  %v4301_v60 = vpop.eup %3580  ;;  %vm998_vm4 = vcmp.ge.f32.partialorder %v4134_v18, 0.0  ;;  %v4309_v29 = vpop.permute.xlu1 %1886 }
 0x11d   : > { %v1027_v10 = vsel %vm995_vm1, %v979_v3, %v1011_v37  ;;  %v871_v26 = vadd.f32 0.2548296, %v855_v11  ;;  %v840_v32 = vadd.f32 -0.28449672, %v824_v58  ;;  %v1012_v44 = vsub.f32 0.0, %v980_v30  ;;  %5838 = vst [vmem:[#allocation22_spill] sm:$0xff] %v4309_v29 }
 0x11e   : > { %v1043_v27 = vadd.f32 1.0, %v1027_v10  ;;  %v1029_v22 = vsel %vm997_vm2, %v981_v50, %v1013_v25  ;;  %v982_v13 = vsub.f32 1.0, %v966_v19  ;;  %vm999_vm5 = vcmp.ge.f32.partialorder %v4157_v55, 0.0 }
 0x11f   : > { %v1045_v54 = vadd.f32 1.0, %v1029_v22  ;;  %v873_v5 = vadd.f32 0.2548296, %v857_v1  ;;  %v887_v21 = vmul.f32 %v4247_v9, %v871_v26  ;;  %vm1001_vm6 = vcmp.ge.f32.partialorder %v4163_v59, 0.0 }
 0x120   : > { %v856_v15 = vmul.f32 %v4262_v12, %v840_v32  ;;  %v826_v3 = vmul.f32 %v4272_v36, %v810_v14  ;;  %v1028_v50 = vsel %vm996_vm3, %v980_v30, %v1012_v44  ;;  %v907_v62 = vsub.f32 0.0, %v4245_v8  ;;  %v4341_v19 = vpop.permute.xlu1 %2604 }
 0x121   : > { %v889_v51 = vmul.f32 %v4250_v41, %v873_v5  ;;  %v4322_v37 = vadd.f32 %v4145_v42, %v4179_v6  ;;  %v1059_v9 = vmul.f32 %v1043_v27, %v4141_v38  ;;  %v1061_v23 = vmul.f32 %v1045_v54, %v4147_v43  ;;  %v4336_v43 = vpop.permute.xlu0 %1077  ;;  %5839 = vst [vmem:[#allocation23_spill] sm:$0xff] %v4341_v19 }
 0x122   : > { %v967_v25 = vmul.f32 %v3575_v35, %v887_v21  ;;  %v872_v11 = vadd.f32 0.2548296, %v856_v15  ;;  %v1014_v58 = vsub.f32 0.0, %v982_v13  ;;  %vm1000_vm7 = vcmp.ge.f32.partialorder %v4168_v0, 0.0 }
 0x123   : > { %v969_v14 = vmul.f32 %v3577_v31, %v889_v51  ;;  %v842_v16 = vadd.f32 -0.28449672, %v826_v3  ;;  %v4329_v41 = vadd.f32 %v4149_v46, %v4179_v6  ;;  %v1044_v39 = vadd.f32 1.0, %v1028_v50 }
 0x124   : > { %v983_v10 = vsub.f32 1.0, %v967_v25  ;;  %v888_v42 = vmul.f32 %v4262_v12, %v872_v11  ;;  %v4334_v38 = vadd.f32 %v4151_v47, %v4179_v6  ;;  %v763_v27 = vmul.f32 1.0614054, %v4301_v60  ;;  %v1083_v59 = vpop.permute.xlu1 %1082 }
 0x125   : > { %v985_v35 = vsub.f32 1.0, %v969_v14  ;;  %v858_v31 = vmul.f32 %v4272_v36, %v842_v16  ;;  %v923_v30 = vmul.f32 %v907_v62, %v4245_v8  ;;  %v1095_v46 = vmul.f32 %v4336_v43, %v1059_v9 }
 0x126   : > { %v1097_v1 = vmul.f32 %v4336_v43, %v1061_v23  ;;  %v1015_v12 = vsub.f32 0.0, %v983_v10  ;;  %v968_v22 = vmul.f32 %v4288_v28, %v888_v42  ;;  %v1030_v47 = vsel %vm998_vm4, %v982_v13, %v1014_v58  ;;  %v3583_v13 = vpop.eup %3582 }
 0x127   : > { %v1017_v6 = vsub.f32 0.0, %v985_v35  ;;  %v874_v26 = vadd.f32 0.2548296, %v858_v31  ;;  %v779_v32 = vadd.f32 -1.4531521, %v763_v27  ;;  %v1060_v54 = vmul.f32 %v1044_v39, %v4165_v61 }
 0x128   : > { %v1031_v8 = vsel %vm999_vm5, %v983_v10, %v1015_v12  ;;  %v984_v44 = vsub.f32 1.0, %v968_v22  ;;  %vm1002_vm8 = vcmp.ge.f32.partialorder %v4188_v20, 0.0  ;;  %v947_v5 = vmul.f32 1.442695, %v923_v30 }
 0x129   : > { %v1047_v21 = vadd.f32 1.0, %v1031_v8  ;;  %v1033_v15 = vsel %vm1001_vm6, %v985_v35, %v1017_v6  ;;  %v890_v28 = vmul.f32 %v4272_v36, %v874_v26  ;;  %v795_v18 = vmul.f32 %v4301_v60, %v779_v32  ;;  %v4375_v6 = vpop.f32.mrb[14].mxu0 }
 0x12a   : > { %v1046_v3 = vadd.f32 1.0, %v1030_v47  ;;  %v1049_v50 = vadd.f32 1.0, %v1033_v15  ;;  %v1016_v51 = vsub.f32 0.0, %v984_v44  ;;  %v4357_v61 = vmul.f32 0.70710677, %v4322_v37 }
 0x12b   : > { %v1063_v55 = vmul.f32 %v1047_v21, %v4202_v33  ;;  %v970_v62 = vmul.f32 %v3583_v13, %v890_v28  ;;  %v811_v9 = vadd.f32 1.4214138, %v795_v18  ;;  %v4361_v23 = vmul.f32 0.70710677, %v4329_v41 }
 0x12c   : > { %v1065_v25 = vmul.f32 %v1049_v50, %v4209_v48  ;;  %v1032_v36 = vsel %vm1000_vm7, %v984_v44, %v1016_v51  ;;  %3584 = vpow2.f32 %v947_v5  ;;  %v685_v11 = vand.u32 2147483647, %v4357_v61  ;;  %v4381_v44 = vpop.f32.mrb[14].mxu1 }
 0x12d   : > { %v1099_v58 = vmul.f32 %v1083_v59, %v1063_v55  ;;  %v1048_v14 = vadd.f32 1.0, %v1032_v36  ;;  %v986_v16 = vsub.f32 1.0, %v970_v62  ;;  %v827_v39 = vmul.f32 %v4301_v60, %v811_v9 }
 0x12e   : > { %v1101_v33 = vmul.f32 %v1083_v59, %v1065_v25  ;;  %v701_v10 = vmul.f32 0.3275911, %v685_v11  ;;  %v909_v42 = vsub.f32 0.0, %v685_v11  ;;  %v684_v35 = vand.u32 2147483647, %v4361_v23  ;;  %v4400_v25 = vpop.f32.mrb[15].mxu0 }
 0x12f   : > { %v4369_v31 = vadd.f32 %v1099_v58, %v1095_v46  ;;  %v1064_v48 = vmul.f32 %v1048_v14, %v4211_v49  ;;  %v1018_v27 = vsub.f32 0.0, %v986_v16  ;;  %v843_v0 = vadd.f32 -0.28449672, %v827_v39  ;;  %v4413_v39 = vpop.permute.xlu0 %1795 }
 0x130   : > { %v1096_v30 = vmul.f32 %v4336_v43, %v1060_v54  ;;  %v4373_v12 = vadd.f32 %v1101_v33, %v1097_v1  ;;  %v717_v22 = vadd.f32 1.0, %v701_v10  ;;  %v700_v47 = vmul.f32 0.3275911, %v684_v35 }
 0x131   : > { %v1062_v26 = vmul.f32 %v1046_v3, %v4181_v7  ;;  %v1100_v32 = vmul.f32 %v1083_v59, %v1064_v48  ;;  %v1034_v8 = vsel %vm1002_vm8, %v986_v16, %v1018_v27  ;;  %v859_v46 = vmul.f32 %v4301_v60, %v843_v0 }
 0x132   : > { %v1050_v49 = vadd.f32 1.0, %v1034_v8  ;;  %3586 = vrcp.f32 %v717_v22  ;;  %v925_v5 = vmul.f32 %v909_v42, %v685_v11  ;;  %v716_v54 = vadd.f32 1.0, %v700_v47  ;;  %v4426_v47 = vpop.f32.mrb[15].mxu1 }
 0x133   : > { %v4383_v1 = vadd.f32 %v1100_v32, %v1096_v30  ;;  %v875_v21 = vadd.f32 0.2548296, %v859_v46  ;;  %v908_v28 = vsub.f32 0.0, %v684_v35  ;;  %v4387_v7 = vmul.f32 0.70710677, %v4334_v38 }
 0x134   : > { %v1066_v15 = vmul.f32 %v1050_v49, %v4217_v17  ;;  %v1098_v20 = vmul.f32 %v4336_v43, %v1062_v26  ;;  %3588 = vrcp.f32 %v716_v54  ;;  %v550_v13 = vadd.f32 %v4153_v52, %v4237_v40 }
 0x135   : > { %v891_v18 = vmul.f32 %v4301_v60, %v875_v21  ;;  %v951_v51 = vmul.f32 1.442695, %v925_v5  ;;  %v686_v55 = vand.u32 2147483647, %v4387_v7  ;;  %v4396_v17 = vadd.f32 %v4155_v53, %v4237_v40 }
 0x136   : > { %v3585_v3 = vpop.eup %3584  ;;  %v1102_v50 = vmul.f32 %v1083_v59, %v1066_v15  ;;  %v4398_v9 = vmul.f32 0.70710677, %v550_v13  ;;  %v651_v60 = vmul.f32 0.5, %v4221_v63  ;;  %v924_v36 = vmul.f32 %v908_v28, %v684_v35 }
 0x137   : > { %v971_v62 = vmul.f32 %v3585_v3, %v891_v18  ;;  %v702_v52 = vmul.f32 0.3275911, %v686_v55  ;;  %v910_v59 = vsub.f32 0.0, %v686_v55  ;;  %v4407_v14 = vmul.f32 0.70710677, %v4396_v17 }
 0x138   : > { %v4402_v43 = vadd.f32 %v1102_v50, %v1098_v20  ;;  %v687_v58 = vand.u32 2147483647, %v4398_v9  ;;  %vm1003_vm9 = vcmp.ge.f32.partialorder %v4235_v34, 0.0  ;;  %v4411_v53 = vmul.f32 0.5, %v4322_v37 }
 0x139   : > { %v987_v11 = vsub.f32 1.0, %v971_v62  ;;  %3590 = vpow2.f32 %v951_v51  ;;  %v718_v16 = vadd.f32 1.0, %v702_v52  ;;  %v689_v10 = vand.u32 2147483647, %v4407_v14 }
 0x13a   : > { %v703_v63 = vmul.f32 0.3275911, %v687_v58  ;;  %v4418_v42 = vadd.f32 %v4159_v56, %v4237_v40  ;;  %v4423_v48 = vmul.f32 0.5, %v4329_v41  ;;  %v949_v34 = vmul.f32 1.442695, %v924_v36 }
 0x13b   : > { %v1019_v33 = vsub.f32 0.0, %v987_v11  ;;  %3592 = vrcp.f32 %v718_v16  ;;  %v911_v37 = vsub.f32 0.0, %v687_v58  ;;  %v926_v30 = vmul.f32 %v910_v59, %v686_v55 }
 0x13c   : > { %v4420_v35 = vpop.eup %3586  ;;  %v719_v22 = vadd.f32 1.0, %v703_v63  ;;  %v4429_v32 = vmul.f32 0.5, %v4334_v38  ;;  %v705_v56 = vmul.f32 0.3275911, %v689_v10  ;;  %v913_v8 = vsub.f32 0.0, %v689_v10  ;;  %v4441_v38 = vpop.permute.xlu0 %1087 }
 0x13d   : > { %v1035_v27 = vsel %vm1003_vm9, %v987_v11, %v1019_v33  ;;  %v765_v0 = vmul.f32 1.0614054, %v4420_v35  ;;  %v4434_v49 = vmul.f32 0.70710677, %v4418_v42  ;;  %v4438_v5 = vadd.f32 %v4161_v57, %v4237_v40 }
 0x13e   : > { %v1051_v26 = vadd.f32 1.0, %v1035_v27  ;;  %v4431_v46 = vpop.eup %3588  ;;  %3594 = vrcp.f32 %v719_v22  ;;  %v927_v15 = vmul.f32 %v911_v37, %v687_v58  ;;  %v721_v28 = vadd.f32 1.0, %v705_v56 }
 0x13f   : > { %v781_v41 = vadd.f32 -1.4531521, %v765_v0  ;;  %v764_v21 = vmul.f32 1.0614054, %v4431_v46  ;;  %3596 = vpow2.f32 %v949_v34  ;;  %v953_v18 = vmul.f32 1.442695, %v926_v30 }
 0x140   : > { %v1067_v54 = vmul.f32 %v1051_v26, %v651_v60  ;;  %v688_v3 = vand.u32 2147483647, %v4434_v49  ;;  %3598 = vrcp.f32 %v721_v28  ;;  %v929_v55 = vmul.f32 %v913_v8, %v689_v10 }
 0x141   : > { %v797_v20 = vmul.f32 %v4420_v35, %v781_v41  ;;  %v780_v51 = vadd.f32 -1.4531521, %v764_v21  ;;  %v4446_v40 = vmul.f32 0.5, %v550_v13  ;;  %v955_v59 = vmul.f32 1.442695, %v927_v15 }
 0x142   : > { %v1103_v50 = vmul.f32 %v4441_v38, %v1067_v54  ;;  %v704_v62 = vmul.f32 0.3275911, %v688_v3  ;;  %v912_v60 = vsub.f32 0.0, %v688_v3  ;;  %v4453_v58 = vmul.f32 0.70710677, %v4438_v5 }
 0x143   : > { %v813_v57 = vadd.f32 1.4214138, %v797_v20  ;;  %v3591_v36 = vpop.eup %3590  ;;  %v796_v11 = vmul.f32 %v4431_v46, %v780_v51  ;;  %v4458_v13 = vadd.f32 %v4170_v2, %v4139_v24  ;;  %3600 = vpow2.f32 %v953_v18 }
 0x144   : > { %v4449_v52 = vadd.f32 %v4369_v31, %v1103_v50  ;;  %v720_v33 = vadd.f32 1.0, %v704_v62  ;;  %v928_v63 = vmul.f32 %v912_v60, %v688_v3  ;;  %v959_v31 = vmul.f32 1.442695, %v929_v55 }
 0x145   : > { %v829_v16 = vmul.f32 %v4420_v35, %v813_v57  ;;  %v4460_v10 = vpop.eup %3592  ;;  %v812_v34 = vadd.f32 1.4214138, %v796_v11  ;;  %v690_v37 = vand.u32 2147483647, %v4453_v58  ;;  %v4465_v30 = vmul.f32 0.5, %v4396_v17  ;;  %v4485_v11 = vpop.f32.mrb[16].mxu0 }
 0x146   : > { %v766_v0 = vmul.f32 1.0614054, %v4460_v10  ;;  %3602 = vrcp.f32 %v720_v33  ;;  %v957_v54 = vmul.f32 1.442695, %v928_v63  ;;  %v4472_v21 = vmul.f32 0.70710677, %v4458_v13 }
 0x147   : > { %v845_v27 = vadd.f32 -0.28449672, %v829_v16  ;;  %v828_v22 = vmul.f32 %v4431_v46, %v812_v34  ;;  %3604 = vpow2.f32 %v955_v59  ;;  %v706_v26 = vmul.f32 0.3275911, %v690_v37 }
 0x148   : > { %v914_v2 = vsub.f32 0.0, %v690_v37  ;;  %v4468_v56 = vpop.eup %3594  ;;  %v782_v41 = vadd.f32 -1.4531521, %v766_v0  ;;  %3606 = vpow2.f32 %v959_v31  ;;  %v1393_v50 = vand.u32 2147483647, %v4472_v21 }
 0x149   : > { %v861_v8 = vmul.f32 %v4420_v35, %v845_v27  ;;  %v844_v15 = vadd.f32 -0.28449672, %v828_v22  ;;  %v767_v28 = vmul.f32 1.0614054, %v4468_v56  ;;  %v722_v17 = vadd.f32 1.0, %v706_v26  ;;  %v3597_v20 = vpop.eup %3596  ;;  %v4490_v27 = vpop.f32.mrb[16].mxu1 }
 0x14a   : > { %v798_v3 = vmul.f32 %v4460_v10, %v782_v41  ;;  %v4479_v51 = vadd.f32 %v4175_v4, %v4139_v24  ;;  %v4481_v55 = vpop.eup %3598  ;;  %vm1005_vm10 = vcmp.ge.f32.partialorder %v4357_v61, 0.0  ;;  %v930_v60 = vmul.f32 %v914_v2, %v690_v37 }
 0x14b   : > { %v877_v18 = vadd.f32 0.2548296, %v861_v8  ;;  %v860_v57 = vmul.f32 %v4431_v46, %v844_v15  ;;  %v783_v62 = vadd.f32 -1.4531521, %v767_v28  ;;  %3608 = vrcp.f32 %v722_v17 }
 0x14c   : > { %v814_v16 = vadd.f32 1.4214138, %v798_v3  ;;  %v769_v33 = vmul.f32 1.0614054, %v4481_v55  ;;  %v1409_v63 = vmul.f32 0.3275911, %v1393_v50  ;;  %3610 = vpow2.f32 %v957_v54 }
 0x14d   : > { %v893_v59 = vmul.f32 %v4420_v35, %v877_v18  ;;  %v876_v34 = vadd.f32 0.2548296, %v860_v57  ;;  %v799_v4 = vmul.f32 %v4468_v56, %v783_v62  ;;  %v1617_v31 = vsub.f32 0.0, %v1393_v50  ;;  %v3601_v2 = vpop.eup %3600 }
 0x14e   : > { %vm1004_vm11 = vcmp.ge.f32.partialorder %v4361_v23, 0.0  ;;  %v830_v37 = vmul.f32 %v4460_v10, %v814_v16  ;;  %v785_v22 = vadd.f32 -1.4531521, %v769_v33  ;;  %v1425_v26 = vadd.f32 1.0, %v1409_v63 }
 0x14f   : > { %v973_v0 = vmul.f32 %v3591_v36, %v893_v59  ;;  %v892_v35 = vmul.f32 %v4431_v46, %v876_v34  ;;  %v815_v8 = vadd.f32 1.4214138, %v799_v4  ;;  %v961_v41 = vmul.f32 1.442695, %v930_v60  ;;  %v4498_v36 = vpop.f32.mrb[17].mxu0 }
 0x150   : > { %v1633_v15 = vmul.f32 %v1617_v31, %v1393_v50  ;;  %v4495_v28 = vpop.eup %3602  ;;  %v846_v54 = vadd.f32 -0.28449672, %v830_v37  ;;  %v801_v18 = vmul.f32 %v4481_v55, %v785_v22  ;;  %3612 = vrcp.f32 %v1425_v26 }
 0x151   : > { %v989_v17 = vsub.f32 1.0, %v973_v0  ;;  %v3605_v3 = vpop.eup %3604  ;;  %v972_v57 = vmul.f32 %v3597_v20, %v892_v35  ;;  %v831_v62 = vmul.f32 %v4468_v56, %v815_v8  ;;  %v768_v59 = vmul.f32 1.0614054, %v4495_v28 }
 0x152   : > { %v4502_v16 = vmul.f32 1.442695, %v1633_v15  ;;  %v862_v50 = vmul.f32 %v4460_v10, %v846_v54  ;;  %v817_v60 = vadd.f32 1.4214138, %v801_v18  ;;  %v4506_v33 = vmul.f32 0.70710677, %v4479_v51  ;;  %v3607_v63 = vpop.eup %3606 }
 0x153   : > { %v1021_v46 = vsub.f32 0.0, %v989_v17  ;;  %v988_v34 = vsub.f32 1.0, %v972_v57  ;;  %v847_v4 = vadd.f32 -0.28449672, %v831_v62  ;;  %v784_v31 = vadd.f32 -1.4531521, %v768_v59 }
 0x154   : > { %3614 = vpow2.f32 %v961_v41  ;;  %v878_v0 = vadd.f32 0.2548296, %v862_v50  ;;  %v833_v37 = vmul.f32 %v4481_v55, %v817_v60  ;;  %v4512_v22 = vand.u32 2147483647, %v4506_v33 }
 0x155   : > { %v1037_v20 = vsel %vm1005_vm10, %v989_v17, %v1021_v46  ;;  %v4514_v26 = vpop.eup %3608  ;;  %v1020_v8 = vsub.f32 0.0, %v988_v34  ;;  %vm1006_vm12 = vcmp.ge.f32.partialorder %v4387_v7, 0.0  ;;  %v863_v15 = vmul.f32 %v4468_v56, %v847_v4 }
 0x156   : > { %v1053_v35 = vadd.f32 1.0, %v1037_v20  ;;  %v800_v54 = vmul.f32 %v4495_v28, %v784_v31  ;;  %v894_v41 = vmul.f32 %v4460_v10, %v878_v0  ;;  %v849_v61 = vadd.f32 -0.28449672, %v833_v37  ;;  %v3611_v57 = vpop.eup %3610  ;;  %v4527_v31 = vpop.f32.mrb[17].mxu1 }
 0x157   : > { %v770_v17 = vmul.f32 1.0614054, %v4514_v26  ;;  %v1411_v18 = vmul.f32 0.3275911, %v4512_v22  ;;  %v1036_v59 = vsel %vm1004_vm11, %v988_v34, %v1020_v8  ;;  %v879_v46 = vadd.f32 0.2548296, %v863_v15 }
 0x158   : > { %v1069_v62 = vmul.f32 %v1053_v35, %v4411_v53  ;;  %v816_v50 = vadd.f32 1.4214138, %v800_v54  ;;  %v1052_v60 = vadd.f32 1.0, %v1036_v59  ;;  %v974_v20 = vmul.f32 %v3601_v2, %v894_v41 }
 0x159   : > { %vm1007_vm13 = vcmp.ge.f32.partialorder %v4398_v9, 0.0  ;;  %v865_v4 = vmul.f32 %v4481_v55, %v849_v61  ;;  %v786_v10 = vadd.f32 -1.4531521, %v770_v17  ;;  %v895_v37 = vmul.f32 %v4468_v56, %v879_v46 }
 0x15a   : > { %v1105_v0 = vmul.f32 %v4441_v38, %v1069_v62  ;;  %v832_v53 = vmul.f32 %v4495_v28, %v816_v50  ;;  %v1427_v35 = vadd.f32 1.0, %v1411_v18  ;;  %v4532_v23 = vpop.eup %3612  ;;  %v1068_v34 = vmul.f32 %v1052_v60, %v4423_v48 }
 0x15b   : > { %v990_v8 = vsub.f32 1.0, %v974_v20  ;;  %v881_v2 = vadd.f32 0.2548296, %v865_v4  ;;  %v802_v15 = vmul.f32 %v4514_v26, %v786_v10  ;;  %v975_v41 = vmul.f32 %v3605_v3, %v895_v37 }
 0x15c   : > { %v4537_v54 = vadd.f32 %v4373_v12, %v1105_v0  ;;  %v848_v61 = vadd.f32 -0.28449672, %v832_v53  ;;  %v1473_v17 = vmul.f32 1.0614054, %v4532_v23  ;;  %v1104_v56 = vmul.f32 %v4441_v38, %v1068_v34  ;;  %v4549_v0 = vpop.permute.xlu0 %2513 }
 0x15d   : > { %v1022_v62 = vsub.f32 0.0, %v990_v8  ;;  %v897_v18 = vmul.f32 %v4481_v55, %v881_v2  ;;  %v818_v59 = vadd.f32 1.4214138, %v802_v15  ;;  %v991_v50 = vsub.f32 1.0, %v975_v41  ;;  %5840 = vst [vmem:[#allocation24_spill] sm:$0xff] %v4549_v0 }
 0x15e   : > { %v3615_v46 = vpop.eup %3614  ;;  %v864_v48 = vmul.f32 %v4495_v28, %v848_v61  ;;  %v1489_v60 = vadd.f32 -1.4531521, %v1473_v17  ;;  %3616 = vrcp.f32 %v1427_v35  ;;  %v4544_v20 = vadd.f32 %v4383_v1, %v1104_v56 }
 0x15f   : > { %v1038_v12 = vsel %vm1006_vm12, %v990_v8, %v1022_v62  ;;  %v977_v3 = vmul.f32 %v3607_v63, %v897_v18  ;;  %v834_v4 = vmul.f32 %v4514_v26, %v818_v59  ;;  %v1023_v55 = vsub.f32 0.0, %v991_v50  ;;  %v5841_v18 = vld [vmem:[#allocation3_spill] sm:$0xff] }
 0x160   : > { %v1054_v10 = vadd.f32 1.0, %v1038_v12  ;;  %v880_v37 = vadd.f32 0.2548296, %v864_v48  ;;  %v1505_v53 = vmul.f32 %v4532_v23, %v1489_v60  ;;  %vm1009_vm14 = vcmp.ge.f32.partialorder %v4407_v14, 0.0 }
 0x161   : > { %v993_v34 = vsub.f32 1.0, %v977_v3  ;;  %v850_v35 = vadd.f32 -0.28449672, %v834_v4  ;;  %v1619_v1 = vsub.f32 0.0, %v4512_v22  ;;  %v1039_v7 = vsel %vm1007_vm13, %v991_v50, %v1023_v55 }
 0x162   : > { %v1070_v2 = vmul.f32 %v1054_v10, %v4429_v32  ;;  %v896_v63 = vmul.f32 %v4495_v28, %v880_v37  ;;  %v1521_v8 = vadd.f32 1.4214138, %v1505_v53  ;;  %v1055_v15 = vadd.f32 1.0, %v1039_v7 }
 0x163   : > { %v1025_v41 = vsub.f32 0.0, %v993_v34  ;;  %v866_v61 = vmul.f32 %v4514_v26, %v850_v35  ;;  %3618 = vpow2.f32 %v4502_v16  ;;  %v4564_v32 = vadd.f32 %v5841_v18, %v4139_v24 }
 0x164   : > { %v1106_v17 = vmul.f32 %v4441_v38, %v1070_v2  ;;  %v976_v56 = vmul.f32 %v3611_v57, %v896_v63  ;;  %v1537_v62 = vmul.f32 %v4532_v23, %v1521_v8  ;;  %v1071_v9 = vmul.f32 %v1055_v15, %v4446_v40  ;;  %v1093_v38 = vpop.permute.xlu0 %1092  ;;  %v4581_v63 = vpop.f32.mrb[18].mxu0 }
 0x165   : > { %v1041_v28 = vsel %vm1009_vm14, %v993_v34, %v1025_v41  ;;  %v882_v59 = vadd.f32 0.2548296, %v866_v61  ;;  %v1635_v50 = vmul.f32 %v1619_v1, %v4512_v22  ;;  %vm1008_vm15 = vcmp.ge.f32.partialorder %v4434_v49, 0.0 }
 0x166   : > { %v1139_v48 = vadd.f32 %v4402_v43, %v1106_v17  ;;  %v1057_v16 = vadd.f32 1.0, %v1041_v28  ;;  %v992_v60 = vsub.f32 1.0, %v976_v56  ;;  %v1553_v57 = vadd.f32 -0.28449672, %v1537_v62 }
 0x167   : > { %v898_v12 = vmul.f32 %v4514_v26, %v882_v59  ;;  %v1107_v3 = vmul.f32 %v1093_v38, %v1071_v9  ;;  %v4576_v55 = vmul.f32 0.70710677, %v4564_v32  ;;  %v1653_v53 = vmul.f32 1.442695, %v1635_v50 }
 0x168   : > { %v3617_v4 = vpop.eup %3616  ;;  %v1073_v40 = vmul.f32 %v1057_v16, %v4465_v30  ;;  %v1024_v10 = vsub.f32 0.0, %v992_v60  ;;  %v1569_v14 = vmul.f32 %v4532_v23, %v1553_v57  ;;  %v656_v1 = vmul.f32 0.5, %v4418_v42 }
 0x169   : > { %v978_v22 = vmul.f32 %v3615_v46, %v898_v12  ;;  %v1113_v43 = vadd.f32 %v4449_v52, %v1107_v3  ;;  %v1475_v37 = vmul.f32 1.0614054, %v3617_v4  ;;  %v1394_v26 = vand.u32 2147483647, %v4576_v55 }
 0x16a   : > { %v1040_v34 = vsel %vm1008_vm15, %v992_v60, %v1024_v10  ;;  %v1109_v35 = vmul.f32 %v1093_v38, %v1073_v40  ;;  %v1585_v49 = vadd.f32 0.2548296, %v1569_v14  ;;  %vm1010_vm0 = vcmp.ge.f32.partialorder %v4453_v58, 0.0  ;;  %v5843_v14 = vld [vmem:[#allocation5_spill] sm:$0xff] }
 0x16b   : > { %v1056_v2 = vadd.f32 1.0, %v1040_v34  ;;  %v994_v30 = vsub.f32 1.0, %v978_v22  ;;  %v1491_v7 = vadd.f32 -1.4531521, %v1475_v37  ;;  %v1410_v15 = vmul.f32 0.3275911, %v1394_v26 }
 0x16c   : > { %v1131_v8 = vadd.f32 %v4537_v54, %v1109_v35  ;;  %v1601_v61 = vmul.f32 %v4532_v23, %v1585_v49  ;;  %3620 = vpow2.f32 %v1653_v53  ;;  %v658_v9 = vmul.f32 0.5, %v4438_v5  ;;  %v5842_v23 = vld [vmem:[#allocation4_spill] sm:$0xff]  ;;  %v4603_v53 = vpop.f32.mrb[18].mxu1 }
 0x16d   : > { %v3619_v46 = vpop.eup %3618  ;;  %v1072_v41 = vmul.f32 %v1056_v2, %v656_v1  ;;  %v1026_v52 = vsub.f32 0.0, %v994_v30  ;;  %v1507_v17 = vmul.f32 %v3617_v4, %v1491_v7  ;;  %v1426_v56 = vadd.f32 1.0, %v1410_v15  ;;  %5845 = vst [vmem:[#allocation3_spill] sm:$0xff] %v4603_v53 }
 0x16e   : > { %v1681_v59 = vmul.f32 %v3619_v46, %v1601_v61  ;;  %v4592_v60 = vadd.f32 %v5842_v23, %v4139_v24  ;;  %v1618_v40 = vsub.f32 0.0, %v1394_v26  ;;  %v1114_v34 = vrot.slane %v1113_v43, 4 }
 0x16f   : > { %v1042_v62 = vsel %vm1010_vm0, %v994_v30, %v1026_v52  ;;  %v1108_v18 = vmul.f32 %v1093_v38, %v1072_v41  ;;  %v1523_v42 = vadd.f32 1.4214138, %v1507_v17  ;;  %3622 = vrcp.f32 %v1426_v56  ;;  %v5846_v41 = vld [vmem:[#allocation7_spill] sm:$0xff] }
 0x170   : > { %v1058_v28 = vadd.f32 1.0, %v1042_v62  ;;  %v1697_v12 = vsub.f32 1.0, %v1681_v59  ;;  %v4597_v5 = vmul.f32 0.70710677, %v4592_v60  ;;  %v1132_v24 = vrot.slane %v1131_v8, 4 }
 0x171   : > { %v4588_v54 = vadd.f32 %v4544_v20, %v1108_v18  ;;  %v1539_v50 = vmul.f32 %v3617_v4, %v1523_v42  ;;  %v5844_v20 = vld [vmem:[#allocation6_spill] sm:$0xff]  ;;  %v1634_v2 = vmul.f32 %v1618_v40, %v1394_v26  ;;  %vm1713_vm1 = vcmp.ge.f32.partialorder %v4472_v21, 0.0 }
 0x172   : > { %v1074_v16 = vmul.f32 %v1058_v28, %v658_v9  ;;  %v4601_v22 = vadd.f32 %v5844_v20, %v5843_v14  ;;  %v1396_v35 = vand.u32 2147483647, %v4597_v5  ;;  %v1729_v49 = vsub.f32 0.0, %v1697_v12  ;;  %v4628_v20 = vpop.f32.mrb[19].mxu1 }
 0x173   : > { %v1555_v58 = vadd.f32 -0.28449672, %v1539_v50  ;;  %v1345_v52 = vadd.f32 %v5846_v41, %v5843_v14  ;;  %v1115_v61 = vadd.f32 %v1114_v34, %v1113_v43  ;;  %v1133_v17 = vadd.f32 %v1132_v24, %v1131_v8  ;;  %v4623_v43 = vpop.f32.mrb[19].mxu0  ;;  %5849 = vst [vmem:[#allocation5_spill] sm:$0xff] %v4628_v20 }
 0x174   : > { %v1110_v57 = vmul.f32 %v1093_v38, %v1074_v16  ;;  %v1412_v30 = vmul.f32 0.3275911, %v1396_v35  ;;  %v4609_v7 = vmul.f32 0.70710677, %v4601_v22  ;;  %v1745_v26 = vsel %vm1713_vm1, %v1697_v12, %v1729_v49  ;;  %5847 = vst [vmem:[#allocation4_spill] sm:$0xff] %v4623_v43 }
 0x175   : > { %v1571_v3 = vmul.f32 %v3617_v4, %v1555_v58  ;;  %v1651_v18 = vmul.f32 1.442695, %v1634_v2  ;;  %v1620_v9 = vsub.f32 0.0, %v1396_v35  ;;  %v1361_v21 = vmul.f32 0.5, %v4458_v13 }
 0x176   : > { %v4594_v10 = vadd.f32 %v1139_v48, %v1110_v57  ;;  %v3621_v38 = vpop.eup %3620  ;;  %v1428_v56 = vadd.f32 1.0, %v1412_v30  ;;  %v4618_v59 = vmul.f32 0.5, %v4479_v51  ;;  %v4621_v16 = vmul.f32 0.70710677, %v1345_v52  ;;  %v5848_v57 = vld [vmem:[#allocation8_spill] sm:$0xff] }
 0x177   : > { %v1587_v37 = vadd.f32 0.2548296, %v1571_v3  ;;  %v1116_v8 = vrot.slane %v1115_v61, 2  ;;  %v1134_v23 = vrot.slane %v1133_v17, 2  ;;  %v1258_v12 = vadd.f32 %v5848_v57, %v5843_v14 }
 0x178   : > { %3624 = vrcp.f32 %v1428_v56  ;;  %v1761_v3 = vadd.f32 1.0, %v1745_v26  ;;  %v1399_v13 = vand.u32 2147483647, %v4621_v16  ;;  %vm1715_vm2 = vcmp.ge.f32.partialorder %v4506_v33, 0.0 }
 0x179   : > { %v1603_v1 = vmul.f32 %v3617_v4, %v1587_v37  ;;  %v4606_v48 = vpop.eup %3622  ;;  %v1397_v4 = vand.u32 2147483647, %v4609_v7  ;;  %3626 = vpow2.f32 %v1651_v18  ;;  %v1636_v37 = vmul.f32 %v1620_v9, %v1396_v35 }
 0x17a   : > { %v1474_v46 = vmul.f32 1.0614054, %v4606_v48  ;;  %v4632_v34 = vmul.f32 0.5, %v4564_v32  ;;  %v1415_v49 = vmul.f32 0.3275911, %v1399_v13  ;;  %v4642_v41 = vadd.f32 %v1134_v23, %v1133_v17 }
 0x17b   : > { %v1683_v15 = vmul.f32 %v3621_v38, %v1603_v1  ;;  %v1413_v28 = vmul.f32 0.3275911, %v1397_v4  ;;  %v1621_v38 = vsub.f32 0.0, %v1397_v4  ;;  %v4635_v1 = vadd.f32 %v1116_v8, %v1115_v61 }
 0x17c   : > { %v1490_v62 = vadd.f32 -1.4531521, %v1474_v46  ;;  %v4638_v30 = vmul.f32 0.70710677, %v1258_v12  ;;  %v1777_v35 = vmul.f32 %v1761_v3, %v1361_v21  ;;  %v1431_v26 = vadd.f32 1.0, %v1415_v49 }
 0x17d   : > { %v1699_v42 = vsub.f32 1.0, %v1683_v15  ;;  %v1429_v58 = vadd.f32 1.0, %v1413_v28  ;;  %v5850_v15 = vld [vmem:[#allocation9_spill] sm:$0xff]  ;;  %v1655_v61 = vmul.f32 1.442695, %v1636_v37  ;;  %v1637_v28 = vmul.f32 %v1621_v38, %v1397_v4 }
 0x17e   : > { %v1506_v50 = vmul.f32 %v4606_v48, %v1490_v62  ;;  %v1347_v46 = vadd.f32 %v5850_v15, %v5843_v14  ;;  %v4647_v62 = vmul.f32 0.5, %v4592_v60  ;;  %v1398_v18 = vand.u32 2147483647, %v4638_v30  ;;  %v5852_v60 = vld [vmem:[#allocation12_spill] sm:$0xff] }
 0x17f   : > { %v1731_v51 = vsub.f32 0.0, %v1699_v42  ;;  %3628 = vrcp.f32 %v1429_v58  ;;  %v4656_v17 = vmul.f32 0.5, %v4601_v22  ;;  %v4658_v21 = vmul.f32 0.5, %v1345_v52 }
 0x180   : > { %v1522_v40 = vadd.f32 1.4214138, %v1506_v50  ;;  %3630 = vrcp.f32 %v1431_v26  ;;  %v4651_v50 = vmul.f32 0.70710677, %v1347_v46  ;;  %v1414_v33 = vmul.f32 0.3275911, %v1398_v18 }
 0x181   : > { %v1747_v32 = vsel %vm1715_vm2, %v1699_v42, %v1731_v51  ;;  %v5851_v42 = vld [vmem:[#allocation11_spill] sm:$0xff]  ;;  %v4665_v23 = vmul.f32 %v4413_v39, %v1777_v35  ;;  %3632 = vpow2.f32 %v1655_v61  ;;  %v4669_v51 = vpop.f32.mrb[20].mxu0  ;;  %v1657_v38 = vmul.f32 1.442695, %v1637_v28  ;;  %v5854_v26 = vld [vmem:[#allocation13_spill] sm:$0xff] }
 0x182   : > { %v1538_v24 = vmul.f32 %v4606_v48, %v1522_v40  ;;  %v4653_v14 = vpop.eup %3624  ;;  %v4662_v8 = vadd.f32 %v5852_v60, %v5851_v42  ;;  %v1400_v57 = vand.u32 2147483647, %v4651_v50  ;;  %v1763_v3 = vadd.f32 1.0, %v1747_v32  ;;  %5853 = vst [vmem:[#allocation6_spill] sm:$0xff] %v4669_v51 }
 0x183   : > { %v1476_v4 = vmul.f32 1.0614054, %v4653_v14  ;;  %v1623_v40 = vsub.f32 0.0, %v1399_v13  ;;  %v1430_v22 = vadd.f32 1.0, %v1414_v33  ;;  %v3627_v52 = vpop.eup %3626  ;;  %v1622_v35 = vsub.f32 0.0, %v1398_v18  ;;  %v4684_v33 = vpop.f32.mrb[20].mxu1 }
 0x184   : > { %v1554_v56 = vadd.f32 -0.28449672, %v1538_v24  ;;  %v1416_v49 = vmul.f32 0.3275911, %v1400_v57  ;;  %v4679_v32 = vadd.f32 %v5854_v26, %v5851_v42  ;;  %vm1714_vm3 = vcmp.ge.f32.partialorder %v4576_v55, 0.0  ;;  %5855 = vst [vmem:[#allocation7_spill] sm:$0xff] %v4684_v33 }
 0x185   : > { %v1492_v24 = vadd.f32 -1.4531521, %v1476_v4  ;;  %3634 = vrcp.f32 %v1430_v22  ;;  %v1779_v60 = vmul.f32 %v1763_v3, %v4618_v59  ;;  %v4687_v4 = vmul.f32 0.5, %v1258_v12 }
 0x186   : > { %v1570_v9 = vmul.f32 %v4606_v48, %v1554_v56  ;;  %v4675_v56 = vmul.f32 0.70710677, %v4662_v8  ;;  %v1432_v28 = vadd.f32 1.0, %v1416_v49  ;;  %v4699_v3 = vmul.f32 0.70710677, %v4679_v32 }
 0x187   : > { %vm1717_vm4 = vcmp.ge.f32.partialorder %v4609_v7, 0.0  ;;  %vm1716_vm5 = vcmp.ge.f32.partialorder %v4597_v5, 0.0  ;;  %vm1719_vm6 = vcmp.ge.f32.partialorder %v4621_v16, 0.0  ;;  %vm1718_vm7 = vcmp.ge.f32.partialorder %v4638_v30, 0.0 }
 0x188   : > { %v1586_v58 = vadd.f32 0.2548296, %v1570_v9  ;;  %v1508_v9 = vmul.f32 %v4653_v14, %v1492_v24  ;;  %v1401_v22 = vand.u32 2147483647, %v4675_v56  ;;  %3636 = vrcp.f32 %v1432_v28 }
 0x189   : > { %v4672_v15 = vpop.eup %3628  ;;  %3638 = vpow2.f32 %v1657_v38  ;;  %v1624_v24 = vsub.f32 0.0, %v1400_v57  ;;  %v1403_v29 = vand.u32 2147483647, %v4699_v3  ;;  %vm1720_vm8 = vcmp.ge.f32.partialorder %v4651_v50, 0.0 }
 0x18a   : > { %v1602_v37 = vmul.f32 %v4606_v48, %v1586_v58  ;;  %v1477_v48 = vmul.f32 1.0614054, %v4672_v15  ;;  %v1639_v58 = vmul.f32 %v1623_v40, %v1399_v13  ;;  %v1524_v26 = vadd.f32 1.4214138, %v1508_v9  ;;  %v4694_v45 = vpop.eup %3630 }
 0x18b   : > { %v1417_v49 = vmul.f32 0.3275911, %v1401_v22  ;;  %v1638_v13 = vmul.f32 %v1622_v35, %v1398_v18  ;;  %v1640_v33 = vmul.f32 %v1624_v24, %v1400_v57  ;;  %v1419_v51 = vmul.f32 0.3275911, %v1403_v29  ;;  %v5858_v57 = vld [vmem:[#allocation15_spill] sm:$0xff] }
 0x18c   : > { %v1682_v61 = vmul.f32 %v3627_v52, %v1602_v37  ;;  %v1493_v19 = vadd.f32 -1.4531521, %v1477_v48  ;;  %v4690_v52 = vpop.f32.mrb[21].mxu0  ;;  %v4692_v37 = vmul.f32 0.5, %v1347_v46  ;;  %v1540_v59 = vmul.f32 %v4653_v14, %v1524_v26 }
 0x18d   : > { %5856 = vst [vmem:[#allocation8_spill] sm:$0xff] %v4690_v52  ;;  %v1661_v9 = vmul.f32 1.442695, %v1639_v58  ;;  %v1433_v48 = vadd.f32 1.0, %v1417_v49  ;;  %v4703_v46 = vmul.f32 %v4413_v39, %v1779_v60  ;;  %v3633_v52 = vpop.eup %3632  ;;  %v1659_v0 = vmul.f32 1.442695, %v1638_v13 }
 0x18e   : > { %v1698_v2 = vsub.f32 1.0, %v1682_v61  ;;  %v1509_v12 = vmul.f32 %v4672_v15, %v1493_v19  ;;  %v1479_v61 = vmul.f32 1.0614054, %v4694_v45  ;;  %v1556_v38 = vadd.f32 -0.28449672, %v1540_v59  ;;  %v4708_v58 = vpop.f32.mrb[21].mxu1 }
 0x18f   : > { %3640 = vrcp.f32 %v1433_v48  ;;  %v1625_v19 = vsub.f32 0.0, %v1401_v22  ;;  %5857 = vst [vmem:[#allocation9_spill] sm:$0xff] %v4708_v58  ;;  %v4710_v49 = vpop.eup %3634  ;;  %v4717_v24 = vadd.f32 %v5858_v57, %v5851_v42  ;;  %v1435_v20 = vadd.f32 1.0, %v1419_v51 }
 0x190   : > { %v1730_v40 = vsub.f32 0.0, %v1698_v2  ;;  %v1525_v28 = vadd.f32 1.4214138, %v1509_v12  ;;  %v1495_v26 = vadd.f32 -1.4531521, %v1479_v61  ;;  %v1572_v18 = vmul.f32 %v4653_v14, %v1556_v38 }
 0x191   : > { %v1627_v12 = vsub.f32 0.0, %v1403_v29  ;;  %3642 = vpow2.f32 %v1661_v9  ;;  %v1478_v13 = vmul.f32 1.0614054, %v4710_v49  ;;  %v1641_v58 = vmul.f32 %v1625_v19, %v1401_v22 }
 0x192   : > { %v1541_v35 = vmul.f32 %v4672_v15, %v1525_v28  ;;  %v1746_v60 = vsel %vm1714_vm3, %v1698_v2, %v1730_v40  ;;  %v1511_v59 = vmul.f32 %v4694_v45, %v1495_v26  ;;  %v1588_v61 = vadd.f32 0.2548296, %v1572_v18  ;;  %v4720_v43 = vpop.eup %3636 }
 0x193   : > { %v1663_v28 = vmul.f32 1.442695, %v1640_v33  ;;  %v1762_v55 = vadd.f32 1.0, %v1746_v60  ;;  %v1494_v26 = vadd.f32 -1.4531521, %v1478_v13  ;;  %v3639_v53 = vpop.eup %3638  ;;  %3644 = vrcp.f32 %v1435_v20 }
 0x194   : > { %v1557_v48 = vadd.f32 -0.28449672, %v1541_v35  ;;  %v1527_v38 = vadd.f32 1.4214138, %v1511_v59  ;;  %v1604_v2 = vmul.f32 %v4653_v14, %v1588_v61  ;;  %v1480_v18 = vmul.f32 1.0614054, %v4720_v43 }
 0x195   : > { %v4727_v9 = vmul.f32 0.70710677, %v4717_v24  ;;  %v1510_v51 = vmul.f32 %v4710_v49, %v1494_v26  ;;  %v1643_v19 = vmul.f32 %v1627_v12, %v1403_v29  ;;  %3646 = vpow2.f32 %v1659_v0 }
 0x196   : > { %v1573_v40 = vmul.f32 %v4672_v15, %v1557_v48  ;;  %v1543_v57 = vmul.f32 %v4694_v45, %v1527_v38  ;;  %v1684_v33 = vmul.f32 %v3633_v52, %v1604_v2  ;;  %v1496_v35 = vadd.f32 -1.4531521, %v1480_v18  ;;  %v4734_v48 = vpop.f32.mrb[22].mxu0 }
 0x197   : > { %v1402_v60 = vand.u32 2147483647, %v4727_v9  ;;  %v1526_v20 = vadd.f32 1.4214138, %v1510_v51  ;;  %3648 = vpow2.f32 %v1663_v28  ;;  %v1665_v61 = vmul.f32 1.442695, %v1641_v58 }
 0x198   : > { %v1589_v22 = vadd.f32 0.2548296, %v1573_v40  ;;  %v1559_v14 = vadd.f32 -0.28449672, %v1543_v57  ;;  %v1700_v13 = vsub.f32 1.0, %v1684_v33  ;;  %v1512_v12 = vmul.f32 %v4720_v43, %v1496_v35 }
 0x199   : > { %v4736_v52 = vpop.eup %3640  ;;  %v1418_v0 = vmul.f32 0.3275911, %v1402_v60  ;;  %v1542_v2 = vmul.f32 %v4710_v49, %v1526_v20  ;;  %v1669_v26 = vmul.f32 1.442695, %v1643_v19  ;;  %3650 = vpow2.f32 %v1665_v61 }
 0x19a   : > { %v1605_v59 = vmul.f32 %v4672_v15, %v1589_v22  ;;  %v1575_v29 = vmul.f32 %v4694_v45, %v1559_v14  ;;  %v1481_v40 = vmul.f32 1.0614054, %v4736_v52  ;;  %v4743_v15 = vmul.f32 %v1762_v55, %v4632_v34 }
 0x19b   : > { %v1528_v28 = vadd.f32 1.4214138, %v1512_v12  ;;  %v1434_v57 = vadd.f32 1.0, %v1418_v0  ;;  %v3643_v18 = vpop.eup %3642  ;;  %v1558_v33 = vadd.f32 -0.28449672, %v1542_v2  ;;  %v1732_v14 = vsub.f32 0.0, %v1700_v13 }
 0x19c   : > { %v1685_v38 = vmul.f32 %v3639_v53, %v1605_v59  ;;  %v1591_v58 = vadd.f32 0.2548296, %v1575_v29  ;;  %v1497_v51 = vadd.f32 -1.4531521, %v1481_v40  ;;  %v1626_v59 = vsub.f32 0.0, %v1402_v60  ;;  %v5859_v0 = vld [vmem:[#allocation20_spill] sm:$0xff] }
 0x19d   : > { %v1544_v35 = vmul.f32 %v4720_v43, %v1528_v28  ;;  %3652 = vrcp.f32 %v1434_v57  ;;  %v1574_v34 = vmul.f32 %v4710_v49, %v1558_v33  ;;  %v4750_v20 = vpop.eup %3644  ;;  %v4754_v61 = vadd.f32 %v5859_v0, %v5851_v42 }
 0x19e   : > { %v1701_v22 = vsub.f32 1.0, %v1685_v38  ;;  %v1607_v53 = vmul.f32 %v4694_v45, %v1591_v58  ;;  %v1513_v55 = vmul.f32 %v4736_v52, %v1497_v51  ;;  %3654 = vpow2.f32 %v1669_v26  ;;  %v4756_v38 = vpop.f32.mrb[22].mxu1 }
 0x19f   : > { %v1560_v12 = vadd.f32 -0.28449672, %v1544_v35  ;;  %v1590_v2 = vadd.f32 0.2548296, %v1574_v34  ;;  %v1483_v58 = vmul.f32 1.0614054, %v4750_v20  ;;  %v3647_v28 = vpop.eup %3646  ;;  %v1748_v57 = vsel %vm1716_vm5, %v1700_v13, %v1732_v14  ;;  %v4771_v13 = vpop.permute.xlu1 %1800 }
 0x1a0   : > { %v1733_v19 = vsub.f32 0.0, %v1701_v22  ;;  %v1687_v29 = vmul.f32 %v3643_v18, %v1607_v53  ;;  %v1529_v40 = vadd.f32 1.4214138, %v1513_v55  ;;  %v1642_v53 = vmul.f32 %v1626_v59, %v1402_v60 }
 0x1a1   : > { %v1576_v42 = vmul.f32 %v4720_v43, %v1560_v12  ;;  %v3649_v26 = vpop.eup %3648  ;;  %v1606_v51 = vmul.f32 %v4710_v49, %v1590_v2  ;;  %v4769_v5 = vmul.f32 0.70710677, %v4754_v61  ;;  %v1764_v14 = vadd.f32 1.0, %v1748_v57 }
 0x1a2   : > { %v1749_v45 = vsel %vm1717_vm4, %v1701_v22, %v1733_v19  ;;  %v1703_v33 = vsub.f32 1.0, %v1687_v29  ;;  %v1545_v7 = vmul.f32 %v4736_v52, %v1529_v40  ;;  %v1499_v22 = vadd.f32 -1.4531521, %v1483_v58 }
 0x1a3   : > { %v1765_v18 = vadd.f32 1.0, %v1749_v45  ;;  %v1592_v34 = vadd.f32 0.2548296, %v1576_v42  ;;  %v1686_v55 = vmul.f32 %v3647_v28, %v1606_v51  ;;  %v4780_v59 = vand.u32 2147483647, %v4769_v5  ;;  %v3651_v0 = vpop.eup %3650 }
 0x1a4   : > { %v1735_v19 = vsub.f32 0.0, %v1703_v33  ;;  %v1561_v29 = vadd.f32 -0.28449672, %v1545_v7  ;;  %v1515_v49 = vmul.f32 %v4750_v20, %v1499_v22  ;;  %v1667_v42 = vmul.f32 1.442695, %v1642_v53 }
 0x1a5   : > { %v1781_v35 = vmul.f32 %v1765_v18, %v4656_v17  ;;  %v1608_v17 = vmul.f32 %v4720_v43, %v1592_v34  ;;  %v1702_v2 = vsub.f32 1.0, %v1686_v55  ;;  %v1420_v16 = vmul.f32 0.3275911, %v4780_v59  ;;  %v5860_v55 = vld [vmem:[#allocation17_spill] sm:$0xff] }
 0x1a6   : > { %v1751_v60 = vsel %vm1719_vm6, %v1703_v33, %v1735_v19  ;;  %v1577_v40 = vmul.f32 %v4736_v52, %v1561_v29  ;;  %v1531_v58 = vadd.f32 1.4214138, %v1515_v49  ;;  %v4794_v29 = vadd.f32 %v4375_v6, %v5860_v55 }
 0x1a7   : > { %v1817_v12 = vmul.f32 %v4771_v13, %v1781_v35  ;;  %v1767_v45 = vadd.f32 1.0, %v1751_v60  ;;  %v4783_v28 = vpop.eup %3652  ;;  %v1688_v18 = vmul.f32 %v3649_v26, %v1608_v17  ;;  %v1734_v33 = vsub.f32 0.0, %v1702_v2 }
 0x1a8   : > { %v1593_v51 = vadd.f32 0.2548296, %v1577_v40  ;;  %v1547_v7 = vmul.f32 %v4750_v20, %v1531_v58  ;;  %v3655_v22 = vpop.eup %3654  ;;  %v1482_v19 = vmul.f32 1.0614054, %v4783_v28  ;;  %v1436_v34 = vadd.f32 1.0, %v1420_v16 }
 0x1a9   : > { %v4786_v57 = vadd.f32 %v1817_v12, %v4665_v23  ;;  %v1783_v43 = vmul.f32 %v1767_v45, %v4658_v21  ;;  %v1704_v35 = vsub.f32 1.0, %v1688_v18  ;;  %v1750_v26 = vsel %vm1718_vm7, %v1702_v2, %v1734_v33 }
 0x1aa   : > { %v1609_v21 = vmul.f32 %v4736_v52, %v1593_v51  ;;  %v1563_v53 = vadd.f32 -0.28449672, %v1547_v7  ;;  %v1766_v49 = vadd.f32 1.0, %v1750_v26  ;;  %v1498_v60 = vadd.f32 -1.4531521, %v1482_v19 }
 0x1ab   : > { %v1819_v23 = vmul.f32 %v4771_v13, %v1783_v43  ;;  %v1736_v12 = vsub.f32 0.0, %v1704_v35  ;;  %3656 = vrcp.f32 %v1436_v34  ;;  %vm1721_vm9 = vcmp.ge.f32.partialorder %v4675_v56, 0.0 }
 0x1ac   : > { %v1689_v45 = vmul.f32 %v3651_v0, %v1609_v21  ;;  %v1579_v6 = vmul.f32 %v4750_v20, %v1563_v53  ;;  %v1814_v40 = vmul.f32 %v4413_v39, %v4743_v15  ;;  %v1782_v30 = vmul.f32 %v1766_v49, %v4687_v4 }
 0x1ad   : > { %v4801_v17 = vadd.f32 %v1819_v23, %v4703_v46  ;;  %v1752_v52 = vsel %vm1720_vm8, %v1704_v35, %v1736_v12  ;;  %v1514_v2 = vmul.f32 %v4783_v28, %v1498_v60  ;;  %v1780_v58 = vmul.f32 %v1764_v14, %v4647_v62  ;;  %v4822_v62 = vpop.f32.mrb[23].mxu0 }
 0x1ae   : > { %v1768_v18 = vadd.f32 1.0, %v1752_v52  ;;  %v1705_v46 = vsub.f32 1.0, %v1689_v45  ;;  %v1595_v16 = vadd.f32 0.2548296, %v1579_v6  ;;  %v1818_v0 = vmul.f32 %v4771_v13, %v1782_v30  ;;  %v4846_v6 = vpop.permute.xlu1 %1805 }
 0x1af   : > { %v1530_v43 = vadd.f32 1.4214138, %v1514_v2  ;;  %3658 = vpow2.f32 %v1667_v42  ;;  %v4814_v33 = vmul.f32 0.70710677, %v4794_v29  ;;  %v4820_v51 = vadd.f32 %v4381_v44, %v5860_v55 }
 0x1b0   : > { %v1784_v15 = vmul.f32 %v1768_v18, %v4692_v37  ;;  %v1737_v4 = vsub.f32 0.0, %v1705_v46  ;;  %v1611_v50 = vmul.f32 %v4750_v20, %v1595_v16  ;;  %v4824_v14 = vadd.f32 %v1818_v0, %v1814_v40 }
 0x1b1   : > { %v1546_v7 = vmul.f32 %v4783_v28, %v1530_v43  ;;  %v1628_v42 = vsub.f32 0.0, %v4780_v59  ;;  %v1405_v35 = vand.u32 2147483647, %v4814_v33  ;;  %v1816_v19 = vmul.f32 %v4413_v39, %v1780_v58 }
 0x1b2   : > { %v1820_v37 = vmul.f32 %v4771_v13, %v1784_v15  ;;  %v1753_v20 = vsel %vm1721_vm9, %v1705_v46, %v1737_v4  ;;  %v1691_v34 = vmul.f32 %v3655_v22, %v1611_v50  ;;  %v1369_v44 = vmul.f32 0.5, %v4662_v8 }
 0x1b3   : > { %v1769_v23 = vadd.f32 1.0, %v1753_v20  ;;  %v1562_v26 = vadd.f32 -0.28449672, %v1546_v7  ;;  %v1421_v21 = vmul.f32 0.3275911, %v1405_v35  ;;  %v5861_v53 = vrot.slane %v4588_v54, 4 }
 0x1b4   : > { %v4837_v12 = vadd.f32 %v1820_v37, %v1816_v19  ;;  %v1707_v60 = vsub.f32 1.0, %v1691_v34  ;;  %v4840_v39 = vmul.f32 0.70710677, %v4820_v51  ;;  %v1644_v8 = vmul.f32 %v1628_v42, %v4780_v59  ;;  %v4858_v59 = vpop.f32.mrb[23].mxu1 }
 0x1b5   : > { %v1124_v49 = vadd.f32 %v5861_v53, %v4588_v54  ;;  %v4842_v13 = vpop.eup %3656  ;;  %v1785_v56 = vmul.f32 %v1769_v23, %v1369_v44  ;;  %v1578_v22 = vmul.f32 %v4783_v28, %v1562_v26  ;;  %v1437_v45 = vadd.f32 1.0, %v1421_v21 }
 0x1b6   : > { %vm1723_vm10 = vcmp.ge.f32.partialorder %v4699_v3, 0.0  ;;  %v1739_v40 = vsub.f32 0.0, %v1707_v60  ;;  %v1484_v54 = vmul.f32 1.0614054, %v4842_v13  ;;  %v4851_v30 = vand.u32 2147483647, %v4840_v39 }
 0x1b7   : > { %v1821_v52 = vmul.f32 %v4846_v6, %v1785_v56  ;;  %v1594_v2 = vadd.f32 0.2548296, %v1578_v22  ;;  %3660 = vrcp.f32 %v1437_v45  ;;  %v4856_v58 = vadd.f32 %v4400_v25, %v5860_v55 }
 0x1b8   : > { %v1371_v18 = vmul.f32 0.5, %v4679_v32  ;;  %v1755_v46 = vsel %vm1723_vm10, %v1707_v60, %v1739_v40  ;;  %v1500_v3 = vadd.f32 -1.4531521, %v1484_v54  ;;  %v1423_v16 = vmul.f32 0.3275911, %v4851_v30 }
 0x1b9   : > { %v3659_v0 = vpop.eup %3658  ;;  %v4863_v43 = vadd.f32 %v4786_v57, %v1821_v52  ;;  %v1771_v15 = vadd.f32 1.0, %v1755_v46  ;;  %v1610_v4 = vmul.f32 %v4783_v28, %v1594_v2  ;;  %v1671_v50 = vmul.f32 1.442695, %v1644_v8 }
 0x1ba   : > { %v1141_v7 = vrot.slane %v4594_v10, 4  ;;  %v1516_v25 = vmul.f32 %v4842_v13, %v1500_v3  ;;  %v1629_v42 = vsub.f32 0.0, %v1405_v35  ;;  %v1439_v19 = vadd.f32 1.0, %v1423_v16  ;;  %v4897_v3 = vpop.f32.mrb[24].mxu0 }
 0x1bb   : > { %v1787_v37 = vmul.f32 %v1771_v15, %v1371_v18  ;;  %v1690_v32 = vmul.f32 %v3659_v0, %v1610_v4  ;;  %v4869_v20 = vmul.f32 0.70710677, %v4856_v58  ;;  %v4873_v34 = vadd.f32 %v4426_v47, %v5860_v55 }
 0x1bc   : > { %v1118_v57 = vrot.slane %v4635_v1, 1  ;;  %v1125_v44 = vrot.slane %v1124_v49, 2  ;;  %v1532_v28 = vadd.f32 1.4214138, %v1516_v25  ;;  %3662 = vrcp.f32 %v1439_v19 }
 0x1bd   : > { %v1823_v23 = vmul.f32 %v4846_v6, %v1787_v37  ;;  %v1706_v26 = vsub.f32 1.0, %v1690_v32  ;;  %3664 = vpow2.f32 %v1671_v50  ;;  %v1406_v21 = vand.u32 2147483647, %v4869_v20 }
 0x1be   : > { %v1136_v53 = vrot.slane %v4642_v41, 1  ;;  %v1142_v60 = vadd.f32 %v1141_v7, %v4594_v10  ;;  %v1548_v56 = vmul.f32 %v4842_v13, %v1532_v28  ;;  %v4882_v47 = vmul.f32 0.70710677, %v4873_v34 }
 0x1bf   : > { %v4885_v55 = vadd.f32 %v4801_v17, %v1823_v23  ;;  %v1738_v22 = vsub.f32 0.0, %v1706_v26  ;;  %v1645_v8 = vmul.f32 %v1629_v42, %v1405_v35  ;;  %v1422_v45 = vmul.f32 0.3275911, %v1406_v21  ;;  %v4899_v35 = vpop.f32.mrb[24].mxu1 }
 0x1c0   : > { %v4887_v40 = vadd.f32 %v1125_v44, %v1124_v49  ;;  %vm1722_vm11 = vcmp.ge.f32.partialorder %v4727_v9, 0.0  ;;  %v1564_v54 = vadd.f32 -0.28449672, %v1548_v56  ;;  %v4891_v52 = vand.u32 2147483647, %v4882_v47 }
 0x1c1   : > { %v4893_v10 = vpop.eup %3660  ;;  %v1370_v2 = vmul.f32 0.5, %v4717_v24  ;;  %v1754_v18 = vsel %vm1722_vm11, %v1706_v26, %v1738_v22  ;;  %v1631_v46 = vsub.f32 0.0, %v4851_v30  ;;  %v1438_v17 = vadd.f32 1.0, %v1422_v45 }
 0x1c2   : > { %v1770_v49 = vadd.f32 1.0, %v1754_v18  ;;  %v1580_v16 = vmul.f32 %v4842_v13, %v1564_v54  ;;  %v1485_v9 = vmul.f32 1.0614054, %v4893_v10  ;;  %v1424_v0 = vmul.f32 0.3275911, %v4891_v52  ;;  %v5862_v54 = vld [vmem:[#allocation10_spill] sm:$0xff] }
 0x1c3   : > { %v4905_v15 = vadd.f32 %v1118_v57, %v4635_v1  ;;  %v1143_v4 = vrot.slane %v1142_v60, 2  ;;  %v1673_v24 = vmul.f32 1.442695, %v1645_v8  ;;  %3666 = vrcp.f32 %v1438_v17 }
 0x1c4   : > { %v1786_v50 = vmul.f32 %v1770_v49, %v1370_v2  ;;  %v1596_v7 = vadd.f32 0.2548296, %v1580_v16  ;;  %v1501_v25 = vadd.f32 -1.4531521, %v1485_v9  ;;  %v1440_v42 = vadd.f32 1.0, %v1424_v0 }
 0x1c5   : > { %v1127_v19 = vrot.slane %v4887_v40, 1  ;;  %v4909_v37 = vadd.f32 %v1136_v53, %v4642_v41  ;;  %v1647_v32 = vmul.f32 %v1631_v46, %v4851_v30  ;;  %v1630_v44 = vsub.f32 0.0, %v1406_v21  ;;  %v4921_v53 = vpop.f32.mrb[25].mxu0 }
 0x1c6   : > { %v4912_v28 = vpop.eup %3662  ;;  %v1822_v1 = vmul.f32 %v4846_v6, %v1786_v50  ;;  %v1612_v57 = vmul.f32 %v4842_v13, %v1596_v7  ;;  %v1517_v23 = vmul.f32 %v4893_v10, %v1501_v25  ;;  %3668 = vrcp.f32 %v1440_v42 }
 0x1c7   : > { %v3665_v26 = vpop.eup %3664  ;;  %v4917_v56 = vadd.f32 %v1143_v4, %v1142_v60  ;;  %v1372_v22 = vmul.f32 0.5, %v4754_v61  ;;  %3670 = vpow2.f32 %v1673_v24  ;;  %v1487_v41 = vmul.f32 1.0614054, %v4912_v28 }
 0x1c8   : > { %v4924_v30 = vadd.f32 %v4824_v14, %v1822_v1  ;;  %v1692_v8 = vmul.f32 %v3665_v26, %v1612_v57  ;;  %v1533_v45 = vadd.f32 1.4214138, %v1517_v23  ;;  %v4928_v13 = vadd.f32 %v4485_v11, %v5862_v54 }
 0x1c9   : > { %v1503_v2 = vadd.f32 -1.4531521, %v1487_v41  ;;  %v1677_v18 = vmul.f32 1.442695, %v1647_v32  ;;  %v1646_v60 = vmul.f32 %v1630_v44, %v1406_v21  ;;  %v4932_v61 = vadd.f32 %v4490_v27, %v5862_v54  ;;  %v4960_v44 = vpop.f32.mrb[25].mxu1 }
 0x1ca   : > { %v1708_v46 = vsub.f32 1.0, %v1692_v8  ;;  %vm1724_vm12 = vcmp.ge.f32.partialorder %v4769_v5, 0.0  ;;  %v1549_v17 = vmul.f32 %v4893_v10, %v1533_v45  ;;  %v4937_v14 = vmul.f32 0.70710677, %v4928_v13 }
 0x1cb   : > { %v4940_v49 = vmul.f32 0.5, %v4794_v29  ;;  %v4943_v11 = vmul.f32 0.5, %v4820_v51  ;;  %v1519_v21 = vmul.f32 %v4912_v28, %v1503_v2  ;;  %v4947_v16 = vmul.f32 0.70710677, %v4932_v61 }
 0x1cc   : > { %v1740_v27 = vsub.f32 0.0, %v1708_v46  ;;  %v1565_v9 = vadd.f32 -0.28449672, %v1549_v17  ;;  %v1632_v0 = vsub.f32 0.0, %v4891_v52  ;;  %v2111_v4 = vand.u32 2147483647, %v4937_v14 }
 0x1cd   : > { %v4951_v24 = vpop.eup %3666  ;;  %v1535_v50 = vadd.f32 1.4214138, %v1519_v21  ;;  %3672 = vpow2.f32 %v1677_v18  ;;  %v1675_v29 = vmul.f32 1.442695, %v1646_v60  ;;  %v4954_v7 = vand.u32 2147483647, %v4947_v16 }
 0x1ce   : > { %v1756_v51 = vsel %vm1724_vm12, %v1708_v46, %v1740_v27  ;;  %v1581_v25 = vmul.f32 %v4893_v10, %v1565_v9  ;;  %v1486_v42 = vmul.f32 1.0614054, %v4951_v24  ;;  %v2127_v32 = vmul.f32 0.3275911, %v2111_v4 }
 0x1cf   : > { %v1772_v1 = vadd.f32 1.0, %v1756_v51  ;;  %v1551_v57 = vmul.f32 %v4912_v28, %v1535_v50  ;;  %v2335_v23 = vsub.f32 0.0, %v2111_v4  ;;  %v2129_v26 = vmul.f32 0.3275911, %v4954_v7 }
 0x1d0   : > { %v4964_v41 = vpop.eup %3668  ;;  %v1597_v8 = vadd.f32 0.2548296, %v1581_v25  ;;  %v1502_v45 = vadd.f32 -1.4531521, %v1486_v42  ;;  %v1648_v5 = vmul.f32 %v1632_v0, %v4891_v52  ;;  %v2143_v2 = vadd.f32 1.0, %v2127_v32 }
 0x1d1   : > { %v3671_v18 = vpop.eup %3670  ;;  %v1788_v60 = vmul.f32 %v1772_v1, %v1372_v22  ;;  %vm1725_vm13 = vcmp.ge.f32.partialorder %v4814_v33, 0.0  ;;  %v1567_v46 = vadd.f32 -0.28449672, %v1551_v57  ;;  %v1488_v17 = vmul.f32 1.0614054, %v4964_v41  ;;  %v4981_v57 = vpop.f32.mrb[26].mxu0 }
 0x1d2   : > { %v4971_v21 = vadd.f32 %v4498_v36, %v5862_v54  ;;  %v1613_v27 = vmul.f32 %v4893_v10, %v1597_v8  ;;  %v1518_v9 = vmul.f32 %v4951_v24, %v1502_v45  ;;  %3674 = vrcp.f32 %v2143_v2 }
 0x1d3   : > { %v2145_v50 = vadd.f32 1.0, %v2129_v26  ;;  %v1824_v52 = vmul.f32 %v4846_v6, %v1788_v60  ;;  %v1583_v0 = vmul.f32 %v4912_v28, %v1567_v46  ;;  %v1504_v22 = vadd.f32 -1.4531521, %v1488_v17 }
 0x1d4   : > { %v2351_v51 = vmul.f32 %v2335_v23, %v2111_v4  ;;  %v1693_v25 = vmul.f32 %v3671_v18, %v1613_v27  ;;  %v1534_v42 = vadd.f32 1.4214138, %v1518_v9  ;;  %v1679_v32 = vmul.f32 1.442695, %v1648_v5  ;;  %v4993_v5 = vpop.permute.xlu1 %2518 }
 0x1d5   : > { %3676 = vrcp.f32 %v2145_v50  ;;  %v4978_v1 = vadd.f32 %v4837_v12, %v1824_v52  ;;  %v1599_v36 = vadd.f32 0.2548296, %v1583_v0  ;;  %v1520_v10 = vmul.f32 %v4964_v41, %v1504_v22 }
 0x1d6   : > { %3678 = vpow2.f32 %v1675_v29  ;;  %v1709_v26 = vsub.f32 1.0, %v1693_v25  ;;  %vm1727_vm14 = vcmp.ge.f32.partialorder %v4840_v39, 0.0  ;;  %v1550_v6 = vmul.f32 %v4951_v24, %v1534_v42 }
 0x1d7   : > { %v4986_v4 = vmul.f32 0.70710677, %v4971_v21  ;;  %v3673_v23 = vpop.eup %3672  ;;  %v1615_v8 = vmul.f32 %v4912_v28, %v1599_v36  ;;  %v1536_v45 = vadd.f32 1.4214138, %v1520_v10  ;;  %v2367_v12 = vmul.f32 1.442695, %v2351_v51 }
 0x1d8   : > { %v4991_v29 = vadd.f32 %v4527_v31, %v5862_v54  ;;  %v1741_v2 = vsub.f32 0.0, %v1709_v26  ;;  %v1566_v18 = vadd.f32 -0.28449672, %v1550_v6  ;;  %3680 = vpow2.f32 %v1679_v32  ;;  %v5018_v6 = vpop.permute.xlu1 %1810 }
 0x1d9   : > { %v2112_v60 = vand.u32 2147483647, %v4986_v4  ;;  %v1695_v46 = vmul.f32 %v3673_v23, %v1615_v8  ;;  %v4997_v17 = vmul.f32 0.5, %v4856_v58  ;;  %v5000_v27 = vmul.f32 0.5, %v4873_v34 }
 0x1da   : > { %v1552_v28 = vmul.f32 %v4964_v41, %v1536_v45  ;;  %v1757_v31 = vsel %vm1725_vm13, %v1709_v26, %v1741_v2  ;;  %v1582_v54 = vmul.f32 %v4951_v24, %v1566_v18  ;;  %v2337_v9 = vsub.f32 0.0, %v4954_v7 }
 0x1db   : > { %v2128_v50 = vmul.f32 0.3275911, %v2112_v60  ;;  %v1773_v52 = vadd.f32 1.0, %v1757_v31  ;;  %v1711_v0 = vsub.f32 1.0, %v1695_v46  ;;  %v5008_v51 = vmul.f32 0.70710677, %v4991_v29 }
 0x1dc   : > { %v1568_v22 = vadd.f32 -0.28449672, %v1552_v28  ;;  %v5010_v58 = vpop.eup %3674  ;;  %v1598_v34 = vadd.f32 0.2548296, %v1582_v54  ;;  %3682 = vpow2.f32 %v2367_v12  ;;  %v2336_v42 = vsub.f32 0.0, %v2112_v60  ;;  %v5028_v28 = vpop.f32.mrb[26].mxu1 }
 0x1dd   : > { %v2144_v25 = vadd.f32 1.0, %v2128_v50  ;;  %v1789_v33 = vmul.f32 %v1773_v52, %v4940_v49  ;;  %v1743_v32 = vsub.f32 0.0, %v1711_v0  ;;  %vm1726_vm15 = vcmp.ge.f32.partialorder %v4869_v20, 0.0 }
 0x1de   : > { %v1584_v36 = vmul.f32 %v4964_v41, %v1568_v22  ;;  %v2191_v10 = vmul.f32 1.0614054, %v5010_v58  ;;  %v1614_v23 = vmul.f32 %v4951_v24, %v1598_v34  ;;  %v2353_v8 = vmul.f32 %v2337_v9, %v4954_v7 }
 0x1df   : > { %v5016_v26 = vpop.eup %3676  ;;  %3684 = vrcp.f32 %v2144_v25  ;;  %v5023_v45 = vand.u32 2147483647, %v5008_v51  ;;  %v1825_v12 = vmul.f32 %v5018_v6, %v1789_v33  ;;  %v1759_v2 = vsel %vm1727_vm14, %v1711_v0, %v1743_v32 }
 0x1e0   : > { %v3679_v49 = vpop.eup %3678  ;;  %v1600_v18 = vadd.f32 0.2548296, %v1584_v36  ;;  %v2207_v46 = vadd.f32 -1.4531521, %v2191_v10  ;;  %v1775_v31 = vadd.f32 1.0, %v1759_v2  ;;  %vm1728_vm0 = vcmp.ge.f32.partialorder %v4882_v47, 0.0 }
 0x1e1   : > { %v1694_v54 = vmul.f32 %v3679_v49, %v1614_v23  ;;  %v2193_v24 = vmul.f32 1.0614054, %v5016_v26  ;;  %v2352_v7 = vmul.f32 %v2336_v42, %v2112_v60  ;;  %v1831_v9 = vadd.f32 %v4863_v43, %v1825_v12 }
 0x1e2   : > { %v1616_v50 = vmul.f32 %v4964_v41, %v1600_v18  ;;  %v2223_v52 = vmul.f32 %v5010_v58, %v2207_v46  ;;  %v2130_v39 = vmul.f32 0.3275911, %v5023_v45  ;;  %v3681_v0 = vpop.eup %3680  ;;  %v1791_v22 = vmul.f32 %v1775_v31, %v4943_v11 }
 0x1e3   : > { %v1710_v34 = vsub.f32 1.0, %v1694_v54  ;;  %v2209_v25 = vadd.f32 -1.4531521, %v2193_v24  ;;  %v2371_v33 = vmul.f32 1.442695, %v2353_v8  ;;  %v1832_v32 = vrot.slane %v1831_v9, 4 }
 0x1e4   : > { %v1696_v36 = vmul.f32 %v3681_v0, %v1616_v50  ;;  %v2239_v10 = vadd.f32 1.4214138, %v2223_v52  ;;  %v2146_v23 = vadd.f32 1.0, %v2130_v39  ;;  %v1827_v60 = vmul.f32 %v5018_v6, %v1791_v22  ;;  %v5863_v39 = vld [vmem:[#allocation14_spill] sm:$0xff] }
 0x1e5   : > { %v1742_v42 = vsub.f32 0.0, %v1710_v34  ;;  %v2225_v43 = vmul.f32 %v5016_v26, %v2209_v25  ;;  %v2369_v41 = vmul.f32 1.442695, %v2352_v7  ;;  %v1833_v49 = vadd.f32 %v1832_v32, %v1831_v9 }
 0x1e6   : > { %v1712_v12 = vsub.f32 1.0, %v1696_v36  ;;  %v2255_v2 = vmul.f32 %v5010_v58, %v2239_v10  ;;  %3686 = vrcp.f32 %v2146_v23  ;;  %v3683_v18 = vpop.eup %3682  ;;  %v1849_v11 = vadd.f32 %v4885_v55, %v1827_v60 }
 0x1e7   : > { %v1758_v8 = vsel %vm1726_vm15, %v1710_v34, %v1742_v42  ;;  %v2241_v46 = vadd.f32 1.4214138, %v2225_v43  ;;  %3688 = vpow2.f32 %v2371_v33  ;;  %v1834_v31 = vrot.slane %v1833_v49, 2 }
 0x1e8   : > { %v1774_v54 = vadd.f32 1.0, %v1758_v8  ;;  %v1744_v24 = vsub.f32 0.0, %v1712_v12  ;;  %v2271_v50 = vadd.f32 -0.28449672, %v2255_v2  ;;  %v1850_v7 = vrot.slane %v1849_v11, 4 }
 0x1e9   : > { %v5043_v52 = vpop.eup %3684  ;;  %v2257_v9 = vmul.f32 %v5016_v26, %v2241_v46  ;;  %3690 = vpow2.f32 %v2369_v41  ;;  %v5048_v0 = vadd.f32 %v4581_v63, %v5863_v39  ;;  %v1835_v55 = vadd.f32 %v1834_v31, %v1833_v49 }
 0x1ea   : > { %v1790_v20 = vmul.f32 %v1774_v54, %v4997_v17  ;;  %v1760_v22 = vsel %vm1728_vm0, %v1712_v12, %v1744_v24  ;;  %v2287_v34 = vmul.f32 %v5010_v58, %v2271_v50  ;;  %v1851_v25 = vadd.f32 %v1850_v7, %v1849_v11 }
 0x1eb   : > { %v1776_v33 = vadd.f32 1.0, %v1760_v22  ;;  %v2273_v32 = vadd.f32 -0.28449672, %v2257_v9  ;;  %v2192_v36 = vmul.f32 1.0614054, %v5043_v52  ;;  %v1836_v10 = vrot.slane %v1835_v55, 1 }
 0x1ec   : > { %v1826_v23 = vmul.f32 %v5018_v6, %v1790_v20  ;;  %v2303_v60 = vadd.f32 0.2548296, %v2287_v34  ;;  %v2338_v63 = vsub.f32 0.0, %v5023_v45  ;;  %v1852_v42 = vrot.slane %v1851_v25, 2 }
 0x1ed   : > { %v1792_v43 = vmul.f32 %v1776_v33, %v5000_v27  ;;  %v2289_v17 = vmul.f32 %v5016_v26, %v2273_v32  ;;  %v2208_v47 = vadd.f32 -1.4531521, %v2192_v36  ;;  %v1837_v41 = vadd.f32 %v1836_v10, %v1835_v55  ;;  %v5078_v10 = vpop.f32.mrb[27].mxu0 }
 0x1ee   : > { %v1840_v49 = vadd.f32 %v4924_v30, %v1826_v23  ;;  %v2319_v12 = vmul.f32 %v5010_v58, %v2303_v60  ;;  %v5062_v2 = vmul.f32 0.70710677, %v5048_v0  ;;  %v1853_v11 = vadd.f32 %v1852_v42, %v1851_v25  ;;  %5864 = vst [vmem:[#allocation11_spill] sm:$0xff] %v5078_v10 }
 0x1ef   : > { %v1828_v8 = vmul.f32 %v5018_v6, %v1792_v43  ;;  %v2305_v46 = vadd.f32 0.2548296, %v2289_v17  ;;  %v2224_v31 = vmul.f32 %v5043_v52, %v2208_v47  ;;  %v5069_v27 = vadd.f32 %v1837_v41, %v4905_v15 }
 0x1f0   : > { %v5066_v54 = vpop.eup %3686  ;;  %v1841_v24 = vrot.slane %v1840_v49, 4  ;;  %v2354_v50 = vmul.f32 %v2338_v63, %v5023_v45  ;;  %v2115_v30 = vand.u32 2147483647, %v5062_v2  ;;  %v1854_v7 = vrot.slane %v1853_v11, 1 }
 0x1f1   : > { %v3689_v58 = vpop.eup %3688  ;;  %v1858_v9 = vadd.f32 %v4978_v1, %v1828_v8  ;;  %v2399_v55 = vmul.f32 %v3683_v18, %v2319_v12  ;;  %v2240_v20 = vadd.f32 1.4214138, %v2224_v31  ;;  %v2321_v22 = vmul.f32 %v5016_v26, %v2305_v46 }
 0x1f2   : > { %v1842_v6 = vadd.f32 %v1841_v24, %v1840_v49  ;;  %v2194_v34 = vmul.f32 1.0614054, %v5066_v54  ;;  %v2131_v25 = vmul.f32 0.3275911, %v2115_v30  ;;  %v1145_v15 = vrot.slane %v4917_v56, 1 }
 0x1f3   : > { %v3691_v33 = vpop.eup %3690  ;;  %v1855_v32 = vadd.f32 %v1854_v7, %v1853_v11  ;;  %v1859_v36 = vrot.slane %v1858_v9, 4  ;;  %v2256_v45 = vmul.f32 %v5043_v52, %v2240_v20  ;;  %v2373_v1 = vmul.f32 1.442695, %v2354_v50 }
 0x1f4   : > { %v1843_v23 = vrot.slane %v1842_v6, 2  ;;  %v2210_v60 = vadd.f32 -1.4531521, %v2194_v34  ;;  %v2147_v18 = vadd.f32 1.0, %v2131_v25  ;;  %v2415_v42 = vsub.f32 1.0, %v2399_v55 }
 0x1f5   : > { %v5081_v63 = vadd.f32 %v1855_v32, %v4909_v37  ;;  %v1860_v26 = vadd.f32 %v1859_v36, %v1858_v9  ;;  %v2272_v43 = vadd.f32 -0.28449672, %v2256_v45  ;;  %v2401_v47 = vmul.f32 %v3689_v58, %v2321_v22  ;;  %v5866_v22 = vld [vmem:[#allocation3_spill] sm:$0xff] }
 0x1f6   : > { %v1844_v17 = vadd.f32 %v1843_v23, %v1842_v6  ;;  %v2226_v41 = vmul.f32 %v5066_v54, %v2210_v60  ;;  %3692 = vrcp.f32 %v2147_v18  ;;  %v1128_v11 = vadd.f32 %v1127_v19, %v4887_v40 }
 0x1f7   : > { %5865 = vst [vmem:[#allocation12_spill] sm:$0xff] %v5081_v63  ;;  %v1861_v49 = vrot.slane %v1860_v26, 2  ;;  %v2288_v12 = vmul.f32 %v5043_v52, %v2272_v43  ;;  %v1146_v37 = vadd.f32 %v1145_v15, %v4917_v56  ;;  %3694 = vpow2.f32 %v2373_v1  ;;  %v5099_v15 = vpop.f32.mrb[27].mxu1  ;;  %v5869_v1 = vld [vmem:[#allocation4_spill] sm:$0xff] }
 0x1f8   : > { %v1845_v8 = vrot.slane %v1844_v17, 1  ;;  %v2242_v46 = vadd.f32 1.4214138, %v2226_v41  ;;  %v2447_v7 = vsub.f32 0.0, %v2415_v42  ;;  %v2417_v58 = vsub.f32 1.0, %v2401_v47  ;;  %5868 = vst [vmem:[#allocation15_spill] sm:$0xff] %v5099_v15 }
 0x1f9   : > { %v1862_v31 = vadd.f32 %v1861_v49, %v1860_v26  ;;  %v2304_v24 = vadd.f32 0.2548296, %v2288_v12  ;;  %v2339_v6 = vsub.f32 0.0, %v2115_v30  ;;  %v5093_v34 = vadd.f32 %v5866_v22, %v5863_v39  ;;  %v5871_v49 = vld [vmem:[#allocation5_spill] sm:$0xff] }
 0x1fa   : > { %v1846_v50 = vadd.f32 %v1845_v8, %v1844_v17  ;;  %v2258_v9 = vmul.f32 %v5066_v54, %v2242_v46  ;;  %v2079_v19 = vmul.f32 0.5, %v4928_v13  ;;  %v2081_v56 = vmul.f32 0.5, %v4932_v61 }
 0x1fb   : > { %v1863_v55 = vrot.slane %v1862_v31, 1  ;;  %v2320_v20 = vmul.f32 %v5043_v52, %v2304_v24  ;;  %vm2431_vm1 = vcmp.ge.f32.partialorder %v4937_v14, 0.0  ;;  %v5103_v52 = vmul.f32 0.70710677, %v5093_v34 }
 0x1fc   : > { %v5095_v40 = vadd.f32 %v1846_v50, %v1128_v11  ;;  %v2274_v25 = vadd.f32 -0.28449672, %v2258_v9  ;;  %v2463_v45 = vsel %vm2431_vm1, %v2415_v42, %v2447_v7  ;;  %v2449_v23 = vsub.f32 0.0, %v2417_v58 }
 0x1fd   : > { %v1864_v32 = vadd.f32 %v1863_v55, %v1862_v31  ;;  %v2400_v36 = vmul.f32 %v3691_v33, %v2320_v20  ;;  %v5108_v18 = vadd.f32 %v5869_v1, %v5863_v39  ;;  %v2355_v26 = vmul.f32 %v2339_v6, %v2115_v30 }
 0x1fe   : > { %5867 = vst [vmem:[#allocation13_spill] sm:$0xff] %v5095_v40  ;;  %v2290_v60 = vmul.f32 %v5066_v54, %v2274_v25  ;;  %v2117_v43 = vand.u32 2147483647, %v5103_v52  ;;  %vm2433_vm2 = vcmp.ge.f32.partialorder %v4947_v16, 0.0  ;;  %vm2432_vm3 = vcmp.ge.f32.partialorder %v4986_v4, 0.0  ;;  %v5125_v16 = vpop.f32.mrb[28].mxu0 }
 0x1ff   : > { %v5110_v13 = vadd.f32 %v1864_v32, %v1146_v37  ;;  %v2416_v61 = vsub.f32 1.0, %v2400_v36  ;;  %v5118_v33 = vmul.f32 0.70710677, %v5108_v18  ;;  %v2065_v12 = vadd.f32 %v5871_v49, %v5863_v39  ;;  %5872 = vst [vmem:[#allocation17_spill] sm:$0xff] %v5125_v16  ;;  %v5127_v37 = vpop.f32.mrb[28].mxu1 }
 0x200   : > { %v5113_v17 = vpop.eup %3692  ;;  %v2306_v14 = vadd.f32 0.2548296, %v2290_v60  ;;  %v2133_v41 = vmul.f32 0.3275911, %v2117_v43  ;;  %v2479_v30 = vadd.f32 1.0, %v2463_v45  ;;  %v2465_v11 = vsel %vm2433_vm2, %v2417_v58, %v2449_v23  ;;  %5873 = vst [vmem:[#allocation10_spill] sm:$0xff] %v5127_v37 }
 0x201   : > { %5870 = vst [vmem:[#allocation20_spill] sm:$0xff] %v5110_v13  ;;  %v2448_v42 = vsub.f32 0.0, %v2416_v61  ;;  %v2195_v47 = vmul.f32 1.0614054, %v5113_v17  ;;  %v2116_v46 = vand.u32 2147483647, %v5118_v33  ;;  %v3695_v31 = vpop.eup %3694 }
 0x202   : > { %v2322_v8 = vmul.f32 %v5066_v54, %v2306_v14  ;;  %v2375_v50 = vmul.f32 1.442695, %v2355_v26  ;;  %v2149_v7 = vadd.f32 1.0, %v2133_v41  ;;  %v2341_v9 = vsub.f32 0.0, %v2117_v43  ;;  %v5139_v60 = vpop.f32.mrb[29].mxu0  ;;  %v5877_v41 = vld [vmem:[#allocation24_spill] sm:$0xff] }
 0x203   : > { %v2211_v24 = vadd.f32 -1.4531521, %v2195_v47  ;;  %v2080_v55 = vmul.f32 0.5, %v4971_v21  ;;  %v2464_v39 = vsel %vm2432_vm3, %v2416_v61, %v2448_v42  ;;  %v2132_v58 = vmul.f32 0.3275911, %v2116_v46  ;;  %5874 = vst [vmem:[#allocation14_spill] sm:$0xff] %v5139_v60 }
 0x204   : > { %v2402_v20 = vmul.f32 %v3695_v31, %v2322_v8  ;;  %3696 = vrcp.f32 %v2149_v7  ;;  %v2340_v6 = vsub.f32 0.0, %v2116_v46  ;;  %v5133_v22 = vmul.f32 0.70710677, %v2065_v12  ;;  %v5875_v42 = vld [vmem:[#allocation16_spill] sm:$0xff] }
 0x205   : > { %v2227_v54 = vmul.f32 %v5113_v17, %v2211_v24  ;;  %v2495_v25 = vmul.f32 %v2479_v30, %v2079_v19  ;;  %v2481_v32 = vadd.f32 1.0, %v2465_v11  ;;  %v5136_v36 = vmul.f32 0.5, %v4991_v29  ;;  %v5876_v29 = vld [vmem:[#allocation6_spill] sm:$0xff]  ;;  %v5878_v11 = vld [vmem:[#allocation7_spill] sm:$0xff] }
 0x206   : > { %v2148_v45 = vadd.f32 1.0, %v2132_v58  ;;  %3698 = vpow2.f32 %v2375_v50  ;;  %v2357_v21 = vmul.f32 %v2341_v9, %v2117_v43  ;;  %v2118_v4 = vand.u32 2147483647, %v5133_v22  ;;  %v5879_v58 = vld [vmem:[#allocation8_spill] sm:$0xff] }
 0x207   : > { %v2243_v23 = vadd.f32 1.4214138, %v2227_v54  ;;  %v2480_v1 = vadd.f32 1.0, %v2464_v39  ;;  %v2418_v61 = vsub.f32 1.0, %v2402_v20  ;;  %vm2434_vm4 = vcmp.ge.f32.partialorder %v5008_v51, 0.0 }
 0x208   : > { %3700 = vrcp.f32 %v2148_v45  ;;  %v2356_v19 = vmul.f32 %v2340_v6, %v2116_v46  ;;  %v2134_v14 = vmul.f32 0.3275911, %v2118_v4  ;;  %v1980_v47 = vadd.f32 %v5876_v29, %v5875_v42  ;;  %v5168_v6 = vpop.f32.mrb[29].mxu1 }
 0x209   : > { %v2259_v26 = vmul.f32 %v5113_v17, %v2243_v23  ;;  %v5146_v49 = vmul.f32 %v5877_v41, %v2495_v25  ;;  %v2497_v43 = vmul.f32 %v2481_v32, %v2081_v56  ;;  %v5149_v30 = vmul.f32 0.5, %v5048_v0  ;;  %5880 = vst [vmem:[#allocation3_spill] sm:$0xff] %v5168_v6  ;;  %v5197_v6 = vpop.f32.mrb[30].mxu0 }
 0x20a   : > { %v5153_v8 = vadd.f32 %v5878_v11, %v5875_v42  ;;  %v5156_v24 = vmul.f32 0.5, %v5093_v34  ;;  %v2379_v46 = vmul.f32 1.442695, %v2357_v21  ;;  %v2150_v50 = vadd.f32 1.0, %v2134_v14  ;;  %5881 = vst [vmem:[#allocation4_spill] sm:$0xff] %v5197_v6 }
 0x20b   : > { %v2275_v31 = vadd.f32 -0.28449672, %v2259_v26  ;;  %v2496_v7 = vmul.f32 %v2480_v1, %v2080_v55  ;;  %v2450_v9 = vsub.f32 0.0, %v2418_v61  ;;  %v5158_v39 = vmul.f32 0.70710677, %v1980_v47 }
 0x20c   : > { %v5161_v20 = vmul.f32 0.70710677, %v5153_v8  ;;  %v2377_v56 = vmul.f32 1.442695, %v2356_v19  ;;  %3702 = vrcp.f32 %v2150_v50  ;;  %v5166_v54 = vadd.f32 %v5879_v58, %v5875_v42 }
 0x20d   : > { %v2291_v0 = vmul.f32 %v5113_v17, %v2275_v31  ;;  %v5171_v34 = vmul.f32 %v5877_v41, %v2497_v43  ;;  %v2342_v55 = vsub.f32 0.0, %v2118_v4  ;;  %v2119_v25 = vand.u32 2147483647, %v5158_v39 }
 0x20e   : > { %v2121_v32 = vand.u32 2147483647, %v5161_v20  ;;  %v5175_v45 = vpop.eup %3696  ;;  %3704 = vpow2.f32 %v2379_v46  ;;  %v5178_v21 = vmul.f32 0.5, %v5108_v18  ;;  %v5180_v1 = vmul.f32 0.5, %v2065_v12 }
 0x20f   : > { %v2307_v23 = vadd.f32 0.2548296, %v2291_v0  ;;  %v5183_v26 = vmul.f32 %v5877_v41, %v2496_v7  ;;  %v2466_v19 = vsel %vm2434_vm4, %v2418_v61, %v2450_v9  ;;  %vm2435_vm5 = vcmp.ge.f32.partialorder %v5062_v2, 0.0 }
 0x210   : > { %v2197_v14 = vmul.f32 1.0614054, %v5175_v45  ;;  %v2135_v29 = vmul.f32 0.3275911, %v2119_v25  ;;  %v3699_v43 = vpop.eup %3698  ;;  %3706 = vpow2.f32 %v2377_v56  ;;  %v2137_v31 = vmul.f32 0.3275911, %v2121_v32 }
 0x211   : > { %v2323_v11 = vmul.f32 %v5113_v17, %v2307_v23  ;;  %v5191_v18 = vmul.f32 0.70710677, %v5166_v54  ;;  %v2358_v50 = vmul.f32 %v2342_v55, %v2118_v4  ;;  %v2343_v51 = vsub.f32 0.0, %v2119_v25  ;;  %v5882_v23 = vld [vmem:[#allocation9_spill] sm:$0xff] }
 0x212   : > { %v5193_v12 = vpop.eup %3700  ;;  %v2213_v46 = vadd.f32 -1.4531521, %v2197_v14  ;;  %v2151_v7 = vadd.f32 1.0, %v2135_v29  ;;  %v2153_v0 = vadd.f32 1.0, %v2137_v31  ;;  %v2345_v56 = vsub.f32 0.0, %v2121_v32 }
 0x213   : > { %v2403_v61 = vmul.f32 %v3699_v43, %v2323_v11  ;;  %v2196_v9 = vmul.f32 1.0614054, %v5193_v12  ;;  %v2120_v58 = vand.u32 2147483647, %v5191_v18  ;;  %v5202_v60 = vadd.f32 %v5882_v23, %v5875_v42 }
 0x214   : > { %v2229_v17 = vmul.f32 %v5175_v45, %v2213_v46  ;;  %3708 = vrcp.f32 %v2151_v7  ;;  %v2482_v29 = vadd.f32 1.0, %v2466_v19  ;;  %v2381_v11 = vmul.f32 1.442695, %v2358_v50 }
 0x215   : > { %v2419_v14 = vsub.f32 1.0, %v2403_v61  ;;  %v2212_v4 = vadd.f32 -1.4531521, %v2196_v9  ;;  %3710 = vrcp.f32 %v2153_v0  ;;  %v2136_v55 = vmul.f32 0.3275911, %v2120_v58 }
 0x216   : > { %v2245_v43 = vadd.f32 1.4214138, %v2229_v17  ;;  %v5204_v31 = vmul.f32 0.5, %v1980_v47  ;;  %v5206_v37 = vpop.eup %3702  ;;  %v2359_v7 = vmul.f32 %v2343_v51, %v2119_v25  ;;  %v2361_v61 = vmul.f32 %v2345_v56, %v2121_v32  ;;  %v5216_v17 = vpop.f32.mrb[30].mxu1 }
 0x217   : > { %v2451_v6 = vsub.f32 0.0, %v2419_v14  ;;  %v2228_v46 = vmul.f32 %v5193_v12, %v2212_v4  ;;  %v2152_v13 = vadd.f32 1.0, %v2136_v55  ;;  %v2198_v42 = vmul.f32 1.0614054, %v5206_v37  ;;  %5883 = vst [vmem:[#allocation5_spill] sm:$0xff] %v5216_v17  ;;  %v5884_v4 = vld [vmem:[#allocation22_spill] sm:$0xff] }
 0x218   : > { %v2261_v16 = vmul.f32 %v5175_v45, %v2245_v43  ;;  %v2344_v9 = vsub.f32 0.0, %v2120_v58  ;;  %v3705_v0 = vpop.eup %3704  ;;  %v5214_v47 = vmul.f32 0.70710677, %v5202_v60  ;;  %v5220_v55 = vadd.f32 %v4734_v48, %v5884_v4 }
 0x219   : > { %v2467_v19 = vsel %vm2435_vm5, %v2419_v14, %v2451_v6  ;;  %v2244_v50 = vadd.f32 1.4214138, %v2228_v46  ;;  %3712 = vrcp.f32 %v2152_v13  ;;  %v2214_v51 = vadd.f32 -1.4531521, %v2198_v42 }
 0x21a   : > { %v2483_v23 = vadd.f32 1.0, %v2467_v19  ;;  %v2277_v25 = vadd.f32 -0.28449672, %v2261_v16  ;;  %v3707_v32 = vpop.eup %3706  ;;  %v5223_v56 = vmul.f32 %v2482_v29, %v5136_v36  ;;  %3714 = vpow2.f32 %v2381_v11 }
 0x21b   : > { %v2260_v2 = vmul.f32 %v5193_v12, %v2244_v50  ;;  %v2122_v13 = vand.u32 2147483647, %v5214_v47  ;;  %v2230_v16 = vmul.f32 %v5206_v37, %v2214_v51  ;;  %v2383_v43 = vmul.f32 1.442695, %v2359_v7 }
 0x21c   : > { %v2499_v6 = vmul.f32 %v2483_v23, %v5149_v30  ;;  %v2293_v14 = vmul.f32 %v5175_v45, %v2277_v25  ;;  %v2387_v42 = vmul.f32 1.442695, %v2361_v61  ;;  %v2360_v48 = vmul.f32 %v2344_v9, %v2120_v58 }
 0x21d   : > { %v2276_v46 = vadd.f32 -0.28449672, %v2260_v2  ;;  %v2138_v19 = vmul.f32 0.3275911, %v2122_v13  ;;  %v2246_v50 = vadd.f32 1.4214138, %v2230_v16 }
 0x21e   : > { %v5230_v17 = vpop.eup %3708  ;;  %v2535_v36 = vmul.f32 %v4993_v5, %v2499_v6  ;;  %v2309_v29 = vadd.f32 0.2548296, %v2293_v14  ;;  %v5234_v11 = vmul.f32 0.70710677, %v5220_v55  ;;  %vm2437_vm6 = vcmp.ge.f32.partialorder %v5103_v52, 0.0 }
 0x21f   : > { %v5236_v15 = vpop.eup %3710  ;;  %v2292_v30 = vmul.f32 %v5193_v12, %v2276_v46  ;;  %v2199_v7 = vmul.f32 1.0614054, %v5230_v17  ;;  %v2154_v61 = vadd.f32 1.0, %v2138_v19  ;;  %v2346_v58 = vsub.f32 0.0, %v2122_v13 }
 0x220   : > { %v5242_v9 = vadd.f32 %v2535_v36, %v5146_v49  ;;  %v2325_v23 = vmul.f32 %v5175_v45, %v2309_v29  ;;  %v2262_v25 = vmul.f32 %v5206_v37, %v2246_v50  ;;  %v2201_v51 = vmul.f32 1.0614054, %v5236_v15 }
 0x221   : > { %v2308_v2 = vadd.f32 0.2548296, %v2292_v30  ;;  %v2215_v6 = vadd.f32 -1.4531521, %v2199_v7  ;;  %v2385_v14 = vmul.f32 1.442695, %v2360_v48  ;;  %3716 = vrcp.f32 %v2154_v61 }
 0x222   : > { %v2405_v16 = vmul.f32 %v3705_v0, %v2325_v23  ;;  %vm2436_vm7 = vcmp.ge.f32.partialorder %v5118_v33, 0.0  ;;  %v2278_v46 = vadd.f32 -0.28449672, %v2262_v25  ;;  %v2217_v10 = vadd.f32 -1.4531521, %v2201_v51  ;;  %v5277_v33 = vpop.f32.mrb[31].mxu0 }
 0x223   : > { %v2123_v19 = vand.u32 2147483647, %v5234_v11  ;;  %v5249_v40 = vpop.eup %3712  ;;  %v2324_v49 = vmul.f32 %v5193_v12, %v2308_v2  ;;  %v2231_v45 = vmul.f32 %v5230_v17, %v2215_v6  ;;  %3718 = vpow2.f32 %v2383_v43 }
 0x224   : > { %v2362_v36 = vmul.f32 %v2346_v58, %v2122_v13  ;;  %v2421_v29 = vsub.f32 1.0, %v2405_v16  ;;  %v2294_v50 = vmul.f32 %v5206_v37, %v2278_v46  ;;  %v2233_v48 = vmul.f32 %v5236_v15, %v2217_v10  ;;  %v3715_v30 = vpop.eup %3714 }
 0x225   : > { %v2200_v0 = vmul.f32 1.0614054, %v5249_v40  ;;  %v2404_v7 = vmul.f32 %v3707_v32, %v2324_v49  ;;  %v2247_v61 = vadd.f32 1.4214138, %v2231_v45  ;;  %3720 = vpow2.f32 %v2387_v42 }
 0x226   : > { %v2139_v23 = vmul.f32 0.3275911, %v2123_v19  ;;  %v2453_v25 = vsub.f32 0.0, %v2421_v29  ;;  %v2310_v51 = vadd.f32 0.2548296, %v2294_v50  ;;  %3722 = vpow2.f32 %v2385_v14 }
 0x227   : > { %v2249_v63 = vadd.f32 1.4214138, %v2233_v48  ;;  %v2420_v12 = vsub.f32 1.0, %v2404_v7  ;;  %vm2438_vm8 = vcmp.ge.f32.partialorder %v5133_v22, 0.0  ;;  %v2263_v13 = vmul.f32 %v5230_v17, %v2247_v61 }
 0x228   : > { %v2216_v43 = vadd.f32 -1.4531521, %v2200_v0  ;;  %v2155_v58 = vadd.f32 1.0, %v2139_v23  ;;  %v2469_v10 = vsel %vm2437_vm6, %v2421_v29, %v2453_v25  ;;  %v2326_v2 = vmul.f32 %v5206_v37, %v2310_v51 }
 0x229   : > { %v2265_v32 = vmul.f32 %v5236_v15, %v2249_v63  ;;  %v2389_v42 = vmul.f32 1.442695, %v2362_v36  ;;  %v2485_v6 = vadd.f32 1.0, %v2469_v10  ;;  %v2452_v16 = vsub.f32 0.0, %v2420_v12 }
 0x22a   : > { %v2279_v46 = vadd.f32 -0.28449672, %v2263_v13  ;;  %v2232_v14 = vmul.f32 %v5249_v40, %v2216_v43  ;;  %v2406_v49 = vmul.f32 %v3715_v30, %v2326_v2  ;;  %3724 = vrcp.f32 %v2155_v58 }
 0x22b   : > { %v2281_v45 = vadd.f32 -0.28449672, %v2265_v32  ;;  %v2347_v50 = vsub.f32 0.0, %v2123_v19  ;;  %v5263_v48 = vpop.eup %3716  ;;  %v2501_v0 = vmul.f32 %v2485_v6, %v5156_v24  ;;  %v2468_v52 = vsel %vm2436_vm7, %v2420_v12, %v2452_v16 }
 0x22c   : > { %v2295_v37 = vmul.f32 %v5230_v17, %v2279_v46  ;;  %v2248_v63 = vadd.f32 1.4214138, %v2232_v14  ;;  %v2484_v36 = vadd.f32 1.0, %v2468_v52  ;;  %v2422_v29 = vsub.f32 1.0, %v2406_v49 }
 0x22d   : > { %v2297_v7 = vmul.f32 %v5236_v15, %v2281_v45  ;;  %v2202_v61 = vmul.f32 1.0614054, %v5263_v48  ;;  %v3719_v30 = vpop.eup %3718  ;;  %v2537_v23 = vmul.f32 %v4993_v5, %v2501_v0  ;;  %v5275_v24 = vadd.f32 %v4756_v38, %v5884_v4 }
 0x22e   : > { %v2311_v25 = vadd.f32 0.2548296, %v2295_v37  ;;  %v2264_v51 = vmul.f32 %v5249_v40, %v2248_v63  ;;  %v2500_v12 = vmul.f32 %v2484_v36, %v5178_v21  ;;  %v2454_v13 = vsub.f32 0.0, %v2422_v29  ;;  %v5302_v36 = vpop.f32.mrb[31].mxu1 }
 0x22f   : > { %vm2439_vm9 = vcmp.ge.f32.partialorder %v5158_v39, 0.0  ;;  %v2313_v43 = vadd.f32 0.2548296, %v2297_v7  ;;  %v2218_v58 = vadd.f32 -1.4531521, %v2202_v61  ;;  %v3721_v10 = vpop.eup %3720  ;;  %v5282_v2 = vadd.f32 %v2537_v23, %v5171_v34 }
 0x230   : > { %v2327_v32 = vmul.f32 %v5230_v17, %v2311_v25  ;;  %vm2441_vm10 = vcmp.ge.f32.partialorder %v5161_v20, 0.0  ;;  %v2280_v6 = vadd.f32 -0.28449672, %v2264_v51  ;;  %v2363_v38 = vmul.f32 %v2347_v50, %v2123_v19  ;;  %v3723_v16 = vpop.eup %3722 }
 0x231   : > { %v2536_v46 = vmul.f32 %v4993_v5, %v2500_v12  ;;  %v2470_v21 = vsel %vm2438_vm8, %v2422_v29, %v2454_v13  ;;  %v2329_v14 = vmul.f32 %v5236_v15, %v2313_v43  ;;  %v2234_v49 = vmul.f32 %v5263_v48, %v2218_v58 }
 0x232   : > { %v2486_v45 = vadd.f32 1.0, %v2470_v21  ;;  %v2407_v0 = vmul.f32 %v3719_v30, %v2327_v32  ;;  %v2296_v34 = vmul.f32 %v5249_v40, %v2280_v6  ;;  %v5293_v17 = vmul.f32 0.70710677, %v5275_v24 }
 0x233   : > { %v5296_v52 = vadd.f32 %v2536_v46, %v5183_v26  ;;  %v2409_v19 = vmul.f32 %v3721_v10, %v2329_v14  ;;  %v2250_v50 = vadd.f32 1.4214138, %v2234_v49  ;;  %3726 = vpow2.f32 %v2389_v42 }
 0x234   : > { %v2502_v22 = vmul.f32 %v2486_v45, %v5180_v1  ;;  %v2423_v37 = vsub.f32 1.0, %v2407_v0  ;;  %v2312_v63 = vadd.f32 0.2548296, %v2296_v34  ;;  %v5300_v15 = vand.u32 2147483647, %v5293_v17  ;;  %v5304_v29 = vpop.eup %3724 }
 0x235   : > { %v2534_v7 = vmul.f32 %v5877_v41, %v5223_v56  ;;  %v2425_v61 = vsub.f32 1.0, %v2409_v19  ;;  %v2266_v26 = vmul.f32 %v5263_v48, %v2250_v50  ;;  %v2391_v30 = vmul.f32 1.442695, %v2363_v38 }
 0x236   : > { %v2538_v42 = vmul.f32 %v4993_v5, %v2502_v22  ;;  %v2455_v23 = vsub.f32 0.0, %v2423_v37  ;;  %v2328_v1 = vmul.f32 %v5249_v40, %v2312_v63  ;;  %v2203_v25 = vmul.f32 1.0614054, %v5304_v29 }
 0x237   : > { %v2457_v51 = vsub.f32 0.0, %v2425_v61  ;;  %v2282_v12 = vadd.f32 -0.28449672, %v2266_v26  ;;  %v2141_v13 = vmul.f32 0.3275911, %v5300_v15  ;;  %v5315_v43 = vadd.f32 %v4822_v62, %v5884_v4 }
 0x238   : > { %v5317_v41 = vadd.f32 %v2538_v42, %v2534_v7  ;;  %v2471_v56 = vsel %vm2439_vm9, %v2423_v37, %v2455_v23  ;;  %v2408_v58 = vmul.f32 %v3723_v16, %v2328_v1  ;;  %v2219_v5 = vadd.f32 -1.4531521, %v2203_v25  ;;  %v2524_v16 = vpop.permute.xlu0 %2523 }
 0x239   : > { %v2487_v10 = vadd.f32 1.0, %v2471_v56  ;;  %v2473_v40 = vsel %vm2441_vm10, %v2425_v61, %v2457_v51  ;;  %v2298_v32 = vmul.f32 %v5263_v48, %v2282_v12  ;;  %v2157_v6 = vadd.f32 1.0, %v2141_v13  ;;  %v5885_v51 = vld [vmem:[#allocation19_spill] sm:$0xff] }
 0x23a   : > { %v2089_v38 = vmul.f32 0.5, %v5153_v8  ;;  %v2489_v46 = vadd.f32 1.0, %v2473_v40  ;;  %v2424_v21 = vsub.f32 1.0, %v2408_v58  ;;  %v2235_v62 = vmul.f32 %v5304_v29, %v2219_v5 }
 0x23b   : > { %v2503_v14 = vmul.f32 %v2487_v10, %v5204_v31  ;;  %v2314_v49 = vadd.f32 0.2548296, %v2298_v32  ;;  %3728 = vrcp.f32 %v2157_v6  ;;  %v5328_v39 = vmul.f32 0.70710677, %v5315_v43 }
 0x23c   : > { %v2505_v45 = vmul.f32 %v2489_v46, %v2089_v38  ;;  %vm2440_vm11 = vcmp.ge.f32.partialorder %v5191_v18, 0.0  ;;  %v2456_v20 = vsub.f32 0.0, %v2424_v21  ;;  %v2251_v0 = vadd.f32 1.4214138, %v2235_v62 }
 0x23d   : > { %v3727_v34 = vpop.eup %3726  ;;  %v2539_v19 = vmul.f32 %v2524_v16, %v2503_v14  ;;  %v2330_v8 = vmul.f32 %v5263_v48, %v2314_v49  ;;  %3730 = vpow2.f32 %v2391_v30  ;;  %v2124_v50 = vand.u32 2147483647, %v5328_v39 }
 0x23e   : > { %v2541_v22 = vmul.f32 %v2524_v16, %v2505_v45  ;;  %v2088_v31 = vmul.f32 0.5, %v5166_v54  ;;  %v2472_v37 = vsel %vm2440_vm11, %v2424_v21, %v2456_v20  ;;  %v2267_v63 = vmul.f32 %v5304_v29, %v2251_v0 }
 0x23f   : > { %v5336_v7 = vadd.f32 %v5242_v9, %v2539_v19  ;;  %v2488_v61 = vadd.f32 1.0, %v2472_v37  ;;  %v2410_v18 = vmul.f32 %v3727_v34, %v2330_v8  ;;  %v2140_v26 = vmul.f32 0.3275911, %v2124_v50 }
 0x240   : > { %v5339_v42 = vadd.f32 %v5282_v2, %v2541_v22  ;;  %v2283_v23 = vadd.f32 -0.28449672, %v2267_v63  ;;  %v2349_v48 = vsub.f32 0.0, %v5300_v15  ;;  %v5344_v30 = vadd.f32 %v4858_v59, %v5884_v4 }
 0x241   : > { %v2504_v54 = vmul.f32 %v2488_v61, %v2088_v31  ;;  %v2426_v1 = vsub.f32 1.0, %v2410_v18  ;;  %v2156_v25 = vadd.f32 1.0, %v2140_v26  ;;  %v5348_v9 = vadd.f32 %v4897_v3, %v5885_v51  ;;  %v5378_v31 = vpop.permute.xlu1 %3231 }
 0x242   : > { %v2299_v12 = vmul.f32 %v5304_v29, %v2283_v23  ;;  %v5352_v13 = vmul.f32 0.70710677, %v5344_v30  ;;  %vm2442_vm12 = vcmp.ge.f32.partialorder %v5214_v47, 0.0  ;;  %v2365_v59 = vmul.f32 %v2349_v48, %v5300_v15 }
 0x243   : > { %v2540_v2 = vmul.f32 %v2524_v16, %v2504_v54  ;;  %v2458_v56 = vsub.f32 0.0, %v2426_v1  ;;  %3732 = vrcp.f32 %v2156_v25  ;;  %v2090_v10 = vmul.f32 0.5, %v5202_v60 }
 0x244   : > { %v2315_v58 = vadd.f32 0.2548296, %v2299_v12  ;;  %v2126_v4 = vand.u32 2147483647, %v5352_v13  ;;  %v5364_v32 = vmul.f32 0.70710677, %v5348_v9  ;;  %v5370_v15 = vadd.f32 %v4899_v35, %v5885_v51 }
 0x245   : > { %v5357_v5 = vpop.eup %3728  ;;  %v5360_v3 = vadd.f32 %v5296_v52, %v2540_v2  ;;  %v2474_v40 = vsel %vm2442_vm12, %v2426_v1, %v2458_v56  ;;  %v2395_v49 = vmul.f32 1.442695, %v2365_v59  ;;  %v2348_v45 = vsub.f32 0.0, %v2124_v50 }
 0x246   : > { %v2490_v6 = vadd.f32 1.0, %v2474_v40  ;;  %v2331_v38 = vmul.f32 %v5304_v29, %v2315_v58  ;;  %v2205_v47 = vmul.f32 1.0614054, %v5357_v5  ;;  %v2142_v21 = vmul.f32 0.3275911, %v2126_v4 }
 0x247   : > { %v3731_v46 = vpop.eup %3730  ;;  %v2829_v52 = vand.u32 2147483647, %v5364_v32  ;;  %v2350_v0 = vsub.f32 0.0, %v2126_v4  ;;  %v5375_v22 = vmul.f32 0.70710677, %v5370_v15  ;;  %vm2443_vm13 = vcmp.ge.f32.partialorder %v5234_v11, 0.0 }
 0x248   : > { %v2506_v62 = vmul.f32 %v2490_v6, %v2090_v10  ;;  %v2411_v14 = vmul.f32 %v3731_v46, %v2331_v38  ;;  %v2221_v60 = vadd.f32 -1.4531521, %v2205_v47  ;;  %v2158_v20 = vadd.f32 1.0, %v2142_v21  ;;  %v5403_v6 = vpop.permute.xlu1 %2528 }
 0x249   : > { %v2845_v34 = vmul.f32 0.3275911, %v2829_v52  ;;  %v2831_v18 = vand.u32 2147483647, %v5375_v22  ;;  %v2364_v26 = vmul.f32 %v2348_v45, %v2124_v50  ;;  %v2366_v23 = vmul.f32 %v2350_v0, %v2126_v4 }
 0x24a   : > { %v2542_v19 = vmul.f32 %v2524_v16, %v2506_v62  ;;  %v2427_v29 = vsub.f32 1.0, %v2411_v14  ;;  %v2237_v8 = vmul.f32 %v5357_v5, %v2221_v60  ;;  %3734 = vrcp.f32 %v2158_v20 }
 0x24b   : > { %v2861_v35 = vadd.f32 1.0, %v2845_v34  ;;  %3736 = vpow2.f32 %v2395_v49  ;;  %v5388_v48 = vadd.f32 %v4921_v53, %v5885_v51  ;;  %v3053_v12 = vsub.f32 0.0, %v2829_v52 }
 0x24c   : > { %v5381_v37 = vadd.f32 %v5317_v41, %v2542_v19  ;;  %v2459_v63 = vsub.f32 0.0, %v2427_v29  ;;  %v2253_v61 = vadd.f32 1.4214138, %v2237_v8  ;;  %v2091_v41 = vmul.f32 0.5, %v5220_v55 }
 0x24d   : > { %v5384_v16 = vpop.eup %3732  ;;  %3738 = vrcp.f32 %v2861_v35  ;;  %v2847_v2 = vmul.f32 0.3275911, %v2831_v18  ;;  %v5394_v56 = vmul.f32 0.5, %v5275_v24  ;;  %v5398_v53 = vadd.f32 %v4960_v44, %v5885_v51 }
 0x24e   : > { %v2475_v11 = vsel %vm2443_vm13, %v2427_v29, %v2459_v63  ;;  %v2269_v54 = vmul.f32 %v5357_v5, %v2253_v61  ;;  %v2204_v1 = vmul.f32 1.0614054, %v5384_v16  ;;  %v2393_v4 = vmul.f32 1.442695, %v2364_v26 }
 0x24f   : > { %v2491_v25 = vadd.f32 1.0, %v2475_v11  ;;  %v2863_v10 = vadd.f32 1.0, %v2847_v2  ;;  %v5401_v40 = vmul.f32 0.70710677, %v5388_v48  ;;  %v2397_v24 = vmul.f32 1.442695, %v2366_v23 }
 0x250   : > { %v2285_v50 = vadd.f32 -0.28449672, %v2269_v54  ;;  %v2220_v58 = vadd.f32 -1.4531521, %v2204_v1  ;;  %v5408_v47 = vmul.f32 0.70710677, %v5398_v53  ;;  %v3069_v44 = vmul.f32 %v3053_v12, %v2829_v52 }
 0x251   : > { %v2507_v59 = vmul.f32 %v2491_v25, %v2091_v41  ;;  %3740 = vrcp.f32 %v2863_v10  ;;  %v5412_v51 = vand.u32 2147483647, %v5401_v40  ;;  %v5415_v62 = vmul.f32 0.5, %v5315_v43 }
 0x252   : > { %v2301_v55 = vmul.f32 %v5357_v5, %v2285_v50  ;;  %v2236_v38 = vmul.f32 %v5384_v16, %v2220_v58  ;;  %v5418_v60 = vmul.f32 0.5, %v5344_v30  ;;  %vm2445_vm14 = vcmp.ge.f32.partialorder %v5293_v17, 0.0  ;;  %v5886_v58 = vld [vmem:[#allocation18_spill] sm:$0xff] }
 0x253   : > { %v2543_v46 = vmul.f32 %v5403_v6, %v2507_v59  ;;  %3742 = vpow2.f32 %v2393_v4  ;;  %v3055_v52 = vsub.f32 0.0, %v2831_v18  ;;  %v2846_v20 = vmul.f32 0.3275911, %v5412_v51 }
 0x254   : > { %v2317_v21 = vadd.f32 0.2548296, %v2301_v55  ;;  %v2252_v14 = vadd.f32 1.4214138, %v2236_v38  ;;  %v5420_v49 = vpop.eup %3734  ;;  %v5429_v19 = vand.u32 2147483647, %v5408_v47  ;;  %3744 = vpow2.f32 %v2397_v24 }
 0x255   : > { %v2549_v45 = vadd.f32 %v5336_v7, %v2543_v46  ;;  %v2206_v43 = vmul.f32 1.0614054, %v5420_v49  ;;  %v3737_v30 = vpop.eup %3736  ;;  %v3085_v8 = vmul.f32 1.442695, %v3069_v44  ;;  %v2862_v7 = vadd.f32 1.0, %v2846_v20 }
 0x256   : > { %v2333_v0 = vmul.f32 %v5357_v5, %v2317_v21  ;;  %v2268_v34 = vmul.f32 %v5384_v16, %v2252_v14  ;;  %v2848_v23 = vmul.f32 0.3275911, %v5429_v19  ;;  %v3071_v54 = vmul.f32 %v3055_v52, %v2831_v18 }
 0x257   : > { %v2550_v29 = vrot.slane %v2549_v45, 4  ;;  %v5431_v35 = vpop.eup %3738  ;;  %v2222_v26 = vadd.f32 -1.4531521, %v2206_v43  ;;  %3746 = vrcp.f32 %v2862_v7  ;;  %v5439_v59 = vadd.f32 %v4981_v57, %v5886_v58 }
 0x258   : > { %v2413_v63 = vmul.f32 %v3737_v30, %v2333_v0  ;;  %v2284_v61 = vadd.f32 -0.28449672, %v2268_v34  ;;  %v2909_v11 = vmul.f32 1.0614054, %v5431_v35  ;;  %v2864_v12 = vadd.f32 1.0, %v2848_v23 }
 0x259   : > { %v2551_v5 = vadd.f32 %v2550_v29, %v2549_v45  ;;  %v2238_v25 = vmul.f32 %v5420_v49, %v2222_v26  ;;  %3748 = vpow2.f32 %v3085_v8  ;;  %vm2444_vm15 = vcmp.ge.f32.partialorder %v5328_v39, 0.0 }
 0x25a   : > { %v2429_v1 = vsub.f32 1.0, %v2413_v63  ;;  %v2300_v41 = vmul.f32 %v5384_v16, %v2284_v61  ;;  %v2925_v50 = vadd.f32 -1.4531521, %v2909_v11  ;;  %3750 = vrcp.f32 %v2864_v12 }
 0x25b   : > { %v2552_v2 = vrot.slane %v2551_v5, 2  ;;  %v2254_v55 = vadd.f32 1.4214138, %v2238_v25  ;;  %v5441_v38 = vpop.eup %3740  ;;  %v3089_v46 = vmul.f32 1.442695, %v3071_v54  ;;  %v3054_v44 = vsub.f32 0.0, %v5412_v51 }
 0x25c   : > { %v2461_v4 = vsub.f32 0.0, %v2429_v1  ;;  %v2316_v10 = vadd.f32 0.2548296, %v2300_v41  ;;  %v2941_v24 = vmul.f32 %v5431_v35, %v2925_v50  ;;  %v2911_v45 = vmul.f32 1.0614054, %v5441_v38 }
 0x25d   : > { %v2553_v18 = vadd.f32 %v2552_v2, %v2551_v5  ;;  %v2270_v14 = vmul.f32 %v5420_v49, %v2254_v55  ;;  %v3743_v52 = vpop.eup %3742  ;;  %v3056_v43 = vsub.f32 0.0, %v5429_v19  ;;  %v5453_v7 = vmul.f32 0.70710677, %v5439_v59 }
 0x25e   : > { %v2477_v21 = vsel %vm2445_vm14, %v2429_v1, %v2461_v4  ;;  %v2332_v57 = vmul.f32 %v5384_v16, %v2316_v10  ;;  %v2957_v34 = vadd.f32 1.4214138, %v2941_v24  ;;  %v2927_v8 = vadd.f32 -1.4531521, %v2911_v45  ;;  %v3745_v17 = vpop.eup %3744 }
 0x25f   : > { %v2554_v20 = vrot.slane %v2553_v18, 1  ;;  %v2493_v0 = vadd.f32 1.0, %v2477_v21  ;;  %v2286_v29 = vadd.f32 -0.28449672, %v2270_v14  ;;  %v3070_v26 = vmul.f32 %v3054_v44, %v5412_v51 }
 0x260   : > { %v2412_v30 = vmul.f32 %v3743_v52, %v2332_v57  ;;  %v2973_v61 = vmul.f32 %v5431_v35, %v2957_v34  ;;  %v2943_v11 = vmul.f32 %v5441_v38, %v2927_v8  ;;  %v5461_v54 = vand.u32 2147483647, %v5453_v7 }
 0x261   : > { %v2555_v63 = vadd.f32 %v2554_v20, %v2553_v18  ;;  %v2509_v16 = vmul.f32 %v2493_v0, %v5394_v56  ;;  %v2302_v5 = vmul.f32 %v5420_v49, %v2286_v29  ;;  %v5463_v1 = vpop.eup %3746  ;;  %3752 = vpow2.f32 %v3089_v46 }
 0x262   : > { %v2428_v23 = vsub.f32 1.0, %v2412_v30  ;;  %v2989_v56 = vadd.f32 -0.28449672, %v2973_v61  ;;  %v2959_v51 = vadd.f32 1.4214138, %v2943_v11  ;;  %v3072_v50 = vmul.f32 %v3056_v43, %v5429_v19 }
 0x263   : > { %v5466_v41 = vadd.f32 %v2555_v63, %v5069_v27  ;;  %v2545_v25 = vmul.f32 %v5403_v6, %v2509_v16  ;;  %v2318_v2 = vadd.f32 0.2548296, %v2302_v5  ;;  %v3749_v4 = vpop.eup %3748  ;;  %v2910_v18 = vmul.f32 1.0614054, %v5463_v1 }
 0x264   : > { %v2460_v12 = vsub.f32 0.0, %v2428_v23  ;;  %v3005_v55 = vmul.f32 %v5431_v35, %v2989_v56  ;;  %v2849_v24 = vmul.f32 0.3275911, %v5461_v54  ;;  %v5474_v27 = vpop.eup %3750  ;;  %v2975_v21 = vmul.f32 %v5441_v38, %v2959_v51 }
 0x265   : > { %v2567_v10 = vadd.f32 %v5339_v42, %v2545_v25  ;;  %v2334_v46 = vmul.f32 %v5420_v49, %v2318_v2  ;;  %v3087_v57 = vmul.f32 1.442695, %v3070_v26  ;;  %v2926_v42 = vadd.f32 -1.4531521, %v2910_v18 }
 0x266   : > { %v2476_v44 = vsel %vm2444_vm15, %v2428_v23, %v2460_v12  ;;  %v3021_v45 = vadd.f32 0.2548296, %v3005_v55  ;;  %v2991_v20 = vadd.f32 -0.28449672, %v2975_v21  ;;  %v2912_v0 = vmul.f32 1.0614054, %v5474_v27 }
 0x267   : > { %v2568_v19 = vrot.slane %v2567_v10, 4  ;;  %v2492_v14 = vadd.f32 1.0, %v2476_v44  ;;  %v2414_v52 = vmul.f32 %v3745_v17, %v2334_v46  ;;  %v2865_v34 = vadd.f32 1.0, %v2849_v24 }
 0x268   : > { %v2942_v39 = vmul.f32 %v5463_v1, %v2926_v42  ;;  %v3091_v29 = vmul.f32 1.442695, %v3072_v50  ;;  %v3007_v49 = vmul.f32 %v5441_v38, %v2991_v20  ;;  %v2928_v63 = vadd.f32 -1.4531521, %v2912_v0  ;;  %v5887_v42 = vld [vmem:[#allocation12_spill] sm:$0xff] }
 0x269   : > { %v2569_v43 = vadd.f32 %v2568_v19, %v2567_v10  ;;  %v2508_v30 = vmul.f32 %v2492_v14, %v5415_v62  ;;  %v2430_v8 = vsub.f32 1.0, %v2414_v52  ;;  %3754 = vrcp.f32 %v2865_v34 }
 0x26a   : > { %vm2446_vm0 = vcmp.ge.f32.partialorder %v5352_v13, 0.0  ;;  %v2958_v17 = vadd.f32 1.4214138, %v2942_v39  ;;  %v3037_v23 = vmul.f32 %v5431_v35, %v3021_v45  ;;  %v3023_v5 = vadd.f32 0.2548296, %v3007_v49 }
 0x26b   : > { %v2570_v16 = vrot.slane %v2569_v43, 2  ;;  %v2544_v61 = vmul.f32 %v5403_v6, %v2508_v30  ;;  %v2462_v26 = vsub.f32 0.0, %v2430_v8  ;;  %v2944_v62 = vmul.f32 %v5474_v27, %v2928_v63  ;;  %v3753_v11 = vpop.eup %3752 }
 0x26c   : > { %v2974_v12 = vmul.f32 %v5463_v1, %v2958_v17  ;;  %3756 = vpow2.f32 %v3087_v57  ;;  %v3039_v51 = vmul.f32 %v5441_v38, %v3023_v5  ;;  %v3057_v35 = vsub.f32 0.0, %v5461_v54 }
 0x26d   : > { %v2571_v25 = vadd.f32 %v2570_v16, %v2569_v43  ;;  %v2558_v56 = vadd.f32 %v5360_v3, %v2544_v61  ;;  %v2478_v2 = vsel %vm2446_vm0, %v2430_v8, %v2462_v26  ;;  %v2960_v50 = vadd.f32 1.4214138, %v2944_v62 }
 0x26e   : > { %3758 = vpow2.f32 %v3091_v29  ;;  %v2494_v55 = vadd.f32 1.0, %v2478_v2  ;;  %v3117_v18 = vmul.f32 %v3749_v4, %v3037_v23  ;;  %v2990_v24 = vadd.f32 -0.28449672, %v2974_v12 }
 0x26f   : > { %v2572_v13 = vrot.slane %v2571_v25, 1  ;;  %v2559_v10 = vrot.slane %v2558_v56, 4  ;;  %v2976_v44 = vmul.f32 %v5474_v27, %v2960_v50  ;;  %v5496_v57 = vadd.f32 %v5028_v28, %v5886_v58  ;;  %v5888_v50 = vld [vmem:[#allocation13_spill] sm:$0xff] }
 0x270   : > { %v2510_v3 = vmul.f32 %v2494_v55, %v5418_v60  ;;  %v5499_v38 = vmul.f32 0.5, %v5348_v9  ;;  %v3119_v19 = vmul.f32 %v3753_v11, %v3039_v51  ;;  %v3006_v14 = vmul.f32 %v5463_v1, %v2990_v24 }
 0x271   : > { %v2573_v46 = vadd.f32 %v2572_v13, %v2571_v25  ;;  %v2560_v21 = vadd.f32 %v2559_v10, %v2558_v56  ;;  %v2992_v45 = vadd.f32 -0.28449672, %v2976_v44  ;;  %v3073_v0 = vmul.f32 %v3057_v35, %v5461_v54 }
 0x272   : > { %v2546_v20 = vmul.f32 %v5403_v6, %v2510_v3  ;;  %v3133_v34 = vsub.f32 1.0, %v3117_v18  ;;  %vm3149_vm1 = vcmp.ge.f32.partialorder %v5364_v32, 0.0  ;;  %v3022_v28 = vadd.f32 0.2548296, %v3006_v14  ;;  %v5890_v32 = vld [vmem:[#allocation15_spill] sm:$0xff] }
 0x273   : > { %v5503_v4 = vadd.f32 %v2573_v46, %v5887_v42  ;;  %v2561_v52 = vrot.slane %v2560_v21, 2  ;;  %v5507_v60 = vpop.eup %3754  ;;  %v3008_v9 = vmul.f32 %v5474_v27, %v2992_v45  ;;  %v5514_v29 = vmul.f32 0.70710677, %v5496_v57 }
 0x274   : > { %v2576_v30 = vadd.f32 %v5381_v37, %v2546_v20  ;;  %v2913_v39 = vmul.f32 1.0614054, %v5507_v60  ;;  %v5517_v6 = vmul.f32 0.5, %v5370_v15  ;;  %v3135_v54 = vsub.f32 1.0, %v3119_v19 }
 0x275   : > { %v2562_v43 = vadd.f32 %v2561_v52, %v2560_v21  ;;  %v3038_v8 = vmul.f32 %v5463_v1, %v3022_v28  ;;  %v3024_v49 = vadd.f32 0.2548296, %v3008_v9  ;;  %v3093_v26 = vmul.f32 1.442695, %v3073_v0  ;;  %v5889_v21 = vld [vmem:[#allocation11_spill] sm:$0xff] }
 0x276   : > { %v3757_v63 = vpop.eup %3756  ;;  %v2577_v61 = vrot.slane %v2576_v30, 4  ;;  %v2929_v17 = vadd.f32 -1.4531521, %v2913_v39  ;;  %v3165_v5 = vsub.f32 0.0, %v3133_v34  ;;  %v2835_v11 = vand.u32 2147483647, %v5514_v29 }
 0x277   : > { %v2563_v16 = vrot.slane %v2562_v43, 1  ;;  %v3118_v37 = vmul.f32 %v3757_v63, %v3038_v8  ;;  %v3040_v62 = vmul.f32 %v5474_v27, %v3024_v49  ;;  %vm3151_vm2 = vcmp.ge.f32.partialorder %v5375_v22, 0.0  ;;  %v5893_v49 = vld [vmem:[#allocation20_spill] sm:$0xff] }
 0x278   : > { %v3759_v23 = vpop.eup %3758  ;;  %v2578_v56 = vadd.f32 %v2577_v61, %v2576_v30  ;;  %v2945_v15 = vmul.f32 %v5507_v60, %v2929_v17  ;;  %v3167_v1 = vsub.f32 0.0, %v3135_v54  ;;  %v5525_v12 = vmul.f32 0.5, %v5388_v48 }
 0x279   : > { %v2564_v25 = vadd.f32 %v2563_v16, %v2562_v43  ;;  %v3120_v2 = vmul.f32 %v3759_v23, %v3040_v62  ;;  %v2851_v51 = vmul.f32 0.3275911, %v2835_v11  ;;  %v3134_v55 = vsub.f32 1.0, %v3118_v37 }
 0x27a   : > { %v2579_v10 = vrot.slane %v2578_v56, 2  ;;  %v2961_v27 = vadd.f32 1.4214138, %v2945_v15  ;;  %v3181_v35 = vsel %vm3149_vm1, %v3133_v34, %v3165_v5  ;;  %v5533_v18 = vmul.f32 0.5, %v5398_v53 }
 0x27b   : > { %v5528_v13 = vadd.f32 %v2564_v25, %v5888_v50  ;;  %3760 = vpow2.f32 %v3093_v26  ;;  %v2867_v24 = vadd.f32 1.0, %v2851_v51  ;;  %v3136_v46 = vsub.f32 1.0, %v3120_v2 }
 0x27c   : > { %v2580_v44 = vadd.f32 %v2579_v10, %v2578_v56  ;;  %v2977_v48 = vmul.f32 %v5507_v60, %v2961_v27  ;;  %v2694_v3 = vadd.f32 %v5889_v21, %v5886_v58  ;;  %v3183_v19 = vsel %vm3151_vm2, %v3135_v54, %v3167_v1  ;;  %v5891_v54 = vld [vmem:[#allocation21_spill] sm:$0xff]  ;;  %v5894_v10 = vld [vmem:[#allocation10_spill] sm:$0xff] }
 0x27d   : > { %3762 = vrcp.f32 %v2867_v24  ;;  %v3059_v14 = vsub.f32 0.0, %v2835_v11  ;;  %v5542_v45 = vadd.f32 %v5890_v32, %v5886_v58  ;;  %v3197_v42 = vadd.f32 1.0, %v3181_v35 }
 0x27e   : > { %v2581_v53 = vrot.slane %v2580_v44, 1  ;;  %v3166_v52 = vsub.f32 0.0, %v3134_v55  ;;  %v2993_v20 = vadd.f32 -0.28449672, %v2977_v48  ;;  %vm3150_vm3 = vcmp.ge.f32.partialorder %v5401_v40, 0.0  ;;  %v5892_v40 = vld [vmem:[#allocation17_spill] sm:$0xff] }
 0x27f   : > { %vm3152_vm4 = vcmp.ge.f32.partialorder %v5408_v47, 0.0  ;;  %v5547_v0 = vmul.f32 0.5, %v5439_v59  ;;  %v5549_v34 = vmul.f32 0.70710677, %v2694_v3  ;;  %v3199_v28 = vadd.f32 1.0, %v3183_v19 }
 0x280   : > { %v2582_v22 = vadd.f32 %v2581_v53, %v2580_v44  ;;  %v3168_v9 = vsub.f32 0.0, %v3136_v46  ;;  %v3009_v43 = vmul.f32 %v5507_v60, %v2993_v20  ;;  %v3075_v58 = vmul.f32 %v3059_v14, %v2835_v11 }
 0x281   : > { %v2834_v30 = vand.u32 2147483647, %v5549_v34  ;;  %v5554_v39 = vmul.f32 0.70710677, %v5542_v45  ;;  %v2698_v8 = vadd.f32 %v5892_v40, %v5891_v54  ;;  %v3213_v59 = vmul.f32 %v3197_v42, %v5499_v38 }
 0x282   : > { %v5559_v63 = vadd.f32 %v2582_v22, %v5893_v49  ;;  %v3182_v16 = vsel %vm3150_vm3, %v3134_v55, %v3166_v52  ;;  %v3025_v61 = vadd.f32 0.2548296, %v3009_v43  ;;  %vm3153_vm5 = vcmp.ge.f32.partialorder %v5453_v7, 0.0 }
 0x283   : > { %v5564_v17 = vmul.f32 0.5, %v5496_v57  ;;  %v2850_v26 = vmul.f32 0.3275911, %v2834_v30  ;;  %v3058_v23 = vsub.f32 0.0, %v2834_v30  ;;  %v2836_v5 = vand.u32 2147483647, %v5554_v39 }
 0x284   : > { %v3215_v37 = vmul.f32 %v3199_v28, %v5517_v6  ;;  %v3184_v62 = vsel %vm3152_vm4, %v3136_v46, %v3168_v9  ;;  %v3041_v11 = vmul.f32 %v5507_v60, %v3025_v61  ;;  %v5571_v25 = vmul.f32 0.70710677, %v2698_v8 }
 0x285   : > { %v3761_v38 = vpop.eup %3760  ;;  %v3198_v56 = vadd.f32 1.0, %v3182_v16  ;;  %v3097_v15 = vmul.f32 1.442695, %v3075_v58  ;;  %v2866_v1 = vadd.f32 1.0, %v2850_v26  ;;  %v2852_v2 = vmul.f32 0.3275911, %v2836_v5 }
 0x286   : > { %v3249_v57 = vmul.f32 %v5378_v31, %v3213_v59  ;;  %v3121_v51 = vmul.f32 %v3761_v38, %v3041_v11  ;;  %v2837_v50 = vand.u32 2147483647, %v5571_v25  ;;  %v2787_v6 = vadd.f32 %v5894_v10, %v5891_v54  ;;  %v5896_v59 = vld [vmem:[#allocation3_spill] sm:$0xff] }
 0x287   : > { %v5577_v55 = vpop.eup %3762  ;;  %v3200_v47 = vadd.f32 1.0, %v3184_v62  ;;  %3764 = vrcp.f32 %v2866_v1  ;;  %v3074_v60 = vmul.f32 %v3058_v23, %v2834_v30  ;;  %v2868_v27 = vadd.f32 1.0, %v2852_v2  ;;  %v5614_v62 = vpop.permute.xlu0 %3236 }
 0x288   : > { %v5580_v35 = vmul.f32 %v5378_v31, %v3215_v37  ;;  %v3137_v24 = vsub.f32 1.0, %v3121_v51  ;;  %v2915_v44 = vmul.f32 1.0614054, %v5577_v55  ;;  %v2853_v46 = vmul.f32 0.3275911, %v2837_v50 }
 0x289   : > { %v3214_v48 = vmul.f32 %v3198_v56, %v5525_v12  ;;  %3766 = vpow2.f32 %v3097_v15  ;;  %v5584_v21 = vmul.f32 0.5, %v2694_v3  ;;  %v5586_v19 = vmul.f32 0.70710677, %v2787_v6  ;;  %v5895_v3 = vld [vmem:[#allocation14_spill] sm:$0xff] }
 0x28a   : > { %v3169_v14 = vsub.f32 0.0, %v3137_v24  ;;  %v2931_v32 = vadd.f32 -1.4531521, %v2915_v44  ;;  %3768 = vrcp.f32 %v2868_v27  ;;  %v2869_v53 = vadd.f32 1.0, %v2853_v46 }
 0x28b   : > { %v3216_v42 = vmul.f32 %v3200_v47, %v5533_v18  ;;  %v3095_v52 = vmul.f32 1.442695, %v3074_v60  ;;  %v3060_v20 = vsub.f32 0.0, %v2836_v5  ;;  %v2839_v22 = vand.u32 2147483647, %v5586_v19 }
 0x28c   : > { %v3185_v28 = vsel %vm3153_vm5, %v3137_v24, %v3169_v14  ;;  %v2947_v12 = vmul.f32 %v5577_v55, %v2931_v32  ;;  %3770 = vrcp.f32 %v2869_v53  ;;  %v5595_v9 = vadd.f32 %v5895_v3, %v5891_v54  ;;  %v5898_v14 = vld [vmem:[#allocation4_spill] sm:$0xff] }
 0x28d   : > { %v5598_v43 = vmul.f32 %v5378_v31, %v3214_v48  ;;  %v3201_v58 = vadd.f32 1.0, %v3185_v28  ;;  %v5601_v18 = vmul.f32 0.5, %v5542_v45  ;;  %v2855_v30 = vmul.f32 0.3275911, %v2839_v22  ;;  %v5897_v48 = vld [vmem:[#allocation23_spill] sm:$0xff] }
 0x28e   : > { %v2963_v40 = vadd.f32 1.4214138, %v2947_v12  ;;  %v3061_v49 = vsub.f32 0.0, %v2837_v50  ;;  %v5604_v7 = vmul.f32 0.70710677, %v5595_v9  ;;  %v5608_v16 = vadd.f32 %v5896_v59, %v5891_v54 }
 0x28f   : > { %v5611_v61 = vmul.f32 %v5378_v31, %v3216_v42  ;;  %v3217_v26 = vmul.f32 %v3201_v58, %v5547_v0  ;;  %v3076_v23 = vmul.f32 %v3060_v20, %v2836_v5  ;;  %v2871_v37 = vadd.f32 1.0, %v2855_v30 }
 0x290   : > { %v2979_v45 = vmul.f32 %v5577_v55, %v2963_v40  ;;  %3772 = vpow2.f32 %v3095_v52  ;;  %v5617_v11 = vmul.f32 0.5, %v2698_v8  ;;  %v2838_v38 = vand.u32 2147483647, %v5604_v7 }
 0x291   : > { %v5620_v56 = vpop.eup %3764  ;;  %v3253_v54 = vmul.f32 %v5614_v62, %v3217_v26  ;;  %3774 = vrcp.f32 %v2871_v37  ;;  %v3063_v31 = vsub.f32 0.0, %v2839_v22  ;;  %v5624_v15 = vmul.f32 0.70710677, %v5608_v16 }
 0x292   : > { %v2995_v0 = vadd.f32 -0.28449672, %v2979_v45  ;;  %v2914_v5 = vmul.f32 1.0614054, %v5620_v56  ;;  %v3077_v1 = vmul.f32 %v3061_v49, %v2837_v50  ;;  %v2854_v2 = vmul.f32 0.3275911, %v2838_v38 }
 0x293   : > { %v3767_v51 = vpop.eup %3766  ;;  %v5627_v10 = vadd.f32 %v3253_v54, %v3249_v57  ;;  %v3099_v8 = vmul.f32 1.442695, %v3076_v23  ;;  %v3062_v47 = vsub.f32 0.0, %v2838_v38  ;;  %v2840_v60 = vand.u32 2147483647, %v5624_v15 }
 0x294   : > { %v5630_v27 = vpop.eup %3768  ;;  %v3011_v24 = vmul.f32 %v5577_v55, %v2995_v0  ;;  %v2930_v44 = vadd.f32 -1.4531521, %v2914_v5  ;;  %v2870_v46 = vadd.f32 1.0, %v2854_v2  ;;  %v5635_v32 = vadd.f32 %v5898_v14, %v5897_v48 }
 0x295   : > { %v2916_v50 = vmul.f32 1.0614054, %v5630_v27  ;;  %v5638_v53 = vmul.f32 0.5, %v2787_v6  ;;  %v3079_v57 = vmul.f32 %v3063_v31, %v2839_v22  ;;  %v2856_v42 = vmul.f32 0.3275911, %v2840_v60 }
 0x296   : > { %v5640_v52 = vpop.eup %3770  ;;  %v3027_v20 = vadd.f32 0.2548296, %v3011_v24  ;;  %v2946_v28 = vmul.f32 %v5620_v56, %v2930_v44  ;;  %v3101_v12 = vmul.f32 1.442695, %v3077_v1  ;;  %3776 = vrcp.f32 %v2870_v46 }
 0x297   : > { %vm3155_vm6 = vcmp.ge.f32.partialorder %v5514_v29, 0.0  ;;  %v2932_v3 = vadd.f32 -1.4531521, %v2916_v50  ;;  %v2917_v58 = vmul.f32 1.0614054, %v5640_v52  ;;  %v3078_v30 = vmul.f32 %v3062_v47, %v2838_v38 }
 0x298   : > { %v3064_v40 = vsub.f32 0.0, %v2840_v60  ;;  %v3043_v49 = vmul.f32 %v5577_v55, %v3027_v20  ;;  %v2962_v6 = vadd.f32 1.4214138, %v2946_v28  ;;  %v2872_v59 = vadd.f32 1.0, %v2856_v42  ;;  %v5899_v42 = vld [vmem:[#allocation5_spill] sm:$0xff] }
 0x299   : > { %v5647_v22 = vmul.f32 0.70710677, %v5635_v32  ;;  %v2948_v26 = vmul.f32 %v5630_v27, %v2932_v3  ;;  %3778 = vpow2.f32 %v3099_v8  ;;  %v2933_v23 = vadd.f32 -1.4531521, %v2917_v58 }
 0x29a   : > { %v3105_v37 = vmul.f32 1.442695, %v3079_v57  ;;  %v3773_v45 = vpop.eup %3772  ;;  %v3123_v54 = vmul.f32 %v3767_v51, %v3043_v49  ;;  %v2978_v31 = vmul.f32 %v5620_v56, %v2962_v6  ;;  %3780 = vrcp.f32 %v2872_v59 }
 0x29b   : > { %v5652_v38 = vand.u32 2147483647, %v5647_v22  ;;  %v5654_v0 = vpop.eup %3774  ;;  %v2964_v55 = vadd.f32 1.4214138, %v2948_v26  ;;  %v2949_v5 = vmul.f32 %v5640_v52, %v2933_v23  ;;  %3782 = vpow2.f32 %v3101_v12 }
 0x29c   : > { %v3103_v1 = vmul.f32 1.442695, %v3078_v30  ;;  %v3139_v2 = vsub.f32 1.0, %v3123_v54  ;;  %v2994_v47 = vadd.f32 -0.28449672, %v2978_v31  ;;  %v3080_v24 = vmul.f32 %v3064_v40, %v2840_v60 }
 0x29d   : > { %v2919_v8 = vmul.f32 1.0614054, %v5654_v0  ;;  %v2980_v51 = vmul.f32 %v5630_v27, %v2964_v55  ;;  %v2965_v44 = vadd.f32 1.4214138, %v2949_v5  ;;  %3784 = vpow2.f32 %v3105_v37 }
 0x29e   : > { %v2857_v46 = vmul.f32 0.3275911, %v5652_v38  ;;  %v3171_v14 = vsub.f32 0.0, %v3139_v2  ;;  %v3010_v50 = vmul.f32 %v5620_v56, %v2994_v47  ;;  %v5663_v20 = vadd.f32 %v5899_v42, %v5897_v48 }
 0x29f   : > { %v2935_v57 = vadd.f32 -1.4531521, %v2919_v8  ;;  %v2996_v28 = vadd.f32 -0.28449672, %v2980_v51  ;;  %v2981_v12 = vmul.f32 %v5640_v52, %v2965_v44  ;;  %3786 = vpow2.f32 %v3103_v1 }
 0x2a0   : > { %v2873_v3 = vadd.f32 1.0, %v2857_v46  ;;  %v5666_v60 = vpop.eup %3776  ;;  %v3187_v58 = vsel %vm3155_vm6, %v3139_v2, %v3171_v14  ;;  %v3026_v30 = vadd.f32 0.2548296, %v3010_v50  ;;  %v3107_v49 = vmul.f32 1.442695, %v3080_v24 }
 0x2a1   : > { %v2951_v40 = vmul.f32 %v5654_v0, %v2935_v57  ;;  %v3203_v6 = vadd.f32 1.0, %v3187_v58  ;;  %vm3154_vm7 = vcmp.ge.f32.partialorder %v5549_v34, 0.0  ;;  %v3012_v59 = vmul.f32 %v5630_v27, %v2996_v28 }
 0x2a2   : > { %v2997_v26 = vadd.f32 -0.28449672, %v2981_v12  ;;  %v2918_v23 = vmul.f32 1.0614054, %v5666_v60  ;;  %v3042_v37 = vmul.f32 %v5620_v56, %v3026_v30  ;;  %3788 = vrcp.f32 %v2873_v3 }
 0x2a3   : > { %v2967_v54 = vadd.f32 1.4214138, %v2951_v40  ;;  %v5676_v31 = vmul.f32 0.70710677, %v5663_v20  ;;  %v3779_v29 = vpop.eup %3778  ;;  %v3219_v55 = vmul.f32 %v3203_v6, %v5564_v17  ;;  %v3028_v5 = vadd.f32 0.2548296, %v3012_v59 }
 0x2a4   : > { %v3013_v1 = vmul.f32 %v5640_v52, %v2997_v26  ;;  %v2934_v2 = vadd.f32 -1.4531521, %v2918_v23  ;;  %v5680_v47 = vpop.eup %3780  ;;  %v3122_v8 = vmul.f32 %v3773_v45, %v3042_v37  ;;  %vm3156_vm8 = vcmp.ge.f32.partialorder %v5554_v39, 0.0 }
 0x2a5   : > { %v2983_v24 = vmul.f32 %v5654_v0, %v2967_v54  ;;  %v3065_v56 = vsub.f32 0.0, %v5652_v38  ;;  %v2843_v51 = vand.u32 2147483647, %v5676_v31  ;;  %v3783_v44 = vpop.eup %3782  ;;  %v3255_v46 = vmul.f32 %v5614_v62, %v3219_v55 }
 0x2a6   : > { %v3044_v17 = vmul.f32 %v5630_v27, %v3028_v5  ;;  %v3029_v14 = vadd.f32 0.2548296, %v3013_v1  ;;  %v2950_v50 = vmul.f32 %v5666_v60, %v2934_v2  ;;  %v3138_v57 = vsub.f32 1.0, %v3122_v8 }
 0x2a7   : > { %vm3157_vm9 = vcmp.ge.f32.partialorder %v5571_v25, 0.0  ;;  %v2999_v45 = vadd.f32 -0.28449672, %v2983_v24  ;;  %v2920_v42 = vmul.f32 1.0614054, %v5680_v47  ;;  %3790 = vpow2.f32 %v3107_v49  ;;  %v3785_v28 = vpop.eup %3784 }
 0x2a8   : > { %v5692_v12 = vadd.f32 %v3255_v46, %v5580_v35  ;;  %v3124_v3 = vmul.f32 %v3779_v29, %v3044_v17  ;;  %v3045_v58 = vmul.f32 %v5640_v52, %v3029_v14  ;;  %v2966_v30 = vadd.f32 1.4214138, %v2950_v50 }
 0x2a9   : > { %v3170_v40 = vsub.f32 0.0, %v3138_v57  ;;  %v3015_v27 = vmul.f32 %v5654_v0, %v2999_v45  ;;  %v2936_v6 = vadd.f32 -1.4531521, %v2920_v42  ;;  %v2859_v59 = vmul.f32 0.3275911, %v2843_v51  ;;  %v3787_v26 = vpop.eup %3786 }
 0x2aa   : > { %v3140_v23 = vsub.f32 1.0, %v3124_v3  ;;  %v3125_v37 = vmul.f32 %v3783_v44, %v3045_v58  ;;  %v2982_v54 = vmul.f32 %v5666_v60, %v2966_v30  ;;  %v3081_v49 = vmul.f32 %v3065_v56, %v5652_v38 }
 0x2ab   : > { %v3186_v35 = vsel %vm3154_vm7, %v3138_v57, %v3170_v40  ;;  %v3031_v55 = vadd.f32 0.2548296, %v3015_v27  ;;  %v2952_v29 = vmul.f32 %v5680_v47, %v2936_v6  ;;  %v2875_v52 = vadd.f32 1.0, %v2859_v59 }
 0x2ac   : > { %v3202_v5 = vadd.f32 1.0, %v3186_v35  ;;  %v3172_v1 = vsub.f32 0.0, %v3140_v23  ;;  %v3141_v2 = vsub.f32 1.0, %v3125_v37  ;;  %vm3159_vm10 = vcmp.ge.f32.partialorder %v5586_v19, 0.0  ;;  %v5702_v24 = vpop.eup %3788 }
 0x2ad   : > { %v2998_v8 = vadd.f32 -0.28449672, %v2982_v54  ;;  %v3047_v44 = vmul.f32 %v5654_v0, %v3031_v55  ;;  %v2968_v46 = vadd.f32 1.4214138, %v2952_v29  ;;  %3792 = vrcp.f32 %v2875_v52  ;;  %v3242_v55 = vpop.permute.xlu0 %3241 }
 0x2ae   : > { %v3067_v38 = vsub.f32 0.0, %v2843_v51  ;;  %v3218_v34 = vmul.f32 %v3202_v5, %v5584_v21  ;;  %v3188_v56 = vsel %vm3156_vm8, %v3140_v23, %v3172_v1  ;;  %v3173_v17 = vsub.f32 0.0, %v3141_v2 }
 0x2af   : > { %v3014_v14 = vmul.f32 %v5666_v60, %v2998_v8  ;;  %v3204_v50 = vadd.f32 1.0, %v3188_v56  ;;  %v3127_v57 = vmul.f32 %v3785_v28, %v3047_v44  ;;  %v2984_v45 = vmul.f32 %v5680_v47, %v2968_v46 }
 0x2b0   : > { %v2921_v42 = vmul.f32 1.0614054, %v5702_v24  ;;  %v3254_v3 = vmul.f32 %v5614_v62, %v3218_v34  ;;  %v3189_v0 = vsel %vm3157_vm9, %v3141_v2, %v3173_v17  ;;  %v3109_v30 = vmul.f32 1.442695, %v3081_v49 }
 0x2b1   : > { %v3030_v58 = vadd.f32 0.2548296, %v3014_v14  ;;  %v3791_v21 = vpop.eup %3790  ;;  %v3220_v39 = vmul.f32 %v3204_v50, %v5601_v18  ;;  %v3205_v40 = vadd.f32 1.0, %v3189_v0  ;;  %v3143_v27 = vsub.f32 1.0, %v3127_v57 }
 0x2b2   : > { %v3000_v6 = vadd.f32 -0.28449672, %v2984_v45  ;;  %v5716_v59 = vadd.f32 %v3254_v3, %v5598_v43  ;;  %v2937_v23 = vadd.f32 -1.4531521, %v2921_v42  ;;  %v3083_v37 = vmul.f32 %v3067_v38, %v2843_v51 }
 0x2b3   : > { %v3046_v28 = vmul.f32 %v5666_v60, %v3030_v58  ;;  %v3256_v54 = vmul.f32 %v5614_v62, %v3220_v39  ;;  %v3221_v25 = vmul.f32 %v3205_v40, %v5617_v11  ;;  %v3175_v35 = vsub.f32 0.0, %v3143_v27 }
 0x2b4   : > { %v3016_v49 = vmul.f32 %v5680_v47, %v3000_v6  ;;  %v2953_v18 = vmul.f32 %v5702_v24, %v2937_v23  ;;  %v5725_v52 = vadd.f32 %v5277_v33, %v5897_v48  ;;  %v5729_v43 = vadd.f32 %v5302_v36, %v5897_v48 }
 0x2b5   : > { %v3126_v29 = vmul.f32 %v3787_v26, %v3046_v28  ;;  %v3292_v60 = vadd.f32 %v3256_v54, %v5611_v61  ;;  %v3257_v62 = vmul.f32 %v3242_v55, %v3221_v25  ;;  %v3191_v11 = vsel %vm3159_vm10, %v3143_v27, %v3175_v35 }
 0x2b6   : > { %v3032_v51 = vadd.f32 0.2548296, %v3016_v49  ;;  %v3207_v5 = vadd.f32 1.0, %v3191_v11  ;;  %vm3158_vm11 = vcmp.ge.f32.partialorder %v5604_v7, 0.0  ;;  %v2969_v26 = vadd.f32 1.4214138, %v2953_v18 }
 0x2b7   : > { %v3142_v1 = vsub.f32 1.0, %v3126_v29  ;;  %v3793_v2 = vpop.eup %3792  ;;  %v5736_v33 = vadd.f32 %v5627_v10, %v3257_v62  ;;  %3794 = vpow2.f32 %v3109_v30  ;;  %v5740_v36 = vmul.f32 0.70710677, %v5725_v52 }
 0x2b8   : > { %v3048_v8 = vmul.f32 %v5680_v47, %v3032_v51  ;;  %v3223_v61 = vmul.f32 %v3207_v5, %v5638_v53  ;;  %v2985_v48 = vmul.f32 %v5702_v24, %v2969_v26  ;;  %v2923_v44 = vmul.f32 1.0614054, %v3793_v2 }
 0x2b9   : > { %v3174_v19 = vsub.f32 0.0, %v3142_v1  ;;  %v3113_v38 = vmul.f32 1.442695, %v3083_v37  ;;  %v2842_v34 = vand.u32 2147483647, %v5740_v36  ;;  %v2806_v50 = vmul.f32 0.5, %v5595_v9 }
 0x2ba   : > { %v3128_v46 = vmul.f32 %v3791_v21, %v3048_v8  ;;  %v5746_v56 = vmul.f32 0.70710677, %v5729_v43  ;;  %v3259_v10 = vmul.f32 %v3242_v55, %v3223_v61  ;;  %v3001_v17 = vadd.f32 -0.28449672, %v2985_v48 }
 0x2bb   : > { %v3190_v47 = vsel %vm3158_vm11, %v3142_v1, %v3174_v19  ;;  %v2939_v14 = vadd.f32 -1.4531521, %v2923_v44  ;;  %v2858_v45 = vmul.f32 0.3275911, %v2842_v34  ;;  %vm3160_vm12 = vcmp.ge.f32.partialorder %v5624_v15, 0.0 }
 0x2bc   : > { %v3206_v53 = vadd.f32 1.0, %v3190_v47  ;;  %v3144_v57 = vsub.f32 1.0, %v3128_v46  ;;  %v5752_v42 = vadd.f32 %v5692_v12, %v3259_v10  ;;  %v3017_v3 = vmul.f32 %v5702_v24, %v3001_v17  ;;  %v5766_v47 = vpop.permute.xlu1 %3246 }
 0x2bd   : > { %v2955_v0 = vmul.f32 %v3793_v2, %v2939_v14  ;;  %v2844_v58 = vand.u32 2147483647, %v5746_v56  ;;  %v2874_v21 = vadd.f32 1.0, %v2858_v45  ;;  %3796 = vpow2.f32 %v3113_v38 }
 0x2be   : > { %v3222_v30 = vmul.f32 %v3206_v53, %v2806_v50  ;;  %v3176_v7 = vsub.f32 0.0, %v3144_v57  ;;  %v3033_v39 = vadd.f32 0.2548296, %v3017_v3  ;;  %v2808_v6 = vmul.f32 0.5, %v5608_v16 }
 0x2bf   : > { %v2971_v40 = vadd.f32 1.4214138, %v2955_v0  ;;  %v2860_v9 = vmul.f32 0.3275911, %v2844_v58  ;;  %3798 = vrcp.f32 %v2874_v21  ;;  %v3066_v51 = vsub.f32 0.0, %v2842_v34 }
 0x2c0   : > { %v3258_v27 = vmul.f32 %v3242_v55, %v3222_v30  ;;  %v3192_v28 = vsel %vm3160_vm12, %v3144_v57, %v3176_v7  ;;  %v3049_v23 = vmul.f32 %v5702_v24, %v3033_v39  ;;  %vm3161_vm13 = vcmp.ge.f32.partialorder %v5647_v22, 0.0 }
 0x2c1   : > { %v3208_v12 = vadd.f32 1.0, %v3192_v28  ;;  %v2987_v37 = vmul.f32 %v3793_v2, %v2971_v40  ;;  %v2876_v54 = vadd.f32 1.0, %v2860_v9  ;;  %v3795_v25 = vpop.eup %3794  ;;  %v3068_v61 = vsub.f32 0.0, %v2844_v58 }
 0x2c2   : > { %v5760_v35 = vadd.f32 %v5716_v59, %v3258_v27  ;;  %v3129_v49 = vmul.f32 %v3795_v25, %v3049_v23  ;;  %v2809_v19 = vmul.f32 0.5, %v5635_v32  ;;  %v3082_v44 = vmul.f32 %v3066_v51, %v2842_v34 }
 0x2c3   : > { %v3224_v15 = vmul.f32 %v3208_v12, %v2808_v6  ;;  %v3003_v29 = vadd.f32 -0.28449672, %v2987_v37  ;;  %3800 = vrcp.f32 %v2876_v54  ;;  %v3084_v14 = vmul.f32 %v3068_v61, %v2844_v58 }
 0x2c4   : > { %v3145_v62 = vsub.f32 1.0, %v3129_v49  ;;  %v3111_v50 = vmul.f32 1.442695, %v3082_v44  ;;  %vm3163_vm14 = vcmp.ge.f32.partialorder %v5676_v31, 0.0  ;;  %v2811_v34 = vmul.f32 0.5, %v5663_v20 }
 0x2c5   : > { %v3260_v18 = vmul.f32 %v3242_v55, %v3224_v15  ;;  %v3019_v11 = vmul.f32 %v3793_v2, %v3003_v29  ;;  %v3115_v30 = vmul.f32 1.442695, %v3084_v14  ;;  %vm3162_vm15 = vcmp.ge.f32.partialorder %v5740_v36, 0.0 }
 0x2c6   : > { %v3177_v5 = vsub.f32 0.0, %v3145_v62  ;;  %3802 = vpow2.f32 %v3111_v50  ;;  %vm3164_vm0 = vcmp.ge.f32.partialorder %v5746_v56, 0.0 }
 0x2c7   : > { %v5762_v16 = vadd.f32 %v3292_v60, %v3260_v18  ;;  %v3035_v1 = vadd.f32 0.2548296, %v3019_v11  ;;  %v3797_v24 = vpop.eup %3796  ;;  %3804 = vpow2.f32 %v3115_v30  ;;  %v3309_v30 = vpop.permute.xlu0 %3308 }
 0x2c8   : > { %v3193_v26 = vsel %vm3161_vm13, %v3145_v62, %v3177_v5 }
 0x2c9   : > { %v3051_v8 = vmul.f32 %v3793_v2, %v3035_v1  ;;  %v3799_v59 = vpop.eup %3798  ;;  %v3209_v48 = vadd.f32 1.0, %v3193_v26 }
 0x2ca   : > { %v2922_v55 = vmul.f32 1.0614054, %v3799_v59 }
 0x2cb   : > { %v3131_v46 = vmul.f32 %v3797_v24, %v3051_v8  ;;  %v3225_v38 = vmul.f32 %v3209_v48, %v2809_v19 }
 0x2cc   : > { %v2938_v17 = vadd.f32 -1.4531521, %v2922_v55 }
 0x2cd   : > { %v3801_v10 = vpop.eup %3800  ;;  %v3147_v60 = vsub.f32 1.0, %v3131_v46  ;;  %v3261_v22 = vmul.f32 %v5766_v47, %v3225_v38  ;;  %v2810_v38 = vmul.f32 0.5, %v5725_v52 }
 0x2ce   : > { %v2924_v53 = vmul.f32 1.0614054, %v3801_v10  ;;  %v2954_v57 = vmul.f32 %v3799_v59, %v2938_v17 }
 0x2cf   : > { %v3179_v2 = vsub.f32 0.0, %v3147_v60  ;;  %v3267_v45 = vadd.f32 %v5736_v33, %v3261_v22  ;;  %v2812_v22 = vmul.f32 0.5, %v5729_v43 }
 0x2d0   : > { %v2940_v32 = vadd.f32 -1.4531521, %v2924_v53  ;;  %v2970_v0 = vadd.f32 1.4214138, %v2954_v57  ;;  %v3803_v18 = vpop.eup %3802  ;;  %v3311_v53 = vlaneseq }
 0x2d1   : > { %v3195_v3 = vsel %vm3163_vm14, %v3147_v60, %v3179_v2  ;;  %v3268_v7 = vrot.slane %v3267_v45, 4  ;;  %v3805_v8 = vpop.eup %3804 }
 0x2d2   : > { %v3211_v21 = vadd.f32 1.0, %v3195_v3  ;;  %v2956_v58 = vmul.f32 %v3801_v10, %v2940_v32  ;;  %v2986_v39 = vmul.f32 %v3799_v59, %v2970_v0  ;;  %v3312_v52 = vshrl.u32 %v3311_v53, 7 }
 0x2d3   : > { %v3269_v40 = vadd.f32 %v3268_v7, %v3267_v45  ;;  %vm3364_vm1 = vcmp.lt.s32.totalorder %v3311_v53, 512 }
 0x2d4   : > { %v3227_v9 = vmul.f32 %v3211_v21, %v2811_v34  ;;  %v2972_v27 = vadd.f32 1.4214138, %v2956_v58  ;;  %v3002_v6 = vadd.f32 -0.28449672, %v2986_v39 }
 0x2d5   : > { %v3270_v28 = vrot.slane %v3269_v40, 2 }
 0x2d6   : > { %v3263_v33 = vmul.f32 %v5766_v47, %v3227_v9  ;;  %v2988_v31 = vmul.f32 %v3801_v10, %v2972_v27  ;;  %v3018_v12 = vmul.f32 %v3799_v59, %v3002_v6  ;;  %v3323_v27 = vpop.permute.xlu1 %3322 }
 0x2d7   : > { %v3271_v23 = vadd.f32 %v3270_v28, %v3269_v40  ;;  %v3832_v40 = vmov 1966171168  }
 0x2d8   : > { %v3285_v20 = vadd.f32 %v5752_v42, %v3263_v33  ;;  %v3004_v37 = vadd.f32 -0.28449672, %v2988_v31  ;;  %v3034_v54 = vadd.f32 0.2548296, %v3018_v12  ;;  %v3340_v9 = vunpack.c.l.s4 %v3832_v40 }
 0x2d9   : > { %v3272_v25 = vrot.slane %v3271_v23, 1 }
 0x2da   : > { %v3286_v15 = vrot.slane %v3285_v20, 4  ;;  %v3020_v49 = vmul.f32 %v3801_v10, %v3004_v37  ;;  %v3050_v29 = vmul.f32 %v3799_v59, %v3034_v54  ;;  %v3341_v31 = vunpack.c.0.s8 %v3340_v9 }
 0x2db   : > { %v3273_v62 = vadd.f32 %v3272_v25, %v3271_v23 }
 0x2dc   : > { %v3287_v11 = vadd.f32 %v3286_v15, %v3285_v20  ;;  %v3036_v51 = vadd.f32 0.2548296, %v3020_v49  ;;  %v3130_v5 = vmul.f32 %v3803_v18, %v3050_v29  ;;  %v3344_v15 = vsub.s32 %v3341_v31, %v3312_v52 }
 0x2dd   : > { %v3301_v1 = vadd.f32 %v3273_v62, %v5466_v41 }
 0x2de   : > { %v3288_v24 = vrot.slane %v3287_v11, 2  ;;  %v3052_v26 = vmul.f32 %v3801_v10, %v3036_v51  ;;  %v3146_v61 = vsub.f32 1.0, %v3130_v5 }
 0x2e0   : > { %v3289_v19 = vadd.f32 %v3288_v24, %v3287_v11  ;;  %v3132_v48 = vmul.f32 %v3805_v8, %v3052_v26  ;;  %v3178_v42 = vsub.f32 0.0, %v3146_v61 }
 0x2e2   : > { %v3290_v44 = vrot.slane %v3289_v19, 1  ;;  %v3148_v46 = vsub.f32 1.0, %v3132_v48  ;;  %v3194_v55 = vsel %vm3162_vm15, %v3146_v61, %v3178_v42 }
 0x2e3   : > { %v3210_v60 = vadd.f32 1.0, %v3194_v55 }
 0x2e4   : > { %v3291_v59 = vadd.f32 %v3290_v44, %v3289_v19  ;;  %v3180_v17 = vsub.f32 0.0, %v3148_v46 }
 0x2e5   : > { %v3226_v10 = vmul.f32 %v3210_v60, %v2810_v38 }
 0x2e6   : > { %v3303_v41 = vadd.f32 %v3291_v59, %v5503_v4  ;;  %v3196_v14 = vsel %vm3164_vm0, %v3148_v46, %v3180_v17  ;;  %v3313_v4 = vsub.s32 0, %v3312_v52 }
 0x2e7   : > { %v3212_v50 = vadd.f32 1.0, %v3196_v14  ;;  %v3262_v2 = vmul.f32 %v5766_v47, %v3226_v10 }
 0x2e8   : > { %v3314_v58 = vrot.slane %v3309_v30, %v3313_v4  ;;  %v3328_v33 = vrot.slane %v3323_v27, %v3313_v4 }
 0x2e9   : > { %v3228_v36 = vmul.f32 %v3212_v50, %v2812_v22  ;;  %v3276_v57 = vadd.f32 %v5760_v35, %v3262_v2 }
 0x2ea   : > { %v3315_v6 = vadd.f32 %v3314_v58, %v3301_v1  ;;  %v3317_v12 = vadd.f32 %v3314_v58, %v3303_v41 }
 0x2eb   : > { %v3264_v45 = vmul.f32 %v5766_v47, %v3228_v36  ;;  %v3277_v32 = vrot.slane %v3276_v57, 4 }
 0x2ec   : > { %v3329_v20 = vmul.f32 %v3328_v33, %v3315_v6  ;;  %v3331_v49 = vmul.f32 %v3328_v33, %v3317_v12 }
 0x2ed   : > { %v3294_v34 = vadd.f32 %v5762_v16, %v3264_v45  ;;  %v3278_v56 = vadd.f32 %v3277_v32, %v3276_v57 }
 0x2ef   : > { %v3295_v3 = vrot.slane %v3294_v34, 4  ;;  %v3279_v0 = vrot.slane %v3278_v56, 2 }
 0x2f1   : > { %v3296_v7 = vadd.f32 %v3295_v3, %v3294_v34  ;;  %v3280_v43 = vadd.f32 %v3279_v0, %v3278_v56 }
 0x2f3   : > { %v3297_v21 = vrot.slane %v3296_v7, 2  ;;  %v3281_v39 = vrot.slane %v3280_v43, 1 }
 0x2f5   : > { %v3298_v35 = vadd.f32 %v3297_v21, %v3296_v7  ;;  %v3282_v47 = vadd.f32 %v3281_v39, %v3280_v43 }
 0x2f7   : > { %v3299_v28 = vrot.slane %v3298_v35, 1  ;;  %v3302_v16 = vadd.f32 %v3282_v47, %v5528_v13 }
 0x2f9   : > { %v3300_v23 = vadd.f32 %v3299_v28, %v3298_v35  ;;  %v3316_v37 = vadd.f32 %v3314_v58, %v3302_v16 }
 0x2fb   : > { %v3304_v54 = vadd.f32 %v3300_v23, %v5559_v63  ;;  %v3330_v25 = vmul.f32 %v3328_v33, %v3316_v37 }
 0x2fd   : > { %v3318_v29 = vadd.f32 %v3314_v58, %v3304_v54  ;;  %v3337_v18 = vcombine.low %v3329_v20, %v3330_v25 }
 0x2ff   : > { %v3332_v62 = vmul.f32 %v3328_v33, %v3318_v29  ;;  %v3345_v11 = vrot.slane %v3337_v18, %v3344_v15 }
 0x301   : > { %v3338_v51 = vcombine.low %v3331_v49, %v3332_v62 }
 0x303   : > { %v3352_v5 = vrot.slane %v3338_v51, %v3344_v15 }
 0x305   : > { %v3353_v1 = vcombine.low %v3345_v11, %v3352_v5 }
 0x307   : > { %v3360_v13 = vrot.slane %v3353_v1, %v3344_v15 }
 0x309   : > { %3366 = vst.msk [vmem:[%s366_s15] sm:$0xf] %vm3364_vm1, %v3360_v13 }
 0x30a PF: > { %s19_s28 = sadd.s32 1, %s3828_s28   ;;  %s5900_s26 = smov %s3824_s27 }
 0x30b   : > { %p16_p5 = scmp.ge.s32.totalorder %s19_s28, 4   ;;  %s5901_s27 = smov %s5903_s5 }
 0x30d   :  { %18 = sbr.rel (!%p16_p5) target bundleno = 3 (0x3), region = 84 }

</bundles_post_ra>
